<compile_context>
chip_gen: v7x
topology: tpu7x:2x2x1
jax: 0.10.0
libtpu: 0.0.40
codegen_flags: <defaults>
</compile_context>

<pallas_src>
import functools

import numpy as np

import jax
import jax.numpy as jnp
from jax import lax
from jax.experimental import pallas as pl
from jax.experimental.pallas import tpu as pltpu


# --------------------------- constant helpers --------------------------------

def _im2col(x_nhwc, stride):
    """3x3, padding=1 im2col (first layer only).  Returns (N, Hout*Wout, 9*Cin)
    with feature order (kh, kw, cin), matching the flattened weight layout."""
    n, h, w, cin = x_nhwc.shape
    kh = kw = 3
    hout = (h + 2 - kh) // stride + 1
    wout = (w + 2 - kw) // stride + 1
    xp = jnp.pad(x_nhwc, ((0, 0), (1, 1), (1, 1), (0, 0)))
    cols = []
    for i in range(kh):
        for j in range(kw):
            cols.append(xp[:, i:i + stride * (hout - 1) + 1:stride,
                            j:j + stride * (wout - 1) + 1:stride, :])
    patches = jnp.concatenate(cols, axis=-1)
    return patches.reshape(n, hout * wout, kh * kw * cin), hout, wout


def _make_selection(h_in, w_in, stride):
    """Constant 0/1 gather matrix for a 3x3, pad=1 conv read pattern.

    Shape (9*m_blk, h_in*w_in).  Row t*m_blk + m holds a one-hot selector for
    the input pixel read by kernel tap t = i*3+j at output position m
    (row-major (ho, wo)).  All-zero rows encode both the conv zero padding and
    the sublane-alignment padding (m_blk = m_out rounded up to 8)."""
    h_out = (h_in + 2 - 3) // stride + 1
    w_out = (w_in + 2 - 3) // stride + 1
    m_out = h_out * w_out
    m_blk = ((m_out + 7) // 8) * 8
    sel = np.zeros((9 * m_blk, h_in * w_in), np.float32)
    for i in range(3):
        for j in range(3):
            t = i * 3 + j
            for ho in range(h_out):
                for wo in range(w_out):
                    hh = stride * ho + i - 1
                    ww = stride * wo + j - 1
                    if 0 <= hh < h_in and 0 <= ww < w_in:
                        sel[t * m_blk + ho * w_out + wo, hh * w_in + ww] = 1.0
    return sel, h_out, w_out, m_out, m_blk


def _prep_conv(w_oihw, bias, pad_cout_to=None):
    """(Cout, Cin, 3, 3) -> per-tap (9, Cin, Cout) bf16 weights + (1, Cout) f32 bias."""
    cout, cin = int(w_oihw.shape[0]), int(w_oihw.shape[1])
    if pad_cout_to is not None and cout < pad_cout_to:
        w_oihw = jnp.pad(w_oihw, ((0, pad_cout_to - cout), (0, 0), (0, 0), (0, 0)))
        bias = jnp.pad(bias, ((0, pad_cout_to - cout),))
        cout = pad_cout_to
    w_taps = jnp.transpose(w_oihw, (2, 3, 1, 0)).reshape(9, cin, cout)
    return w_taps.astype(jnp.bfloat16), bias.reshape(1, cout).astype(jnp.float32)


# ----------------------------- Pallas kernel ---------------------------------

def _discriminator_kernel(patch_ref, w1_ref, b1_ref,
                          sel2_ref, w2_ref, b2_ref,
                          sel3_ref, w3_ref, b3_ref,
                          sel4_ref, w4_ref, b4_ref,
                          sel5_ref, w5_ref, b5_ref,
                          out_ref, *, block_meta, negative_slope, eps):
    """Whole Discriminator forward for ONE image (one grid step).

    patch_ref : (1, M1, 9*Cin)  bf16  layer-1 im2col patches
    w1_ref    : (9*Cin, 64)     bf16  layer-1 weights (flattened taps)
    selL_ref  : (9*m_blk, M_in) bf16  constant gather matrix for layer L
    wL_ref    : (9, Cin, Cout)  bf16  per-tap weights for layer L
    bL_ref    : (1, Cout)       f32   bias
    out_ref   : (1, M5, 128)    f32   head output (channel 0 is the real one)
    """

    def leaky(v):
        return jnp.where(v >= 0.0, v, negative_slope * v)

    def inorm(v):  # per-image, per-channel, biased variance (InstanceNorm2d)
        mu = jnp.mean(v, axis=0, keepdims=True)
        var = jnp.mean(jnp.square(v - mu), axis=0, keepdims=True)
        return (v - mu) * lax.rsqrt(var + eps)

    def conv(sel_ref, w_ref, b_ref, x, m_out, m_blk):
        # Gather all 9 taps' input pixels with one MXU matmul, then accumulate
        # one small weight matmul per tap.  All slices are sublane-aligned.
        p = jnp.dot(sel_ref[...], x, preferred_element_type=jnp.float32)
        acc = jnp.zeros((m_blk, w_ref.shape[2]), jnp.float32)
        for t in range(9):
            lhs = p[t * m_blk:(t + 1) * m_blk, :].astype(jnp.bfloat16)
            acc = acc + jnp.dot(lhs, w_ref[t],
                                preferred_element_type=jnp.float32)
        return acc[:m_out, :] + b_ref[...]

    # ---- layer 1: conv(3->64, s=2) + bias + LeakyReLU (no norm) ----
    x = jnp.dot(patch_ref[0], w1_ref[...], preferred_element_type=jnp.float32)
    x = leaky(x + b1_ref[...]).astype(jnp.bfloat16)          # (M1, 64)

    layer_refs = ((sel2_ref, w2_ref, b2_ref),
                  (sel3_ref, w3_ref, b3_ref),
                  (sel4_ref, w4_ref, b4_ref),
                  (sel5_ref, w5_ref, b5_ref))
    num_layers = len(layer_refs)
    for idx in range(num_layers):
        sref, wref, bref = layer_refs[idx]
        m_out, m_blk = block_meta[idx]
        y = conv(sref, wref, bref, x, m_out, m_blk)
        if idx < num_layers - 1:
            # conv -> LeakyReLU -> InstanceNorm (bias NOT cancellable: the
            # nonlinearity sits between the conv and the norm).
            x = inorm(leaky(y)).astype(jnp.bfloat16)
        else:
            # head: plain conv, f32 lane-dense store
            out_ref[0] = y.astype(out_ref.dtype)


# ------------------------------ forward wrapper -------------------------------

def discriminator_forward(params, img_nchw):
    """block(c,64,no-norm) -> block(64,128) -> block(128,256) -> block(256,512)
    -> Conv2d(512,1,3,1,1), all fused in one pallas_call (grid over batch)."""
    n, cin_img, h, w = img_nchw.shape
    assert h % 16 == 0 and w % 16 == 0, (h, w)

    x_nhwc = jnp.transpose(img_nchw, (0, 2, 3, 1)).astype(jnp.bfloat16)
    patches, h_cur, w_cur = _im2col(x_nhwc, stride=2)          # (n, M1, 9*Cin)
    m1, k1 = patches.shape[1], patches.shape[2]

    # layer 1 weights as a single flattened matrix
    w1_mat = jnp.transpose(params[0][0], (2, 3, 1, 0)).reshape(k1, -1)
    w1_mat = w1_mat.astype(jnp.bfloat16)
    b1_row = params[0][1].reshape(1, -1).astype(jnp.float32)

    # inner layers: constant gather matrices + per-tap weights
    sels, wts, bss, metas = [], [], [], []
    strides = (2, 2, 2, 1)
    pad_to = (None, None, None, 128)   # pad the 512->1 head to 128 lanes
    for li in range(1, 5):
        sel_np, h_out, w_out, m_out, m_blk = _make_selection(
            h_cur, w_cur, strides[li - 1])
        wt, br = _prep_conv(params[li][0], params[li][1],
                            pad_cout_to=pad_to[li - 1])
        sels.append(jnp.asarray(sel_np, jnp.bfloat16))
        wts.append(wt)
        bss.append(br)
        metas.append((m_out, m_blk))
        h_cur, w_cur = h_out, w_out
    m5 = metas[-1][0]

    kernel = functools.partial(_discriminator_kernel,
                               block_meta=tuple(metas),
                               negative_slope=0.2, eps=1e-5)

    def _const2(i):
        return (0, 0)

    def _const3(i):
        return (0, 0, 0)

    in_specs = [pl.BlockSpec((1, m1, k1), lambda i: (i, 0, 0)),   # patches
                pl.BlockSpec(w1_mat.shape, _const2),
                pl.BlockSpec(b1_row.shape, _const2)]
    operands = [patches, w1_mat, b1_row]
    for sel, wt, br in zip(sels, wts, bss):
        in_specs += [pl.BlockSpec(sel.shape, _const2),
                     pl.BlockSpec(wt.shape, _const3),
                     pl.BlockSpec(br.shape, _const2)]
        operands += [sel, wt, br]

    out = pl.pallas_call(
        kernel,
        out_shape=jax.ShapeDtypeStruct((n, m5, 128), jnp.float32),
        grid=(n,),
        in_specs=in_specs,
        out_specs=pl.BlockSpec((1, m5, 128), lambda i: (i, 0, 0)),
        compiler_params=pltpu.CompilerParams(
            dimension_semantics=("parallel",),      # one image per TC on v7x
            vmem_limit_bytes=32 * 1024 * 1024,      # ~10 MB actually needed
        ),
    )(*operands)

    validity = out[:, :, 0].reshape(n, h_cur, w_cur)
    return validity[:, None, :, :]                 # NCHW (n, 1, H/16, W/16)


# ------------------------------ init & reference ------------------------------

def init_params(key, channels):
    """PyTorch Conv2d default init U(-1/sqrt(fan_in), 1/sqrt(fan_in))."""
    dims = [(channels, 64), (64, 128), (128, 256), (256, 512), (512, 1)]
    params = []
    for cin, cout in dims:
        key, wk, bk = jax.random.split(key, 3)
        bound = 1.0 / float(cin * 9) ** 0.5
        wgt = jax.random.uniform(wk, (cout, cin, 3, 3), jnp.float32, -bound, bound)
        b = jax.random.uniform(bk, (cout,), jnp.float32, -bound, bound)
        params.append((wgt, b))
    return params


def _reference_forward(params, img):
    """Pure-JAX f32 reference of the PyTorch Discriminator forward."""
    x = img
    for li, (wgt, b) in enumerate(params):
        stride = 2 if li < 4 else 1
        x = lax.conv_general_dilated(
            x, wgt, window_strides=(stride, stride),
            padding=((1, 1), (1, 1)),
            dimension_numbers=("NCHW", "OIHW", "NCHW"))
        x = x + b.reshape(1, -1, 1, 1)
        if li < 4:
            x = jnp.where(x >= 0, x, 0.2 * x)
            if li >= 1:
                mu = jnp.mean(x, axis=(2, 3), keepdims=True)
                var = jnp.mean((x - mu) ** 2, axis=(2, 3), keepdims=True)
                x = (x - mu) * lax.rsqrt(var + 1e-5)
    return x


if __name__ == "__main__":
    key = jax.random.PRNGKey(0)
    pkey, xkey = jax.random.split(key)

    channels, img_size, batch = 3, 32, 2
    params = init_params(pkey, channels)
    img = jax.random.normal(xkey, (batch, channels, img_size, img_size),
                            jnp.float32)

    fwd = jax.jit(discriminator_forward)
    validity = fwd(params, img)
    jax.block_until_ready(validity)

    # 4 stride-2 convs: 32 -> 16 -> 8 -> 4 -> 2, then the 1-channel head.
    assert validity.shape == (batch, 1, img_size // 16, img_size // 16), \
        validity.shape
    assert validity.dtype == jnp.float32
    assert bool(jnp.all(jnp.isfinite(validity)))

    # Loose check against a pure-JAX f32 reference (kernel uses bf16 MXU inputs).
    ref = jax.jit(_reference_forward)(params, img)
    rel_err = float(jnp.linalg.norm(validity - ref) /
                    (jnp.linalg.norm(ref) + 1e-6))
    assert rel_err < 0.15, rel_err

    print("KERNEL_OK")
</pallas_src>

<mosaic_0001>
module attributes {stable_mosaic.version = 11 : i64} {
  func.func @_discriminator_kernel(%arg0: i32, %arg1: memref<1x256x27xbf16, #tpu.memory_space<vmem>>, %arg2: memref<27x64xbf16, #tpu.memory_space<vmem>>, %arg3: memref<1x64xf32, #tpu.memory_space<vmem>>, %arg4: memref<576x256xbf16, #tpu.memory_space<vmem>>, %arg5: memref<9x64x128xbf16, #tpu.memory_space<vmem>>, %arg6: memref<1x128xf32, #tpu.memory_space<vmem>>, %arg7: memref<144x64xbf16, #tpu.memory_space<vmem>>, %arg8: memref<9x128x256xbf16, #tpu.memory_space<vmem>>, %arg9: memref<1x256xf32, #tpu.memory_space<vmem>>, %arg10: memref<72x16xbf16, #tpu.memory_space<vmem>>, %arg11: memref<9x256x512xbf16, #tpu.memory_space<vmem>>, %arg12: memref<1x512xf32, #tpu.memory_space<vmem>>, %arg13: memref<72x4xbf16, #tpu.memory_space<vmem>>, %arg14: memref<9x512x128xbf16, #tpu.memory_space<vmem>>, %arg15: memref<1x128xf32, #tpu.memory_space<vmem>>, %arg16: memref<1x4x128xf32, #tpu.memory_space<vmem>>) attributes {dimension_semantics = [#tpu.dimension_semantics<parallel>], iteration_bounds = array<i64: 2>, scalar_prefetch = 0 : i64, scratch_operands = 0 : i64, tpu.core_type = #tpu.core_type<tc>, window_params = [{transform_indices = @transform_0, window_bounds = array<i64: 1, 256, 27>}, {pipeline_mode = #tpu.pipeline_mode<synchronous>, transform_indices = @transform_1, window_bounds = array<i64: 27, 64>}, {pipeline_mode = #tpu.pipeline_mode<synchronous>, transform_indices = @transform_2, window_bounds = array<i64: 1, 64>}, {pipeline_mode = #tpu.pipeline_mode<synchronous>, transform_indices = @transform_3, window_bounds = array<i64: 576, 256>}, {pipeline_mode = #tpu.pipeline_mode<synchronous>, transform_indices = @transform_4, window_bounds = array<i64: 9, 64, 128>}, {pipeline_mode = #tpu.pipeline_mode<synchronous>, transform_indices = @transform_5, window_bounds = array<i64: 1, 128>}, {pipeline_mode = #tpu.pipeline_mode<synchronous>, transform_indices = @transform_6, window_bounds = array<i64: 144, 64>}, {pipeline_mode = #tpu.pipeline_mode<synchronous>, transform_indices = @transform_7, window_bounds = array<i64: 9, 128, 256>}, {pipeline_mode = #tpu.pipeline_mode<synchronous>, transform_indices = @transform_8, window_bounds = array<i64: 1, 256>}, {pipeline_mode = #tpu.pipeline_mode<synchronous>, transform_indices = @transform_9, window_bounds = array<i64: 72, 16>}, {pipeline_mode = #tpu.pipeline_mode<synchronous>, transform_indices = @transform_10, window_bounds = array<i64: 9, 256, 512>}, {pipeline_mode = #tpu.pipeline_mode<synchronous>, transform_indices = @transform_11, window_bounds = array<i64: 1, 512>}, {pipeline_mode = #tpu.pipeline_mode<synchronous>, transform_indices = @transform_12, window_bounds = array<i64: 72, 4>}, {pipeline_mode = #tpu.pipeline_mode<synchronous>, transform_indices = @transform_13, window_bounds = array<i64: 9, 512, 128>}, {pipeline_mode = #tpu.pipeline_mode<synchronous>, transform_indices = @transform_14, window_bounds = array<i64: 1, 128>}, {transform_indices = @transform_15, window_bounds = array<i64: 1, 4, 128>}]} {
    %c0 = arith.constant 0 : index
    %c0_0 = arith.constant 0 : index
    %c0_1 = arith.constant 0 : index
    %0 = vector.load %arg1[%c0, %c0_0, %c0_1] : memref<1x256x27xbf16, #tpu.memory_space<vmem>>, vector<1x256x27xbf16>
    %1 = vector.shape_cast %0 : vector<1x256x27xbf16> to vector<256x27xbf16>
    %c0_2 = arith.constant 0 : index
    %c0_3 = arith.constant 0 : index
    %2 = vector.load %arg2[%c0_2, %c0_3] : memref<27x64xbf16, #tpu.memory_space<vmem>>, vector<27x64xbf16>
    %cst = arith.constant dense<0.000000e+00> : vector<256x64xf32>
    %3 = tpu.matmul %1, %2, %cst {dimension_numbers = #tpu.dot_dimension_numbers<[1], [0], [0], [1], [0, 0, 1, 1], [], []>} : vector<256x27xbf16>, vector<27x64xbf16>, vector<256x64xf32> -> vector<256x64xf32>
    %c0_4 = arith.constant 0 : index
    %c0_5 = arith.constant 0 : index
    %4 = vector.load %arg3[%c0_4, %c0_5] : memref<1x64xf32, #tpu.memory_space<vmem>>, vector<1x64xf32>
    %5 = vector.broadcast %4 : vector<1x64xf32> to vector<256x64xf32>
    %6 = arith.addf %3, %5 : vector<256x64xf32>
    %cst_6 = arith.constant 0.000000e+00 : f32
    %7 = vector.broadcast %cst_6 : f32 to vector<256x64xf32>
    %8 = arith.cmpf oge, %6, %7 : vector<256x64xf32>
    %cst_7 = arith.constant 2.000000e-01 : f32
    %9 = vector.broadcast %cst_7 : f32 to vector<256x64xf32>
    %10 = arith.mulf %9, %6 : vector<256x64xf32>
    %11 = arith.select %8, %6, %10 : vector<256x64xi1>, vector<256x64xf32>
    %12 = arith.truncf %11 : vector<256x64xf32> to vector<256x64xbf16>
    %c0_8 = arith.constant 0 : index
    %c0_9 = arith.constant 0 : index
    %13 = vector.load %arg4[%c0_8, %c0_9] : memref<576x256xbf16, #tpu.memory_space<vmem>>, vector<576x256xbf16>
    %cst_10 = arith.constant dense<0.000000e+00> : vector<576x64xf32>
    %14 = tpu.matmul %13, %12, %cst_10 {dimension_numbers = #tpu.dot_dimension_numbers<[1], [0], [0], [1], [0, 0, 1, 1], [], []>} : vector<576x256xbf16>, vector<256x64xbf16>, vector<576x64xf32> -> vector<576x64xf32>
    %cst_11 = arith.constant 0.000000e+00 : f32
    %15 = vector.broadcast %cst_11 : f32 to vector<64x128xf32>
    %16 = vector.extract_strided_slice %14 {offsets = [0, 0], sizes = [64, 64], strides = [1, 1]} : vector<576x64xf32> to vector<64x64xf32>
    %17 = arith.truncf %16 : vector<64x64xf32> to vector<64x64xbf16>
    %c0_12 = arith.constant 0 : index
    %c0_13 = arith.constant 0 : index
    %c0_14 = arith.constant 0 : index
    %18 = vector.load %arg5[%c0_12, %c0_13, %c0_14] : memref<9x64x128xbf16, #tpu.memory_space<vmem>>, vector<1x64x128xbf16>
    %19 = vector.shape_cast %18 : vector<1x64x128xbf16> to vector<64x128xbf16>
    %cst_15 = arith.constant dense<0.000000e+00> : vector<64x128xf32>
    %20 = tpu.matmul %17, %19, %cst_15 {dimension_numbers = #tpu.dot_dimension_numbers<[1], [0], [0], [1], [0, 0, 1, 1], [], []>} : vector<64x64xbf16>, vector<64x128xbf16>, vector<64x128xf32> -> vector<64x128xf32>
    %21 = arith.addf %15, %20 : vector<64x128xf32>
    %22 = vector.extract_strided_slice %14 {offsets = [64, 0], sizes = [64, 64], strides = [1, 1]} : vector<576x64xf32> to vector<64x64xf32>
    %23 = arith.truncf %22 : vector<64x64xf32> to vector<64x64xbf16>
    %c1 = arith.constant 1 : index
    %c0_16 = arith.constant 0 : index
    %c0_17 = arith.constant 0 : index
    %24 = vector.load %arg5[%c1, %c0_16, %c0_17] : memref<9x64x128xbf16, #tpu.memory_space<vmem>>, vector<1x64x128xbf16>
    %25 = vector.shape_cast %24 : vector<1x64x128xbf16> to vector<64x128xbf16>
    %cst_18 = arith.constant dense<0.000000e+00> : vector<64x128xf32>
    %26 = tpu.matmul %23, %25, %cst_18 {dimension_numbers = #tpu.dot_dimension_numbers<[1], [0], [0], [1], [0, 0, 1, 1], [], []>} : vector<64x64xbf16>, vector<64x128xbf16>, vector<64x128xf32> -> vector<64x128xf32>
    %27 = arith.addf %21, %26 : vector<64x128xf32>
    %28 = vector.extract_strided_slice %14 {offsets = [128, 0], sizes = [64, 64], strides = [1, 1]} : vector<576x64xf32> to vector<64x64xf32>
    %29 = arith.truncf %28 : vector<64x64xf32> to vector<64x64xbf16>
    %c2 = arith.constant 2 : index
    %c0_19 = arith.constant 0 : index
    %c0_20 = arith.constant 0 : index
    %30 = vector.load %arg5[%c2, %c0_19, %c0_20] : memref<9x64x128xbf16, #tpu.memory_space<vmem>>, vector<1x64x128xbf16>
    %31 = vector.shape_cast %30 : vector<1x64x128xbf16> to vector<64x128xbf16>
    %cst_21 = arith.constant dense<0.000000e+00> : vector<64x128xf32>
    %32 = tpu.matmul %29, %31, %cst_21 {dimension_numbers = #tpu.dot_dimension_numbers<[1], [0], [0], [1], [0, 0, 1, 1], [], []>} : vector<64x64xbf16>, vector<64x128xbf16>, vector<64x128xf32> -> vector<64x128xf32>
    %33 = arith.addf %27, %32 : vector<64x128xf32>
    %34 = vector.extract_strided_slice %14 {offsets = [192, 0], sizes = [64, 64], strides = [1, 1]} : vector<576x64xf32> to vector<64x64xf32>
    %35 = arith.truncf %34 : vector<64x64xf32> to vector<64x64xbf16>
    %c3 = arith.constant 3 : index
    %c0_22 = arith.constant 0 : index
    %c0_23 = arith.constant 0 : index
    %36 = vector.load %arg5[%c3, %c0_22, %c0_23] : memref<9x64x128xbf16, #tpu.memory_space<vmem>>, vector<1x64x128xbf16>
    %37 = vector.shape_cast %36 : vector<1x64x128xbf16> to vector<64x128xbf16>
    %cst_24 = arith.constant dense<0.000000e+00> : vector<64x128xf32>
    %38 = tpu.matmul %35, %37, %cst_24 {dimension_numbers = #tpu.dot_dimension_numbers<[1], [0], [0], [1], [0, 0, 1, 1], [], []>} : vector<64x64xbf16>, vector<64x128xbf16>, vector<64x128xf32> -> vector<64x128xf32>
    %39 = arith.addf %33, %38 : vector<64x128xf32>
    %40 = vector.extract_strided_slice %14 {offsets = [256, 0], sizes = [64, 64], strides = [1, 1]} : vector<576x64xf32> to vector<64x64xf32>
    %41 = arith.truncf %40 : vector<64x64xf32> to vector<64x64xbf16>
    %c4 = arith.constant 4 : index
    %c0_25 = arith.constant 0 : index
    %c0_26 = arith.constant 0 : index
    %42 = vector.load %arg5[%c4, %c0_25, %c0_26] : memref<9x64x128xbf16, #tpu.memory_space<vmem>>, vector<1x64x128xbf16>
    %43 = vector.shape_cast %42 : vector<1x64x128xbf16> to vector<64x128xbf16>
    %cst_27 = arith.constant dense<0.000000e+00> : vector<64x128xf32>
    %44 = tpu.matmul %41, %43, %cst_27 {dimension_numbers = #tpu.dot_dimension_numbers<[1], [0], [0], [1], [0, 0, 1, 1], [], []>} : vector<64x64xbf16>, vector<64x128xbf16>, vector<64x128xf32> -> vector<64x128xf32>
    %45 = arith.addf %39, %44 : vector<64x128xf32>
    %46 = vector.extract_strided_slice %14 {offsets = [320, 0], sizes = [64, 64], strides = [1, 1]} : vector<576x64xf32> to vector<64x64xf32>
    %47 = arith.truncf %46 : vector<64x64xf32> to vector<64x64xbf16>
    %c5 = arith.constant 5 : index
    %c0_28 = arith.constant 0 : index
    %c0_29 = arith.constant 0 : index
    %48 = vector.load %arg5[%c5, %c0_28, %c0_29] : memref<9x64x128xbf16, #tpu.memory_space<vmem>>, vector<1x64x128xbf16>
    %49 = vector.shape_cast %48 : vector<1x64x128xbf16> to vector<64x128xbf16>
    %cst_30 = arith.constant dense<0.000000e+00> : vector<64x128xf32>
    %50 = tpu.matmul %47, %49, %cst_30 {dimension_numbers = #tpu.dot_dimension_numbers<[1], [0], [0], [1], [0, 0, 1, 1], [], []>} : vector<64x64xbf16>, vector<64x128xbf16>, vector<64x128xf32> -> vector<64x128xf32>
    %51 = arith.addf %45, %50 : vector<64x128xf32>
    %52 = vector.extract_strided_slice %14 {offsets = [384, 0], sizes = [64, 64], strides = [1, 1]} : vector<576x64xf32> to vector<64x64xf32>
    %53 = arith.truncf %52 : vector<64x64xf32> to vector<64x64xbf16>
    %c6 = arith.constant 6 : index
    %c0_31 = arith.constant 0 : index
    %c0_32 = arith.constant 0 : index
    %54 = vector.load %arg5[%c6, %c0_31, %c0_32] : memref<9x64x128xbf16, #tpu.memory_space<vmem>>, vector<1x64x128xbf16>
    %55 = vector.shape_cast %54 : vector<1x64x128xbf16> to vector<64x128xbf16>
    %cst_33 = arith.constant dense<0.000000e+00> : vector<64x128xf32>
    %56 = tpu.matmul %53, %55, %cst_33 {dimension_numbers = #tpu.dot_dimension_numbers<[1], [0], [0], [1], [0, 0, 1, 1], [], []>} : vector<64x64xbf16>, vector<64x128xbf16>, vector<64x128xf32> -> vector<64x128xf32>
    %57 = arith.addf %51, %56 : vector<64x128xf32>
    %58 = vector.extract_strided_slice %14 {offsets = [448, 0], sizes = [64, 64], strides = [1, 1]} : vector<576x64xf32> to vector<64x64xf32>
    %59 = arith.truncf %58 : vector<64x64xf32> to vector<64x64xbf16>
    %c7 = arith.constant 7 : index
    %c0_34 = arith.constant 0 : index
    %c0_35 = arith.constant 0 : index
    %60 = vector.load %arg5[%c7, %c0_34, %c0_35] : memref<9x64x128xbf16, #tpu.memory_space<vmem>>, vector<1x64x128xbf16>
    %61 = vector.shape_cast %60 : vector<1x64x128xbf16> to vector<64x128xbf16>
    %cst_36 = arith.constant dense<0.000000e+00> : vector<64x128xf32>
    %62 = tpu.matmul %59, %61, %cst_36 {dimension_numbers = #tpu.dot_dimension_numbers<[1], [0], [0], [1], [0, 0, 1, 1], [], []>} : vector<64x64xbf16>, vector<64x128xbf16>, vector<64x128xf32> -> vector<64x128xf32>
    %63 = arith.addf %57, %62 : vector<64x128xf32>
    %64 = vector.extract_strided_slice %14 {offsets = [512, 0], sizes = [64, 64], strides = [1, 1]} : vector<576x64xf32> to vector<64x64xf32>
    %65 = arith.truncf %64 : vector<64x64xf32> to vector<64x64xbf16>
    %c8 = arith.constant 8 : index
    %c0_37 = arith.constant 0 : index
    %c0_38 = arith.constant 0 : index
    %66 = vector.load %arg5[%c8, %c0_37, %c0_38] : memref<9x64x128xbf16, #tpu.memory_space<vmem>>, vector<1x64x128xbf16>
    %67 = vector.shape_cast %66 : vector<1x64x128xbf16> to vector<64x128xbf16>
    %cst_39 = arith.constant dense<0.000000e+00> : vector<64x128xf32>
    %68 = tpu.matmul %65, %67, %cst_39 {dimension_numbers = #tpu.dot_dimension_numbers<[1], [0], [0], [1], [0, 0, 1, 1], [], []>} : vector<64x64xbf16>, vector<64x128xbf16>, vector<64x128xf32> -> vector<64x128xf32>
    %69 = arith.addf %63, %68 : vector<64x128xf32>
    %c0_40 = arith.constant 0 : index
    %c0_41 = arith.constant 0 : index
    %70 = vector.load %arg6[%c0_40, %c0_41] : memref<1x128xf32, #tpu.memory_space<vmem>>, vector<1x128xf32>
    %71 = vector.broadcast %70 : vector<1x128xf32> to vector<64x128xf32>
    %72 = arith.addf %69, %71 : vector<64x128xf32>
    %cst_42 = arith.constant 0.000000e+00 : f32
    %73 = vector.broadcast %cst_42 : f32 to vector<64x128xf32>
    %74 = arith.cmpf oge, %72, %73 : vector<64x128xf32>
    %cst_43 = arith.constant 2.000000e-01 : f32
    %75 = vector.broadcast %cst_43 : f32 to vector<64x128xf32>
    %76 = arith.mulf %75, %72 : vector<64x128xf32>
    %77 = arith.select %74, %72, %76 : vector<64x128xi1>, vector<64x128xf32>
    %cst_44 = arith.constant dense<0.000000e+00> : vector<128xf32>
    %78 = vector.multi_reduction <add>, %77, %cst_44 [0] : vector<64x128xf32> to vector<128xf32>
    %79 = vector.shape_cast %78 : vector<128xf32> to vector<1x128xf32>
    %cst_45 = arith.constant 6.400000e+01 : f32
    %80 = vector.broadcast %cst_45 : f32 to vector<1x128xf32>
    %81 = arith.divf %79, %80 : vector<1x128xf32>
    %82 = vector.broadcast %81 : vector<1x128xf32> to vector<64x128xf32>
    %83 = arith.subf %77, %82 : vector<64x128xf32>
    %84 = arith.mulf %83, %83 : vector<64x128xf32>
    %cst_46 = arith.constant dense<0.000000e+00> : vector<128xf32>
    %85 = vector.multi_reduction <add>, %84, %cst_46 [0] : vector<64x128xf32> to vector<128xf32>
    %86 = vector.shape_cast %85 : vector<128xf32> to vector<1x128xf32>
    %cst_47 = arith.constant 6.400000e+01 : f32
    %87 = vector.broadcast %cst_47 : f32 to vector<1x128xf32>
    %88 = arith.divf %86, %87 : vector<1x128xf32>
    %89 = vector.broadcast %81 : vector<1x128xf32> to vector<64x128xf32>
    %90 = arith.subf %77, %89 : vector<64x128xf32>
    %cst_48 = arith.constant 9.99999974E-6 : f32
    %91 = vector.broadcast %cst_48 : f32 to vector<1x128xf32>
    %92 = arith.addf %88, %91 : vector<1x128xf32>
    %93 = math.rsqrt %92 : vector<1x128xf32>
    %94 = vector.broadcast %93 : vector<1x128xf32> to vector<64x128xf32>
    %95 = arith.mulf %90, %94 : vector<64x128xf32>
    %96 = arith.truncf %95 : vector<64x128xf32> to vector<64x128xbf16>
    %c0_49 = arith.constant 0 : index
    %c0_50 = arith.constant 0 : index
    %97 = vector.load %arg7[%c0_49, %c0_50] : memref<144x64xbf16, #tpu.memory_space<vmem>>, vector<144x64xbf16>
    %cst_51 = arith.constant dense<0.000000e+00> : vector<144x128xf32>
    %98 = tpu.matmul %97, %96, %cst_51 {dimension_numbers = #tpu.dot_dimension_numbers<[1], [0], [0], [1], [0, 0, 1, 1], [], []>} : vector<144x64xbf16>, vector<64x128xbf16>, vector<144x128xf32> -> vector<144x128xf32>
    %cst_52 = arith.constant 0.000000e+00 : f32
    %99 = vector.broadcast %cst_52 : f32 to vector<16x256xf32>
    %100 = vector.extract_strided_slice %98 {offsets = [0, 0], sizes = [16, 128], strides = [1, 1]} : vector<144x128xf32> to vector<16x128xf32>
    %101 = arith.truncf %100 : vector<16x128xf32> to vector<16x128xbf16>
    %c0_53 = arith.constant 0 : index
    %c0_54 = arith.constant 0 : index
    %c0_55 = arith.constant 0 : index
    %102 = vector.load %arg8[%c0_53, %c0_54, %c0_55] : memref<9x128x256xbf16, #tpu.memory_space<vmem>>, vector<1x128x256xbf16>
    %103 = vector.shape_cast %102 : vector<1x128x256xbf16> to vector<128x256xbf16>
    %cst_56 = arith.constant dense<0.000000e+00> : vector<16x256xf32>
    %104 = tpu.matmul %101, %103, %cst_56 {dimension_numbers = #tpu.dot_dimension_numbers<[1], [0], [0], [1], [0, 0, 1, 1], [], []>} : vector<16x128xbf16>, vector<128x256xbf16>, vector<16x256xf32> -> vector<16x256xf32>
    %105 = arith.addf %99, %104 : vector<16x256xf32>
    %106 = vector.extract_strided_slice %98 {offsets = [16, 0], sizes = [16, 128], strides = [1, 1]} : vector<144x128xf32> to vector<16x128xf32>
    %107 = arith.truncf %106 : vector<16x128xf32> to vector<16x128xbf16>
    %c1_57 = arith.constant 1 : index
    %c0_58 = arith.constant 0 : index
    %c0_59 = arith.constant 0 : index
    %108 = vector.load %arg8[%c1_57, %c0_58, %c0_59] : memref<9x128x256xbf16, #tpu.memory_space<vmem>>, vector<1x128x256xbf16>
    %109 = vector.shape_cast %108 : vector<1x128x256xbf16> to vector<128x256xbf16>
    %cst_60 = arith.constant dense<0.000000e+00> : vector<16x256xf32>
    %110 = tpu.matmul %107, %109, %cst_60 {dimension_numbers = #tpu.dot_dimension_numbers<[1], [0], [0], [1], [0, 0, 1, 1], [], []>} : vector<16x128xbf16>, vector<128x256xbf16>, vector<16x256xf32> -> vector<16x256xf32>
    %111 = arith.addf %105, %110 : vector<16x256xf32>
    %112 = vector.extract_strided_slice %98 {offsets = [32, 0], sizes = [16, 128], strides = [1, 1]} : vector<144x128xf32> to vector<16x128xf32>
    %113 = arith.truncf %112 : vector<16x128xf32> to vector<16x128xbf16>
    %c2_61 = arith.constant 2 : index
    %c0_62 = arith.constant 0 : index
    %c0_63 = arith.constant 0 : index
    %114 = vector.load %arg8[%c2_61, %c0_62, %c0_63] : memref<9x128x256xbf16, #tpu.memory_space<vmem>>, vector<1x128x256xbf16>
    %115 = vector.shape_cast %114 : vector<1x128x256xbf16> to vector<128x256xbf16>
    %cst_64 = arith.constant dense<0.000000e+00> : vector<16x256xf32>
    %116 = tpu.matmul %113, %115, %cst_64 {dimension_numbers = #tpu.dot_dimension_numbers<[1], [0], [0], [1], [0, 0, 1, 1], [], []>} : vector<16x128xbf16>, vector<128x256xbf16>, vector<16x256xf32> -> vector<16x256xf32>
    %117 = arith.addf %111, %116 : vector<16x256xf32>
    %118 = vector.extract_strided_slice %98 {offsets = [48, 0], sizes = [16, 128], strides = [1, 1]} : vector<144x128xf32> to vector<16x128xf32>
    %119 = arith.truncf %118 : vector<16x128xf32> to vector<16x128xbf16>
    %c3_65 = arith.constant 3 : index
    %c0_66 = arith.constant 0 : index
    %c0_67 = arith.constant 0 : index
    %120 = vector.load %arg8[%c3_65, %c0_66, %c0_67] : memref<9x128x256xbf16, #tpu.memory_space<vmem>>, vector<1x128x256xbf16>
    %121 = vector.shape_cast %120 : vector<1x128x256xbf16> to vector<128x256xbf16>
    %cst_68 = arith.constant dense<0.000000e+00> : vector<16x256xf32>
    %122 = tpu.matmul %119, %121, %cst_68 {dimension_numbers = #tpu.dot_dimension_numbers<[1], [0], [0], [1], [0, 0, 1, 1], [], []>} : vector<16x128xbf16>, vector<128x256xbf16>, vector<16x256xf32> -> vector<16x256xf32>
    %123 = arith.addf %117, %122 : vector<16x256xf32>
    %124 = vector.extract_strided_slice %98 {offsets = [64, 0], sizes = [16, 128], strides = [1, 1]} : vector<144x128xf32> to vector<16x128xf32>
    %125 = arith.truncf %124 : vector<16x128xf32> to vector<16x128xbf16>
    %c4_69 = arith.constant 4 : index
    %c0_70 = arith.constant 0 : index
    %c0_71 = arith.constant 0 : index
    %126 = vector.load %arg8[%c4_69, %c0_70, %c0_71] : memref<9x128x256xbf16, #tpu.memory_space<vmem>>, vector<1x128x256xbf16>
    %127 = vector.shape_cast %126 : vector<1x128x256xbf16> to vector<128x256xbf16>
    %cst_72 = arith.constant dense<0.000000e+00> : vector<16x256xf32>
    %128 = tpu.matmul %125, %127, %cst_72 {dimension_numbers = #tpu.dot_dimension_numbers<[1], [0], [0], [1], [0, 0, 1, 1], [], []>} : vector<16x128xbf16>, vector<128x256xbf16>, vector<16x256xf32> -> vector<16x256xf32>
    %129 = arith.addf %123, %128 : vector<16x256xf32>
    %130 = vector.extract_strided_slice %98 {offsets = [80, 0], sizes = [16, 128], strides = [1, 1]} : vector<144x128xf32> to vector<16x128xf32>
    %131 = arith.truncf %130 : vector<16x128xf32> to vector<16x128xbf16>
    %c5_73 = arith.constant 5 : index
    %c0_74 = arith.constant 0 : index
    %c0_75 = arith.constant 0 : index
    %132 = vector.load %arg8[%c5_73, %c0_74, %c0_75] : memref<9x128x256xbf16, #tpu.memory_space<vmem>>, vector<1x128x256xbf16>
    %133 = vector.shape_cast %132 : vector<1x128x256xbf16> to vector<128x256xbf16>
    %cst_76 = arith.constant dense<0.000000e+00> : vector<16x256xf32>
    %134 = tpu.matmul %131, %133, %cst_76 {dimension_numbers = #tpu.dot_dimension_numbers<[1], [0], [0], [1], [0, 0, 1, 1], [], []>} : vector<16x128xbf16>, vector<128x256xbf16>, vector<16x256xf32> -> vector<16x256xf32>
    %135 = arith.addf %129, %134 : vector<16x256xf32>
    %136 = vector.extract_strided_slice %98 {offsets = [96, 0], sizes = [16, 128], strides = [1, 1]} : vector<144x128xf32> to vector<16x128xf32>
    %137 = arith.truncf %136 : vector<16x128xf32> to vector<16x128xbf16>
    %c6_77 = arith.constant 6 : index
    %c0_78 = arith.constant 0 : index
    %c0_79 = arith.constant 0 : index
    %138 = vector.load %arg8[%c6_77, %c0_78, %c0_79] : memref<9x128x256xbf16, #tpu.memory_space<vmem>>, vector<1x128x256xbf16>
    %139 = vector.shape_cast %138 : vector<1x128x256xbf16> to vector<128x256xbf16>
    %cst_80 = arith.constant dense<0.000000e+00> : vector<16x256xf32>
    %140 = tpu.matmul %137, %139, %cst_80 {dimension_numbers = #tpu.dot_dimension_numbers<[1], [0], [0], [1], [0, 0, 1, 1], [], []>} : vector<16x128xbf16>, vector<128x256xbf16>, vector<16x256xf32> -> vector<16x256xf32>
    %141 = arith.addf %135, %140 : vector<16x256xf32>
    %142 = vector.extract_strided_slice %98 {offsets = [112, 0], sizes = [16, 128], strides = [1, 1]} : vector<144x128xf32> to vector<16x128xf32>
    %143 = arith.truncf %142 : vector<16x128xf32> to vector<16x128xbf16>
    %c7_81 = arith.constant 7 : index
    %c0_82 = arith.constant 0 : index
    %c0_83 = arith.constant 0 : index
    %144 = vector.load %arg8[%c7_81, %c0_82, %c0_83] : memref<9x128x256xbf16, #tpu.memory_space<vmem>>, vector<1x128x256xbf16>
    %145 = vector.shape_cast %144 : vector<1x128x256xbf16> to vector<128x256xbf16>
    %cst_84 = arith.constant dense<0.000000e+00> : vector<16x256xf32>
    %146 = tpu.matmul %143, %145, %cst_84 {dimension_numbers = #tpu.dot_dimension_numbers<[1], [0], [0], [1], [0, 0, 1, 1], [], []>} : vector<16x128xbf16>, vector<128x256xbf16>, vector<16x256xf32> -> vector<16x256xf32>
    %147 = arith.addf %141, %146 : vector<16x256xf32>
    %148 = vector.extract_strided_slice %98 {offsets = [128, 0], sizes = [16, 128], strides = [1, 1]} : vector<144x128xf32> to vector<16x128xf32>
    %149 = arith.truncf %148 : vector<16x128xf32> to vector<16x128xbf16>
    %c8_85 = arith.constant 8 : index
    %c0_86 = arith.constant 0 : index
    %c0_87 = arith.constant 0 : index
    %150 = vector.load %arg8[%c8_85, %c0_86, %c0_87] : memref<9x128x256xbf16, #tpu.memory_space<vmem>>, vector<1x128x256xbf16>
    %151 = vector.shape_cast %150 : vector<1x128x256xbf16> to vector<128x256xbf16>
    %cst_88 = arith.constant dense<0.000000e+00> : vector<16x256xf32>
    %152 = tpu.matmul %149, %151, %cst_88 {dimension_numbers = #tpu.dot_dimension_numbers<[1], [0], [0], [1], [0, 0, 1, 1], [], []>} : vector<16x128xbf16>, vector<128x256xbf16>, vector<16x256xf32> -> vector<16x256xf32>
    %153 = arith.addf %147, %152 : vector<16x256xf32>
    %c0_89 = arith.constant 0 : index
    %c0_90 = arith.constant 0 : index
    %154 = vector.load %arg9[%c0_89, %c0_90] : memref<1x256xf32, #tpu.memory_space<vmem>>, vector<1x256xf32>
    %155 = vector.broadcast %154 : vector<1x256xf32> to vector<16x256xf32>
    %156 = arith.addf %153, %155 : vector<16x256xf32>
    %cst_91 = arith.constant 0.000000e+00 : f32
    %157 = vector.broadcast %cst_91 : f32 to vector<16x256xf32>
    %158 = arith.cmpf oge, %156, %157 : vector<16x256xf32>
    %cst_92 = arith.constant 2.000000e-01 : f32
    %159 = vector.broadcast %cst_92 : f32 to vector<16x256xf32>
    %160 = arith.mulf %159, %156 : vector<16x256xf32>
    %161 = arith.select %158, %156, %160 : vector<16x256xi1>, vector<16x256xf32>
    %cst_93 = arith.constant dense<0.000000e+00> : vector<256xf32>
    %162 = vector.multi_reduction <add>, %161, %cst_93 [0] : vector<16x256xf32> to vector<256xf32>
    %163 = vector.shape_cast %162 : vector<256xf32> to vector<1x256xf32>
    %cst_94 = arith.constant 1.600000e+01 : f32
    %164 = vector.broadcast %cst_94 : f32 to vector<1x256xf32>
    %165 = arith.divf %163, %164 : vector<1x256xf32>
    %166 = vector.broadcast %165 : vector<1x256xf32> to vector<16x256xf32>
    %167 = arith.subf %161, %166 : vector<16x256xf32>
    %168 = arith.mulf %167, %167 : vector<16x256xf32>
    %cst_95 = arith.constant dense<0.000000e+00> : vector<256xf32>
    %169 = vector.multi_reduction <add>, %168, %cst_95 [0] : vector<16x256xf32> to vector<256xf32>
    %170 = vector.shape_cast %169 : vector<256xf32> to vector<1x256xf32>
    %cst_96 = arith.constant 1.600000e+01 : f32
    %171 = vector.broadcast %cst_96 : f32 to vector<1x256xf32>
    %172 = arith.divf %170, %171 : vector<1x256xf32>
    %173 = vector.broadcast %165 : vector<1x256xf32> to vector<16x256xf32>
    %174 = arith.subf %161, %173 : vector<16x256xf32>
    %cst_97 = arith.constant 9.99999974E-6 : f32
    %175 = vector.broadcast %cst_97 : f32 to vector<1x256xf32>
    %176 = arith.addf %172, %175 : vector<1x256xf32>
    %177 = math.rsqrt %176 : vector<1x256xf32>
    %178 = vector.broadcast %177 : vector<1x256xf32> to vector<16x256xf32>
    %179 = arith.mulf %174, %178 : vector<16x256xf32>
    %180 = arith.truncf %179 : vector<16x256xf32> to vector<16x256xbf16>
    %c0_98 = arith.constant 0 : index
    %c0_99 = arith.constant 0 : index
    %181 = vector.load %arg10[%c0_98, %c0_99] : memref<72x16xbf16, #tpu.memory_space<vmem>>, vector<72x16xbf16>
    %cst_100 = arith.constant dense<0.000000e+00> : vector<72x256xf32>
    %182 = tpu.matmul %181, %180, %cst_100 {dimension_numbers = #tpu.dot_dimension_numbers<[1], [0], [0], [1], [0, 0, 1, 1], [], []>} : vector<72x16xbf16>, vector<16x256xbf16>, vector<72x256xf32> -> vector<72x256xf32>
    %cst_101 = arith.constant 0.000000e+00 : f32
    %183 = vector.broadcast %cst_101 : f32 to vector<8x512xf32>
    %184 = vector.extract_strided_slice %182 {offsets = [0, 0], sizes = [8, 256], strides = [1, 1]} : vector<72x256xf32> to vector<8x256xf32>
    %185 = arith.truncf %184 : vector<8x256xf32> to vector<8x256xbf16>
    %c0_102 = arith.constant 0 : index
    %c0_103 = arith.constant 0 : index
    %c0_104 = arith.constant 0 : index
    %186 = vector.load %arg11[%c0_102, %c0_103, %c0_104] : memref<9x256x512xbf16, #tpu.memory_space<vmem>>, vector<1x256x512xbf16>
    %187 = vector.shape_cast %186 : vector<1x256x512xbf16> to vector<256x512xbf16>
    %cst_105 = arith.constant dense<0.000000e+00> : vector<8x512xf32>
    %188 = tpu.matmul %185, %187, %cst_105 {dimension_numbers = #tpu.dot_dimension_numbers<[1], [0], [0], [1], [0, 0, 1, 1], [], []>} : vector<8x256xbf16>, vector<256x512xbf16>, vector<8x512xf32> -> vector<8x512xf32>
    %189 = arith.addf %183, %188 : vector<8x512xf32>
    %190 = vector.extract_strided_slice %182 {offsets = [8, 0], sizes = [8, 256], strides = [1, 1]} : vector<72x256xf32> to vector<8x256xf32>
    %191 = arith.truncf %190 : vector<8x256xf32> to vector<8x256xbf16>
    %c1_106 = arith.constant 1 : index
    %c0_107 = arith.constant 0 : index
    %c0_108 = arith.constant 0 : index
    %192 = vector.load %arg11[%c1_106, %c0_107, %c0_108] : memref<9x256x512xbf16, #tpu.memory_space<vmem>>, vector<1x256x512xbf16>
    %193 = vector.shape_cast %192 : vector<1x256x512xbf16> to vector<256x512xbf16>
    %cst_109 = arith.constant dense<0.000000e+00> : vector<8x512xf32>
    %194 = tpu.matmul %191, %193, %cst_109 {dimension_numbers = #tpu.dot_dimension_numbers<[1], [0], [0], [1], [0, 0, 1, 1], [], []>} : vector<8x256xbf16>, vector<256x512xbf16>, vector<8x512xf32> -> vector<8x512xf32>
    %195 = arith.addf %189, %194 : vector<8x512xf32>
    %196 = vector.extract_strided_slice %182 {offsets = [16, 0], sizes = [8, 256], strides = [1, 1]} : vector<72x256xf32> to vector<8x256xf32>
    %197 = arith.truncf %196 : vector<8x256xf32> to vector<8x256xbf16>
    %c2_110 = arith.constant 2 : index
    %c0_111 = arith.constant 0 : index
    %c0_112 = arith.constant 0 : index
    %198 = vector.load %arg11[%c2_110, %c0_111, %c0_112] : memref<9x256x512xbf16, #tpu.memory_space<vmem>>, vector<1x256x512xbf16>
    %199 = vector.shape_cast %198 : vector<1x256x512xbf16> to vector<256x512xbf16>
    %cst_113 = arith.constant dense<0.000000e+00> : vector<8x512xf32>
    %200 = tpu.matmul %197, %199, %cst_113 {dimension_numbers = #tpu.dot_dimension_numbers<[1], [0], [0], [1], [0, 0, 1, 1], [], []>} : vector<8x256xbf16>, vector<256x512xbf16>, vector<8x512xf32> -> vector<8x512xf32>
    %201 = arith.addf %195, %200 : vector<8x512xf32>
    %202 = vector.extract_strided_slice %182 {offsets = [24, 0], sizes = [8, 256], strides = [1, 1]} : vector<72x256xf32> to vector<8x256xf32>
    %203 = arith.truncf %202 : vector<8x256xf32> to vector<8x256xbf16>
    %c3_114 = arith.constant 3 : index
    %c0_115 = arith.constant 0 : index
    %c0_116 = arith.constant 0 : index
    %204 = vector.load %arg11[%c3_114, %c0_115, %c0_116] : memref<9x256x512xbf16, #tpu.memory_space<vmem>>, vector<1x256x512xbf16>
    %205 = vector.shape_cast %204 : vector<1x256x512xbf16> to vector<256x512xbf16>
    %cst_117 = arith.constant dense<0.000000e+00> : vector<8x512xf32>
    %206 = tpu.matmul %203, %205, %cst_117 {dimension_numbers = #tpu.dot_dimension_numbers<[1], [0], [0], [1], [0, 0, 1, 1], [], []>} : vector<8x256xbf16>, vector<256x512xbf16>, vector<8x512xf32> -> vector<8x512xf32>
    %207 = arith.addf %201, %206 : vector<8x512xf32>
    %208 = vector.extract_strided_slice %182 {offsets = [32, 0], sizes = [8, 256], strides = [1, 1]} : vector<72x256xf32> to vector<8x256xf32>
    %209 = arith.truncf %208 : vector<8x256xf32> to vector<8x256xbf16>
    %c4_118 = arith.constant 4 : index
    %c0_119 = arith.constant 0 : index
    %c0_120 = arith.constant 0 : index
    %210 = vector.load %arg11[%c4_118, %c0_119, %c0_120] : memref<9x256x512xbf16, #tpu.memory_space<vmem>>, vector<1x256x512xbf16>
    %211 = vector.shape_cast %210 : vector<1x256x512xbf16> to vector<256x512xbf16>
    %cst_121 = arith.constant dense<0.000000e+00> : vector<8x512xf32>
    %212 = tpu.matmul %209, %211, %cst_121 {dimension_numbers = #tpu.dot_dimension_numbers<[1], [0], [0], [1], [0, 0, 1, 1], [], []>} : vector<8x256xbf16>, vector<256x512xbf16>, vector<8x512xf32> -> vector<8x512xf32>
    %213 = arith.addf %207, %212 : vector<8x512xf32>
    %214 = vector.extract_strided_slice %182 {offsets = [40, 0], sizes = [8, 256], strides = [1, 1]} : vector<72x256xf32> to vector<8x256xf32>
    %215 = arith.truncf %214 : vector<8x256xf32> to vector<8x256xbf16>
    %c5_122 = arith.constant 5 : index
    %c0_123 = arith.constant 0 : index
    %c0_124 = arith.constant 0 : index
    %216 = vector.load %arg11[%c5_122, %c0_123, %c0_124] : memref<9x256x512xbf16, #tpu.memory_space<vmem>>, vector<1x256x512xbf16>
    %217 = vector.shape_cast %216 : vector<1x256x512xbf16> to vector<256x512xbf16>
    %cst_125 = arith.constant dense<0.000000e+00> : vector<8x512xf32>
    %218 = tpu.matmul %215, %217, %cst_125 {dimension_numbers = #tpu.dot_dimension_numbers<[1], [0], [0], [1], [0, 0, 1, 1], [], []>} : vector<8x256xbf16>, vector<256x512xbf16>, vector<8x512xf32> -> vector<8x512xf32>
    %219 = arith.addf %213, %218 : vector<8x512xf32>
    %220 = vector.extract_strided_slice %182 {offsets = [48, 0], sizes = [8, 256], strides = [1, 1]} : vector<72x256xf32> to vector<8x256xf32>
    %221 = arith.truncf %220 : vector<8x256xf32> to vector<8x256xbf16>
    %c6_126 = arith.constant 6 : index
    %c0_127 = arith.constant 0 : index
    %c0_128 = arith.constant 0 : index
    %222 = vector.load %arg11[%c6_126, %c0_127, %c0_128] : memref<9x256x512xbf16, #tpu.memory_space<vmem>>, vector<1x256x512xbf16>
    %223 = vector.shape_cast %222 : vector<1x256x512xbf16> to vector<256x512xbf16>
    %cst_129 = arith.constant dense<0.000000e+00> : vector<8x512xf32>
    %224 = tpu.matmul %221, %223, %cst_129 {dimension_numbers = #tpu.dot_dimension_numbers<[1], [0], [0], [1], [0, 0, 1, 1], [], []>} : vector<8x256xbf16>, vector<256x512xbf16>, vector<8x512xf32> -> vector<8x512xf32>
    %225 = arith.addf %219, %224 : vector<8x512xf32>
    %226 = vector.extract_strided_slice %182 {offsets = [56, 0], sizes = [8, 256], strides = [1, 1]} : vector<72x256xf32> to vector<8x256xf32>
    %227 = arith.truncf %226 : vector<8x256xf32> to vector<8x256xbf16>
    %c7_130 = arith.constant 7 : index
    %c0_131 = arith.constant 0 : index
    %c0_132 = arith.constant 0 : index
    %228 = vector.load %arg11[%c7_130, %c0_131, %c0_132] : memref<9x256x512xbf16, #tpu.memory_space<vmem>>, vector<1x256x512xbf16>
    %229 = vector.shape_cast %228 : vector<1x256x512xbf16> to vector<256x512xbf16>
    %cst_133 = arith.constant dense<0.000000e+00> : vector<8x512xf32>
    %230 = tpu.matmul %227, %229, %cst_133 {dimension_numbers = #tpu.dot_dimension_numbers<[1], [0], [0], [1], [0, 0, 1, 1], [], []>} : vector<8x256xbf16>, vector<256x512xbf16>, vector<8x512xf32> -> vector<8x512xf32>
    %231 = arith.addf %225, %230 : vector<8x512xf32>
    %232 = vector.extract_strided_slice %182 {offsets = [64, 0], sizes = [8, 256], strides = [1, 1]} : vector<72x256xf32> to vector<8x256xf32>
    %233 = arith.truncf %232 : vector<8x256xf32> to vector<8x256xbf16>
    %c8_134 = arith.constant 8 : index
    %c0_135 = arith.constant 0 : index
    %c0_136 = arith.constant 0 : index
    %234 = vector.load %arg11[%c8_134, %c0_135, %c0_136] : memref<9x256x512xbf16, #tpu.memory_space<vmem>>, vector<1x256x512xbf16>
    %235 = vector.shape_cast %234 : vector<1x256x512xbf16> to vector<256x512xbf16>
    %cst_137 = arith.constant dense<0.000000e+00> : vector<8x512xf32>
    %236 = tpu.matmul %233, %235, %cst_137 {dimension_numbers = #tpu.dot_dimension_numbers<[1], [0], [0], [1], [0, 0, 1, 1], [], []>} : vector<8x256xbf16>, vector<256x512xbf16>, vector<8x512xf32> -> vector<8x512xf32>
    %237 = arith.addf %231, %236 : vector<8x512xf32>
    %238 = vector.extract_strided_slice %237 {offsets = [0, 0], sizes = [4, 512], strides = [1, 1]} : vector<8x512xf32> to vector<4x512xf32>
    %c0_138 = arith.constant 0 : index
    %c0_139 = arith.constant 0 : index
    %239 = vector.load %arg12[%c0_138, %c0_139] : memref<1x512xf32, #tpu.memory_space<vmem>>, vector<1x512xf32>
    %240 = vector.broadcast %239 : vector<1x512xf32> to vector<4x512xf32>
    %241 = arith.addf %238, %240 : vector<4x512xf32>
    %cst_140 = arith.constant 0.000000e+00 : f32
    %242 = vector.broadcast %cst_140 : f32 to vector<4x512xf32>
    %243 = arith.cmpf oge, %241, %242 : vector<4x512xf32>
    %cst_141 = arith.constant 2.000000e-01 : f32
    %244 = vector.broadcast %cst_141 : f32 to vector<4x512xf32>
    %245 = arith.mulf %244, %241 : vector<4x512xf32>
    %246 = arith.select %243, %241, %245 : vector<4x512xi1>, vector<4x512xf32>
    %cst_142 = arith.constant dense<0.000000e+00> : vector<512xf32>
    %247 = vector.multi_reduction <add>, %246, %cst_142 [0] : vector<4x512xf32> to vector<512xf32>
    %248 = vector.shape_cast %247 : vector<512xf32> to vector<1x512xf32>
    %cst_143 = arith.constant 4.000000e+00 : f32
    %249 = vector.broadcast %cst_143 : f32 to vector<1x512xf32>
    %250 = arith.divf %248, %249 : vector<1x512xf32>
    %251 = vector.broadcast %250 : vector<1x512xf32> to vector<4x512xf32>
    %252 = arith.subf %246, %251 : vector<4x512xf32>
    %253 = arith.mulf %252, %252 : vector<4x512xf32>
    %cst_144 = arith.constant dense<0.000000e+00> : vector<512xf32>
    %254 = vector.multi_reduction <add>, %253, %cst_144 [0] : vector<4x512xf32> to vector<512xf32>
    %255 = vector.shape_cast %254 : vector<512xf32> to vector<1x512xf32>
    %cst_145 = arith.constant 4.000000e+00 : f32
    %256 = vector.broadcast %cst_145 : f32 to vector<1x512xf32>
    %257 = arith.divf %255, %256 : vector<1x512xf32>
    %258 = vector.broadcast %250 : vector<1x512xf32> to vector<4x512xf32>
    %259 = arith.subf %246, %258 : vector<4x512xf32>
    %cst_146 = arith.constant 9.99999974E-6 : f32
    %260 = vector.broadcast %cst_146 : f32 to vector<1x512xf32>
    %261 = arith.addf %257, %260 : vector<1x512xf32>
    %262 = math.rsqrt %261 : vector<1x512xf32>
    %263 = vector.broadcast %262 : vector<1x512xf32> to vector<4x512xf32>
    %264 = arith.mulf %259, %263 : vector<4x512xf32>
    %265 = arith.truncf %264 : vector<4x512xf32> to vector<4x512xbf16>
    %c0_147 = arith.constant 0 : index
    %c0_148 = arith.constant 0 : index
    %266 = vector.load %arg13[%c0_147, %c0_148] : memref<72x4xbf16, #tpu.memory_space<vmem>>, vector<72x4xbf16>
    %cst_149 = arith.constant dense<0.000000e+00> : vector<72x512xf32>
    %267 = tpu.matmul %266, %265, %cst_149 {dimension_numbers = #tpu.dot_dimension_numbers<[1], [0], [0], [1], [0, 0, 1, 1], [], []>} : vector<72x4xbf16>, vector<4x512xbf16>, vector<72x512xf32> -> vector<72x512xf32>
    %cst_150 = arith.constant 0.000000e+00 : f32
    %268 = vector.broadcast %cst_150 : f32 to vector<8x128xf32>
    %269 = vector.extract_strided_slice %267 {offsets = [0, 0], sizes = [8, 512], strides = [1, 1]} : vector<72x512xf32> to vector<8x512xf32>
    %270 = arith.truncf %269 : vector<8x512xf32> to vector<8x512xbf16>
    %c0_151 = arith.constant 0 : index
    %c0_152 = arith.constant 0 : index
    %c0_153 = arith.constant 0 : index
    %271 = vector.load %arg14[%c0_151, %c0_152, %c0_153] : memref<9x512x128xbf16, #tpu.memory_space<vmem>>, vector<1x512x128xbf16>
    %272 = vector.shape_cast %271 : vector<1x512x128xbf16> to vector<512x128xbf16>
    %cst_154 = arith.constant dense<0.000000e+00> : vector<8x128xf32>
    %273 = tpu.matmul %270, %272, %cst_154 {dimension_numbers = #tpu.dot_dimension_numbers<[1], [0], [0], [1], [0, 0, 1, 1], [], []>} : vector<8x512xbf16>, vector<512x128xbf16>, vector<8x128xf32> -> vector<8x128xf32>
    %274 = arith.addf %268, %273 : vector<8x128xf32>
    %275 = vector.extract_strided_slice %267 {offsets = [8, 0], sizes = [8, 512], strides = [1, 1]} : vector<72x512xf32> to vector<8x512xf32>
    %276 = arith.truncf %275 : vector<8x512xf32> to vector<8x512xbf16>
    %c1_155 = arith.constant 1 : index
    %c0_156 = arith.constant 0 : index
    %c0_157 = arith.constant 0 : index
    %277 = vector.load %arg14[%c1_155, %c0_156, %c0_157] : memref<9x512x128xbf16, #tpu.memory_space<vmem>>, vector<1x512x128xbf16>
    %278 = vector.shape_cast %277 : vector<1x512x128xbf16> to vector<512x128xbf16>
    %cst_158 = arith.constant dense<0.000000e+00> : vector<8x128xf32>
    %279 = tpu.matmul %276, %278, %cst_158 {dimension_numbers = #tpu.dot_dimension_numbers<[1], [0], [0], [1], [0, 0, 1, 1], [], []>} : vector<8x512xbf16>, vector<512x128xbf16>, vector<8x128xf32> -> vector<8x128xf32>
    %280 = arith.addf %274, %279 : vector<8x128xf32>
    %281 = vector.extract_strided_slice %267 {offsets = [16, 0], sizes = [8, 512], strides = [1, 1]} : vector<72x512xf32> to vector<8x512xf32>
    %282 = arith.truncf %281 : vector<8x512xf32> to vector<8x512xbf16>
    %c2_159 = arith.constant 2 : index
    %c0_160 = arith.constant 0 : index
    %c0_161 = arith.constant 0 : index
    %283 = vector.load %arg14[%c2_159, %c0_160, %c0_161] : memref<9x512x128xbf16, #tpu.memory_space<vmem>>, vector<1x512x128xbf16>
    %284 = vector.shape_cast %283 : vector<1x512x128xbf16> to vector<512x128xbf16>
    %cst_162 = arith.constant dense<0.000000e+00> : vector<8x128xf32>
    %285 = tpu.matmul %282, %284, %cst_162 {dimension_numbers = #tpu.dot_dimension_numbers<[1], [0], [0], [1], [0, 0, 1, 1], [], []>} : vector<8x512xbf16>, vector<512x128xbf16>, vector<8x128xf32> -> vector<8x128xf32>
    %286 = arith.addf %280, %285 : vector<8x128xf32>
    %287 = vector.extract_strided_slice %267 {offsets = [24, 0], sizes = [8, 512], strides = [1, 1]} : vector<72x512xf32> to vector<8x512xf32>
    %288 = arith.truncf %287 : vector<8x512xf32> to vector<8x512xbf16>
    %c3_163 = arith.constant 3 : index
    %c0_164 = arith.constant 0 : index
    %c0_165 = arith.constant 0 : index
    %289 = vector.load %arg14[%c3_163, %c0_164, %c0_165] : memref<9x512x128xbf16, #tpu.memory_space<vmem>>, vector<1x512x128xbf16>
    %290 = vector.shape_cast %289 : vector<1x512x128xbf16> to vector<512x128xbf16>
    %cst_166 = arith.constant dense<0.000000e+00> : vector<8x128xf32>
    %291 = tpu.matmul %288, %290, %cst_166 {dimension_numbers = #tpu.dot_dimension_numbers<[1], [0], [0], [1], [0, 0, 1, 1], [], []>} : vector<8x512xbf16>, vector<512x128xbf16>, vector<8x128xf32> -> vector<8x128xf32>
    %292 = arith.addf %286, %291 : vector<8x128xf32>
    %293 = vector.extract_strided_slice %267 {offsets = [32, 0], sizes = [8, 512], strides = [1, 1]} : vector<72x512xf32> to vector<8x512xf32>
    %294 = arith.truncf %293 : vector<8x512xf32> to vector<8x512xbf16>
    %c4_167 = arith.constant 4 : index
    %c0_168 = arith.constant 0 : index
    %c0_169 = arith.constant 0 : index
    %295 = vector.load %arg14[%c4_167, %c0_168, %c0_169] : memref<9x512x128xbf16, #tpu.memory_space<vmem>>, vector<1x512x128xbf16>
    %296 = vector.shape_cast %295 : vector<1x512x128xbf16> to vector<512x128xbf16>
    %cst_170 = arith.constant dense<0.000000e+00> : vector<8x128xf32>
    %297 = tpu.matmul %294, %296, %cst_170 {dimension_numbers = #tpu.dot_dimension_numbers<[1], [0], [0], [1], [0, 0, 1, 1], [], []>} : vector<8x512xbf16>, vector<512x128xbf16>, vector<8x128xf32> -> vector<8x128xf32>
    %298 = arith.addf %292, %297 : vector<8x128xf32>
    %299 = vector.extract_strided_slice %267 {offsets = [40, 0], sizes = [8, 512], strides = [1, 1]} : vector<72x512xf32> to vector<8x512xf32>
    %300 = arith.truncf %299 : vector<8x512xf32> to vector<8x512xbf16>
    %c5_171 = arith.constant 5 : index
    %c0_172 = arith.constant 0 : index
    %c0_173 = arith.constant 0 : index
    %301 = vector.load %arg14[%c5_171, %c0_172, %c0_173] : memref<9x512x128xbf16, #tpu.memory_space<vmem>>, vector<1x512x128xbf16>
    %302 = vector.shape_cast %301 : vector<1x512x128xbf16> to vector<512x128xbf16>
    %cst_174 = arith.constant dense<0.000000e+00> : vector<8x128xf32>
    %303 = tpu.matmul %300, %302, %cst_174 {dimension_numbers = #tpu.dot_dimension_numbers<[1], [0], [0], [1], [0, 0, 1, 1], [], []>} : vector<8x512xbf16>, vector<512x128xbf16>, vector<8x128xf32> -> vector<8x128xf32>
    %304 = arith.addf %298, %303 : vector<8x128xf32>
    %305 = vector.extract_strided_slice %267 {offsets = [48, 0], sizes = [8, 512], strides = [1, 1]} : vector<72x512xf32> to vector<8x512xf32>
    %306 = arith.truncf %305 : vector<8x512xf32> to vector<8x512xbf16>
    %c6_175 = arith.constant 6 : index
    %c0_176 = arith.constant 0 : index
    %c0_177 = arith.constant 0 : index
    %307 = vector.load %arg14[%c6_175, %c0_176, %c0_177] : memref<9x512x128xbf16, #tpu.memory_space<vmem>>, vector<1x512x128xbf16>
    %308 = vector.shape_cast %307 : vector<1x512x128xbf16> to vector<512x128xbf16>
    %cst_178 = arith.constant dense<0.000000e+00> : vector<8x128xf32>
    %309 = tpu.matmul %306, %308, %cst_178 {dimension_numbers = #tpu.dot_dimension_numbers<[1], [0], [0], [1], [0, 0, 1, 1], [], []>} : vector<8x512xbf16>, vector<512x128xbf16>, vector<8x128xf32> -> vector<8x128xf32>
    %310 = arith.addf %304, %309 : vector<8x128xf32>
    %311 = vector.extract_strided_slice %267 {offsets = [56, 0], sizes = [8, 512], strides = [1, 1]} : vector<72x512xf32> to vector<8x512xf32>
    %312 = arith.truncf %311 : vector<8x512xf32> to vector<8x512xbf16>
    %c7_179 = arith.constant 7 : index
    %c0_180 = arith.constant 0 : index
    %c0_181 = arith.constant 0 : index
    %313 = vector.load %arg14[%c7_179, %c0_180, %c0_181] : memref<9x512x128xbf16, #tpu.memory_space<vmem>>, vector<1x512x128xbf16>
    %314 = vector.shape_cast %313 : vector<1x512x128xbf16> to vector<512x128xbf16>
    %cst_182 = arith.constant dense<0.000000e+00> : vector<8x128xf32>
    %315 = tpu.matmul %312, %314, %cst_182 {dimension_numbers = #tpu.dot_dimension_numbers<[1], [0], [0], [1], [0, 0, 1, 1], [], []>} : vector<8x512xbf16>, vector<512x128xbf16>, vector<8x128xf32> -> vector<8x128xf32>
    %316 = arith.addf %310, %315 : vector<8x128xf32>
    %317 = vector.extract_strided_slice %267 {offsets = [64, 0], sizes = [8, 512], strides = [1, 1]} : vector<72x512xf32> to vector<8x512xf32>
    %318 = arith.truncf %317 : vector<8x512xf32> to vector<8x512xbf16>
    %c8_183 = arith.constant 8 : index
    %c0_184 = arith.constant 0 : index
    %c0_185 = arith.constant 0 : index
    %319 = vector.load %arg14[%c8_183, %c0_184, %c0_185] : memref<9x512x128xbf16, #tpu.memory_space<vmem>>, vector<1x512x128xbf16>
    %320 = vector.shape_cast %319 : vector<1x512x128xbf16> to vector<512x128xbf16>
    %cst_186 = arith.constant dense<0.000000e+00> : vector<8x128xf32>
    %321 = tpu.matmul %318, %320, %cst_186 {dimension_numbers = #tpu.dot_dimension_numbers<[1], [0], [0], [1], [0, 0, 1, 1], [], []>} : vector<8x512xbf16>, vector<512x128xbf16>, vector<8x128xf32> -> vector<8x128xf32>
    %322 = arith.addf %316, %321 : vector<8x128xf32>
    %323 = vector.extract_strided_slice %322 {offsets = [0, 0], sizes = [4, 128], strides = [1, 1]} : vector<8x128xf32> to vector<4x128xf32>
    %c0_187 = arith.constant 0 : index
    %c0_188 = arith.constant 0 : index
    %324 = vector.load %arg15[%c0_187, %c0_188] : memref<1x128xf32, #tpu.memory_space<vmem>>, vector<1x128xf32>
    %325 = vector.broadcast %324 : vector<1x128xf32> to vector<4x128xf32>
    %326 = arith.addf %323, %325 : vector<4x128xf32>
    %c0_189 = arith.constant 0 : index
    %c0_190 = arith.constant 0 : index
    %c0_191 = arith.constant 0 : index
    %327 = vector.load %arg16[%c0_189, %c0_190, %c0_191] : memref<1x4x128xf32, #tpu.memory_space<vmem>>, vector<1x4x128xf32>
    %328 = vector.shape_cast %327 : vector<1x4x128xf32> to vector<4x128xf32>
    %329 = vector.shape_cast %326 : vector<4x128xf32> to vector<1x4x128xf32>
    tpu.vector_store %arg16[%c0_189, %c0_190, %c0_191], %329 {strides = array<i32>} : memref<1x4x128xf32, #tpu.memory_space<vmem>>, vector<1x4x128xf32>,
    return
  }
  func.func @transform_0(%arg0: i32) -> (i32, i32, i32) {
    %c0_i32 = arith.constant 0 : i32
    %c0_i32_0 = arith.constant 0 : i32
    %c0_i32_1 = arith.constant 0 : i32
    return %arg0, %c0_i32, %c0_i32_0 : i32, i32, i32
  }
  func.func @transform_1(%arg0: i32) -> (i32, i32) {
    %c0_i32 = arith.constant 0 : i32
    %c0_i32_0 = arith.constant 0 : i32
    %c0_i32_1 = arith.constant 0 : i32
    return %c0_i32, %c0_i32_0 : i32, i32
  }
  func.func @transform_2(%arg0: i32) -> (i32, i32) {
    %c0_i32 = arith.constant 0 : i32
    %c0_i32_0 = arith.constant 0 : i32
    %c0_i32_1 = arith.constant 0 : i32
    return %c0_i32, %c0_i32_0 : i32, i32
  }
  func.func @transform_3(%arg0: i32) -> (i32, i32) {
    %c0_i32 = arith.constant 0 : i32
    %c0_i32_0 = arith.constant 0 : i32
    %c0_i32_1 = arith.constant 0 : i32
    return %c0_i32, %c0_i32_0 : i32, i32
  }
  func.func @transform_4(%arg0: i32) -> (i32, i32, i32) {
    %c0_i32 = arith.constant 0 : i32
    %c0_i32_0 = arith.constant 0 : i32
    %c0_i32_1 = arith.constant 0 : i32
    %c0_i32_2 = arith.constant 0 : i32
    return %c0_i32, %c0_i32_0, %c0_i32_1 : i32, i32, i32
  }
  func.func @transform_5(%arg0: i32) -> (i32, i32) {
    %c0_i32 = arith.constant 0 : i32
    %c0_i32_0 = arith.constant 0 : i32
    %c0_i32_1 = arith.constant 0 : i32
    return %c0_i32, %c0_i32_0 : i32, i32
  }
  func.func @transform_6(%arg0: i32) -> (i32, i32) {
    %c0_i32 = arith.constant 0 : i32
    %c0_i32_0 = arith.constant 0 : i32
    %c0_i32_1 = arith.constant 0 : i32
    return %c0_i32, %c0_i32_0 : i32, i32
  }
  func.func @transform_7(%arg0: i32) -> (i32, i32, i32) {
    %c0_i32 = arith.constant 0 : i32
    %c0_i32_0 = arith.constant 0 : i32
    %c0_i32_1 = arith.constant 0 : i32
    %c0_i32_2 = arith.constant 0 : i32
    return %c0_i32, %c0_i32_0, %c0_i32_1 : i32, i32, i32
  }
  func.func @transform_8(%arg0: i32) -> (i32, i32) {
    %c0_i32 = arith.constant 0 : i32
    %c0_i32_0 = arith.constant 0 : i32
    %c0_i32_1 = arith.constant 0 : i32
    return %c0_i32, %c0_i32_0 : i32, i32
  }
  func.func @transform_9(%arg0: i32) -> (i32, i32) {
    %c0_i32 = arith.constant 0 : i32
    %c0_i32_0 = arith.constant 0 : i32
    %c0_i32_1 = arith.constant 0 : i32
    return %c0_i32, %c0_i32_0 : i32, i32
  }
  func.func @transform_10(%arg0: i32) -> (i32, i32, i32) {
    %c0_i32 = arith.constant 0 : i32
    %c0_i32_0 = arith.constant 0 : i32
    %c0_i32_1 = arith.constant 0 : i32
    %c0_i32_2 = arith.constant 0 : i32
    return %c0_i32, %c0_i32_0, %c0_i32_1 : i32, i32, i32
  }
  func.func @transform_11(%arg0: i32) -> (i32, i32) {
    %c0_i32 = arith.constant 0 : i32
    %c0_i32_0 = arith.constant 0 : i32
    %c0_i32_1 = arith.constant 0 : i32
    return %c0_i32, %c0_i32_0 : i32, i32
  }
  func.func @transform_12(%arg0: i32) -> (i32, i32) {
    %c0_i32 = arith.constant 0 : i32
    %c0_i32_0 = arith.constant 0 : i32
    %c0_i32_1 = arith.constant 0 : i32
    return %c0_i32, %c0_i32_0 : i32, i32
  }
  func.func @transform_13(%arg0: i32) -> (i32, i32, i32) {
    %c0_i32 = arith.constant 0 : i32
    %c0_i32_0 = arith.constant 0 : i32
    %c0_i32_1 = arith.constant 0 : i32
    %c0_i32_2 = arith.constant 0 : i32
    return %c0_i32, %c0_i32_0, %c0_i32_1 : i32, i32, i32
  }
  func.func @transform_14(%arg0: i32) -> (i32, i32) {
    %c0_i32 = arith.constant 0 : i32
    %c0_i32_0 = arith.constant 0 : i32
    %c0_i32_1 = arith.constant 0 : i32
    return %c0_i32, %c0_i32_0 : i32, i32
  }
  func.func @transform_15(%arg0: i32) -> (i32, i32, i32) {
    %c0_i32 = arith.constant 0 : i32
    %c0_i32_0 = arith.constant 0 : i32
    %c0_i32_1 = arith.constant 0 : i32
    return %arg0, %c0_i32, %c0_i32_0 : i32, i32, i32
  }
}

</mosaic_0001>

<bundles_post_ra>
// kernel: squeeze.1
= control target key start
LH: loop header
LB: loop body
LE: loop exit
PB: predicated region body
PF: predicated region fallthrough
CT: control target
= control target key end

     0   :  { %s90_s0 = inlined_call_operand.vmem [shape: f32[2,4], index: 0, kind: input, shape index: {}]   ;;  %s91_s1 = inlined_call_operand.hbm [shape: f32[2,1,2,2], index: 1, kind: output, shape index: {}]  }
   0x1   :  { %v5_v0 = vld [vmem:[%s90_s0] sm:$0x3] }
   0x2   :  { %2 = vsyncpa [#allocation1], 0  ;;  %6 = vst [vmem:[#allocation3] sm:$0x3] %v5_v0  ;;  %vm8_vm0 = vcmask 15360   ;;  %s63_s0 = smov 126  }
   0x3   :  { %s64_s8 = smov [#allocation0]  }
   0x4   :  { %s31_s9 = sshll.u32 %s64_s8, 4  ;;  %s32_s9 = int_to_ptr.vmem [resolvable:$true] %s31_s9 }
   0x5   :  { %s39_s10 = scalar_lea.vmem %s32_s9, 64  ;;  %p44_p1 = scmp.lt.s32.totalorder %s32_s9, %s32_s9 }
   0x6   :  { %p40_p0 = scmp.ne.s32.totalorder %s32_s9, %s39_s10  ;;  %p45_p2 = scmp.lt.s32.totalorder %s39_s10, %s39_s10 }
   0x8   :  { %p46_p3 = por %p45_p2, %p44_p1 }
   0x9   :  { %v10_v1 = vld [vmem:[#allocation3] sm:$0x3]  }
   0xa   :  { %v7_v2 = vld [vmem:[#allocation3] sm:$0x3]   ;;  %11 = vrot.lane.b32.xlu0 %v10_v1, %s63_s0  ;;  %p47_p4 = pnand %p46_p3, %p40_p0 }
   0xb   :  { %9 = vst.msk [vmem:[#allocation2] ss:$8 sm:$0x3] %vm8_vm0, %v7_v2  }
  0x7c   :  { %v12_v3 = vpop.permute.xlu0 %11  }
  0x7d   :  { %15 = vst.msk [vmem:[#allocation2 + $0x1] ss:$8 sm:$0x3] %vm8_vm0, %v12_v3  }
  0x84   :  { %v19_v4 = vld [vmem:[#allocation2] sm:$0x3]  ;;  %v23_v5 = vld [vmem:[#allocation2 + $0x8] sm:$0x3] }
  0x85   :  { %21 = vst [vmem:[#allocation0] sm:$0x3] %v19_v4  ;;  %26 = vst [vmem:[#allocation0 + $0x2] sm:$0x3] %v23_v5 }
  0x86   :  { %50 = shalt.err (!%p47_p4)
}
  0x87   :  { %s51_s13 = scalar_lea.hbm %s91_s1, 64 }
  0x88   :  { %p52_p5 = scmp.ne.s32.totalorder %s91_s1, %s51_s13  ;;  %p55_p6 = scmp.lt.u32.totalorder %s51_s13, %s91_s1 }
  0x8a   :  { %p57_p7 = pnand %p55_p6, %p52_p5 }
  0x8c   :  { %60 = shalt.err (!%p57_p7)
}
  0x8d   :  { %34 = dma.vmem_to_hbm [thread:$0]  %s32_s9, 64, %s91_s1, [#allocation1]  }
  0x8e   :  { %61 = dma.done.wait [#allocation1], 64  }
  0x8f   :  { %62 = vsyncadd [#allocation1], 4294967232 }
  0x90   :  { %36 = vsyncpa [#allocation1], 1 }

// kernel: discriminator_forward.1
= control target key start
LH: loop header
LB: loop body
LE: loop exit
PB: predicated region body
PF: predicated region fallthrough
CT: control target
= control target key end

     0   :  { %s17272_s18 = smov 0   ;;  %s21339_s0 = inlined_call_operand.vmem [shape: bf16[2,256,27], index: 0, kind: input, shape index: {}]   ;;  %s21340_s1 = inlined_call_operand.vmem [shape: bf16[27,64], index: 1, kind: input, shape index: {}]   ;;  %s21341_s2 = inlined_call_operand.vmem [shape: f32[1,64], index: 2, kind: input, shape index: {}]   ;;  %s21342_s3 = inlined_call_operand.vmem [shape: bf16[576,256], index: 3, kind: input, shape index: {}]   ;;  %s21343_s4 = inlined_call_operand.vmem [shape: bf16[9,64,128], index: 4, kind: input, shape index: {}]   ;;  %s21344_s5 = inlined_call_operand.vmem [shape: f32[1,128], index: 5, kind: input, shape index: {}]   ;;  %s21345_s6 = inlined_call_operand.vmem [shape: bf16[144,64], index: 6, kind: input, shape index: {}]   ;;  %s21346_s7 = inlined_call_operand.vmem [shape: bf16[9,128,256], index: 7, kind: input, shape index: {}]   ;;  %s21347_s8 = inlined_call_operand.vmem [shape: f32[1,256], index: 8, kind: input, shape index: {}]   ;;  %s21348_s9 = inlined_call_operand.vmem [shape: bf16[72,16], index: 9, kind: input, shape index: {}]   ;;  %s21349_s10 = inlined_call_operand.vmem [shape: bf16[9,256,512], index: 10, kind: input, shape index: {}]   ;;  %s21350_s11 = inlined_call_operand.vmem [shape: f32[1,512], index: 11, kind: input, shape index: {}]   ;;  %s21351_s12 = inlined_call_operand.vmem [shape: bf16[72,4], index: 12, kind: input, shape index: {}]   ;;  %s21352_s13 = inlined_call_operand.vmem [shape: bf16[9,512,128], index: 13, kind: input, shape index: {}]   ;;  %s21353_s14 = inlined_call_operand.vmem [shape: f32[1,128], index: 14, kind: input, shape index: {}]   ;;  %s21354_s15 = inlined_call_operand.vmem [shape: f32[2,4,128], index: 15, kind: output, shape index: {}]  }
   0x1 LB: > { %s12325_s19 = sadd.s32 4294967295, %s17186_s18   ;;  %p12329_p0 = scmp.ge.s32.totalorder %s17186_s18, 1  ;;  %s17186_s18 = sphi %s17272_s18, %s25_s18  }
   0x2   : > { %p437_p1 = scmp.lt.s32.totalorder %s17186_s18, 3 }
   0x4   : > { %p438_p2 = pnand %p12329_p0, %p437_p1 }
   0x5   : > { %v15617_v0 = vld [vmem:[%s21340_s1] sm:$0xff] (!%p438_p2)   ;;  %vm677_vm0 = vcmask (!%p438_p2), 1044480   ;;  %v15618_v1 = vld [vmem:[%s21340_s1 + $0x8] sm:$0x3f] (!%p438_p2)   ;;  %vm678_vm1 = vcmask (!%p438_p2), 1045504   ;;  %p484_p3 = scmp.lt.s32.totalorder (!%p438_p2), %s12325_s19, 1 }
   0x6   : > { %441 = sbr.rel (%p438_p2) target bundleno = 3665 (0xe51), region = 80  ;;  %15285 = vmatprep.subr.bf16.mxu0 (!%p438_p2), %v15617_v0  ;;  %v17188_v2 = vmov (!%p438_p2), 65535   ;;  %vm628_vm2 = vcmask (!%p438_p2), 220160   ;;  %v17189_v22 = vmov (!%p438_p2), 0   ;;  %v15637_v23 = vld [vmem:[%s21342_s3 + $0x4] ss:$8 sps:$4 sm:$0xff] (!%p438_p2)  }
   0x7   : > { %15286 = vmatpush3.bf16.msra.mxu0 (!%p438_p2), %v15617_v0  ;;  %v679_v3 = vsel (!%p438_p2), %vm677_vm0, 4294967295, %v17188_v2  ;;  %1389 = vmatprep.subr.bf16.mxu1 (!%p438_p2), %v17189_v22  ;;  %v17333_v24 = vld [vmem:[%s21341_s2] ss:$0 sm:$0xff] (!%p438_p2) }
   0x8   : > { %v680_v4 = vsel (!%p438_p2), %vm678_vm1, %v679_v3, 0  ;;  %1421 = vmatprep.mubr.bf16.mxu1 (!%p438_p2), %v15637_v23 }
   0x9   : > { %v682_v5 = vand.u32 (!%p438_p2), %v15618_v1, %v680_v4 }
   0xb   : > { %15287 = vmatprep.subr.bf16.mxu0 (!%p438_p2), %v682_v5 }
   0xc   : > { %15288 = vmatpush3.bf16.msra.mxu0 (!%p438_p2), %v682_v5 }
   0xd   : > { %s21356_s19 = smov (!%p484_p3, %s12325_s19), 1 }
   0xe   : > { %s14785_s24 = sshll.u32 %s21356_s19, 7  ;;  %s12332_s16 = sshll.u32 %s21356_s19, 2 }
   0xf   : > { %s17292_s27 = scalar_lea.vmem %s21339_s0, %s14785_s24  ;;  %s492_s23 = scalar_lea.vmem %s21354_s15, %s12332_s16 }
  0x10   : > { %v15619_v6 = vld [vmem:[%s17292_s27] sm:$0xff]   ;;  %v15620_v7 = vld [vmem:[%s17292_s27 + $0x8] sm:$0xff]   ;;  %v15621_v8 = vld [vmem:[%s17292_s27 + $0x10] sm:$0xff]  }
  0x11   : > { %15289 = vmatprep.mubr.msk.bf16.mxu0 %vm628_vm2, %v15619_v6  ;;  %v15622_v9 = vld [vmem:[%s17292_s27 + $0x18] sm:$0xff]   ;;  %v15623_v10 = vld [vmem:[%s17292_s27 + $0x20] sm:$0xff]   ;;  %v15624_v11 = vld [vmem:[%s17292_s27 + $0x28] sm:$0xff]  }
  0x12   : > { %15290 = vmatmul.mubr.msk.bf16.vlgmr.msra.gmra.mrb[0].mxu0 %vm628_vm2, %v15620_v7  ;;  %v15625_v12 = vld [vmem:[%s17292_s27 + $0x30] sm:$0xff]   ;;  %v15626_v13 = vld [vmem:[%s17292_s27 + $0x38] sm:$0xff]   ;;  %v15627_v14 = vld [vmem:[%s17292_s27 + $0x40] sm:$0xff]  }
  0x13   : > { %15293 = vmatprep.mubr.msk.bf16.mxu0 %vm628_vm2, %v15621_v8  ;;  %v15628_v15 = vld [vmem:[%s17292_s27 + $0x48] sm:$0xff]   ;;  %v15629_v16 = vld [vmem:[%s17292_s27 + $0x50] sm:$0xff]   ;;  %v15630_v17 = vld [vmem:[%s17292_s27 + $0x58] sm:$0xff]  }
  0x14   : > { %v15631_v18 = vld [vmem:[%s17292_s27 + $0x60] sm:$0xff]   ;;  %v15632_v19 = vld [vmem:[%s17292_s27 + $0x68] sm:$0xff]   ;;  %v15633_v20 = vld [vmem:[%s17292_s27 + $0x70] sm:$0xff]  }
  0x15   : > { %v15634_v21 = vld [vmem:[%s17292_s27 + $0x78] sm:$0xff]  }
  0x1a   : > { %15294 = vmatmul.mubr.msk.bf16.gmra.mrb[4].mxu0 %vm628_vm2, %v15622_v9 }
  0x1b   : > { %15297 = vmatprep.mubr.msk.bf16.mxu0 %vm628_vm2, %v15623_v10 }
  0x22   : > { %15298 = vmatmul.mubr.msk.bf16.gmra.mrb[8].mxu0 %vm628_vm2, %v15624_v11 }
  0x23   : > { %15301 = vmatprep.mubr.msk.bf16.mxu0 %vm628_vm2, %v15625_v12 }
  0x2a   : > { %15302 = vmatmul.mubr.msk.bf16.gmra.mrb[12].mxu0 %vm628_vm2, %v15626_v13 }
  0x2b   : > { %15305 = vmatprep.mubr.msk.bf16.mxu0 %vm628_vm2, %v15627_v14 }
  0x32   : > { %15306 = vmatmul.mubr.msk.bf16.gmra.mrb[16].mxu0 %vm628_vm2, %v15628_v15 }
  0x33   : > { %15309 = vmatprep.mubr.msk.bf16.mxu0 %vm628_vm2, %v15629_v16 }
  0x3a   : > { %15310 = vmatmul.mubr.msk.bf16.gmra.mrb[20].mxu0 %vm628_vm2, %v15630_v17 }
  0x3b   : > { %15313 = vmatprep.mubr.msk.bf16.mxu0 %vm628_vm2, %v15631_v18 }
  0x42   : > { %15314 = vmatmul.mubr.msk.bf16.gmra.mrb[24].mxu0 %vm628_vm2, %v15632_v19 }
  0x43   : > { %15317 = vmatprep.mubr.msk.bf16.mxu0 %vm628_vm2, %v15633_v20 }
  0x4a   : > { %15318 = vmatmul.mubr.msk.bf16.gmra.mrb[28].mxu0 %vm628_vm2, %v15634_v21 }
  0xe5   : > { %v15291_v25 = vpop.f32.mrb[0].mxu0 }
  0xe6   : > { %v727_v26 = vadd.f32 %v15291_v25, %v17333_v24  ;;  %v718_v27 = vpop.f32.mrb[1].mxu0 }
  0xe7   : > { %v719_v28 = vadd.f32 %v17333_v24, %v718_v27  ;;  %v15292_v29 = vpop.f32.mrb[2].mxu0 }
  0xe8   : > { %vm847_vm3 = vcmp.ge.f32.partialorder %v727_v26, 0.0  ;;  %v879_v30 = vmul.f32 0.2, %v727_v26  ;;  %v730_v31 = vadd.f32 %v15292_v29, %v17333_v24  ;;  %v721_v32 = vpop.f32.mrb[3].mxu0 }
  0xe9   : > { %v877_v33 = vmul.f32 0.2, %v719_v28  ;;  %v722_v34 = vadd.f32 %v17333_v24, %v721_v32  ;;  %vm845_vm4 = vcmp.ge.f32.partialorder %v719_v28, 0.0 }
  0xea   : > { %vm848_vm5 = vcmp.ge.f32.partialorder %v730_v31, 0.0  ;;  %v880_v35 = vmul.f32 0.2, %v730_v31  ;;  %v911_v37 = vsel %vm847_vm3, %v727_v26, %v879_v30 }
  0xeb   : > { %v878_v36 = vmul.f32 0.2, %v722_v34  ;;  %vm846_vm6 = vcmp.ge.f32.partialorder %v722_v34, 0.0  ;;  %v909_v40 = vsel %vm845_vm4, %v719_v28, %v877_v33 }
  0xec   : > { %v912_v38 = vsel %vm848_vm5, %v730_v31, %v880_v35 }
  0xed   : > { %v15295_v39 = vpop.f32.mrb[4].mxu0  ;;  %v910_v41 = vsel %vm846_vm6, %v722_v34, %v878_v36  ;;  %v942_v42 = vpack.c.bf16 %v912_v38, %v911_v37 }
  0xee   : > { %v743_v43 = vadd.f32 %v15295_v39, %v17333_v24  ;;  %v734_v44 = vpop.f32.mrb[5].mxu0  ;;  %v941_v45 = vpack.c.bf16 %v910_v41, %v909_v40 }
  0xef   : > { %v735_v46 = vadd.f32 %v17333_v24, %v734_v44  ;;  %v15296_v47 = vpop.f32.mrb[6].mxu0 }
  0xf0   : > { %vm851_vm7 = vcmp.ge.f32.partialorder %v743_v43, 0.0  ;;  %v883_v48 = vmul.f32 0.2, %v743_v43  ;;  %v746_v49 = vadd.f32 %v15296_v47, %v17333_v24  ;;  %v737_v50 = vpop.f32.mrb[7].mxu0  ;;  %1390 = vmatpush1.bf16.msra.mxu1 %v941_v45 }
  0xf1   : > { %vm849_vm8 = vcmp.ge.f32.partialorder %v735_v46, 0.0  ;;  %v881_v51 = vmul.f32 0.2, %v735_v46  ;;  %v738_v52 = vadd.f32 %v17333_v24, %v737_v50  ;;  %1391 = vmatprep.subr.bf16.mxu1 %v17189_v22 }
  0xf2   : > { %vm852_vm9 = vcmp.ge.f32.partialorder %v746_v49, 0.0  ;;  %v884_v53 = vmul.f32 0.2, %v746_v49  ;;  %v915_v55 = vsel %vm851_vm7, %v743_v43, %v883_v48 }
  0xf3   : > { %vm850_vm10 = vcmp.ge.f32.partialorder %v738_v52, 0.0  ;;  %v882_v54 = vmul.f32 0.2, %v738_v52  ;;  %v913_v58 = vsel %vm849_vm8, %v735_v46, %v881_v51 }
  0xf4   : > { %1392 = vmatpush1.bf16.msra.mxu1 %v942_v42  ;;  %v916_v56 = vsel %vm852_vm9, %v746_v49, %v884_v53 }
  0xf5   : > { %v15299_v57 = vpop.f32.mrb[8].mxu0  ;;  %1393 = vmatprep.subr.bf16.mxu1 %v17189_v22  ;;  %v914_v59 = vsel %vm850_vm10, %v738_v52, %v882_v54  ;;  %v944_v60 = vpack.c.bf16 %v916_v56, %v915_v55 }
  0xf6   : > { %v759_v61 = vadd.f32 %v15299_v57, %v17333_v24  ;;  %v750_v62 = vpop.f32.mrb[9].mxu0  ;;  %v943_v63 = vpack.c.bf16 %v914_v59, %v913_v58 }
  0xf7   : > { %v751_v0 = vadd.f32 %v17333_v24, %v750_v62  ;;  %v15300_v1 = vpop.f32.mrb[10].mxu0 }
  0xf8   : > { %vm855_vm11 = vcmp.ge.f32.partialorder %v759_v61, 0.0  ;;  %v887_v2 = vmul.f32 0.2, %v759_v61  ;;  %v762_v3 = vadd.f32 %v15300_v1, %v17333_v24  ;;  %v753_v4 = vpop.f32.mrb[11].mxu0  ;;  %1394 = vmatpush1.bf16.msra.mxu1 %v943_v63 }
  0xf9   : > { %vm853_vm12 = vcmp.ge.f32.partialorder %v751_v0, 0.0  ;;  %v885_v5 = vmul.f32 0.2, %v751_v0  ;;  %v754_v6 = vadd.f32 %v17333_v24, %v753_v4  ;;  %1395 = vmatprep.subr.bf16.mxu1 %v17189_v22 }
  0xfa   : > { %vm856_vm13 = vcmp.ge.f32.partialorder %v762_v3, 0.0  ;;  %v888_v7 = vmul.f32 0.2, %v762_v3  ;;  %v919_v9 = vsel %vm855_vm11, %v759_v61, %v887_v2 }
  0xfb   : > { %vm854_vm14 = vcmp.ge.f32.partialorder %v754_v6, 0.0  ;;  %v886_v8 = vmul.f32 0.2, %v754_v6  ;;  %v917_v12 = vsel %vm853_vm12, %v751_v0, %v885_v5 }
  0xfc   : > { %1396 = vmatpush1.bf16.msra.mxu1 %v944_v60  ;;  %v920_v10 = vsel %vm856_vm13, %v762_v3, %v888_v7 }
  0xfd   : > { %v15303_v11 = vpop.f32.mrb[12].mxu0  ;;  %1397 = vmatprep.subr.bf16.mxu1 %v17189_v22  ;;  %v918_v13 = vsel %vm854_vm14, %v754_v6, %v886_v8  ;;  %v946_v14 = vpack.c.bf16 %v920_v10, %v919_v9 }
  0xfe   : > { %v775_v15 = vadd.f32 %v15303_v11, %v17333_v24  ;;  %v766_v16 = vpop.f32.mrb[13].mxu0  ;;  %v945_v17 = vpack.c.bf16 %v918_v13, %v917_v12 }
  0xff   : > { %v767_v18 = vadd.f32 %v17333_v24, %v766_v16  ;;  %v15304_v19 = vpop.f32.mrb[14].mxu0 }
 0x100   : > { %vm859_vm15 = vcmp.ge.f32.partialorder %v775_v15, 0.0  ;;  %v891_v20 = vmul.f32 0.2, %v775_v15  ;;  %v778_v21 = vadd.f32 %v15304_v19, %v17333_v24  ;;  %v769_v23 = vpop.f32.mrb[15].mxu0  ;;  %1398 = vmatpush1.bf16.msra.mxu1 %v945_v17 }
 0x101   : > { %vm857_vm0 = vcmp.ge.f32.partialorder %v767_v18, 0.0  ;;  %v889_v25 = vmul.f32 0.2, %v767_v18  ;;  %v770_v26 = vadd.f32 %v17333_v24, %v769_v23  ;;  %1399 = vmatprep.subr.bf16.mxu1 %v17189_v22 }
 0x102   : > { %vm860_vm1 = vcmp.ge.f32.partialorder %v778_v21, 0.0  ;;  %v892_v27 = vmul.f32 0.2, %v778_v21  ;;  %v923_v29 = vsel %vm859_vm15, %v775_v15, %v891_v20 }
 0x103   : > { %vm858_vm2 = vcmp.ge.f32.partialorder %v770_v26, 0.0  ;;  %v890_v28 = vmul.f32 0.2, %v770_v26  ;;  %v921_v32 = vsel %vm857_vm0, %v767_v18, %v889_v25 }
 0x104   : > { %1400 = vmatpush1.bf16.msra.mxu1 %v946_v14  ;;  %v924_v30 = vsel %vm860_vm1, %v778_v21, %v892_v27 }
 0x105   : > { %v15307_v31 = vpop.f32.mrb[16].mxu0  ;;  %1401 = vmatprep.subr.bf16.mxu1 %v17189_v22  ;;  %v922_v33 = vsel %vm858_vm2, %v770_v26, %v890_v28  ;;  %v948_v34 = vpack.c.bf16 %v924_v30, %v923_v29 }
 0x106   : > { %v791_v35 = vadd.f32 %v15307_v31, %v17333_v24  ;;  %v782_v36 = vpop.f32.mrb[17].mxu0  ;;  %v947_v37 = vpack.c.bf16 %v922_v33, %v921_v32 }
 0x107   : > { %v783_v38 = vadd.f32 %v17333_v24, %v782_v36  ;;  %v15308_v39 = vpop.f32.mrb[18].mxu0 }
 0x108   : > { %vm863_vm3 = vcmp.ge.f32.partialorder %v791_v35, 0.0  ;;  %v895_v40 = vmul.f32 0.2, %v791_v35  ;;  %v794_v41 = vadd.f32 %v15308_v39, %v17333_v24  ;;  %v785_v42 = vpop.f32.mrb[19].mxu0  ;;  %1402 = vmatpush1.bf16.msra.mxu1 %v947_v37 }
 0x109   : > { %vm861_vm4 = vcmp.ge.f32.partialorder %v783_v38, 0.0  ;;  %v893_v43 = vmul.f32 0.2, %v783_v38  ;;  %v786_v44 = vadd.f32 %v17333_v24, %v785_v42  ;;  %1403 = vmatprep.subr.bf16.mxu1 %v17189_v22 }
 0x10a   : > { %vm864_vm5 = vcmp.ge.f32.partialorder %v794_v41, 0.0  ;;  %v896_v45 = vmul.f32 0.2, %v794_v41  ;;  %v927_v47 = vsel %vm863_vm3, %v791_v35, %v895_v40  ;;  %vm1759_vm3 = vcmask 523264  }
 0x10b   : > { %vm862_vm6 = vcmp.ge.f32.partialorder %v786_v44, 0.0  ;;  %v894_v46 = vmul.f32 0.2, %v786_v44  ;;  %v925_v50 = vsel %vm861_vm4, %v783_v38, %v893_v43  ;;  %vm17191_vm4 = vmmov 0  }
 0x10c   : > { %1404 = vmatpush1.bf16.msra.mxu1 %v948_v34  ;;  %v928_v48 = vsel %vm864_vm5, %v794_v41, %v896_v45  ;;  %v15638_v45 = vld [vmem:[%s21342_s3 + $0x14] ss:$8 sps:$4 sm:$0xff]  }
 0x10d   : > { %v15311_v49 = vpop.f32.mrb[20].mxu0  ;;  %1405 = vmatprep.subr.bf16.mxu1 %v17189_v22  ;;  %v926_v51 = vsel %vm862_vm6, %v786_v44, %v894_v46  ;;  %v950_v52 = vpack.c.bf16 %v928_v48, %v927_v47  ;;  %v15640_v46 = vld [vmem:[%s21342_s3 + $0x10] ss:$8 sps:$4 sm:$0xff]   ;;  %v15641_v47 = vld [vmem:[%s21342_s3 + $0x24] ss:$8 sps:$4 sm:$0xff]  }
 0x10e   : > { %v807_v53 = vadd.f32 %v15311_v49, %v17333_v24  ;;  %v798_v54 = vpop.f32.mrb[21].mxu0  ;;  %v949_v55 = vpack.c.bf16 %v926_v51, %v925_v50  ;;  %v15643_v48 = vld [vmem:[%s21342_s3 + $0x20] ss:$8 sps:$4 sm:$0xff]   ;;  %v15644_v49 = vld [vmem:[%s21342_s3 + $0x34] ss:$8 sps:$4 sm:$0xff]  }
 0x10f   : > { %v799_v56 = vadd.f32 %v17333_v24, %v798_v54  ;;  %v15312_v57 = vpop.f32.mrb[22].mxu0  ;;  %v15646_v50 = vld [vmem:[%s21342_s3 + $0x30] ss:$8 sps:$4 sm:$0xff]   ;;  %v15647_v51 = vld [vmem:[%s21342_s3 + $0x44] ss:$8 sps:$4 sm:$0xff]  }
 0x110   : > { %vm867_vm7 = vcmp.ge.f32.partialorder %v807_v53, 0.0  ;;  %v899_v58 = vmul.f32 0.2, %v807_v53  ;;  %v810_v59 = vadd.f32 %v15312_v57, %v17333_v24  ;;  %v801_v60 = vpop.f32.mrb[23].mxu0  ;;  %1406 = vmatpush1.bf16.msra.mxu1 %v949_v55  ;;  %v15652_v54 = vld [vmem:[%s21342_s3 + $0x50] ss:$8 sps:$4 sm:$0xff]  }
 0x111   : > { %vm865_vm8 = vcmp.ge.f32.partialorder %v799_v56, 0.0  ;;  %v897_v61 = vmul.f32 0.2, %v799_v56  ;;  %v802_v62 = vadd.f32 %v17333_v24, %v801_v60  ;;  %1407 = vmatprep.subr.bf16.mxu1 %v17189_v22  ;;  %v15653_v55 = vld [vmem:[%s21342_s3 + $0x64] ss:$8 sps:$4 sm:$0xff]  }
 0x112   : > { %vm868_vm9 = vcmp.ge.f32.partialorder %v810_v59, 0.0  ;;  %v900_v63 = vmul.f32 0.2, %v810_v59  ;;  %v931_v1 = vsel %vm867_vm7, %v807_v53, %v899_v58  ;;  %v15650_v53 = vld [vmem:[%s21342_s3 + $0x54] ss:$8 sps:$4 sm:$0xff]  }
 0x113   : > { %vm866_vm10 = vcmp.ge.f32.partialorder %v802_v62, 0.0  ;;  %v898_v0 = vmul.f32 0.2, %v802_v62  ;;  %v929_v4 = vsel %vm865_vm8, %v799_v56, %v897_v61  ;;  %v15655_v56 = vld [vmem:[%s21342_s3 + $0x60] ss:$8 sps:$4 sm:$0xff]  }
 0x114   : > { %1408 = vmatpush1.bf16.msra.mxu1 %v950_v52  ;;  %v932_v2 = vsel %vm868_vm9, %v810_v59, %v900_v63  ;;  %v15649_v52 = vld [vmem:[%s21342_s3 + $0x40] ss:$8 sps:$4 sm:$0xff]   ;;  %v15656_v57 = vld [vmem:[%s21342_s3 + $0x74] ss:$8 sps:$4 sm:$0xff]   ;;  %v15658_v58 = vld [vmem:[%s21342_s3 + $0x70] ss:$8 sps:$4 sm:$0xff]  }
 0x115   : > { %v15315_v3 = vpop.f32.mrb[24].mxu0  ;;  %1409 = vmatprep.subr.bf16.mxu1 %v17189_v22  ;;  %v930_v5 = vsel %vm866_vm10, %v802_v62, %v898_v0  ;;  %v952_v6 = vpack.c.bf16 %v932_v2, %v931_v1  ;;  %v15659_v59 = vld [vmem:[%s21342_s3 + $0x84] ss:$8 sps:$4 sm:$0xff]   ;;  %v15661_v60 = vld [vmem:[%s21342_s3 + $0x80] ss:$8 sps:$4 sm:$0xff]  }
 0x116   : > { %v823_v7 = vadd.f32 %v15315_v3, %v17333_v24  ;;  %v814_v8 = vpop.f32.mrb[25].mxu0  ;;  %v951_v9 = vpack.c.bf16 %v930_v5, %v929_v4  ;;  %v15662_v61 = vld [vmem:[%s21342_s3 + $0x94] ss:$8 sps:$4 sm:$0xff]   ;;  %v15664_v62 = vld [vmem:[%s21342_s3 + $0x90] ss:$8 sps:$4 sm:$0xff]  }
 0x117   : > { %v815_v10 = vadd.f32 %v17333_v24, %v814_v8  ;;  %v15316_v11 = vpop.f32.mrb[26].mxu0  ;;  %v15665_v63 = vld [vmem:[%s21342_s3 + $0xa4] ss:$8 sps:$4 sm:$0xff]   ;;  %v15667_v0 = vld [vmem:[%s21342_s3 + $0xa0] ss:$8 sps:$4 sm:$0xff]  }
 0x118   : > { %vm871_vm11 = vcmp.ge.f32.partialorder %v823_v7, 0.0  ;;  %v903_v12 = vmul.f32 0.2, %v823_v7  ;;  %v826_v13 = vadd.f32 %v15316_v11, %v17333_v24  ;;  %v817_v14 = vpop.f32.mrb[27].mxu0  ;;  %1410 = vmatpush1.bf16.msra.mxu1 %v951_v9  ;;  %v15668_v1 = vld [vmem:[%s21342_s3 + $0xb4] ss:$8 sps:$4 sm:$0xff]  }
 0x119   : > { %vm869_vm12 = vcmp.ge.f32.partialorder %v815_v10, 0.0  ;;  %v901_v15 = vmul.f32 0.2, %v815_v10  ;;  %v818_v16 = vadd.f32 %v17333_v24, %v817_v14  ;;  %1411 = vmatprep.subr.bf16.mxu1 %v17189_v22  ;;  %v15670_v2 = vld [vmem:[%s21342_s3 + $0xb0] ss:$8 sps:$4 sm:$0xff]  }
 0x11a   : > { %vm872_vm13 = vcmp.ge.f32.partialorder %v826_v13, 0.0  ;;  %v904_v17 = vmul.f32 0.2, %v826_v13  ;;  %v935_v19 = vsel %vm871_vm11, %v823_v7, %v903_v12  ;;  %v15671_v3 = vld [vmem:[%s21342_s3 + $0xc4] ss:$8 sps:$4 sm:$0xff]   ;;  %v15733_v14 = vld [vmem:[%s21343_s4 + $0x30] sm:$0xff]  }
 0x11b   : > { %vm870_vm14 = vcmp.ge.f32.partialorder %v818_v16, 0.0  ;;  %v902_v18 = vmul.f32 0.2, %v818_v16  ;;  %v933_v23 = vsel %vm869_vm12, %v815_v10, %v901_v15  ;;  %v15673_v4 = vld [vmem:[%s21342_s3 + $0xc0] ss:$8 sps:$4 sm:$0xff]  }
 0x11c   : > { %1412 = vmatpush1.bf16.msra.mxu1 %v952_v6  ;;  %v936_v20 = vsel %vm872_vm13, %v826_v13, %v904_v17  ;;  %v15674_v5 = vld [vmem:[%s21342_s3 + $0xd4] ss:$8 sps:$4 sm:$0xff]   ;;  %v15676_v6 = vld [vmem:[%s21342_s3 + $0xd0] ss:$8 sps:$4 sm:$0xff]   ;;  %v15677_v7 = vld [vmem:[%s21342_s3 + $0xe4] ss:$8 sps:$4 sm:$0xff]  }
 0x11d   : > { %v15319_v21 = vpop.f32.mrb[28].mxu0  ;;  %1413 = vmatprep.subr.bf16.mxu1 %v17189_v22  ;;  %v934_v25 = vsel %vm870_vm14, %v818_v16, %v902_v18  ;;  %v954_v26 = vpack.c.bf16 %v936_v20, %v935_v19  ;;  %v15679_v8 = vld [vmem:[%s21342_s3 + $0xe0] ss:$8 sps:$4 sm:$0xff]   ;;  %v15680_v9 = vld [vmem:[%s21342_s3 + $0xf4] ss:$8 sps:$4 sm:$0xff]  }
 0x11e   : > { %v839_v27 = vadd.f32 %v15319_v21, %v17333_v24  ;;  %v830_v28 = vpop.f32.mrb[29].mxu0  ;;  %v953_v29 = vpack.c.bf16 %v934_v25, %v933_v23  ;;  %v15728_v10 = vld [vmem:[%s21343_s4 + $0x20] sm:$0xff]   ;;  %v15682_v11 = vld [vmem:[%s21342_s3 + $0xf0] ss:$8 sps:$4 sm:$0xff]   ;;  %v15729_v12 = vld [vmem:[%s21343_s4 + $0x28] sm:$0xff]  }
 0x11f   : > { %v831_v30 = vadd.f32 %v17333_v24, %v830_v28  ;;  %v15320_v31 = vpop.f32.mrb[30].mxu0  ;;  %15321 = vmatprep.subr.bf16.mxu0 %v15728_v10  ;;  %v15683_v13 = vld [vmem:[%s21342_s3 + $0x104] ss:$8 sps:$4 sm:$0xff]   ;;  %v15685_v15 = vld [vmem:[%s21342_s3 + $0x100] ss:$8 sps:$4 sm:$0xff]   ;;  %v15734_v16 = vld [vmem:[%s21343_s4 + $0x38] sm:$0xff]  }
 0x120   : > { %vm875_vm15 = vcmp.ge.f32.partialorder %v839_v27, 0.0  ;;  %v907_v32 = vmul.f32 0.2, %v839_v27  ;;  %v842_v33 = vadd.f32 %v15320_v31, %v17333_v24  ;;  %v833_v34 = vpop.f32.mrb[31].mxu0  ;;  %1414 = vmatpush1.bf16.msra.mxu1 %v953_v29  ;;  %15322 = vmatpush3.bf16.msra.mxu0 %v15728_v10  ;;  %v15686_v17 = vld [vmem:[%s21342_s3 + $0x114] ss:$8 sps:$4 sm:$0xff]  }
 0x121   : > { %vm873_vm0 = vcmp.ge.f32.partialorder %v831_v30, 0.0  ;;  %v905_v35 = vmul.f32 0.2, %v831_v30  ;;  %v834_v36 = vadd.f32 %v17333_v24, %v833_v34  ;;  %1415 = vmatprep.subr.bf16.mxu1 %v17189_v22  ;;  %v15635_v24 = vld [vmem:[%s21342_s3] ss:$8 sps:$4 sm:$0xff]   ;;  %15323 = vmatprep.subr.bf16.mxu0 %v15729_v12 }
 0x122   : > { %vm876_vm1 = vcmp.ge.f32.partialorder %v842_v33, 0.0  ;;  %v908_v37 = vmul.f32 0.2, %v842_v33  ;;  %v939_v39 = vsel %vm875_vm15, %v839_v27, %v907_v32  ;;  %v15688_v18 = vld [vmem:[%s21342_s3 + $0x110] ss:$8 sps:$4 sm:$0xff]   ;;  %v17505_v20 = vld [vmem:[%s21343_s4] sm:$0xff]  }
 0x123   : > { %vm874_vm2 = vcmp.ge.f32.partialorder %v834_v36, 0.0  ;;  %v906_v38 = vmul.f32 0.2, %v834_v36  ;;  %v937_v41 = vsel %vm873_vm0, %v831_v30, %v905_v35  ;;  %v15689_v19 = vld [vmem:[%s21342_s3 + $0x124] ss:$8 sps:$4 sm:$0xff]  }
 0x124   : > { %1416 = vmatpush1.bf16.msra.mxu1 %v954_v26  ;;  %v940_v40 = vsel %vm876_vm1, %v842_v33, %v908_v37  ;;  %15324 = vmatpush3.bf16.msra.mxu0 %v15729_v12  ;;  %v15691_v21 = vld [vmem:[%s21342_s3 + $0x120] ss:$8 sps:$4 sm:$0xff]   ;;  %v15692_v23 = vld [vmem:[%s21342_s3 + $0x134] ss:$8 sps:$4 sm:$0xff]   ;;  %v15694_v25 = vld [vmem:[%s21342_s3 + $0x130] ss:$8 sps:$4 sm:$0xff]  }
 0x125   : > { %1417 = vmatprep.subr.bf16.mxu1 %v17189_v22  ;;  %v938_v42 = vsel %vm874_vm2, %v834_v36, %v906_v38  ;;  %v956_v43 = vpack.c.bf16 %v940_v40, %v939_v39  ;;  %15325 = vmatprep.subr.bf16.mxu0 %v15733_v14  ;;  %v15695_v26 = vld [vmem:[%s21342_s3 + $0x144] ss:$8 sps:$4 sm:$0xff]   ;;  %v15697_v27 = vld [vmem:[%s21342_s3 + $0x140] ss:$8 sps:$4 sm:$0xff]   ;;  %v15698_v28 = vld [vmem:[%s21342_s3 + $0x154] ss:$8 sps:$4 sm:$0xff]  }
 0x126   : > { %v955_v44 = vpack.c.bf16 %v938_v42, %v937_v41  ;;  %v15700_v29 = vld [vmem:[%s21342_s3 + $0x150] ss:$8 sps:$4 sm:$0xff]   ;;  %v15701_v30 = vld [vmem:[%s21342_s3 + $0x164] ss:$8 sps:$4 sm:$0xff]   ;;  %v15703_v31 = vld [vmem:[%s21342_s3 + $0x160] ss:$8 sps:$4 sm:$0xff]  }
 0x127   : > { %v15704_v32 = vld [vmem:[%s21342_s3 + $0x174] ss:$8 sps:$4 sm:$0xff]   ;;  %v15706_v33 = vld [vmem:[%s21342_s3 + $0x170] ss:$8 sps:$4 sm:$0xff]   ;;  %v15707_v34 = vld [vmem:[%s21342_s3 + $0x184] ss:$8 sps:$4 sm:$0xff]  }
 0x128   : > { %1418 = vmatpush1.bf16.msra.mxu1 %v955_v44  ;;  %15326 = vmatpush3.bf16.msra.mxu0 %v15733_v14  ;;  %v15709_v35 = vld [vmem:[%s21342_s3 + $0x180] ss:$8 sps:$4 sm:$0xff]   ;;  %v15710_v36 = vld [vmem:[%s21342_s3 + $0x194] ss:$8 sps:$4 sm:$0xff]   ;;  %v15712_v37 = vld [vmem:[%s21342_s3 + $0x190] ss:$8 sps:$4 sm:$0xff]  }
 0x129   : > { %1419 = vmatprep.subr.bf16.mxu1 %v17189_v22  ;;  %15327 = vmatprep.subr.bf16.mxu0 %v15734_v16  ;;  %v15713_v38 = vld [vmem:[%s21342_s3 + $0x1a4] ss:$8 sps:$4 sm:$0xff]   ;;  %v15715_v39 = vld [vmem:[%s21342_s3 + $0x1a0] ss:$8 sps:$4 sm:$0xff]   ;;  %v15716_v40 = vld [vmem:[%s21342_s3 + $0x1b4] ss:$8 sps:$4 sm:$0xff]  }
 0x12a   : > { %v15718_v41 = vld [vmem:[%s21342_s3 + $0x1b0] ss:$8 sps:$4 sm:$0xff]   ;;  %vm4492_vm1 = vcmask 130048  }
 0x12c   : > { %1420 = vmatpush1.bf16.msra.mxu1 %v956_v43  ;;  %15328 = vmatpush3.bf16.msra.mxu0 %v15734_v16  ;;  %v15719_v43 = vld [vmem:[%s21342_s3 + $0x1c4] ss:$8 sps:$4 sm:$0xff]  }
 0x12d   : > { %15337 = vmatprep.subr.bf16.mxu0 %v17505_v20 }
 0x12f   : > { %1422 = vmatmul.mubr.bf16.vlgmr.msra.gmra.mrb[0].mxu1 %v15635_v24 }
 0x130   : > { %1429 = vmatprep.mubr.bf16.mxu1 %v15638_v45 }
 0x137   : > { %1430 = vmatmul.mubr.bf16.gmra.mrb[4].mxu1 %v15640_v46 }
 0x138   : > { %1437 = vmatprep.mubr.bf16.mxu1 %v15641_v47  ;;  %v15721_v47 = vld [vmem:[%s21342_s3 + $0x1c0] ss:$8 sps:$4 sm:$0xff]  }
 0x13f   : > { %1438 = vmatmul.mubr.bf16.gmra.mrb[8].mxu1 %v15643_v48 }
 0x140   : > { %1445 = vmatprep.mubr.bf16.mxu1 %v15644_v49  ;;  %v15722_v49 = vld [vmem:[%s21342_s3 + $0x1d4] ss:$8 sps:$4 sm:$0xff]  }
 0x147   : > { %1446 = vmatmul.mubr.bf16.gmra.mrb[12].mxu1 %v15646_v50 }
 0x148   : > { %1453 = vmatprep.mubr.bf16.mxu1 %v15647_v51 }
 0x14f   : > { %1454 = vmatmul.mubr.bf16.gmra.mrb[16].mxu1 %v15649_v52 }
 0x150   : > { %1461 = vmatprep.mubr.bf16.mxu1 %v15650_v53 }
 0x157   : > { %1462 = vmatmul.mubr.bf16.gmra.mrb[20].mxu1 %v15652_v54  ;;  %v15724_v54 = vld [vmem:[%s21342_s3 + $0x1d0] ss:$8 sps:$4 sm:$0xff]  }
 0x158   : > { %1469 = vmatprep.mubr.bf16.mxu1 %v15653_v55 }
 0x15f   : > { %1470 = vmatmul.mubr.bf16.gmra.mrb[24].mxu1 %v15655_v56  ;;  %v15725_v56 = vld [vmem:[%s21342_s3 + $0x1e4] ss:$8 sps:$4 sm:$0xff]  }
 0x160   : > { %1477 = vmatprep.mubr.bf16.mxu1 %v15656_v57 }
 0x167   : > { %1478 = vmatmul.mubr.bf16.gmra.mrb[28].mxu1 %v15658_v58 }
 0x168   : > { %1485 = vmatprep.mubr.bf16.mxu1 %v15659_v59 }
 0x16f   : > { %1486 = vmatmul.mubr.bf16.gmra.mrb[32].mxu1 %v15661_v60 }
 0x170   : > { %1493 = vmatprep.mubr.bf16.mxu1 %v15662_v61  ;;  %v15727_v61 = vld [vmem:[%s21342_s3 + $0x1e0] ss:$8 sps:$4 sm:$0xff]  }
 0x177   : > { %1494 = vmatmul.mubr.bf16.gmra.mrb[36].mxu1 %v15664_v62 }
 0x178   : > { %1501 = vmatprep.mubr.bf16.mxu1 %v15665_v63  ;;  %v15730_v63 = vld [vmem:[%s21342_s3 + $0x1f4] ss:$8 sps:$4 sm:$0xff]  }
 0x17f   : > { %1502 = vmatmul.mubr.bf16.gmra.mrb[40].mxu1 %v15667_v0 }
 0x180   : > { %1509 = vmatprep.mubr.bf16.mxu1 %v15668_v1 }
 0x187   : > { %1510 = vmatmul.mubr.bf16.gmra.mrb[44].mxu1 %v15670_v2 }
 0x188   : > { %1517 = vmatprep.mubr.bf16.mxu1 %v15671_v3 }
 0x18f   : > { %1518 = vmatmul.mubr.bf16.gmra.mrb[48].mxu1 %v15673_v4  ;;  %v15732_v4 = vld [vmem:[%s21342_s3 + $0x1f0] ss:$8 sps:$4 sm:$0xff]  }
 0x190   : > { %1525 = vmatprep.mubr.bf16.mxu1 %v15674_v5 }
 0x197   : > { %1526 = vmatmul.mubr.bf16.gmra.mrb[52].mxu1 %v15676_v6  ;;  %v15735_v6 = vld [vmem:[%s21342_s3 + $0x204] ss:$8 sps:$4 sm:$0xff]  }
 0x198   : > { %1533 = vmatprep.mubr.bf16.mxu1 %v15677_v7 }
 0x19f   : > { %1534 = vmatmul.mubr.bf16.gmra.mrb[56].mxu1 %v15679_v8 }
 0x1a0   : > { %1541 = vmatprep.mubr.bf16.mxu1 %v15680_v9 }
 0x1a7   : > { %1542 = vmatmul.mubr.bf16.gmra.mrb[60].mxu1 %v15682_v11  ;;  %v15737_v11 = vld [vmem:[%s21342_s3 + $0x200] ss:$8 sps:$4 sm:$0xff]  }
 0x1a8   : > { %1549 = vmatprep.mubr.bf16.mxu1 %v15683_v13  ;;  %v15738_v13 = vld [vmem:[%s21342_s3 + $0x214] ss:$8 sps:$4 sm:$0xff]  }
 0x1af   : > { %1550 = vmatmul.mubr.bf16.gmra.mrb[64].mxu1 %v15685_v15 }
 0x1b0   : > { %1557 = vmatprep.mubr.bf16.mxu1 %v15686_v17 }
 0x1b7   : > { %1558 = vmatmul.mubr.bf16.gmra.mrb[68].mxu1 %v15688_v18  ;;  %v15742_v18 = vld [vmem:[%s21343_s4 + $0x8] sm:$0xff]  }
 0x1b8   : > { %1565 = vmatprep.mubr.bf16.mxu1 %v15689_v19  ;;  %v15746_v19 = vld [vmem:[%s21343_s4 + $0x10] sm:$0xff]  }
 0x1bf   : > { %1566 = vmatmul.mubr.bf16.gmra.mrb[72].mxu1 %v15691_v21 }
 0x1c0   : > { %1573 = vmatprep.mubr.bf16.mxu1 %v15692_v23 }
 0x1c7   : > { %1574 = vmatmul.mubr.bf16.gmra.mrb[76].mxu1 %v15694_v25  ;;  %v15740_v25 = vld [vmem:[%s21342_s3 + $0x210] ss:$8 sps:$4 sm:$0xff]  }
 0x1c8   : > { %1581 = vmatprep.mubr.bf16.mxu1 %v15695_v26 }
 0x1cf   : > { %1582 = vmatmul.mubr.bf16.gmra.mrb[80].mxu1 %v15697_v27  ;;  %v15743_v27 = vld [vmem:[%s21342_s3 + $0x224] ss:$8 sps:$4 sm:$0xff]  }
 0x1d0   : > { %1589 = vmatprep.mubr.bf16.mxu1 %v15698_v28 }
 0x1d7   : > { %1590 = vmatmul.mubr.bf16.gmra.mrb[84].mxu1 %v15700_v29 }
 0x1d8   : > { %1597 = vmatprep.mubr.bf16.mxu1 %v15701_v30  ;;  %v15751_v30 = vld [vmem:[%s21343_s4 + $0x40] sm:$0xff]  }
 0x1df   : > { %1598 = vmatmul.mubr.bf16.gmra.mrb[88].mxu1 %v15703_v31 }
 0x1e0   : > { %1605 = vmatprep.mubr.bf16.mxu1 %v15704_v32 }
 0x1e7   : > { %1606 = vmatmul.mubr.bf16.gmra.mrb[92].mxu1 %v15706_v33  ;;  %v15745_v33 = vld [vmem:[%s21342_s3 + $0x220] ss:$8 sps:$4 sm:$0xff]  }
 0x1e8   : > { %1613 = vmatprep.mubr.bf16.mxu1 %v15707_v34 }
 0x1ef   : > { %1614 = vmatmul.mubr.bf16.gmra.mrb[96].mxu1 %v15709_v35  ;;  %v15748_v35 = vld [vmem:[%s21342_s3 + $0x234] ss:$8 sps:$4 sm:$0xff]  }
 0x1f0   : > { %1621 = vmatprep.mubr.bf16.mxu1 %v15710_v36 }
 0x1f7   : > { %1622 = vmatmul.mubr.bf16.gmra.mrb[100].mxu1 %v15712_v37 }
 0x1f8   : > { %1629 = vmatprep.mubr.bf16.mxu1 %v15713_v38 }
 0x1ff   : > { %1630 = vmatmul.mubr.bf16.gmra.mrb[104].mxu1 %v15715_v39 }
 0x200   : > { %1637 = vmatprep.mubr.bf16.mxu1 %v15716_v40  ;;  %v15750_v40 = vld [vmem:[%s21342_s3 + $0x230] ss:$8 sps:$4 sm:$0xff]  }
 0x202   : > { %v17565_v42 = vpop.f32.mrb[0].mxu1 }
 0x203   : > { %v1425_v44 = vpop.f32.mrb[1].mxu1 }
 0x204   : > { %v17570_v24 = vpop.f32.mrb[2].mxu1 }
 0x205   : > { %v1710_v45 = vpack.c.bf16 %v17570_v24, %v17565_v42  ;;  %v1428_v46 = vpop.f32.mrb[3].mxu1  ;;  %v15753_v42 = vld [vmem:[%s21343_s4 + $0x50] sm:$0xff]  }
 0x206   : > { %v15752_v46 = vld [vmem:[%s21343_s4 + $0x48] sm:$0xff]  }
 0x207   : > { %1638 = vmatmul.mubr.bf16.gmra.mrb[108].mxu1 %v15718_v41 }
 0x208   : > { %1645 = vmatprep.mubr.bf16.mxu1 %v15719_v43 }
 0x20a   : > { %v17577_v48 = vpop.f32.mrb[4].mxu1 }
 0x20b   : > { %v1433_v50 = vpop.f32.mrb[5].mxu1 }
 0x20c   : > { %v17582_v51 = vpop.f32.mrb[6].mxu1  ;;  %v15754_v50 = vld [vmem:[%s21343_s4 + $0x58] sm:$0xff]  }
 0x20d   : > { %v1711_v52 = vpack.c.bf16 %v17582_v51, %v17577_v48  ;;  %v1436_v53 = vpop.f32.mrb[7].mxu1  ;;  %v15755_v51 = vld [vmem:[%s21343_s4 + $0x60] sm:$0xff]  }
 0x20f   : > { %1646 = vmatmul.mubr.bf16.gmra.mrb[112].mxu1 %v15721_v47 }
 0x210   : > { %1653 = vmatprep.mubr.bf16.mxu1 %v15722_v49 }
 0x212   : > { %v17589_v55 = vpop.f32.mrb[8].mxu1 }
 0x213   : > { %v1441_v57 = vpop.f32.mrb[9].mxu1 }
 0x214   : > { %v17594_v58 = vpop.f32.mrb[10].mxu1  ;;  %v15756_v57 = vld [vmem:[%s21343_s4 + $0x68] sm:$0xff]  }
 0x215   : > { %v1712_v59 = vpack.c.bf16 %v17594_v58, %v17589_v55  ;;  %v1444_v60 = vpop.f32.mrb[11].mxu1  ;;  %v15757_v58 = vld [vmem:[%s21343_s4 + $0x70] sm:$0xff]  }
 0x217   : > { %1654 = vmatmul.mubr.bf16.gmra.mrb[116].mxu1 %v15724_v54 }
 0x218   : > { %1661 = vmatprep.mubr.bf16.mxu1 %v15725_v56 }
 0x21a   : > { %v17601_v62 = vpop.f32.mrb[12].mxu1 }
 0x21b   : > { %v1449_v0 = vpop.f32.mrb[13].mxu1 }
 0x21c   : > { %v17606_v1 = vpop.f32.mrb[14].mxu1  ;;  %v15758_v0 = vld [vmem:[%s21343_s4 + $0x78] sm:$0xff]  }
 0x21d   : > { %v1713_v2 = vpack.c.bf16 %v17606_v1, %v17601_v62  ;;  %v1452_v3 = vpop.f32.mrb[15].mxu1  ;;  %v15759_v1 = vld [vmem:[%s21343_s4 + $0x80] sm:$0xff]  }
 0x21f   : > { %1662 = vmatmul.mubr.bf16.gmra.mrb[120].mxu1 %v15727_v61 }
 0x220   : > { %1669 = vmatprep.mubr.bf16.mxu1 %v15730_v63 }
 0x222   : > { %v1455_v5 = vpop.f32.mrb[16].mxu1 }
 0x223   : > { %v1457_v7 = vpop.f32.mrb[17].mxu1 }
 0x224   : > { %v1458_v8 = vpop.f32.mrb[18].mxu1 }
 0x225   : > { %v1722_v9 = vpack.c.bf16 %v1458_v8, %v1455_v5  ;;  %v1460_v10 = vpop.f32.mrb[19].mxu1 }
 0x227   : > { %1670 = vmatmul.mubr.bf16.gmra.mrb[124].mxu1 %v15732_v4  ;;  %15329 = vmatprep.mubr.msk.bf16.mxu0 %vm1759_vm3, %v1722_v9 }
 0x228   : > { %1677 = vmatprep.mubr.bf16.mxu1 %v15735_v6 }
 0x22a   : > { %v1463_v12 = vpop.f32.mrb[20].mxu1 }
 0x22b   : > { %v1465_v14 = vpop.f32.mrb[21].mxu1 }
 0x22c   : > { %v1466_v15 = vpop.f32.mrb[22].mxu1 }
 0x22d   : > { %v1723_v16 = vpack.c.bf16 %v1466_v15, %v1463_v12  ;;  %v1468_v17 = vpop.f32.mrb[23].mxu1  ;;  %v15760_v12 = vld [vmem:[%s21343_s4 + $0x88] sm:$0xff]  }
 0x22f   : > { %1678 = vmatmul.mubr.bf16.gmra.mrb[128].mxu1 %v15737_v11  ;;  %15330 = vmatmul.mubr.msk.bf16.vlgmr.msra.gmra.mrb[32].mxu0 %vm1759_vm3, %v1723_v16 }
 0x230   : > { %1685 = vmatprep.mubr.bf16.mxu1 %v15738_v13  ;;  %15338 = vmatpush3.bf16.msra.mxu0 %v17505_v20  ;;  %v15747_v20 = vld [vmem:[%s21343_s4 + $0x18] sm:$0xff]   ;;  %v15761_v13 = vld [vmem:[%s21343_s4 + $0x90] sm:$0xff]  }
 0x231   : > { %15339 = vmatprep.subr.bf16.mxu0 %v15742_v18 }
 0x232   : > { %v1471_v21 = vpop.f32.mrb[24].mxu1 }
 0x233   : > { %v1473_v23 = vpop.f32.mrb[25].mxu1 }
 0x234   : > { %v1474_v26 = vpop.f32.mrb[26].mxu1  ;;  %15340 = vmatpush3.bf16.msra.mxu0 %v15742_v18 }
 0x235   : > { %v1724_v28 = vpack.c.bf16 %v1474_v26, %v1471_v21  ;;  %v1476_v29 = vpop.f32.mrb[27].mxu1  ;;  %15341 = vmatprep.subr.bf16.mxu0 %v15746_v19  ;;  %v15763_v21 = vld [vmem:[%s21343_s4 + $0xa0] sm:$0xff]  }
 0x237   : > { %1686 = vmatmul.mubr.bf16.gmra.mrb[132].mxu1 %v15740_v25  ;;  %15333 = vmatprep.mubr.msk.bf16.mxu0 %vm1759_vm3, %v1724_v28 }
 0x238   : > { %1693 = vmatprep.mubr.bf16.mxu1 %v15743_v27  ;;  %15342 = vmatpush3.bf16.msra.mxu0 %v15746_v19  ;;  %v15762_v19 = vld [vmem:[%s21343_s4 + $0x98] sm:$0xff]  }
 0x239   : > { %15343 = vmatprep.subr.bf16.mxu0 %v15747_v20 }
 0x23a   : > { %v1479_v31 = vpop.f32.mrb[28].mxu1 }
 0x23b   : > { %v1481_v32 = vpop.f32.mrb[29].mxu1 }
 0x23c   : > { %v1482_v34 = vpop.f32.mrb[30].mxu1  ;;  %15344 = vmatpush3.bf16.msra.mxu0 %v15747_v20 }
 0x23d   : > { %v1725_v36 = vpack.c.bf16 %v1482_v34, %v1479_v31  ;;  %v1484_v37 = vpop.f32.mrb[31].mxu1  ;;  %15353 = vmatprep.subr.bf16.mxu0 %v15751_v30 }
 0x23f   : > { %1694 = vmatmul.mubr.bf16.gmra.mrb[136].mxu1 %v15745_v33  ;;  %15334 = vmatmul.mubr.msk.bf16.gmra.mrb[36].mxu0 %vm1759_vm3, %v1725_v36 }
 0x240   : > { %15345 = vmatprep.mubr.msk.bf16.mxu0 %vm1759_vm3, %v1710_v45  ;;  %1701 = vmatprep.mubr.bf16.mxu1 %v15748_v35 }
 0x242   : > { %v1487_v38 = vpop.f32.mrb[32].mxu1 }
 0x243   : > { %v1489_v39 = vpop.f32.mrb[33].mxu1 }
 0x244   : > { %v1490_v41 = vpop.f32.mrb[34].mxu1  ;;  %v15765_v39 = vld [vmem:[%s21343_s4 + $0xb0] sm:$0xff]  }
 0x245   : > { %v1938_v43 = vpack.c.bf16 %v1490_v41, %v1487_v38  ;;  %v1492_v44 = vpop.f32.mrb[35].mxu1  ;;  %v15764_v38 = vld [vmem:[%s21343_s4 + $0xa8] sm:$0xff]  }
 0x247   : > { %1702 = vmatmul.mubr.bf16.gmra.mrb[140].mxu1 %v15750_v40  ;;  %15346 = vmatmul.mubr.msk.bf16.vlgmr.msra.gmra.mrb[32].mxu0 %vm1759_vm3, %v1711_v52 }
 0x248   : > { %15349 = vmatprep.mubr.msk.bf16.mxu0 %vm1759_vm3, %v1712_v59  ;;  %15354 = vmatpush3.bf16.msra.mxu0 %v15751_v30 }
 0x249   : > { %15355 = vmatprep.subr.bf16.mxu0 %v15752_v46  ;;  %4540 = vmatprep.mubr.bf16.mxu1 %v17189_v22 }
 0x24a   : > { %v1495_v24 = vpop.f32.mrb[36].mxu1 }
 0x24b   : > { %v1497_v45 = vpop.f32.mrb[37].mxu1 }
 0x24c   : > { %v1498_v47 = vpop.f32.mrb[38].mxu1  ;;  %15356 = vmatpush3.bf16.msra.mxu0 %v15752_v46 }
 0x24d   : > { %v1939_v48 = vpack.c.bf16 %v1498_v47, %v1495_v24  ;;  %v1500_v49 = vpop.f32.mrb[39].mxu1  ;;  %15357 = vmatprep.subr.bf16.mxu0 %v15753_v42  ;;  %v15767_v24 = vld [vmem:[%s21343_s4 + $0xc0] sm:$0xff]  }
 0x24f   : > { %15350 = vmatmul.mubr.msk.bf16.gmra.mrb[36].mxu0 %vm1759_vm3, %v1713_v2 }
 0x250   : > { %15358 = vmatpush3.bf16.msra.mxu0 %v15753_v42  ;;  %15361 = vmatprep.mubr.msk.bf16.mxu0 %vm1759_vm3, %v1938_v43  ;;  %v15766_v42 = vld [vmem:[%s21343_s4 + $0xb8] sm:$0xff]  }
 0x251   : > { %15359 = vmatprep.subr.bf16.mxu0 %v15754_v50 }
 0x252   : > { %v1503_v52 = vpop.f32.mrb[40].mxu1 }
 0x253   : > { %v1505_v53 = vpop.f32.mrb[41].mxu1 }
 0x254   : > { %v1506_v54 = vpop.f32.mrb[42].mxu1  ;;  %15360 = vmatpush3.bf16.msra.mxu0 %v15754_v50 }
 0x255   : > { %v1940_v55 = vpack.c.bf16 %v1506_v54, %v1503_v52  ;;  %v1508_v56 = vpop.f32.mrb[43].mxu1  ;;  %15369 = vmatprep.subr.bf16.mxu0 %v15755_v51 }
 0x257   : > { %15362 = vmatmul.mubr.msk.bf16.vlgmr.msra.gmra.mrb[32].mxu0 %vm1759_vm3, %v1939_v48 }
 0x258   : > { %15365 = vmatprep.mubr.msk.bf16.mxu0 %vm1759_vm3, %v1940_v55  ;;  %15370 = vmatpush3.bf16.msra.mxu0 %v15755_v51 }
 0x259   : > { %15371 = vmatprep.subr.bf16.mxu0 %v15756_v57 }
 0x25a   : > { %v1511_v59 = vpop.f32.mrb[44].mxu1 }
 0x25b   : > { %v1513_v60 = vpop.f32.mrb[45].mxu1 }
 0x25c   : > { %v1514_v61 = vpop.f32.mrb[46].mxu1  ;;  %15372 = vmatpush3.bf16.msra.mxu0 %v15756_v57 }
 0x25d   : > { %v1941_v62 = vpack.c.bf16 %v1514_v61, %v1511_v59  ;;  %v1516_v63 = vpop.f32.mrb[47].mxu1  ;;  %15373 = vmatprep.subr.bf16.mxu0 %v15757_v58  ;;  %v15768_v61 = vld [vmem:[%s21343_s4 + $0xc8] sm:$0xff]  }
 0x25f   : > { %15366 = vmatmul.mubr.msk.bf16.gmra.mrb[36].mxu0 %vm1759_vm3, %v1941_v62  ;;  %v15769_v62 = vld [vmem:[%s21343_s4 + $0xd0] sm:$0xff]  }
 0x260   : > { %15374 = vmatpush3.bf16.msra.mxu0 %v15757_v58 }
 0x261   : > { %15375 = vmatprep.subr.bf16.mxu0 %v15758_v0 }
 0x262   : > { %v1519_v2 = vpop.f32.mrb[48].mxu1 }
 0x263   : > { %v1521_v3 = vpop.f32.mrb[49].mxu1 }
 0x264   : > { %v1522_v4 = vpop.f32.mrb[50].mxu1  ;;  %15376 = vmatpush3.bf16.msra.mxu0 %v15758_v0 }
 0x265   : > { %v2060_v5 = vpack.c.bf16 %v1522_v4, %v1519_v2  ;;  %v1524_v6 = vpop.f32.mrb[51].mxu1  ;;  %15385 = vmatprep.subr.bf16.mxu0 %v15759_v1  ;;  %v15770_v4 = vld [vmem:[%s21343_s4 + $0xd8] sm:$0xff]  }
 0x267   : > { %15377 = vmatprep.mubr.msk.bf16.mxu0 %vm1759_vm3, %v2060_v5  ;;  %v15771_v5 = vld [vmem:[%s21343_s4 + $0xe0] sm:$0xff]  }
 0x26a   : > { %v1527_v7 = vpop.f32.mrb[52].mxu1 }
 0x26b   : > { %v1529_v8 = vpop.f32.mrb[53].mxu1 }
 0x26c   : > { %v1530_v9 = vpop.f32.mrb[54].mxu1 }
 0x26d   : > { %v2061_v10 = vpack.c.bf16 %v1530_v9, %v1527_v7  ;;  %v1532_v11 = vpop.f32.mrb[55].mxu1 }
 0x26f   : > { %15378 = vmatmul.mubr.msk.bf16.vlgmr.msra.gmra.mrb[32].mxu0 %vm1759_vm3, %v2061_v10 }
 0x270   : > { %15386 = vmatpush3.bf16.msra.mxu0 %v15759_v1 }
 0x271   : > { %15387 = vmatprep.subr.bf16.mxu0 %v15760_v12 }
 0x272   : > { %v1535_v14 = vpop.f32.mrb[56].mxu1 }
 0x273   : > { %v1537_v15 = vpop.f32.mrb[57].mxu1 }
 0x274   : > { %v1538_v16 = vpop.f32.mrb[58].mxu1  ;;  %15388 = vmatpush3.bf16.msra.mxu0 %v15760_v12 }
 0x275   : > { %v2062_v17 = vpack.c.bf16 %v1538_v16, %v1535_v14  ;;  %v1540_v18 = vpop.f32.mrb[59].mxu1  ;;  %15389 = vmatprep.subr.bf16.mxu0 %v15761_v13 }
 0x277   : > { %15381 = vmatprep.mubr.msk.bf16.mxu0 %vm1759_vm3, %v2062_v17 }
 0x278   : > { %15390 = vmatpush3.bf16.msra.mxu0 %v15761_v13 }
 0x279   : > { %15391 = vmatprep.subr.bf16.mxu0 %v15762_v19 }
 0x27a   : > { %v1543_v23 = vpop.f32.mrb[60].mxu1 }
 0x27b   : > { %v1545_v25 = vpop.f32.mrb[61].mxu1 }
 0x27c   : > { %v1546_v26 = vpop.f32.mrb[62].mxu1  ;;  %15392 = vmatpush3.bf16.msra.mxu0 %v15762_v19  ;;  %v15773_v25 = vld [vmem:[%s21343_s4 + $0xf0] sm:$0xff]  }
 0x27d   : > { %v2063_v27 = vpack.c.bf16 %v1546_v26, %v1543_v23  ;;  %v1548_v28 = vpop.f32.mrb[63].mxu1  ;;  %15401 = vmatprep.subr.bf16.mxu0 %v15763_v21  ;;  %v15772_v23 = vld [vmem:[%s21343_s4 + $0xe8] sm:$0xff]  }
 0x27f   : > { %15382 = vmatmul.mubr.msk.bf16.gmra.mrb[36].mxu0 %vm1759_vm3, %v2063_v27 }
 0x282   : > { %v1551_v29 = vpop.f32.mrb[64].mxu1 }
 0x283   : > { %v1553_v20 = vpop.f32.mrb[65].mxu1 }
 0x284   : > { %v1554_v30 = vpop.f32.mrb[66].mxu1 }
 0x285   : > { %v2182_v31 = vpack.c.bf16 %v1554_v30, %v1551_v29  ;;  %v1556_v32 = vpop.f32.mrb[67].mxu1  ;;  %v15774_v30 = vld [vmem:[%s21343_s4 + $0xf8] sm:$0xff]  }
 0x287   : > { %15393 = vmatprep.mubr.msk.bf16.mxu0 %vm1759_vm3, %v2182_v31  ;;  %v15775_v31 = vld [vmem:[%s21343_s4 + $0x100] sm:$0xff]  }
 0x28a   : > { %v1559_v33 = vpop.f32.mrb[68].mxu1 }
 0x28b   : > { %v1561_v34 = vpop.f32.mrb[69].mxu1 }
 0x28c   : > { %v1562_v35 = vpop.f32.mrb[70].mxu1 }
 0x28d   : > { %v2183_v36 = vpack.c.bf16 %v1562_v35, %v1559_v33  ;;  %v1564_v37 = vpop.f32.mrb[71].mxu1 }
 0x28f   : > { %15394 = vmatmul.mubr.msk.bf16.vlgmr.msra.gmra.mrb[32].mxu0 %vm1759_vm3, %v2183_v36 }
 0x290   : > { %15402 = vmatpush3.bf16.msra.mxu0 %v15763_v21 }
 0x291   : > { %15403 = vmatprep.subr.bf16.mxu0 %v15764_v38 }
 0x292   : > { %v1567_v40 = vpop.f32.mrb[72].mxu1 }
 0x293   : > { %v1569_v41 = vpop.f32.mrb[73].mxu1 }
 0x294   : > { %v1570_v43 = vpop.f32.mrb[74].mxu1  ;;  %15404 = vmatpush3.bf16.msra.mxu0 %v15764_v38 }
 0x295   : > { %v2184_v44 = vpack.c.bf16 %v1570_v43, %v1567_v40  ;;  %v1572_v46 = vpop.f32.mrb[75].mxu1  ;;  %15405 = vmatprep.subr.bf16.mxu0 %v15765_v39 }
 0x297   : > { %15397 = vmatprep.mubr.msk.bf16.mxu0 %vm1759_vm3, %v2184_v44 }
 0x298   : > { %15406 = vmatpush3.bf16.msra.mxu0 %v15765_v39 }
 0x299   : > { %15407 = vmatprep.subr.bf16.mxu0 %v15766_v42 }
 0x29a   : > { %v1575_v45 = vpop.f32.mrb[76].mxu1 }
 0x29b   : > { %v1577_v47 = vpop.f32.mrb[77].mxu1 }
 0x29c   : > { %v1578_v48 = vpop.f32.mrb[78].mxu1  ;;  %15408 = vmatpush3.bf16.msra.mxu0 %v15766_v42  ;;  %v15777_v47 = vld [vmem:[%s21343_s4 + $0x110] sm:$0xff]  }
 0x29d   : > { %v2185_v49 = vpack.c.bf16 %v1578_v48, %v1575_v45  ;;  %v1580_v50 = vpop.f32.mrb[79].mxu1  ;;  %15417 = vmatprep.subr.bf16.mxu0 %v15767_v24  ;;  %v15776_v45 = vld [vmem:[%s21343_s4 + $0x108] sm:$0xff]  }
 0x29f   : > { %15398 = vmatmul.mubr.msk.bf16.gmra.mrb[36].mxu0 %vm1759_vm3, %v2185_v49 }
 0x2a2   : > { %v1583_v51 = vpop.f32.mrb[80].mxu1 }
 0x2a3   : > { %v1585_v52 = vpop.f32.mrb[81].mxu1 }
 0x2a4   : > { %v1586_v53 = vpop.f32.mrb[82].mxu1 }
 0x2a5   : > { %v2304_v54 = vpack.c.bf16 %v1586_v53, %v1583_v51  ;;  %v1588_v55 = vpop.f32.mrb[83].mxu1  ;;  %v15778_v53 = vld [vmem:[%s21343_s4 + $0x118] sm:$0xff]  }
 0x2a7   : > { %15409 = vmatprep.mubr.msk.bf16.mxu0 %vm1759_vm3, %v2304_v54 }
 0x2aa   : > { %v1591_v56 = vpop.f32.mrb[84].mxu1 }
 0x2ab   : > { %v1593_v57 = vpop.f32.mrb[85].mxu1 }
 0x2ac   : > { %v1594_v58 = vpop.f32.mrb[86].mxu1 }
 0x2ad   : > { %v2305_v59 = vpack.c.bf16 %v1594_v58, %v1591_v56  ;;  %v1596_v60 = vpop.f32.mrb[87].mxu1 }
 0x2af   : > { %15410 = vmatmul.mubr.msk.bf16.vlgmr.msra.gmra.mrb[32].mxu0 %vm1759_vm3, %v2305_v59 }
 0x2b0   : > { %15418 = vmatpush3.bf16.msra.mxu0 %v15767_v24 }
 0x2b1   : > { %15419 = vmatprep.subr.bf16.mxu0 %v15768_v61 }
 0x2b2   : > { %v1599_v63 = vpop.f32.mrb[88].mxu1 }
 0x2b3   : > { %v1601_v0 = vpop.f32.mrb[89].mxu1 }
 0x2b4   : > { %v1602_v1 = vpop.f32.mrb[90].mxu1  ;;  %15420 = vmatpush3.bf16.msra.mxu0 %v15768_v61 }
 0x2b5   : > { %v2306_v2 = vpack.c.bf16 %v1602_v1, %v1599_v63  ;;  %v1604_v3 = vpop.f32.mrb[91].mxu1  ;;  %15421 = vmatprep.subr.bf16.mxu0 %v15769_v62 }
 0x2b7   : > { %15413 = vmatprep.mubr.msk.bf16.mxu0 %vm1759_vm3, %v2306_v2 }
 0x2b8   : > { %15422 = vmatpush3.bf16.msra.mxu0 %v15769_v62 }
 0x2b9   : > { %15423 = vmatprep.subr.bf16.mxu0 %v15770_v4 }
 0x2ba   : > { %v1607_v6 = vpop.f32.mrb[92].mxu1 }
 0x2bb   : > { %v1609_v7 = vpop.f32.mrb[93].mxu1 }
 0x2bc   : > { %v1610_v8 = vpop.f32.mrb[94].mxu1  ;;  %15424 = vmatpush3.bf16.msra.mxu0 %v15770_v4 }
 0x2bd   : > { %v2307_v9 = vpack.c.bf16 %v1610_v8, %v1607_v6  ;;  %v1612_v10 = vpop.f32.mrb[95].mxu1  ;;  %15433 = vmatprep.subr.bf16.mxu0 %v15771_v5 }
 0x2bf   : > { %15414 = vmatmul.mubr.msk.bf16.gmra.mrb[36].mxu0 %vm1759_vm3, %v2307_v9 }
 0x2c2   : > { %v1615_v11 = vpop.f32.mrb[96].mxu1 }
 0x2c3   : > { %v1617_v12 = vpop.f32.mrb[97].mxu1 }
 0x2c4   : > { %v1618_v13 = vpop.f32.mrb[98].mxu1 }
 0x2c5   : > { %v2426_v14 = vpack.c.bf16 %v1618_v13, %v1615_v11  ;;  %v1620_v15 = vpop.f32.mrb[99].mxu1 }
 0x2c6   : > { %v17190_v15 = vmov 0.0  }
 0x2c7   : > { %15425 = vmatprep.mubr.msk.bf16.mxu0 %vm1759_vm3, %v2426_v14 }
 0x2ca   : > { %v1623_v16 = vpop.f32.mrb[100].mxu1 }
 0x2cb   : > { %v1625_v17 = vpop.f32.mrb[101].mxu1 }
 0x2cc   : > { %v1626_v18 = vpop.f32.mrb[102].mxu1 }
 0x2cd   : > { %v2427_v19 = vpack.c.bf16 %v1626_v18, %v1623_v16  ;;  %v1628_v21 = vpop.f32.mrb[103].mxu1  ;;  %v12576_v16 = vld [vmem:[%s21344_s5] ss:$0 sm:$0xff] }
 0x2cf   : > { %15426 = vmatmul.mubr.msk.bf16.vlgmr.msra.gmra.mrb[32].mxu0 %vm1759_vm3, %v2427_v19 }
 0x2d0   : > { %15434 = vmatpush3.bf16.msra.mxu0 %v15771_v5 }
 0x2d1   : > { %15435 = vmatprep.subr.bf16.mxu0 %v15772_v23 }
 0x2d2   : > { %v1631_v26 = vpop.f32.mrb[104].mxu1 }
 0x2d3   : > { %v1633_v27 = vpop.f32.mrb[105].mxu1 }
 0x2d4   : > { %v1634_v28 = vpop.f32.mrb[106].mxu1  ;;  %15436 = vmatpush3.bf16.msra.mxu0 %v15772_v23 }
 0x2d5   : > { %v2428_v29 = vpack.c.bf16 %v1634_v28, %v1631_v26  ;;  %v1636_v20 = vpop.f32.mrb[107].mxu1  ;;  %15437 = vmatprep.subr.bf16.mxu0 %v15773_v25 }
 0x2d7   : > { %15429 = vmatprep.mubr.msk.bf16.mxu0 %vm1759_vm3, %v2428_v29 }
 0x2d8   : > { %15438 = vmatpush3.bf16.msra.mxu0 %v15773_v25 }
 0x2d9   : > { %15439 = vmatprep.subr.bf16.mxu0 %v15774_v30 }
 0x2da   : > { %v1639_v32 = vpop.f32.mrb[108].mxu1 }
 0x2db   : > { %v1641_v33 = vpop.f32.mrb[109].mxu1 }
 0x2dc   : > { %v1642_v34 = vpop.f32.mrb[110].mxu1  ;;  %15440 = vmatpush3.bf16.msra.mxu0 %v15774_v30 }
 0x2dd   : > { %v2429_v35 = vpack.c.bf16 %v1642_v34, %v1639_v32  ;;  %v1644_v36 = vpop.f32.mrb[111].mxu1  ;;  %15449 = vmatprep.subr.bf16.mxu0 %v15775_v31 }
 0x2df   : > { %15430 = vmatmul.mubr.msk.bf16.gmra.mrb[36].mxu0 %vm1759_vm3, %v2429_v35 }
 0x2e2   : > { %v1647_v37 = vpop.f32.mrb[112].mxu1 }
 0x2e3   : > { %v1649_v38 = vpop.f32.mrb[113].mxu1 }
 0x2e4   : > { %v1650_v39 = vpop.f32.mrb[114].mxu1 }
 0x2e5   : > { %v2548_v40 = vpack.c.bf16 %v1650_v39, %v1647_v37  ;;  %v1652_v41 = vpop.f32.mrb[115].mxu1 }
 0x2e7   : > { %15441 = vmatprep.mubr.msk.bf16.mxu0 %vm1759_vm3, %v2548_v40 }
 0x2ea   : > { %v1655_v43 = vpop.f32.mrb[116].mxu1 }
 0x2eb   : > { %v1657_v44 = vpop.f32.mrb[117].mxu1 }
 0x2ec   : > { %v1658_v46 = vpop.f32.mrb[118].mxu1 }
 0x2ed   : > { %v2549_v42 = vpack.c.bf16 %v1658_v46, %v1655_v43  ;;  %v1660_v24 = vpop.f32.mrb[119].mxu1 }
 0x2ef   : > { %15442 = vmatmul.mubr.msk.bf16.vlgmr.msra.gmra.mrb[32].mxu0 %vm1759_vm3, %v2549_v42 }
 0x2f0   : > { %15450 = vmatpush3.bf16.msra.mxu0 %v15775_v31 }
 0x2f1   : > { %15451 = vmatprep.subr.bf16.mxu0 %v15776_v45 }
 0x2f2   : > { %v1663_v48 = vpop.f32.mrb[120].mxu1 }
 0x2f3   : > { %v1665_v49 = vpop.f32.mrb[121].mxu1 }
 0x2f4   : > { %v1666_v50 = vpop.f32.mrb[122].mxu1  ;;  %15452 = vmatpush3.bf16.msra.mxu0 %v15776_v45 }
 0x2f5   : > { %v2550_v51 = vpack.c.bf16 %v1666_v50, %v1663_v48  ;;  %v1668_v52 = vpop.f32.mrb[123].mxu1  ;;  %15453 = vmatprep.subr.bf16.mxu0 %v15777_v47 }
 0x2f7   : > { %15445 = vmatprep.mubr.msk.bf16.mxu0 %vm1759_vm3, %v2550_v51 }
 0x2f8   : > { %15454 = vmatpush3.bf16.msra.mxu0 %v15777_v47 }
 0x2f9   : > { %15455 = vmatprep.subr.bf16.mxu0 %v15778_v53 }
 0x2fa   : > { %v1671_v54 = vpop.f32.mrb[124].mxu1 }
 0x2fb   : > { %v1673_v55 = vpop.f32.mrb[125].mxu1 }
 0x2fc   : > { %v1674_v56 = vpop.f32.mrb[126].mxu1  ;;  %15456 = vmatpush3.bf16.msra.mxu0 %v15778_v53 }
 0x2fd   : > { %v2551_v57 = vpack.c.bf16 %v1674_v56, %v1671_v54  ;;  %v1676_v58 = vpop.f32.mrb[127].mxu1  ;;  %15465 = vmatprep.subr.bf16.mxu0 %v17190_v15 }
 0x2ff   : > { %15446 = vmatmul.mubr.msk.bf16.gmra.mrb[36].mxu0 %vm1759_vm3, %v2551_v57 }
 0x302   : > { %v1679_v59 = vpop.f32.mrb[128].mxu1 }
 0x303   : > { %v1681_v60 = vpop.f32.mrb[129].mxu1 }
 0x304   : > { %v1682_v61 = vpop.f32.mrb[130].mxu1 }
 0x305   : > { %v2670_v62 = vpack.c.bf16 %v1682_v61, %v1679_v59  ;;  %v1684_v63 = vpop.f32.mrb[131].mxu1 }
 0x307   : > { %15457 = vmatprep.mubr.msk.bf16.mxu0 %vm1759_vm3, %v2670_v62 }
 0x30a   : > { %v1687_v0 = vpop.f32.mrb[132].mxu1 }
 0x30b   : > { %v1689_v1 = vpop.f32.mrb[133].mxu1 }
 0x30c   : > { %v1690_v2 = vpop.f32.mrb[134].mxu1 }
 0x30d   : > { %v2671_v3 = vpack.c.bf16 %v1690_v2, %v1687_v0  ;;  %v1692_v4 = vpop.f32.mrb[135].mxu1 }
 0x30f   : > { %15458 = vmatmul.mubr.msk.bf16.vlgmr.msra.gmra.mrb[32].mxu0 %vm1759_vm3, %v2671_v3 }
 0x312   : > { %v1695_v5 = vpop.f32.mrb[136].mxu1 }
 0x313   : > { %v1697_v6 = vpop.f32.mrb[137].mxu1 }
 0x314   : > { %v1698_v7 = vpop.f32.mrb[138].mxu1 }
 0x315   : > { %v2672_v8 = vpack.c.bf16 %v1698_v7, %v1695_v5  ;;  %v1700_v9 = vpop.f32.mrb[139].mxu1 }
 0x317   : > { %15461 = vmatprep.mubr.msk.bf16.mxu0 %vm1759_vm3, %v2672_v8 }
 0x31a   : > { %v1703_v10 = vpop.f32.mrb[140].mxu1 }
 0x31b   : > { %v1705_v11 = vpop.f32.mrb[141].mxu1 }
 0x31c   : > { %v1706_v12 = vpop.f32.mrb[142].mxu1 }
 0x31d   : > { %v2673_v13 = vpack.c.bf16 %v1706_v12, %v1703_v10  ;;  %v1708_v14 = vpop.f32.mrb[143].mxu1 }
 0x31f   : > { %15462 = vmatmul.mubr.msk.bf16.gmra.mrb[36].mxu0 %vm1759_vm3, %v2673_v13 }
 0x320   : > { %15473 = vmatprep.mubr.msk.bf16.mxu0 %vm17191_vm4, %v17190_v15 }
 0x3e2   : > { %v15459_v17 = vpop.f32.mrb[32].mxu0 }
 0x3e3   : > { %v2753_v18 = vpop.f32.mrb[33].mxu0  ;;  %v2801_v19 = vadd.f32 %v15459_v17, %v12576_v16 }
 0x3e4   : > { %v2799_v21 = vadd.f32 %v12576_v16, %v2753_v18  ;;  %v15460_v23 = vpop.f32.mrb[34].mxu0 }
 0x3e5   : > { %v2756_v25 = vpop.f32.mrb[35].mxu0  ;;  %v2802_v27 = vadd.f32 %v15460_v23, %v12576_v16  ;;  %v2817_v29 = vmul.f32 0.2, %v2801_v19  ;;  %vm2809_vm7 = vcmp.ge.f32.partialorder %v2801_v19, 0.0 }
 0x3e6   : > { %v2815_v26 = vmul.f32 0.2, %v2799_v21  ;;  %v2800_v28 = vadd.f32 %v12576_v16, %v2756_v25  ;;  %vm2807_vm5 = vcmp.ge.f32.partialorder %v2799_v21, 0.0 }
 0x3e7   : > { %v2818_v31 = vmul.f32 0.2, %v2802_v27  ;;  %vm2810_vm8 = vcmp.ge.f32.partialorder %v2802_v27, 0.0  ;;  %v2825_v34 = vsel %vm2809_vm7, %v2801_v19, %v2817_v29  ;;  %vm9013_vm7 = vcmask 1041408  }
 0x3e8   : > { %vm2808_vm6 = vcmp.ge.f32.partialorder %v2800_v28, 0.0  ;;  %v2816_v20 = vmul.f32 0.2, %v2800_v28  ;;  %v2823_v30 = vsel %vm2807_vm5, %v2799_v21, %v2815_v26 }
 0x3e9   : > { %v2826_v36 = vsel %vm2810_vm8, %v2802_v27, %v2818_v31  ;;  %vm8997_vm8 = vcmask 31744  }
 0x3ea   : > { %v2824_v32 = vsel %vm2808_vm6, %v2800_v28, %v2816_v20 }
 0x3eb   : > { %v2831_v33 = vadd.f32 %v2824_v32, %v2823_v30 }
 0x3ed   : > { %v2832_v35 = vadd.f32 %v2831_v33, %v2825_v34 }
 0x3ef   : > { %v2833_v37 = vadd.f32 %v2832_v35, %v2826_v36 }
 0x3f2   : > { %v15463_v38 = vpop.f32.mrb[36].mxu0 }
 0x3f3   : > { %v2769_v39 = vpop.f32.mrb[37].mxu0  ;;  %v2805_v40 = vadd.f32 %v15463_v38, %v12576_v16 }
 0x3f4   : > { %v2803_v41 = vadd.f32 %v12576_v16, %v2769_v39  ;;  %v15464_v43 = vpop.f32.mrb[38].mxu0 }
 0x3f5   : > { %v2772_v44 = vpop.f32.mrb[39].mxu0  ;;  %v2806_v42 = vadd.f32 %v15464_v43, %v12576_v16  ;;  %v2821_v45 = vmul.f32 0.2, %v2805_v40  ;;  %vm2813_vm11 = vcmp.ge.f32.partialorder %v2805_v40, 0.0 }
 0x3f6   : > { %vm2811_vm9 = vcmp.ge.f32.partialorder %v2803_v41, 0.0  ;;  %v2819_v46 = vmul.f32 0.2, %v2803_v41  ;;  %v2804_v24 = vadd.f32 %v12576_v16, %v2772_v44 }
 0x3f7   : > { %v2822_v50 = vmul.f32 0.2, %v2806_v42  ;;  %vm2814_vm12 = vcmp.ge.f32.partialorder %v2806_v42, 0.0  ;;  %v2829_v53 = vsel %vm2813_vm11, %v2805_v40, %v2821_v45  ;;  %v15787_v45 = vld [vmem:[%s21346_s7 + $0x84] ss:$8 sps:$4 sm:$0xff]  }
 0x3f8   : > { %v2827_v47 = vsel %vm2811_vm9, %v2803_v41, %v2819_v46  ;;  %vm2812_vm10 = vcmp.ge.f32.partialorder %v2804_v24, 0.0  ;;  %v2820_v48 = vmul.f32 0.2, %v2804_v24 }
 0x3f9   : > { %v2834_v49 = vadd.f32 %v2833_v37, %v2827_v47  ;;  %v2830_v55 = vsel %vm2814_vm12, %v2806_v42, %v2822_v50  ;;  %v15788_v50 = vld [vmem:[%s21346_s7 + $0x90] ss:$8 sps:$4 sm:$0xff]  }
 0x3fa   : > { %v2828_v51 = vsel %vm2812_vm10, %v2804_v24, %v2820_v48  ;;  %v15785_v48 = vld [vmem:[%s21346_s7 + $0x80] ss:$8 sps:$4 sm:$0xff]  }
 0x3fb   : > { %v2835_v52 = vadd.f32 %v2834_v49, %v2828_v51  ;;  %v15790_v49 = vld [vmem:[%s21346_s7 + $0x94] ss:$8 sps:$4 sm:$0xff]  }
 0x3fd   : > { %v2836_v54 = vadd.f32 %v2835_v52, %v2829_v53  ;;  %v15780_v52 = vld [vmem:[%s21345_s6 + $0x8] sm:$0xff]  }
 0x3ff   : > { %v2837_v56 = vadd.f32 %v2836_v54, %v2830_v55  ;;  %v15797_v54 = vld [vmem:[%s21346_s7 + $0xb4] ss:$8 sps:$4 sm:$0xff]  }
 0x401   : > { %v2838_v57 = vrot.slane %v2837_v56, 4 }
 0x403   : > { %v2839_v58 = vadd.f32 %v2838_v57, %v2837_v56  ;;  %v15801_v56 = vld [vmem:[%s21346_s7 + $0xc4] ss:$8 sps:$4 sm:$0xff]   ;;  %v15781_v57 = vld [vmem:[%s21345_s6 + $0x10] sm:$0xff]  }
 0x405   : > { %v2840_v59 = vrot.slane %v2839_v58, 2 }
 0x407   : > { %v2841_v60 = vadd.f32 %v2840_v59, %v2839_v58  ;;  %v15799_v58 = vld [vmem:[%s21346_s7 + $0xc0] ss:$8 sps:$4 sm:$0xff]   ;;  %v15782_v59 = vld [vmem:[%s21345_s6 + $0x18] sm:$0xff]  }
 0x409   : > { %v2842_v61 = vrot.slane %v2841_v60, 1 }
 0x40b   : > { %v2843_v62 = vadd.f32 %v2842_v61, %v2841_v60  ;;  %v15783_v60 = vld [vmem:[%s21345_s6 + $0x20] sm:$0xff]   ;;  %v15784_v61 = vld [vmem:[%s21345_s6 + $0x28] sm:$0xff]  }
 0x40d   : > { %v2845_v63 = vmul.f32 0.015625, %v2843_v62  ;;  %v15791_v62 = vld [vmem:[%s21345_s6 + $0x30] sm:$0xff]  }
 0x40f   : > { %v2846_v0 = vsub.f32 %v2823_v30, %v2845_v63  ;;  %v2847_v1 = vsub.f32 %v2824_v32, %v2845_v63  ;;  %v2848_v2 = vsub.f32 %v2825_v34, %v2845_v63  ;;  %v2849_v3 = vsub.f32 %v2826_v36, %v2845_v63 }
 0x410   : > { %v2850_v4 = vsub.f32 %v2827_v47, %v2845_v63  ;;  %v2851_v5 = vsub.f32 %v2828_v51, %v2845_v63  ;;  %v2852_v6 = vsub.f32 %v2829_v53, %v2845_v63  ;;  %v2853_v7 = vsub.f32 %v2830_v55, %v2845_v63  ;;  %v15779_v47 = vld [vmem:[%s21345_s6] sm:$0xff]   ;;  %v15795_v55 = vld [vmem:[%s21346_s7 + $0xb0] ss:$8 sps:$4 sm:$0xff]  }
 0x411   : > { %v2854_v8 = vmul.f32 %v2846_v0, %v2846_v0  ;;  %v2855_v9 = vmul.f32 %v2847_v1, %v2847_v1  ;;  %v2856_v10 = vmul.f32 %v2848_v2, %v2848_v2  ;;  %v2857_v12 = vmul.f32 %v2849_v3, %v2849_v3  ;;  %v15794_v51 = vld [vmem:[%s21346_s7 + $0xa4] ss:$8 sps:$4 sm:$0xff]   ;;  %v15792_v53 = vld [vmem:[%s21346_s7 + $0xa0] ss:$8 sps:$4 sm:$0xff]   ;;  %v15798_v63 = vld [vmem:[%s21345_s6 + $0x38] sm:$0xff]  }
 0x412   : > { %v2858_v14 = vmul.f32 %v2850_v4, %v2850_v4  ;;  %v2859_v17 = vmul.f32 %v2851_v5, %v2851_v5  ;;  %v2860_v19 = vmul.f32 %v2852_v6, %v2852_v6  ;;  %v2861_v23 = vmul.f32 %v2853_v7, %v2853_v7 }
 0x413   : > { %v2862_v11 = vadd.f32 %v2855_v9, %v2854_v8 }
 0x415   : > { %v2863_v13 = vadd.f32 %v2862_v11, %v2856_v10 }
 0x417   : > { %v2864_v16 = vadd.f32 %v2863_v13, %v2857_v12 }
 0x419   : > { %v2865_v18 = vadd.f32 %v2864_v16, %v2858_v14  ;;  %v15812_v16 = vld [vmem:[%s21346_s7] ss:$8 sps:$4 sm:$0xff]  }
 0x41b   : > { %v2866_v21 = vadd.f32 %v2865_v18, %v2859_v17 }
 0x41d   : > { %v2867_v25 = vadd.f32 %v2866_v21, %v2860_v19  ;;  %v15817_v19 = vld [vmem:[%s21346_s7 + $0x14] ss:$8 sps:$4 sm:$0xff]   ;;  %v15815_v21 = vld [vmem:[%s21346_s7 + $0x10] ss:$8 sps:$4 sm:$0xff]  }
 0x41f   : > { %v2868_v26 = vadd.f32 %v2867_v25, %v2861_v23  ;;  %v15820_v23 = vld [vmem:[%s21346_s7 + $0x24] ss:$8 sps:$4 sm:$0xff]  }
 0x421   : > { %v2869_v27 = vrot.slane %v2868_v26, 4 }
 0x423   : > { %v2870_v28 = vadd.f32 %v2869_v27, %v2868_v26  ;;  %v15818_v27 = vld [vmem:[%s21346_s7 + $0x20] ss:$8 sps:$4 sm:$0xff]  }
 0x425   : > { %v2871_v29 = vrot.slane %v2870_v28, 2 }
 0x427   : > { %v2872_v20 = vadd.f32 %v2871_v29, %v2870_v28  ;;  %v15823_v29 = vld [vmem:[%s21346_s7 + $0x34] ss:$8 sps:$4 sm:$0xff]  }
 0x429   : > { %v2873_v30 = vrot.slane %v2872_v20, 1 }
 0x42b   : > { %v2874_v31 = vadd.f32 %v2873_v30, %v2872_v20 }
 0x42d   : > { %v2875_v32 = vmul.f32 0.015625, %v2874_v31  ;;  %v15821_v31 = vld [vmem:[%s21346_s7 + $0x30] ss:$8 sps:$4 sm:$0xff]  }
 0x42f   : > { %v2876_v33 = vadd.f32 1e-05, %v2875_v32  ;;  %v15826_v32 = vld [vmem:[%s21346_s7 + $0x44] ss:$8 sps:$4 sm:$0xff]  }
 0x431   : > { %17166 = vrsqrt.f32 %v2876_v33 }
 0x43b   : > { %v17167_v34 = vpop.eup %17166 }
 0x43c   : > { %v2883_v35 = vmul.f32 %v17167_v34, %v2851_v5  ;;  %v2878_v36 = vmul.f32 %v17167_v34, %v2846_v0  ;;  %v2879_v37 = vmul.f32 %v17167_v34, %v2847_v1  ;;  %v2880_v38 = vmul.f32 %v17167_v34, %v2848_v2  ;;  %v15804_v0 = vld [vmem:[%s21346_s7 + $0xd4] ss:$8 sps:$4 sm:$0xff]   ;;  %v15802_v1 = vld [vmem:[%s21346_s7 + $0xd0] ss:$8 sps:$4 sm:$0xff]   ;;  %v15805_v2 = vld [vmem:[%s21345_s6 + $0x40] sm:$0xff]  }
 0x43d   : > { %v2881_v39 = vmul.f32 %v17167_v34, %v2849_v3  ;;  %v2882_v40 = vmul.f32 %v17167_v34, %v2850_v4  ;;  %v2884_v41 = vmul.f32 %v17167_v34, %v2852_v6  ;;  %v2885_v43 = vmul.f32 %v17167_v34, %v2853_v7  ;;  %v15808_v3 = vld [vmem:[%s21346_s7 + $0xe4] ss:$8 sps:$4 sm:$0xff]   ;;  %v15811_v4 = vld [vmem:[%s21346_s7 + $0xf4] ss:$8 sps:$4 sm:$0xff]   ;;  %v15809_v5 = vld [vmem:[%s21346_s7 + $0xf0] ss:$8 sps:$4 sm:$0xff]  }
 0x43e   : > { %v2886_v44 = vpack.c.bf16 %v2879_v37, %v2878_v36  ;;  %v15814_v6 = vld [vmem:[%s21346_s7 + $0x4] ss:$8 sps:$4 sm:$0xff]   ;;  %v15829_v37 = vld [vmem:[%s21346_s7 + $0x54] ss:$8 sps:$4 sm:$0xff]  }
 0x43f   : > { %v2887_v46 = vpack.c.bf16 %v2881_v39, %v2880_v38  ;;  %v2888_v42 = vpack.c.bf16 %v2883_v35, %v2882_v40  ;;  %v2889_v24 = vpack.c.bf16 %v2885_v43, %v2884_v41  ;;  %v15824_v35 = vld [vmem:[%s21346_s7 + $0x40] ss:$8 sps:$4 sm:$0xff]   ;;  %v15827_v40 = vld [vmem:[%s21346_s7 + $0x50] ss:$8 sps:$4 sm:$0xff]   ;;  %v15832_v41 = vld [vmem:[%s21346_s7 + $0x64] ss:$8 sps:$4 sm:$0xff]  }
 0x440   : > { %15466 = vmatpush3.bf16.msra.mxu0 %v2886_v44 }
 0x441   : > { %15467 = vmatprep.subr.bf16.mxu0 %v17190_v15 }
 0x444   : > { %15468 = vmatpush3.bf16.msra.mxu0 %v2887_v46  ;;  %v15830_v46 = vld [vmem:[%s21346_s7 + $0x60] ss:$8 sps:$4 sm:$0xff]  }
 0x445   : > { %15469 = vmatprep.subr.bf16.mxu0 %v17190_v15 }
 0x448   : > { %15470 = vmatpush3.bf16.msra.mxu0 %v2888_v42 }
 0x449   : > { %15471 = vmatprep.subr.bf16.mxu0 %v17190_v15 }
 0x44c   : > { %15472 = vmatpush3.bf16.msra.mxu0 %v2889_v24  ;;  %v15835_v24 = vld [vmem:[%s21346_s7 + $0x74] ss:$8 sps:$4 sm:$0xff]  }
 0x44d   : > { %3200 = vmatprep.subr.bf16.mxu0 %v15787_v45 }
 0x44f   : > { %15474 = vmatmul.mubr.msk.bf16.vlgmr.msra.gmra.mrb[40].mxu0 %vm1759_vm3, %v15779_v47 }
 0x450   : > { %15477 = vmatprep.mubr.msk.bf16.mxu0 %vm17191_vm4, %v17190_v15  ;;  %3201 = vmatpush1.bf16.msra.mxu0 %v15785_v48  ;;  %v15833_v48 = vld [vmem:[%s21346_s7 + $0x70] ss:$8 sps:$4 sm:$0xff]  }
 0x451   : > { %3202 = vmatprep.subr.bf16.mxu0 %v15790_v49  ;;  %v15838_v49 = vld [vmem:[%s21346_s7 + $0x104] ss:$8 sps:$4 sm:$0xff]  }
 0x454   : > { %3203 = vmatpush1.bf16.msra.mxu0 %v15788_v50 }
 0x455   : > { %3204 = vmatprep.subr.bf16.mxu0 %v15794_v51 }
 0x457   : > { %15478 = vmatmul.mubr.msk.bf16.gmra.mrb[44].mxu0 %vm1759_vm3, %v15780_v52  ;;  %v15836_v52 = vld [vmem:[%s21346_s7 + $0x100] ss:$8 sps:$4 sm:$0xff]  }
 0x458   : > { %15481 = vmatprep.mubr.msk.bf16.mxu0 %vm17191_vm4, %v17190_v15  ;;  %3205 = vmatpush1.bf16.msra.mxu0 %v15792_v53 }
 0x459   : > { %3206 = vmatprep.subr.bf16.mxu0 %v15797_v54  ;;  %v15841_v54 = vld [vmem:[%s21346_s7 + $0x114] ss:$8 sps:$4 sm:$0xff]  }
 0x45c   : > { %3207 = vmatpush1.bf16.msra.mxu0 %v15795_v55 }
 0x45d   : > { %3208 = vmatprep.subr.bf16.mxu0 %v15801_v56 }
 0x45f   : > { %15482 = vmatmul.mubr.msk.bf16.gmra.mrb[48].mxu0 %vm1759_vm3, %v15781_v57  ;;  %v15839_v57 = vld [vmem:[%s21346_s7 + $0x110] ss:$8 sps:$4 sm:$0xff]  }
 0x460   : > { %15485 = vmatprep.mubr.msk.bf16.mxu0 %vm17191_vm4, %v17190_v15  ;;  %3209 = vmatpush1.bf16.msra.mxu0 %v15799_v58  ;;  %v15844_v58 = vld [vmem:[%s21346_s7 + $0x124] ss:$8 sps:$4 sm:$0xff]  }
 0x461   : > { %3210 = vmatprep.subr.bf16.mxu0 %v15804_v0  ;;  %v15853_v0 = vld [vmem:[%s21346_s7 + $0x154] ss:$8 sps:$4 sm:$0xff]  }
 0x464   : > { %3211 = vmatpush1.bf16.msra.mxu0 %v15802_v1  ;;  %v15851_v1 = vld [vmem:[%s21346_s7 + $0x150] ss:$8 sps:$4 sm:$0xff]  }
 0x465   : > { %3212 = vmatprep.subr.bf16.mxu0 %v15808_v3  ;;  %v15859_v3 = vld [vmem:[%s21346_s7 + $0x174] ss:$8 sps:$4 sm:$0xff]  }
 0x467   : > { %15486 = vmatmul.mubr.msk.bf16.gmra.mrb[52].mxu0 %vm1759_vm3, %v15782_v59  ;;  %v15842_v59 = vld [vmem:[%s21346_s7 + $0x120] ss:$8 sps:$4 sm:$0xff]  }
 0x468   : > { %15489 = vmatprep.mubr.msk.bf16.mxu0 %vm17191_vm4, %v17190_v15 }
 0x46f   : > { %15490 = vmatmul.mubr.msk.bf16.gmra.mrb[56].mxu0 %vm1759_vm3, %v15783_v60  ;;  %v15847_v60 = vld [vmem:[%s21346_s7 + $0x134] ss:$8 sps:$4 sm:$0xff]  }
 0x470   : > { %15493 = vmatprep.mubr.msk.bf16.mxu0 %vm17191_vm4, %v17190_v15 }
 0x477   : > { %15494 = vmatmul.mubr.msk.bf16.gmra.mrb[60].mxu0 %vm1759_vm3, %v15784_v61  ;;  %v15845_v61 = vld [vmem:[%s21346_s7 + $0x130] ss:$8 sps:$4 sm:$0xff]  }
 0x478   : > { %15497 = vmatprep.mubr.msk.bf16.mxu0 %vm17191_vm4, %v17190_v15 }
 0x47f   : > { %15498 = vmatmul.mubr.msk.bf16.gmra.mrb[64].mxu0 %vm1759_vm3, %v15791_v62  ;;  %v15850_v62 = vld [vmem:[%s21346_s7 + $0x144] ss:$8 sps:$4 sm:$0xff]  }
 0x480   : > { %15501 = vmatprep.mubr.msk.bf16.mxu0 %vm17191_vm4, %v17190_v15 }
 0x487   : > { %15502 = vmatmul.mubr.msk.bf16.gmra.mrb[68].mxu0 %vm1759_vm3, %v15798_v63  ;;  %v15848_v63 = vld [vmem:[%s21346_s7 + $0x140] ss:$8 sps:$4 sm:$0xff]  }
 0x488   : > { %15505 = vmatprep.mubr.msk.bf16.mxu0 %vm17191_vm4, %v17190_v15  ;;  %v15806_v15 = vld [vmem:[%s21346_s7 + $0xe0] ss:$8 sps:$4 sm:$0xff]   ;;  %vm8875_vm4 = vcmask 1043456  }
 0x489   : > { %3213 = vmatpush1.bf16.msra.mxu0 %v15806_v15  ;;  %v15854_v15 = vld [vmem:[%s21346_s7 + $0x160] ss:$8 sps:$4 sm:$0xff]  }
 0x48a   : > { %3214 = vmatprep.subr.bf16.mxu0 %v15811_v4 }
 0x48d   : > { %3215 = vmatpush1.bf16.msra.mxu0 %v15809_v5 }
 0x48e   : > { %3323 = vmatprep.subr.bf16.mxu0 %v15814_v6  ;;  %v15857_v6 = vld [vmem:[%s21346_s7 + $0x170] ss:$8 sps:$4 sm:$0xff]  }
 0x48f   : > { %15506 = vmatmul.mubr.msk.bf16.gmra.mrb[72].mxu0 %vm1759_vm3, %v15805_v2  ;;  %v15856_v2 = vld [vmem:[%s21346_s7 + $0x164] ss:$8 sps:$4 sm:$0xff]  }
 0x490   : > { %3232 = vmatprep.mubr.bf16.mxu0 %v17189_v22 }
 0x522   : > { %v17893_v7 = vpop.f32.mrb[40].mxu0 }
 0x523   : > { %v15475_v8 = vpop.f32.mrb[41].mxu0 }
 0x524   : > { %v17895_v9 = vpop.f32.mrb[42].mxu0  ;;  %v15862_v8 = vld [vmem:[%s21346_s7 + $0x184] ss:$8 sps:$4 sm:$0xff]  }
 0x525   : > { %v3085_v10 = vpack.c.bf16 %v17895_v9, %v17893_v7  ;;  %v15476_v11 = vpop.f32.mrb[43].mxu0 }
 0x526   : > { %v15860_v11 = vld [vmem:[%s21346_s7 + $0x180] ss:$8 sps:$4 sm:$0xff]  }
 0x52a   : > { %v3022_v12 = vpop.f32.mrb[44].mxu0 }
 0x52b   : > { %v15479_v13 = vpop.f32.mrb[45].mxu0 }
 0x52c   : > { %v3025_v14 = vpop.f32.mrb[46].mxu0 }
 0x52d   : > { %v3102_v17 = vpack.c.bf16 %v3025_v14, %v3022_v12  ;;  %v15480_v18 = vpop.f32.mrb[47].mxu0  ;;  %v15865_v12 = vld [vmem:[%s21346_s7 + $0x194] ss:$8 sps:$4 sm:$0xff]   ;;  %v15863_v14 = vld [vmem:[%s21346_s7 + $0x190] ss:$8 sps:$4 sm:$0xff]  }
 0x52f   : > { %3233 = vmatmul.mubr.bf16.vlgmr.msra.gmra.mrb[76].mxu0 %v3102_v17  ;;  %v15868_v17 = vld [vmem:[%s21346_s7 + $0x1a4] ss:$8 sps:$4 sm:$0xff]  }
 0x530   : > { %3324 = vmatpush1.bf16.msra.mxu0 %v15812_v16  ;;  %3355 = vmatprep.mubr.bf16.mxu0 %v17189_v22 }
 0x531   : > { %3325 = vmatprep.subr.bf16.mxu0 %v15817_v19 }
 0x532   : > { %v17912_v25 = vpop.f32.mrb[48].mxu0 }
 0x533   : > { %v15483_v26 = vpop.f32.mrb[49].mxu0 }
 0x534   : > { %3326 = vmatpush1.bf16.msra.mxu0 %v15815_v21  ;;  %v17917_v28 = vpop.f32.mrb[50].mxu0  ;;  %v15869_v26 = vld [vmem:[%s21346_s7 + $0x1b0] ss:$8 sps:$4 sm:$0xff]  }
 0x535   : > { %3327 = vmatprep.subr.bf16.mxu0 %v15820_v23  ;;  %v3366_v20 = vpack.c.bf16 %v17917_v28, %v17912_v25  ;;  %v15484_v30 = vpop.f32.mrb[51].mxu0  ;;  %v15866_v23 = vld [vmem:[%s21346_s7 + $0x1a0] ss:$8 sps:$4 sm:$0xff]   ;;  %v15871_v25 = vld [vmem:[%s21346_s7 + $0x1b4] ss:$8 sps:$4 sm:$0xff]  }
 0x536   : > { %v15874_v28 = vld [vmem:[%s21346_s7 + $0x1c4] ss:$8 sps:$4 sm:$0xff]  }
 0x538   : > { %3328 = vmatpush1.bf16.msra.mxu0 %v15818_v27 }
 0x539   : > { %3329 = vmatprep.subr.bf16.mxu0 %v15823_v29 }
 0x53a   : > { %v17930_v33 = vpop.f32.mrb[52].mxu0 }
 0x53b   : > { %v15487_v34 = vpop.f32.mrb[53].mxu0 }
 0x53c   : > { %3330 = vmatpush1.bf16.msra.mxu0 %v15821_v31  ;;  %v17935_v36 = vpop.f32.mrb[54].mxu0  ;;  %v15877_v34 = vld [vmem:[%s21346_s7 + $0x1d4] ss:$8 sps:$4 sm:$0xff]  }
 0x53d   : > { %3331 = vmatprep.subr.bf16.mxu0 %v15826_v32  ;;  %v3511_v38 = vpack.c.bf16 %v17935_v36, %v17930_v33  ;;  %v15488_v39 = vpop.f32.mrb[55].mxu0  ;;  %v15872_v32 = vld [vmem:[%s21346_s7 + $0x1c0] ss:$8 sps:$4 sm:$0xff]   ;;  %v15895_v33 = vld [vmem:[%s21346_s7 + $0x234] ss:$8 sps:$4 sm:$0xff]  }
 0x53e   : > { %v15878_v39 = vld [vmem:[%s21346_s7 + $0x1e0] ss:$8 sps:$4 sm:$0xff]   ;;  %v15893_v36 = vld [vmem:[%s21346_s7 + $0x230] ss:$8 sps:$4 sm:$0xff]  }
 0x540   : > { %3332 = vmatpush1.bf16.msra.mxu0 %v15824_v35  ;;  %v15875_v35 = vld [vmem:[%s21346_s7 + $0x1d0] ss:$8 sps:$4 sm:$0xff]  }
 0x541   : > { %3333 = vmatprep.subr.bf16.mxu0 %v15829_v37  ;;  %v15880_v37 = vld [vmem:[%s21346_s7 + $0x1e4] ss:$8 sps:$4 sm:$0xff]  }
 0x542   : > { %v17948_v43 = vpop.f32.mrb[56].mxu0 }
 0x543   : > { %v15491_v44 = vpop.f32.mrb[57].mxu0 }
 0x544   : > { %3334 = vmatpush1.bf16.msra.mxu0 %v15827_v40  ;;  %v17953_v42 = vpop.f32.mrb[58].mxu0  ;;  %v15883_v40 = vld [vmem:[%s21346_s7 + $0x1f4] ss:$8 sps:$4 sm:$0xff]   ;;  %v15886_v44 = vld [vmem:[%s21346_s7 + $0x204] ss:$8 sps:$4 sm:$0xff]  }
 0x545   : > { %3335 = vmatprep.subr.bf16.mxu0 %v15832_v41  ;;  %v3656_v45 = vpack.c.bf16 %v17953_v42, %v17948_v43  ;;  %v15492_v47 = vpop.f32.mrb[59].mxu0  ;;  %v15881_v41 = vld [vmem:[%s21346_s7 + $0x1f0] ss:$8 sps:$4 sm:$0xff]   ;;  %v15919_v43 = vld [vmem:[%s21346_s7 + $0x2b4] ss:$8 sps:$4 sm:$0xff]  }
 0x546   : > { %v15887_v47 = vld [vmem:[%s21346_s7 + $0x210] ss:$8 sps:$4 sm:$0xff]  }
 0x547   : > { %v15917_v42 = vld [vmem:[%s21346_s7 + $0x2b0] ss:$8 sps:$4 sm:$0xff]  }
 0x548   : > { %3336 = vmatpush1.bf16.msra.mxu0 %v15830_v46  ;;  %v15884_v46 = vld [vmem:[%s21346_s7 + $0x200] ss:$8 sps:$4 sm:$0xff]  }
 0x549   : > { %3337 = vmatprep.subr.bf16.mxu0 %v15835_v24  ;;  %v15889_v24 = vld [vmem:[%s21346_s7 + $0x214] ss:$8 sps:$4 sm:$0xff]  }
 0x54a   : > { %v17966_v50 = vpop.f32.mrb[60].mxu0 }
 0x54b   : > { %v15495_v51 = vpop.f32.mrb[61].mxu0 }
 0x54c   : > { %3338 = vmatpush1.bf16.msra.mxu0 %v15833_v48  ;;  %v17971_v53 = vpop.f32.mrb[62].mxu0  ;;  %v15892_v48 = vld [vmem:[%s21346_s7 + $0x224] ss:$8 sps:$4 sm:$0xff]   ;;  %v15896_v51 = vld [vmem:[%s21346_s7 + $0x240] ss:$8 sps:$4 sm:$0xff]  }
 0x54d   : > { %3464 = vmatprep.subr.bf16.mxu0 %v15838_v49  ;;  %v3801_v55 = vpack.c.bf16 %v17971_v53, %v17966_v50  ;;  %v15496_v56 = vpop.f32.mrb[63].mxu0  ;;  %v15890_v49 = vld [vmem:[%s21346_s7 + $0x220] ss:$8 sps:$4 sm:$0xff]   ;;  %v15943_v50 = vld [vmem:[%s21346_s7 + $0x334] ss:$8 sps:$4 sm:$0xff]  }
 0x54e   : > { %v15904_v56 = vld [vmem:[%s21346_s7 + $0x264] ss:$8 sps:$4 sm:$0xff]   ;;  %v15941_v53 = vld [vmem:[%s21346_s7 + $0x330] ss:$8 sps:$4 sm:$0xff]  }
 0x54f   : > { %3356 = vmatmul.mubr.bf16.vlgmr.msra.gmra.mrb[76].mxu0 %v3085_v10 }
 0x550   : > { %3465 = vmatpush1.bf16.msra.mxu0 %v15836_v52  ;;  %3496 = vmatprep.mubr.bf16.mxu0 %v17189_v22  ;;  %v15901_v52 = vld [vmem:[%s21346_s7 + $0x254] ss:$8 sps:$4 sm:$0xff]  }
 0x551   : > { %3466 = vmatprep.subr.bf16.mxu0 %v15841_v54  ;;  %v15899_v54 = vld [vmem:[%s21346_s7 + $0x250] ss:$8 sps:$4 sm:$0xff]  }
 0x552   : > { %v18015_v4 = vpop.f32.mrb[64].mxu0 }
 0x553   : > { %v15499_v5 = vpop.f32.mrb[65].mxu0 }
 0x554   : > { %3467 = vmatpush1.bf16.msra.mxu0 %v15839_v57  ;;  %v18020_v7 = vpop.f32.mrb[66].mxu0  ;;  %v15902_v57 = vld [vmem:[%s21346_s7 + $0x260] ss:$8 sps:$4 sm:$0xff]   ;;  %v15928_v5 = vld [vmem:[%s21346_s7 + $0x2e4] ss:$8 sps:$4 sm:$0xff]  }
 0x555   : > { %3468 = vmatprep.subr.bf16.mxu0 %v15844_v58  ;;  %v3946_v9 = vpack.c.bf16 %v18020_v7, %v18015_v4  ;;  %v15500_v10 = vpop.f32.mrb[67].mxu0  ;;  %v15907_v58 = vld [vmem:[%s21346_s7 + $0x274] ss:$8 sps:$4 sm:$0xff]   ;;  %v15965_v7 = vld [vmem:[%s21346_s7 + $0x3b0] ss:$8 sps:$4 sm:$0xff]  }
 0x556   : > { %v15929_v10 = vld [vmem:[%s21346_s7 + $0x2f0] ss:$8 sps:$4 sm:$0xff]   ;;  %v15967_v4 = vld [vmem:[%s21346_s7 + $0x3b4] ss:$8 sps:$4 sm:$0xff]  }
 0x558   : > { %3469 = vmatpush1.bf16.msra.mxu0 %v15842_v59  ;;  %v15905_v59 = vld [vmem:[%s21346_s7 + $0x270] ss:$8 sps:$4 sm:$0xff]  }
 0x559   : > { %3470 = vmatprep.subr.bf16.mxu0 %v15847_v60  ;;  %v15910_v60 = vld [vmem:[%s21346_s7 + $0x284] ss:$8 sps:$4 sm:$0xff]  }
 0x55a   : > { %v18036_v13 = vpop.f32.mrb[68].mxu0 }
 0x55b   : > { %v15503_v16 = vpop.f32.mrb[69].mxu0 }
 0x55c   : > { %3471 = vmatpush1.bf16.msra.mxu0 %v15845_v61  ;;  %v18045_v18 = vpop.f32.mrb[70].mxu0  ;;  %v15908_v61 = vld [vmem:[%s21346_s7 + $0x280] ss:$8 sps:$4 sm:$0xff]   ;;  %v15935_v16 = vld [vmem:[%s21346_s7 + $0x310] ss:$8 sps:$4 sm:$0xff]  }
 0x55d   : > { %3472 = vmatprep.subr.bf16.mxu0 %v15850_v62  ;;  %v4091_v19 = vpack.c.bf16 %v18045_v18, %v18036_v13  ;;  %v15504_v21 = vpop.f32.mrb[71].mxu0  ;;  %v15913_v62 = vld [vmem:[%s21346_s7 + $0x294] ss:$8 sps:$4 sm:$0xff]   ;;  %v15989_v18 = vld [vmem:[%s21346_s7 + $0x430] ss:$8 sps:$4 sm:$0xff]  }
 0x55e   : > { %v15938_v21 = vld [vmem:[%s21346_s7 + $0x320] ss:$8 sps:$4 sm:$0xff]   ;;  %v15991_v13 = vld [vmem:[%s21346_s7 + $0x434] ss:$8 sps:$4 sm:$0xff]  }
 0x560   : > { %3473 = vmatpush1.bf16.msra.mxu0 %v15848_v63  ;;  %v15911_v63 = vld [vmem:[%s21346_s7 + $0x290] ss:$8 sps:$4 sm:$0xff]  }
 0x561   : > { %3474 = vmatprep.subr.bf16.mxu0 %v15853_v0  ;;  %v15916_v0 = vld [vmem:[%s21346_s7 + $0x2a4] ss:$8 sps:$4 sm:$0xff]  }
 0x562   : > { %v18058_v27 = vpop.f32.mrb[72].mxu0 }
 0x563   : > { %v15507_v29 = vpop.f32.mrb[73].mxu0 }
 0x564   : > { %3475 = vmatpush1.bf16.msra.mxu0 %v15851_v1  ;;  %v15914_v1 = vld [vmem:[%s21346_s7 + $0x2a0] ss:$8 sps:$4 sm:$0xff]  }
 0x565   : > { %3476 = vmatprep.subr.bf16.mxu0 %v15856_v2  ;;  %v15920_v2 = vld [vmem:[%s21346_s7 + $0x2c0] ss:$8 sps:$4 sm:$0xff]  }
 0x566   : > { %v15950_v29 = vld [vmem:[%s21346_s7 + $0x360] ss:$8 sps:$4 sm:$0xff]  }
 0x568   : > { %3477 = vmatpush1.bf16.msra.mxu0 %v15854_v15  ;;  %v15925_v15 = vld [vmem:[%s21346_s7 + $0x2d4] ss:$8 sps:$4 sm:$0xff]  }
 0x569   : > { %3478 = vmatprep.subr.bf16.mxu0 %v15859_v3  ;;  %v15923_v3 = vld [vmem:[%s21346_s7 + $0x2d0] ss:$8 sps:$4 sm:$0xff]  }
 0x56c   : > { %3479 = vmatpush1.bf16.msra.mxu0 %v15857_v6  ;;  %v15926_v6 = vld [vmem:[%s21346_s7 + $0x2e0] ss:$8 sps:$4 sm:$0xff]  }
 0x56d   : > { %3609 = vmatprep.subr.bf16.mxu0 %v15862_v8  ;;  %v15931_v8 = vld [vmem:[%s21346_s7 + $0x2f4] ss:$8 sps:$4 sm:$0xff]  }
 0x56f   : > { %3497 = vmatmul.mubr.bf16.vlgmr.msra.gmra.mrb[76].mxu0 %v3366_v20  ;;  %v18063_v20 = vpop.f32.mrb[74].mxu0 }
 0x570   : > { %3610 = vmatpush1.bf16.msra.mxu0 %v15860_v11  ;;  %3641 = vmatprep.mubr.bf16.mxu0 %v17189_v22  ;;  %v4236_v30 = vpack.c.bf16 %v18063_v20, %v18058_v27  ;;  %v15508_v31 = vpop.f32.mrb[75].mxu0  ;;  %v15934_v11 = vld [vmem:[%s21346_s7 + $0x304] ss:$8 sps:$4 sm:$0xff]   ;;  %v16018_v20 = vld [vmem:[%s21349_s10 + $0x48] ss:$16 sps:$4 sm:$0xff]  }
 0x571   : > { %3611 = vmatprep.subr.bf16.mxu0 %v15865_v12  ;;  %v15932_v12 = vld [vmem:[%s21346_s7 + $0x300] ss:$8 sps:$4 sm:$0xff]   ;;  %v15955_v31 = vld [vmem:[%s21346_s7 + $0x374] ss:$8 sps:$4 sm:$0xff]  }
 0x572   : > { %v16020_v27 = vld [vmem:[%s21349_s10 + $0x4c] ss:$16 sps:$4 sm:$0xff]  }
 0x574   : > { %3612 = vmatpush1.bf16.msra.mxu0 %v15863_v14  ;;  %v15937_v14 = vld [vmem:[%s21346_s7 + $0x314] ss:$8 sps:$4 sm:$0xff]  }
 0x575   : > { %3613 = vmatprep.subr.bf16.mxu0 %v15868_v17  ;;  %v15940_v17 = vld [vmem:[%s21346_s7 + $0x324] ss:$8 sps:$4 sm:$0xff]  }
 0x578   : > { %3614 = vmatpush1.bf16.msra.mxu0 %v15866_v23  ;;  %v15944_v23 = vld [vmem:[%s21346_s7 + $0x340] ss:$8 sps:$4 sm:$0xff]  }
 0x579   : > { %3615 = vmatprep.subr.bf16.mxu0 %v15871_v25  ;;  %v15949_v25 = vld [vmem:[%s21346_s7 + $0x354] ss:$8 sps:$4 sm:$0xff]  }
 0x57c   : > { %3616 = vmatpush1.bf16.msra.mxu0 %v15869_v26  ;;  %v15947_v26 = vld [vmem:[%s21346_s7 + $0x350] ss:$8 sps:$4 sm:$0xff]  }
 0x57d   : > { %3617 = vmatprep.subr.bf16.mxu0 %v15874_v28  ;;  %v15952_v28 = vld [vmem:[%s21346_s7 + $0x364] ss:$8 sps:$4 sm:$0xff]  }
 0x580   : > { %3618 = vmatpush1.bf16.msra.mxu0 %v15872_v32  ;;  %v15953_v32 = vld [vmem:[%s21346_s7 + $0x370] ss:$8 sps:$4 sm:$0xff]  }
 0x581   : > { %3619 = vmatprep.subr.bf16.mxu0 %v15877_v34  ;;  %v15958_v34 = vld [vmem:[%s21346_s7 + $0x384] ss:$8 sps:$4 sm:$0xff]  }
 0x584   : > { %3620 = vmatpush1.bf16.msra.mxu0 %v15875_v35  ;;  %v15956_v35 = vld [vmem:[%s21346_s7 + $0x380] ss:$8 sps:$4 sm:$0xff]  }
 0x585   : > { %3621 = vmatprep.subr.bf16.mxu0 %v15880_v37  ;;  %v15961_v37 = vld [vmem:[%s21346_s7 + $0x394] ss:$8 sps:$4 sm:$0xff]  }
 0x588   : > { %3622 = vmatpush1.bf16.msra.mxu0 %v15878_v39  ;;  %v15959_v39 = vld [vmem:[%s21346_s7 + $0x390] ss:$8 sps:$4 sm:$0xff]  }
 0x589   : > { %3623 = vmatprep.subr.bf16.mxu0 %v15883_v40  ;;  %v15964_v40 = vld [vmem:[%s21346_s7 + $0x3a4] ss:$8 sps:$4 sm:$0xff]  }
 0x58c   : > { %3624 = vmatpush1.bf16.msra.mxu0 %v15881_v41  ;;  %v15962_v41 = vld [vmem:[%s21346_s7 + $0x3a0] ss:$8 sps:$4 sm:$0xff]  }
 0x58d   : > { %3754 = vmatprep.subr.bf16.mxu0 %v15886_v44  ;;  %v15968_v44 = vld [vmem:[%s21346_s7 + $0x3c0] ss:$8 sps:$4 sm:$0xff]  }
 0x58f   : > { %3642 = vmatmul.mubr.bf16.vlgmr.msra.gmra.mrb[76].mxu0 %v3511_v38  ;;  %v15898_v38 = vld [vmem:[%s21346_s7 + $0x244] ss:$8 sps:$4 sm:$0xff]  }
 0x590   : > { %3755 = vmatpush1.bf16.msra.mxu0 %v15884_v46  ;;  %3786 = vmatprep.mubr.bf16.mxu0 %v17189_v22  ;;  %v15973_v46 = vld [vmem:[%s21346_s7 + $0x3d4] ss:$8 sps:$4 sm:$0xff]  }
 0x591   : > { %3756 = vmatprep.subr.bf16.mxu0 %v15889_v24  ;;  %v15971_v24 = vld [vmem:[%s21346_s7 + $0x3d0] ss:$8 sps:$4 sm:$0xff]  }
 0x594   : > { %3757 = vmatpush1.bf16.msra.mxu0 %v15887_v47  ;;  %v15976_v47 = vld [vmem:[%s21346_s7 + $0x3e4] ss:$8 sps:$4 sm:$0xff]  }
 0x595   : > { %3758 = vmatprep.subr.bf16.mxu0 %v15892_v48  ;;  %v15974_v48 = vld [vmem:[%s21346_s7 + $0x3e0] ss:$8 sps:$4 sm:$0xff]  }
 0x598   : > { %3759 = vmatpush1.bf16.msra.mxu0 %v15890_v49  ;;  %v15979_v49 = vld [vmem:[%s21346_s7 + $0x3f4] ss:$8 sps:$4 sm:$0xff]  }
 0x599   : > { %3760 = vmatprep.subr.bf16.mxu0 %v15895_v33  ;;  %v15977_v33 = vld [vmem:[%s21346_s7 + $0x3f0] ss:$8 sps:$4 sm:$0xff]  }
 0x59c   : > { %3761 = vmatpush1.bf16.msra.mxu0 %v15893_v36  ;;  %v15982_v36 = vld [vmem:[%s21346_s7 + $0x404] ss:$8 sps:$4 sm:$0xff]  }
 0x59d   : > { %3762 = vmatprep.subr.bf16.mxu0 %v15898_v38  ;;  %v15980_v38 = vld [vmem:[%s21346_s7 + $0x400] ss:$8 sps:$4 sm:$0xff]  }
 0x5a0   : > { %3763 = vmatpush1.bf16.msra.mxu0 %v15896_v51  ;;  %v15985_v51 = vld [vmem:[%s21346_s7 + $0x414] ss:$8 sps:$4 sm:$0xff]  }
 0x5a1   : > { %3764 = vmatprep.subr.bf16.mxu0 %v15901_v52  ;;  %v15983_v52 = vld [vmem:[%s21346_s7 + $0x410] ss:$8 sps:$4 sm:$0xff]  }
 0x5a4   : > { %3765 = vmatpush1.bf16.msra.mxu0 %v15899_v54  ;;  %v15988_v54 = vld [vmem:[%s21346_s7 + $0x424] ss:$8 sps:$4 sm:$0xff]  }
 0x5a5   : > { %3766 = vmatprep.subr.bf16.mxu0 %v15904_v56  ;;  %v15986_v56 = vld [vmem:[%s21346_s7 + $0x420] ss:$8 sps:$4 sm:$0xff]  }
 0x5a8   : > { %3767 = vmatpush1.bf16.msra.mxu0 %v15902_v57  ;;  %v15992_v57 = vld [vmem:[%s21346_s7 + $0x440] ss:$8 sps:$4 sm:$0xff]  }
 0x5a9   : > { %3768 = vmatprep.subr.bf16.mxu0 %v15907_v58  ;;  %v15997_v58 = vld [vmem:[%s21346_s7 + $0x454] ss:$8 sps:$4 sm:$0xff]  }
 0x5ac   : > { %3769 = vmatpush1.bf16.msra.mxu0 %v15905_v59  ;;  %v15995_v59 = vld [vmem:[%s21346_s7 + $0x450] ss:$8 sps:$4 sm:$0xff]  }
 0x5ad   : > { %3899 = vmatprep.subr.bf16.mxu0 %v15910_v60  ;;  %v16000_v60 = vld [vmem:[%s21346_s7 + $0x464] ss:$8 sps:$4 sm:$0xff]  }
 0x5af   : > { %3787 = vmatmul.mubr.bf16.vlgmr.msra.gmra.mrb[76].mxu0 %v3656_v45  ;;  %v15922_v45 = vld [vmem:[%s21346_s7 + $0x2c4] ss:$8 sps:$4 sm:$0xff]  }
 0x5b0   : > { %3900 = vmatpush1.bf16.msra.mxu0 %v15908_v61  ;;  %3931 = vmatprep.mubr.bf16.mxu0 %v17189_v22  ;;  %v15998_v61 = vld [vmem:[%s21346_s7 + $0x460] ss:$8 sps:$4 sm:$0xff]  }
 0x5b1   : > { %3901 = vmatprep.subr.bf16.mxu0 %v15913_v62  ;;  %v16003_v62 = vld [vmem:[%s21346_s7 + $0x474] ss:$8 sps:$4 sm:$0xff]  }
 0x5b4   : > { %3902 = vmatpush1.bf16.msra.mxu0 %v15911_v63  ;;  %v16001_v63 = vld [vmem:[%s21346_s7 + $0x470] ss:$8 sps:$4 sm:$0xff]  }
 0x5b5   : > { %3903 = vmatprep.subr.bf16.mxu0 %v15916_v0  ;;  %v16006_v0 = vld [vmem:[%s21349_s10 + $0x8] ss:$16 sps:$4 sm:$0xff]  }
 0x5b8   : > { %3904 = vmatpush1.bf16.msra.mxu0 %v15914_v1  ;;  %v16008_v1 = vld [vmem:[%s21349_s10 + $0xc] ss:$16 sps:$4 sm:$0xff]  }
 0x5b9   : > { %3905 = vmatprep.subr.bf16.mxu0 %v15919_v43  ;;  %v16014_v43 = vld [vmem:[%s21349_s10 + $0x2c] ss:$16 sps:$4 sm:$0xff]  }
 0x5bc   : > { %3906 = vmatpush1.bf16.msra.mxu0 %v15917_v42  ;;  %v16012_v42 = vld [vmem:[%s21349_s10 + $0x28] ss:$16 sps:$4 sm:$0xff]  }
 0x5bd   : > { %3907 = vmatprep.subr.bf16.mxu0 %v15922_v45  ;;  %v16024_v45 = vld [vmem:[%s21349_s10 + $0x68] ss:$16 sps:$4 sm:$0xff]  }
 0x5c0   : > { %3908 = vmatpush1.bf16.msra.mxu0 %v15920_v2  ;;  %v16032_v2 = vld [vmem:[%s21349_s10 + $0x8c] ss:$16 sps:$4 sm:$0xff]  }
 0x5c1   : > { %3909 = vmatprep.subr.bf16.mxu0 %v15925_v15  ;;  %v16030_v15 = vld [vmem:[%s21349_s10 + $0x88] ss:$16 sps:$4 sm:$0xff]  }
 0x5c4   : > { %3910 = vmatpush1.bf16.msra.mxu0 %v15923_v3  ;;  %v16038_v3 = vld [vmem:[%s21349_s10 + $0xac] ss:$16 sps:$4 sm:$0xff]  }
 0x5c5   : > { %3911 = vmatprep.subr.bf16.mxu0 %v15928_v5  ;;  %v16036_v5 = vld [vmem:[%s21349_s10 + $0xa8] ss:$16 sps:$4 sm:$0xff]  }
 0x5c8   : > { %3912 = vmatpush1.bf16.msra.mxu0 %v15926_v6  ;;  %v16044_v6 = vld [vmem:[%s21349_s10 + $0xcc] ss:$16 sps:$4 sm:$0xff]  }
 0x5c9   : > { %3913 = vmatprep.subr.bf16.mxu0 %v15931_v8  ;;  %v16042_v8 = vld [vmem:[%s21349_s10 + $0xc8] ss:$16 sps:$4 sm:$0xff]  }
 0x5cc   : > { %3914 = vmatpush1.bf16.msra.mxu0 %v15929_v10  ;;  %v16050_v10 = vld [vmem:[%s21349_s10 + $0xec] ss:$16 sps:$4 sm:$0xff]  }
 0x5cd   : > { %4044 = vmatprep.subr.bf16.mxu0 %v15934_v11  ;;  %v16048_v11 = vld [vmem:[%s21349_s10 + $0xe8] ss:$16 sps:$4 sm:$0xff]  }
 0x5cf   : > { %3932 = vmatmul.mubr.bf16.vlgmr.msra.gmra.mrb[76].mxu0 %v3801_v55  ;;  %v15946_v55 = vld [vmem:[%s21346_s7 + $0x344] ss:$8 sps:$4 sm:$0xff]  }
 0x5d0   : > { %4045 = vmatpush1.bf16.msra.mxu0 %v15932_v12  ;;  %4076 = vmatprep.mubr.bf16.mxu0 %v17189_v22  ;;  %v16056_v12 = vld [vmem:[%s21349_s10 + $0x10c] ss:$16 sps:$4 sm:$0xff]  }
 0x5d1   : > { %4046 = vmatprep.subr.bf16.mxu0 %v15937_v14  ;;  %v16054_v14 = vld [vmem:[%s21349_s10 + $0x108] ss:$16 sps:$4 sm:$0xff]  }
 0x5d4   : > { %4047 = vmatpush1.bf16.msra.mxu0 %v15935_v16  ;;  %v16062_v16 = vld [vmem:[%s21349_s10 + $0x12c] ss:$16 sps:$4 sm:$0xff]  }
 0x5d5   : > { %4048 = vmatprep.subr.bf16.mxu0 %v15940_v17  ;;  %v16060_v17 = vld [vmem:[%s21349_s10 + $0x128] ss:$16 sps:$4 sm:$0xff]  }
 0x5d8   : > { %4049 = vmatpush1.bf16.msra.mxu0 %v15938_v21  ;;  %v16068_v21 = vld [vmem:[%s21349_s10 + $0x14c] ss:$16 sps:$4 sm:$0xff]  }
 0x5d9   : > { %4050 = vmatprep.subr.bf16.mxu0 %v15943_v50  ;;  %v4383_v50 = vlaneseq }
 0x5dc   : > { %4051 = vmatpush1.bf16.msra.mxu0 %v15941_v53  ;;  %v16066_v53 = vld [vmem:[%s21349_s10 + $0x148] ss:$16 sps:$4 sm:$0xff]  }
 0x5dd   : > { %4052 = vmatprep.subr.bf16.mxu0 %v15946_v55  ;;  %v16075_v55 = vld [vmem:[%s21349_s10 + $0x16c] ss:$16 sps:$4 sm:$0xff]  }
 0x5e0   : > { %4053 = vmatpush1.bf16.msra.mxu0 %v15944_v23  ;;  %v18420_v23 = vshrl.u32 %v4383_v50, 7 }
 0x5e1   : > { %4054 = vmatprep.subr.bf16.mxu0 %v15949_v25  ;;  %v16073_v25 = vld [vmem:[%s21349_s10 + $0x168] ss:$16 sps:$4 sm:$0xff]  }
 0x5e4   : > { %4055 = vmatpush1.bf16.msra.mxu0 %v15947_v26  ;;  %v16081_v26 = vld [vmem:[%s21349_s10 + $0x18c] ss:$16 sps:$4 sm:$0xff]  }
 0x5e5   : > { %4056 = vmatprep.subr.bf16.mxu0 %v15952_v28  ;;  %v4385_v28 = vsub.s32 0, %v18420_v23 }
 0x5e8   : > { %4057 = vmatpush1.bf16.msra.mxu0 %v15950_v29  ;;  %v16079_v29 = vld [vmem:[%s21349_s10 + $0x188] ss:$16 sps:$4 sm:$0xff]  }
 0x5e9   : > { %4058 = vmatprep.subr.bf16.mxu0 %v15955_v31  ;;  %v4381_v31 = vld [vmem:[%s21347_s8] sm:$0x3] }
 0x5ec   : > { %4059 = vmatpush1.bf16.msra.mxu0 %v15953_v32  ;;  %v4389_v32 = vsub.s32 1, %v18420_v23 }
 0x5ed   : > { %4189 = vmatprep.subr.bf16.mxu0 %v15958_v34  ;;  %v16088_v34 = vld [vmem:[%s21349_s10 + $0x1ac] ss:$16 sps:$4 sm:$0xff]  }
 0x5ef   : > { %4077 = vmatmul.mubr.bf16.vlgmr.msra.gmra.mrb[76].mxu0 %v3946_v9  ;;  %v15970_v9 = vld [vmem:[%s21346_s7 + $0x3c4] ss:$8 sps:$4 sm:$0xff]  }
 0x5f0   : > { %4190 = vmatpush1.bf16.msra.mxu0 %v15956_v35  ;;  %4221 = vmatprep.mubr.bf16.mxu0 %v17189_v22  ;;  %v4386_v35 = vrot.slane %v4381_v31, %v4385_v28 }
 0x5f1   : > { %4191 = vmatprep.subr.bf16.mxu0 %v15961_v37  ;;  %v16086_v37 = vld [vmem:[%s21349_s10 + $0x1a8] ss:$16 sps:$4 sm:$0xff]  }
 0x5f4   : > { %4192 = vmatpush1.bf16.msra.mxu0 %v15959_v39  ;;  %v4390_v39 = vrot.slane %v4381_v31, %v4389_v32 }
 0x5f5   : > { %4193 = vmatprep.subr.bf16.mxu0 %v15964_v40  ;;  %v16094_v40 = vld [vmem:[%s21349_s10 + $0x1cc] ss:$16 sps:$4 sm:$0xff]  }
 0x5f8   : > { %4194 = vmatpush1.bf16.msra.mxu0 %v15962_v41 }
 0x5f9   : > { %4195 = vmatprep.subr.bf16.mxu0 %v15967_v4 }
 0x5fc   : > { %4196 = vmatpush1.bf16.msra.mxu0 %v15965_v7 }
 0x5fd   : > { %4197 = vmatprep.subr.bf16.mxu0 %v15970_v9  ;;  %v16092_v9 = vld [vmem:[%s21349_s10 + $0x1c8] ss:$16 sps:$4 sm:$0xff]  }
 0x600   : > { %4198 = vmatpush1.bf16.msra.mxu0 %v15968_v44 }
 0x601   : > { %4199 = vmatprep.subr.bf16.mxu0 %v15973_v46 }
 0x604   : > { %4200 = vmatpush1.bf16.msra.mxu0 %v15971_v24 }
 0x605   : > { %4201 = vmatprep.subr.bf16.mxu0 %v15976_v47 }
 0x608   : > { %4202 = vmatpush1.bf16.msra.mxu0 %v15974_v48 }
 0x609   : > { %4203 = vmatprep.subr.bf16.mxu0 %v15979_v49 }
 0x60c   : > { %4204 = vmatpush1.bf16.msra.mxu0 %v15977_v33 }
 0x60d   : > { %4334 = vmatprep.subr.bf16.mxu0 %v15982_v36 }
 0x60f   : > { %4222 = vmatmul.mubr.bf16.vlgmr.msra.gmra.mrb[76].mxu0 %v4091_v19  ;;  %v15994_v19 = vld [vmem:[%s21346_s7 + $0x444] ss:$8 sps:$4 sm:$0xff]  }
 0x610   : > { %4335 = vmatpush1.bf16.msra.mxu0 %v15980_v38  ;;  %4366 = vmatprep.mubr.bf16.mxu0 %v17189_v22 }
 0x611   : > { %4336 = vmatprep.subr.bf16.mxu0 %v15985_v51 }
 0x614   : > { %4337 = vmatpush1.bf16.msra.mxu0 %v15983_v52 }
 0x615   : > { %4338 = vmatprep.subr.bf16.mxu0 %v15988_v54 }
 0x618   : > { %4339 = vmatpush1.bf16.msra.mxu0 %v15986_v56 }
 0x619   : > { %4340 = vmatprep.subr.bf16.mxu0 %v15991_v13 }
 0x61c   : > { %4341 = vmatpush1.bf16.msra.mxu0 %v15989_v18 }
 0x61d   : > { %4342 = vmatprep.subr.bf16.mxu0 %v15994_v19 }
 0x620   : > { %4343 = vmatpush1.bf16.msra.mxu0 %v15992_v57 }
 0x621   : > { %4344 = vmatprep.subr.bf16.mxu0 %v15997_v58 }
 0x624   : > { %4345 = vmatpush1.bf16.msra.mxu0 %v15995_v59 }
 0x625   : > { %4346 = vmatprep.subr.bf16.mxu0 %v16000_v60 }
 0x628   : > { %4347 = vmatpush1.bf16.msra.mxu0 %v15998_v61 }
 0x629   : > { %4348 = vmatprep.subr.bf16.mxu0 %v16003_v62 }
 0x62c   : > { %4349 = vmatpush1.bf16.msra.mxu0 %v16001_v63 }
 0x62d   : > { %5485 = vmatprep.subr.bf16.mxu0 %v16008_v1 }
 0x62f   : > { %4367 = vmatmul.mubr.bf16.vlgmr.msra.gmra.mrb[76].mxu0 %v4236_v30  ;;  %v16026_v30 = vld [vmem:[%s21349_s10 + $0x6c] ss:$16 sps:$4 sm:$0xff]  }
 0x630   : > { %5486 = vmatpush1.bf16.msra.mxu0 %v16006_v0 }
 0x631   : > { %5487 = vmatprep.subr.bf16.mxu0 %v16014_v43 }
 0x634   : > { %5488 = vmatpush1.bf16.msra.mxu0 %v16012_v42 }
 0x635   : > { %5489 = vmatprep.subr.bf16.mxu0 %v16020_v27 }
 0x638   : > { %5490 = vmatpush1.bf16.msra.mxu0 %v16018_v20 }
 0x639   : > { %5491 = vmatprep.subr.bf16.mxu0 %v16026_v30 }
 0x63c   : > { %5492 = vmatpush1.bf16.msra.mxu0 %v16024_v45 }
 0x63d   : > { %5493 = vmatprep.subr.bf16.mxu0 %v16032_v2 }
 0x640   : > { %5494 = vmatpush1.bf16.msra.mxu0 %v16030_v15 }
 0x641   : > { %5495 = vmatprep.subr.bf16.mxu0 %v16038_v3 }
 0x644   : > { %5496 = vmatpush1.bf16.msra.mxu0 %v16036_v5 }
 0x645   : > { %5497 = vmatprep.subr.bf16.mxu0 %v16044_v6 }
 0x648   : > { %5498 = vmatpush1.bf16.msra.mxu0 %v16042_v8 }
 0x649   : > { %5499 = vmatprep.subr.bf16.mxu0 %v16050_v10 }
 0x64c   : > { %5500 = vmatpush1.bf16.msra.mxu0 %v16048_v11 }
 0x64d   : > { %5501 = vmatprep.subr.bf16.mxu0 %v16056_v12 }
 0x650   : > { %5502 = vmatpush1.bf16.msra.mxu0 %v16054_v14 }
 0x651   : > { %5503 = vmatprep.subr.bf16.mxu0 %v16062_v16 }
 0x654   : > { %5504 = vmatpush1.bf16.msra.mxu0 %v16060_v17 }
 0x655   : > { %5505 = vmatprep.subr.bf16.mxu0 %v16068_v21 }
 0x658   : > { %5506 = vmatpush1.bf16.msra.mxu0 %v16066_v53 }
 0x659   : > { %5507 = vmatprep.subr.bf16.mxu0 %v16075_v55 }
 0x65c   : > { %5508 = vmatpush1.bf16.msra.mxu0 %v16073_v25 }
 0x65d   : > { %5509 = vmatprep.subr.bf16.mxu0 %v16081_v26 }
 0x660   : > { %5510 = vmatpush1.bf16.msra.mxu0 %v16079_v29 }
 0x661   : > { %5511 = vmatprep.subr.bf16.mxu0 %v16088_v34 }
 0x664   : > { %5512 = vmatpush1.bf16.msra.mxu0 %v16086_v37 }
 0x665   : > { %5513 = vmatprep.subr.bf16.mxu0 %v16094_v40 }
 0x668   : > { %5514 = vmatpush1.bf16.msra.mxu0 %v16092_v9 }
 0x702   : > { %v4368_v41 = vpop.f32.mrb[76].mxu0 }
 0x703   : > { %v4393_v4 = vadd.f32 %v4386_v35, %v4368_v41  ;;  %v4370_v7 = vpop.f32.mrb[77].mxu0 }
 0x704   : > { %v4394_v44 = vadd.f32 %v4390_v39, %v4370_v7  ;;  %v4372_v46 = vpop.f32.mrb[78].mxu0 }
 0x705   : > { %v4401_v24 = vmul.f32 0.2, %v4393_v4  ;;  %v4395_v47 = vadd.f32 %v4386_v35, %v4372_v46  ;;  %v4374_v48 = vpop.f32.mrb[79].mxu0  ;;  %vm4397_vm13 = vcmp.ge.f32.partialorder %v4393_v4, 0.0 }
 0x706   : > { %v4402_v49 = vmul.f32 0.2, %v4394_v44  ;;  %v4396_v33 = vadd.f32 %v4390_v39, %v4374_v48  ;;  %vm4398_vm14 = vcmp.ge.f32.partialorder %v4394_v44, 0.0  ;;  %v16004_v48 = vld [vmem:[%s21348_s9] sm:$0xff]  }
 0x707   : > { %vm4399_vm15 = vcmp.ge.f32.partialorder %v4395_v47, 0.0  ;;  %v4403_v36 = vmul.f32 0.2, %v4395_v47  ;;  %v4405_v51 = vsel %vm4397_vm13, %v4393_v4, %v4401_v24 }
 0x708   : > { %vm4400_vm0 = vcmp.ge.f32.partialorder %v4396_v33, 0.0  ;;  %v4404_v38 = vmul.f32 0.2, %v4396_v33  ;;  %v4406_v54 = vsel %vm4398_vm14, %v4394_v44, %v4402_v49  ;;  %v16009_v49 = vld [vmem:[%s21349_s10 + $0x200] ss:$16 sps:$4 sm:$0xff]  }
 0x709   : > { %v4407_v52 = vsel %vm4399_vm15, %v4395_v47, %v4403_v36  ;;  %v16011_v47 = vld [vmem:[%s21349_s10 + $0x204] ss:$16 sps:$4 sm:$0xff]   ;;  %v16015_v36 = vld [vmem:[%s21349_s10 + $0x220] ss:$16 sps:$4 sm:$0xff]  }
 0x70a   : > { %v4409_v56 = vadd.f32 %v4407_v52, %v4405_v51  ;;  %v4408_v13 = vsel %vm4400_vm0, %v4396_v33, %v4404_v38  ;;  %v16017_v33 = vld [vmem:[%s21349_s10 + $0x224] ss:$16 sps:$4 sm:$0xff]  }
 0x70b   : > { %v4416_v18 = vadd.f32 %v4408_v13, %v4406_v54  ;;  %v16023_v38 = vld [vmem:[%s21349_s10 + $0x244] ss:$16 sps:$4 sm:$0xff]  }
 0x70c   : > { %v4410_v19 = vrot.slane %v4409_v56, 4 }
 0x70d   : > { %v4417_v57 = vrot.slane %v4416_v18, 4 }
 0x70e   : > { %v4411_v58 = vadd.f32 %v4410_v19, %v4409_v56  ;;  %v16027_v56 = vld [vmem:[%s21349_s10 + $0x260] ss:$16 sps:$4 sm:$0xff]  }
 0x70f   : > { %v4418_v59 = vadd.f32 %v4417_v57, %v4416_v18  ;;  %v16069_v18 = vld [vmem:[%s21348_s9 + $0x10] sm:$0xff]  }
 0x710   : > { %v4412_v60 = vrot.slane %v4411_v58, 2  ;;  %v16033_v19 = vld [vmem:[%s21349_s10 + $0x280] ss:$16 sps:$4 sm:$0xff]   ;;  %v16041_v57 = vld [vmem:[%s21349_s10 + $0x2a4] ss:$16 sps:$4 sm:$0xff]  }
 0x711   : > { %v4419_v61 = vrot.slane %v4418_v59, 2 }
 0x712   : > { %v4413_v62 = vadd.f32 %v4412_v60, %v4411_v58  ;;  %v16039_v58 = vld [vmem:[%s21349_s10 + $0x2a0] ss:$16 sps:$4 sm:$0xff]   ;;  %v16085_v60 = vld [vmem:[%s21348_s9 + $0x18] sm:$0xff]  }
 0x713   : > { %v4420_v63 = vadd.f32 %v4419_v61, %v4418_v59  ;;  %v16047_v59 = vld [vmem:[%s21349_s10 + $0x2c4] ss:$16 sps:$4 sm:$0xff]   ;;  %v16045_v61 = vld [vmem:[%s21349_s10 + $0x2c0] ss:$16 sps:$4 sm:$0xff]  }
 0x714   : > { %v4414_v0 = vrot.slane %v4413_v62, 1 }
 0x715   : > { %v4421_v1 = vrot.slane %v4420_v63, 1 }
 0x716   : > { %v4415_v43 = vadd.f32 %v4414_v0, %v4413_v62  ;;  %v16053_v62 = vld [vmem:[%s21349_s10 + $0x2e4] ss:$16 sps:$4 sm:$0xff]  }
 0x717   : > { %v4422_v42 = vadd.f32 %v4421_v1, %v4420_v63  ;;  %v16051_v63 = vld [vmem:[%s21349_s10 + $0x2e0] ss:$16 sps:$4 sm:$0xff]   ;;  %v16059_v0 = vld [vmem:[%s21349_s10 + $0x304] ss:$16 sps:$4 sm:$0xff]  }
 0x718   : > { %v4424_v27 = vmul.f32 0.0625, %v4415_v43  ;;  %v16098_v1 = vld [vmem:[%s21348_s9 + $0x20] ss:$0 sps:$4 sm:$0xff]  }
 0x719   : > { %v4425_v20 = vmul.f32 0.0625, %v4422_v42  ;;  %v16057_v43 = vld [vmem:[%s21349_s10 + $0x300] ss:$16 sps:$4 sm:$0xff]   ;;  %v16065_v42 = vld [vmem:[%s21349_s10 + $0x324] ss:$16 sps:$4 sm:$0xff]  }
 0x71a   : > { %v4426_v30 = vsub.f32 %v4405_v51, %v4424_v27  ;;  %v4428_v45 = vsub.f32 %v4407_v52, %v4424_v27  ;;  %v16005_v51 = vld [vmem:[%s21348_s9 + $0x8] sm:$0xff]   ;;  %v16021_v52 = vld [vmem:[%s21349_s10 + $0x240] ss:$16 sps:$4 sm:$0xff]  }
 0x71b   : > { %v4429_v2 = vsub.f32 %v4408_v13, %v4425_v20  ;;  %v4427_v15 = vsub.f32 %v4406_v54, %v4425_v20  ;;  %v16029_v54 = vld [vmem:[%s21349_s10 + $0x264] ss:$16 sps:$4 sm:$0xff]   ;;  %v16063_v27 = vld [vmem:[%s21349_s10 + $0x320] ss:$16 sps:$4 sm:$0xff]  }
 0x71c   : > { %v4430_v3 = vmul.f32 %v4426_v30, %v4426_v30  ;;  %v4432_v5 = vmul.f32 %v4428_v45, %v4428_v45  ;;  %v16035_v13 = vld [vmem:[%s21349_s10 + $0x284] ss:$16 sps:$4 sm:$0xff]  }
 0x71d   : > { %v4433_v6 = vmul.f32 %v4429_v2, %v4429_v2  ;;  %v4431_v8 = vmul.f32 %v4427_v15, %v4427_v15  ;;  %v16072_v20 = vld [vmem:[%s21349_s10 + $0x344] ss:$16 sps:$4 sm:$0xff]  }
 0x71e   : > { %v4434_v10 = vadd.f32 %v4432_v5, %v4430_v3  ;;  %v16082_v3 = vld [vmem:[%s21349_s10 + $0x380] ss:$16 sps:$4 sm:$0xff]   ;;  %v16091_v5 = vld [vmem:[%s21349_s10 + $0x3a4] ss:$16 sps:$4 sm:$0xff]  }
 0x71f   : > { %v4441_v11 = vadd.f32 %v4433_v6, %v4431_v8  ;;  %v16089_v6 = vld [vmem:[%s21349_s10 + $0x3a0] ss:$16 sps:$4 sm:$0xff]   ;;  %v16097_v8 = vld [vmem:[%s21349_s10 + $0x3c4] ss:$16 sps:$4 sm:$0xff]  }
 0x720   : > { %v4435_v12 = vrot.slane %v4434_v10, 4 }
 0x721   : > { %v4442_v14 = vrot.slane %v4441_v11, 4 }
 0x722   : > { %v4436_v16 = vadd.f32 %v4435_v12, %v4434_v10  ;;  %v16095_v10 = vld [vmem:[%s21349_s10 + $0x3c0] ss:$16 sps:$4 sm:$0xff]   ;;  %v16099_v12 = vld [vmem:[%s21349_s10 + $0x1e8] ss:$16 sps:$4 sm:$0xff]  }
 0x723   : > { %v4443_v17 = vadd.f32 %v4442_v14, %v4441_v11  ;;  %v16101_v11 = vld [vmem:[%s21349_s10 + $0x1ec] ss:$16 sps:$4 sm:$0xff]   ;;  %v16104_v14 = vld [vmem:[%s21349_s10 + $0x3e4] ss:$16 sps:$4 sm:$0xff]  }
 0x724   : > { %v4437_v21 = vrot.slane %v4436_v16, 2  ;;  %5515 = vmatprep.subr.bf16.mxu0 %v16101_v11  ;;  %v16173_v11 = vld [vmem:[%s21349_s10 + $0x56c] ss:$16 sps:$4 sm:$0xff]  }
 0x725   : > { %v4444_v50 = vrot.slane %v4443_v17, 2  ;;  %5516 = vmatpush1.bf16.msra.mxu0 %v16099_v12  ;;  %v16168_v12 = vld [vmem:[%s21349_s10 + $0x348] ss:$16 sps:$4 sm:$0xff]  }
 0x726   : > { %v4438_v53 = vadd.f32 %v4437_v21, %v4436_v16  ;;  %v16102_v16 = vld [vmem:[%s21349_s10 + $0x3e0] ss:$16 sps:$4 sm:$0xff]   ;;  %v16110_v21 = vld [vmem:[%s21349_s10 + $0x20c] ss:$16 sps:$4 sm:$0xff]  }
 0x727   : > { %v4445_v55 = vadd.f32 %v4444_v50, %v4443_v17  ;;  %v16107_v17 = vld [vmem:[%s21349_s10 + $0x40c] ss:$16 sps:$4 sm:$0xff]  }
 0x728   : > { %v4439_v25 = vrot.slane %v4438_v53, 1  ;;  %5954 = vmatprep.subr.bf16.mxu0 %v16107_v17  ;;  %v16179_v17 = vld [vmem:[%s21349_s10 + $0x58c] ss:$16 sps:$4 sm:$0xff]  }
 0x729   : > { %v4446_v26 = vrot.slane %v4445_v55, 1 }
 0x72a   : > { %v4440_v29 = vadd.f32 %v4439_v25, %v4438_v53 }
 0x72b   : > { %v4447_v31 = vadd.f32 %v4446_v26, %v4445_v55  ;;  %v16105_v26 = vld [vmem:[%s21349_s10 + $0x408] ss:$16 sps:$4 sm:$0xff]  }
 0x72c   : > { %v4448_v34 = vmul.f32 0.0625, %v4440_v29 }
 0x72d   : > { %v4449_v35 = vmul.f32 0.0625, %v4447_v31 }
 0x72e   : > { %v4450_v37 = vadd.f32 1e-05, %v4448_v34  ;;  %v16113_v34 = vld [vmem:[%s21349_s10 + $0x42c] ss:$16 sps:$4 sm:$0xff]  }
 0x72f   : > { %v4451_v39 = vadd.f32 1e-05, %v4449_v35 }
 0x730   : > { %17168 = vrsqrt.f32 %v4450_v37  ;;  %v16108_v37 = vld [vmem:[%s21349_s10 + $0x208] ss:$16 sps:$4 sm:$0xff]  }
 0x731   : > { %17170 = vrsqrt.f32 %v4451_v39 }
 0x73a   : > { %v17169_v40 = vpop.eup %17168 }
 0x73b   : > { %v17171_v41 = vpop.eup %17170  ;;  %v4456_v4 = vmul.f32 %v17169_v40, %v4428_v45  ;;  %v4454_v7 = vmul.f32 %v17169_v40, %v4426_v30  ;;  %v16070_v30 = vld [vmem:[%s21349_s10 + $0x340] ss:$16 sps:$4 sm:$0xff]   ;;  %v16078_v45 = vld [vmem:[%s21349_s10 + $0x364] ss:$16 sps:$4 sm:$0xff]   ;;  %v16116_v40 = vld [vmem:[%s21349_s10 + $0x22c] ss:$16 sps:$4 sm:$0xff]  }
 0x73c   : > { %v4455_v9 = vmul.f32 %v17171_v41, %v4427_v15  ;;  %v4457_v44 = vmul.f32 %v17171_v41, %v4429_v2  ;;  %v16076_v2 = vld [vmem:[%s21349_s10 + $0x360] ss:$16 sps:$4 sm:$0xff]   ;;  %v16084_v15 = vld [vmem:[%s21349_s10 + $0x384] ss:$16 sps:$4 sm:$0xff]   ;;  %v16111_v41 = vld [vmem:[%s21349_s10 + $0x428] ss:$16 sps:$4 sm:$0xff]  }
 0x73d   : > { %v4458_v46 = vpack.c.bf16 %v4456_v4, %v4454_v7  ;;  %v16119_v4 = vld [vmem:[%s21349_s10 + $0x44c] ss:$16 sps:$4 sm:$0xff]   ;;  %v16114_v7 = vld [vmem:[%s21349_s10 + $0x228] ss:$16 sps:$4 sm:$0xff]  }
 0x73e   : > { %v4459_v24 = vpack.c.bf16 %v4457_v44, %v4455_v9  ;;  %v16122_v44 = vld [vmem:[%s21349_s10 + $0x24c] ss:$16 sps:$4 sm:$0xff]  }
 0x740   : > { %4508 = vmatprep.subr.bf16.mxu1 %v4459_v24  ;;  %v16117_v24 = vld [vmem:[%s21349_s10 + $0x448] ss:$16 sps:$4 sm:$0xff]  }
 0x741   : > { %4509 = vmatpush1.bf16.msra.mxu1 %v4458_v46 }
 0x742   : > { %5042 = vmatprep.subr.bf16.mxu1 %v16011_v47 }
 0x744   : > { %12872 = vmatmul.mubr.msk.bf16.vlgmr.msra.gmra.mrb[144].mxu1 %vm4492_vm1, %v16004_v48 }
 0x745   : > { %4550 = vmatprep.mubr.bf16.mxu1 %v17189_v22  ;;  %5043 = vmatpush1.bf16.msra.mxu1 %v16009_v49  ;;  %v16125_v49 = vld [vmem:[%s21349_s10 + $0x46c] ss:$16 sps:$4 sm:$0xff]  }
 0x746   : > { %5044 = vmatprep.subr.bf16.mxu1 %v16017_v33 }
 0x749   : > { %5045 = vmatpush1.bf16.msra.mxu1 %v16015_v36  ;;  %v16120_v36 = vld [vmem:[%s21349_s10 + $0x248] ss:$16 sps:$4 sm:$0xff]  }
 0x74a   : > { %5046 = vmatprep.subr.bf16.mxu1 %v16023_v38  ;;  %v16128_v38 = vld [vmem:[%s21349_s10 + $0x26c] ss:$16 sps:$4 sm:$0xff]  }
 0x74c   : > { %12873 = vmatmul.mubr.msk.bf16.gmra.mrb[148].mxu1 %vm4492_vm1, %v16005_v51  ;;  %v16123_v51 = vld [vmem:[%s21349_s10 + $0x468] ss:$16 sps:$4 sm:$0xff]  }
 0x74d   : > { %5047 = vmatpush1.bf16.msra.mxu1 %v16021_v52  ;;  %4560 = vmatprep.mubr.bf16.mxu1 %v17189_v22  ;;  %v16131_v52 = vld [vmem:[%s21349_s10 + $0x48c] ss:$16 sps:$4 sm:$0xff]  }
 0x74e   : > { %5048 = vmatprep.subr.bf16.mxu1 %v16029_v54  ;;  %v16126_v54 = vld [vmem:[%s21349_s10 + $0x268] ss:$16 sps:$4 sm:$0xff]  }
 0x751   : > { %5049 = vmatpush1.bf16.msra.mxu1 %v16027_v56  ;;  %v16134_v56 = vld [vmem:[%s21349_s10 + $0x28c] ss:$16 sps:$4 sm:$0xff]  }
 0x752   : > { %5050 = vmatprep.subr.bf16.mxu1 %v16035_v13  ;;  %v16129_v13 = vld [vmem:[%s21349_s10 + $0x488] ss:$16 sps:$4 sm:$0xff]  }
 0x754   : > { %12874 = vmatmul.mubr.msk.bf16.gmra.mrb[152].mxu1 %vm4492_vm1, %v16069_v18  ;;  %v16137_v18 = vld [vmem:[%s21349_s10 + $0x4ac] ss:$16 sps:$4 sm:$0xff]  }
 0x755   : > { %5051 = vmatpush1.bf16.msra.mxu1 %v16033_v19  ;;  %4570 = vmatprep.mubr.bf16.mxu1 %v17189_v22  ;;  %v16132_v19 = vld [vmem:[%s21349_s10 + $0x288] ss:$16 sps:$4 sm:$0xff]  }
 0x756   : > { %5052 = vmatprep.subr.bf16.mxu1 %v16041_v57  ;;  %v16140_v57 = vld [vmem:[%s21349_s10 + $0x2ac] ss:$16 sps:$4 sm:$0xff]  }
 0x759   : > { %5053 = vmatpush1.bf16.msra.mxu1 %v16039_v58  ;;  %v16135_v58 = vld [vmem:[%s21349_s10 + $0x4a8] ss:$16 sps:$4 sm:$0xff]  }
 0x75a   : > { %5054 = vmatprep.subr.bf16.mxu1 %v16047_v59  ;;  %v16143_v59 = vld [vmem:[%s21349_s10 + $0x4cc] ss:$16 sps:$4 sm:$0xff]  }
 0x75c   : > { %12875 = vmatmul.mubr.msk.bf16.gmra.mrb[156].mxu1 %vm4492_vm1, %v16085_v60  ;;  %v16138_v60 = vld [vmem:[%s21349_s10 + $0x2a8] ss:$16 sps:$4 sm:$0xff]  }
 0x75d   : > { %5055 = vmatpush1.bf16.msra.mxu1 %v16045_v61  ;;  %4580 = vmatprep.mubr.bf16.mxu1 %v17189_v22  ;;  %v16146_v61 = vld [vmem:[%s21349_s10 + $0x2cc] ss:$16 sps:$4 sm:$0xff]  }
 0x75e   : > { %5056 = vmatprep.subr.bf16.mxu1 %v16053_v62  ;;  %v16141_v62 = vld [vmem:[%s21349_s10 + $0x4c8] ss:$16 sps:$4 sm:$0xff]  }
 0x761   : > { %5057 = vmatpush1.bf16.msra.mxu1 %v16051_v63  ;;  %v16149_v63 = vld [vmem:[%s21349_s10 + $0x4ec] ss:$16 sps:$4 sm:$0xff]  }
 0x762   : > { %5058 = vmatprep.subr.bf16.mxu1 %v16059_v0  ;;  %v16144_v0 = vld [vmem:[%s21349_s10 + $0x2c8] ss:$16 sps:$4 sm:$0xff]  }
 0x764   : > { %12876 = vmatmul.mubr.msk.bf16.gmra.mrb[160].mxu1 %vm4492_vm1, %v16098_v1  ;;  %v16152_v1 = vld [vmem:[%s21349_s10 + $0x2ec] ss:$16 sps:$4 sm:$0xff]  }
 0x765   : > { %5059 = vmatpush1.bf16.msra.mxu1 %v16057_v43  ;;  %v16147_v43 = vld [vmem:[%s21349_s10 + $0x4e8] ss:$16 sps:$4 sm:$0xff]  }
 0x766   : > { %5060 = vmatprep.subr.bf16.mxu1 %v16065_v42  ;;  %v16155_v42 = vld [vmem:[%s21349_s10 + $0x50c] ss:$16 sps:$4 sm:$0xff]  }
 0x769   : > { %5061 = vmatpush1.bf16.msra.mxu1 %v16063_v27  ;;  %v16150_v27 = vld [vmem:[%s21349_s10 + $0x2e8] ss:$16 sps:$4 sm:$0xff]  }
 0x76a   : > { %5062 = vmatprep.subr.bf16.mxu1 %v16072_v20  ;;  %v16158_v20 = vld [vmem:[%s21349_s10 + $0x30c] ss:$16 sps:$4 sm:$0xff]  }
 0x76d   : > { %5063 = vmatpush1.bf16.msra.mxu1 %v16070_v30  ;;  %v16153_v30 = vld [vmem:[%s21349_s10 + $0x508] ss:$16 sps:$4 sm:$0xff]  }
 0x76e   : > { %5064 = vmatprep.subr.bf16.mxu1 %v16078_v45  ;;  %v16161_v45 = vld [vmem:[%s21349_s10 + $0x52c] ss:$16 sps:$4 sm:$0xff]  }
 0x771   : > { %5065 = vmatpush1.bf16.msra.mxu1 %v16076_v2  ;;  %v16156_v2 = vld [vmem:[%s21349_s10 + $0x308] ss:$16 sps:$4 sm:$0xff]  }
 0x772   : > { %5066 = vmatprep.subr.bf16.mxu1 %v16084_v15  ;;  %v16164_v15 = vld [vmem:[%s21349_s10 + $0x32c] ss:$16 sps:$4 sm:$0xff]  }
 0x775   : > { %5067 = vmatpush1.bf16.msra.mxu1 %v16082_v3  ;;  %v16159_v3 = vld [vmem:[%s21349_s10 + $0x528] ss:$16 sps:$4 sm:$0xff]  }
 0x776   : > { %5068 = vmatprep.subr.bf16.mxu1 %v16091_v5  ;;  %v16167_v5 = vld [vmem:[%s21349_s10 + $0x54c] ss:$16 sps:$4 sm:$0xff]  }
 0x779   : > { %5069 = vmatpush1.bf16.msra.mxu1 %v16089_v6  ;;  %v16162_v6 = vld [vmem:[%s21349_s10 + $0x328] ss:$16 sps:$4 sm:$0xff]  }
 0x77a   : > { %5070 = vmatprep.subr.bf16.mxu1 %v16097_v8  ;;  %v16170_v8 = vld [vmem:[%s21349_s10 + $0x34c] ss:$16 sps:$4 sm:$0xff]  }
 0x77d   : > { %5071 = vmatpush1.bf16.msra.mxu1 %v16095_v10  ;;  %v16165_v10 = vld [vmem:[%s21349_s10 + $0x548] ss:$16 sps:$4 sm:$0xff]  }
 0x77e   : > { %5072 = vmatprep.subr.bf16.mxu1 %v16104_v14  ;;  %v16176_v14 = vld [vmem:[%s21349_s10 + $0x36c] ss:$16 sps:$4 sm:$0xff]  }
 0x781   : > { %5073 = vmatpush1.bf16.msra.mxu1 %v16102_v16  ;;  %v16171_v16 = vld [vmem:[%s21349_s10 + $0x568] ss:$16 sps:$4 sm:$0xff]  }
 0x782   : > { %5083 = vmatprep.subr.bf16.mxu1 %v16110_v21  ;;  %v16174_v21 = vld [vmem:[%s21349_s10 + $0x368] ss:$16 sps:$4 sm:$0xff]  }
 0x817   : > { %v4542_v50 = vpop.f32.mrb[144].mxu1 }
 0x818   : > { %v4544_v53 = vpop.f32.mrb[145].mxu1  ;;  %v18589_v29 = vpack.c.bf16 %v4542_v50, %v4542_v50  ;;  %v16182_v50 = vld [vmem:[%s21349_s10 + $0x38c] ss:$16 sps:$4 sm:$0xff]  }
 0x819   : > { %v18584_v55 = vpack.c.bf16 %v4544_v53, %v4544_v53  ;;  %v4546_v25 = vpop.f32.mrb[146].mxu1  ;;  %v16177_v53 = vld [vmem:[%s21349_s10 + $0x588] ss:$16 sps:$4 sm:$0xff]  }
 0x81a   : > { %v4548_v31 = vpop.f32.mrb[147].mxu1  ;;  %v18598_v39 = vpack.c.bf16 %v4546_v25, %v4546_v25  ;;  %v16185_v25 = vld [vmem:[%s21349_s10 + $0x5ac] ss:$16 sps:$4 sm:$0xff]  }
 0x81b   : > { %v4656_v35 = vpack.c.bf16 %v4548_v31, %v4548_v31  ;;  %5517 = vmatprep.mubr.bf16.mxu0 %v18584_v55  ;;  %v16188_v31 = vld [vmem:[%s21349_s10 + $0x3ac] ss:$16 sps:$4 sm:$0xff]  }
 0x81c   : > { %5518 = vmatmul.mubr.bf16.vlgmr.msra.gmra.mrb[80].mxu0 %v18589_v29 }
 0x81d   : > { %5955 = vmatpush1.bf16.msra.mxu0 %v16105_v26  ;;  %5074 = vmatprep.mubr.bf16.mxu1 %v4656_v35  ;;  %v16180_v26 = vld [vmem:[%s21349_s10 + $0x388] ss:$16 sps:$4 sm:$0xff]  }
 0x81e   : > { %5075 = vmatmul.mubr.bf16.vlgmr.msra.gmra.mrb[164].mxu1 %v18598_v39  ;;  %5956 = vmatprep.subr.bf16.mxu0 %v16113_v34  ;;  %v16183_v34 = vld [vmem:[%s21349_s10 + $0x5a8] ss:$16 sps:$4 sm:$0xff]  }
 0x81f   : > { %5084 = vmatpush1.bf16.msra.mxu1 %v16108_v37  ;;  %v18614_v9 = vpop.f32.mrb[148].mxu1  ;;  %5115 = vmatprep.mubr.bf16.mxu1 %v4656_v35  ;;  %v16191_v35 = vld [vmem:[%s21349_s10 + $0x5cc] ss:$16 sps:$4 sm:$0xff]   ;;  %v16186_v37 = vld [vmem:[%s21349_s10 + $0x3a8] ss:$16 sps:$4 sm:$0xff]  }
 0x820   : > { %5085 = vmatprep.subr.bf16.mxu1 %v16116_v40  ;;  %v4554_v46 = vpop.f32.mrb[149].mxu1  ;;  %v16194_v40 = vld [vmem:[%s21349_s10 + $0x3cc] ss:$16 sps:$4 sm:$0xff]  }
 0x821   : > { %5957 = vmatpush1.bf16.msra.mxu0 %v16111_v41  ;;  %v18622_v47 = vpack.c.bf16 %v4554_v46, %v4554_v46  ;;  %v18624_v48 = vpop.f32.mrb[150].mxu1  ;;  %v16189_v41 = vld [vmem:[%s21349_s10 + $0x5c8] ss:$16 sps:$4 sm:$0xff]  }
 0x822   : > { %5958 = vmatprep.subr.bf16.mxu0 %v16119_v4  ;;  %v18629_v33 = vpop.f32.mrb[151].mxu1  ;;  %v16197_v4 = vld [vmem:[%s21349_s10 + $0x5ec] ss:$16 sps:$4 sm:$0xff]   ;;  %v16195_v46 = vld [vmem:[%s21349_s10 + $0x5e8] ss:$16 sps:$4 sm:$0xff]  }
 0x823   : > { %5086 = vmatpush1.bf16.msra.mxu1 %v16114_v7  ;;  %5986 = vmatprep.mubr.bf16.mxu0 %v18622_v47  ;;  %v16192_v7 = vld [vmem:[%s21349_s10 + $0x3c8] ss:$16 sps:$4 sm:$0xff]  }
 0x824   : > { %5087 = vmatprep.subr.bf16.mxu1 %v16122_v44  ;;  %v16200_v44 = vld [vmem:[%s21349_s10 + $0x3ec] ss:$16 sps:$4 sm:$0xff]  }
 0x825   : > { %5959 = vmatpush1.bf16.msra.mxu0 %v16117_v24  ;;  %v16203_v24 = vld [vmem:[%s21349_s10 + $0x60c] ss:$16 sps:$4 sm:$0xff]  }
 0x826   : > { %5960 = vmatprep.subr.bf16.mxu0 %v16125_v49  ;;  %v16198_v49 = vld [vmem:[%s21349_s10 + $0x3e8] ss:$16 sps:$4 sm:$0xff]  }
 0x827   : > { %5088 = vmatpush1.bf16.msra.mxu1 %v16120_v36  ;;  %v18791_v36 = vpop.f32.mrb[152].mxu1 }
 0x828   : > { %5089 = vmatprep.subr.bf16.mxu1 %v16128_v38  ;;  %v18795_v38 = vpack.c.bf16 %v18614_v9, %v18614_v9  ;;  %v16209_v9 = vld [vmem:[%s21349_s10 + $0x62c] ss:$16 sps:$4 sm:$0xff]  }
 0x829   : > { %5961 = vmatpush1.bf16.msra.mxu0 %v16123_v51  ;;  %v16206_v51 = vld [vmem:[%s21349_s10 + $0x4] ss:$16 sps:$4 sm:$0xff]  }
 0x82a   : > { %5962 = vmatprep.subr.bf16.mxu0 %v16131_v52  ;;  %v18800_v52 = vpop.f32.mrb[153].mxu1 }
 0x82b   : > { %5090 = vmatpush1.bf16.msra.mxu1 %v16126_v54  ;;  %v16201_v54 = vld [vmem:[%s21349_s10 + $0x608] ss:$16 sps:$4 sm:$0xff]  }
 0x82c   : > { %5091 = vmatprep.subr.bf16.mxu1 %v16134_v56  ;;  %v18807_v56 = vpack.c.bf16 %v18629_v33, %v18629_v33  ;;  %v16212_v33 = vld [vmem:[%s21349_s10 + $0x24] ss:$16 sps:$4 sm:$0xff]  }
 0x82d   : > { %5963 = vmatpush1.bf16.msra.mxu0 %v16129_v13  ;;  %v18809_v13 = vpop.f32.mrb[154].mxu1 }
 0x82e   : > { %5964 = vmatprep.subr.bf16.mxu0 %v16137_v18  ;;  %v18814_v18 = vpop.f32.mrb[155].mxu1 }
 0x82f   : > { %5092 = vmatpush1.bf16.msra.mxu1 %v16132_v19  ;;  %v16204_v19 = vld [vmem:[%s21349_s10] ss:$16 sps:$4 sm:$0xff]  }
 0x830   : > { %5093 = vmatprep.subr.bf16.mxu1 %v16140_v57  ;;  %v16207_v57 = vld [vmem:[%s21349_s10 + $0x628] ss:$16 sps:$4 sm:$0xff]  }
 0x831   : > { %5965 = vmatpush1.bf16.msra.mxu0 %v16135_v58  ;;  %v16215_v58 = vld [vmem:[%s21349_s10 + $0x64c] ss:$16 sps:$4 sm:$0xff]  }
 0x832   : > { %5966 = vmatprep.subr.bf16.mxu0 %v16143_v59  ;;  %v16210_v59 = vld [vmem:[%s21349_s10 + $0x20] ss:$16 sps:$4 sm:$0xff]  }
 0x833   : > { %5094 = vmatpush1.bf16.msra.mxu1 %v16138_v60  ;;  %v18835_v60 = vpop.f32.mrb[156].mxu1 }
 0x834   : > { %5095 = vmatprep.subr.bf16.mxu1 %v16146_v61  ;;  %v16218_v61 = vld [vmem:[%s21349_s10 + $0x44] ss:$16 sps:$4 sm:$0xff]  }
 0x835   : > { %5967 = vmatpush1.bf16.msra.mxu0 %v16141_v62  ;;  %v16213_v62 = vld [vmem:[%s21349_s10 + $0x648] ss:$16 sps:$4 sm:$0xff]  }
 0x836   : > { %5968 = vmatprep.subr.bf16.mxu0 %v16149_v63 }
 0x837   : > { %5096 = vmatpush1.bf16.msra.mxu1 %v16144_v0 }
 0x838   : > { %5097 = vmatprep.subr.bf16.mxu1 %v16152_v1  ;;  %v16216_v1 = vld [vmem:[%s21349_s10 + $0x40] ss:$16 sps:$4 sm:$0xff]  }
 0x839   : > { %5969 = vmatpush1.bf16.msra.mxu0 %v16147_v43  ;;  %v16224_v43 = vld [vmem:[%s21349_s10 + $0x64] ss:$16 sps:$4 sm:$0xff]  }
 0x83a   : > { %5970 = vmatprep.subr.bf16.mxu0 %v16155_v42  ;;  %v16219_v42 = vld [vmem:[%s21349_s10 + $0x668] ss:$16 sps:$4 sm:$0xff]  }
 0x83b   : > { %5098 = vmatpush1.bf16.msra.mxu1 %v16150_v27  ;;  %v16227_v27 = vld [vmem:[%s21349_s10 + $0x68c] ss:$16 sps:$4 sm:$0xff]  }
 0x83c   : > { %5099 = vmatprep.subr.bf16.mxu1 %v16158_v20  ;;  %v16222_v20 = vld [vmem:[%s21349_s10 + $0x60] ss:$16 sps:$4 sm:$0xff]  }
 0x83d   : > { %5971 = vmatpush1.bf16.msra.mxu0 %v16153_v30 }
 0x83e   : > { %5972 = vmatprep.subr.bf16.mxu0 %v16161_v45  ;;  %v16230_v45 = vld [vmem:[%s21349_s10 + $0x84] ss:$16 sps:$4 sm:$0xff]  }
 0x83f   : > { %5100 = vmatpush1.bf16.msra.mxu1 %v16156_v2 }
 0x840   : > { %5101 = vmatprep.subr.bf16.mxu1 %v16164_v15  ;;  %v16225_v15 = vld [vmem:[%s21349_s10 + $0x688] ss:$16 sps:$4 sm:$0xff]  }
 0x841   : > { %5973 = vmatpush1.bf16.msra.mxu0 %v16159_v3 }
 0x842   : > { %5974 = vmatprep.subr.bf16.mxu0 %v16167_v5  ;;  %v16233_v5 = vld [vmem:[%s21349_s10 + $0x6ac] ss:$16 sps:$4 sm:$0xff]  }
 0x843   : > { %5102 = vmatpush1.bf16.msra.mxu1 %v16162_v6 }
 0x844   : > { %5103 = vmatprep.subr.bf16.mxu1 %v16170_v8  ;;  %v16228_v8 = vld [vmem:[%s21349_s10 + $0x80] ss:$16 sps:$4 sm:$0xff]  }
 0x845   : > { %5975 = vmatpush1.bf16.msra.mxu0 %v16165_v10  ;;  %v16236_v10 = vld [vmem:[%s21349_s10 + $0xa4] ss:$16 sps:$4 sm:$0xff]  }
 0x846   : > { %5976 = vmatprep.subr.bf16.mxu0 %v16173_v11  ;;  %v16231_v11 = vld [vmem:[%s21349_s10 + $0x6a8] ss:$16 sps:$4 sm:$0xff]  }
 0x847   : > { %5104 = vmatpush1.bf16.msra.mxu1 %v16168_v12  ;;  %v16239_v12 = vld [vmem:[%s21349_s10 + $0x6cc] ss:$16 sps:$4 sm:$0xff]  }
 0x848   : > { %5105 = vmatprep.subr.bf16.mxu1 %v16176_v14  ;;  %v16234_v14 = vld [vmem:[%s21349_s10 + $0xa0] ss:$16 sps:$4 sm:$0xff]  }
 0x849   : > { %5977 = vmatpush1.bf16.msra.mxu0 %v16171_v16  ;;  %v16242_v16 = vld [vmem:[%s21349_s10 + $0xc4] ss:$16 sps:$4 sm:$0xff]  }
 0x84a   : > { %5978 = vmatprep.subr.bf16.mxu0 %v16179_v17  ;;  %v16237_v17 = vld [vmem:[%s21349_s10 + $0x6c8] ss:$16 sps:$4 sm:$0xff]  }
 0x84b   : > { %5106 = vmatpush1.bf16.msra.mxu1 %v16174_v21  ;;  %v16245_v21 = vld [vmem:[%s21349_s10 + $0x6ec] ss:$16 sps:$4 sm:$0xff]  }
 0x84c   : > { %5107 = vmatprep.subr.bf16.mxu1 %v16182_v50  ;;  %v16240_v50 = vld [vmem:[%s21349_s10 + $0xc0] ss:$16 sps:$4 sm:$0xff]  }
 0x84d   : > { %5979 = vmatpush1.bf16.msra.mxu0 %v16177_v53  ;;  %v16248_v53 = vld [vmem:[%s21349_s10 + $0xe4] ss:$16 sps:$4 sm:$0xff]  }
 0x84e   : > { %5980 = vmatprep.subr.bf16.mxu0 %v16185_v25  ;;  %v16243_v25 = vld [vmem:[%s21349_s10 + $0x6e8] ss:$16 sps:$4 sm:$0xff]  }
 0x84f   : > { %5108 = vmatpush1.bf16.msra.mxu1 %v16180_v26  ;;  %v16251_v26 = vld [vmem:[%s21349_s10 + $0x70c] ss:$16 sps:$4 sm:$0xff]  }
 0x850   : > { %5109 = vmatprep.subr.bf16.mxu1 %v16188_v31  ;;  %v16246_v31 = vld [vmem:[%s21349_s10 + $0xe0] ss:$16 sps:$4 sm:$0xff]  }
 0x851   : > { %5981 = vmatpush1.bf16.msra.mxu0 %v16183_v34  ;;  %v16254_v34 = vld [vmem:[%s21349_s10 + $0x104] ss:$16 sps:$4 sm:$0xff]  }
 0x852   : > { %5982 = vmatprep.subr.bf16.mxu0 %v16191_v35  ;;  %v16249_v35 = vld [vmem:[%s21349_s10 + $0x708] ss:$16 sps:$4 sm:$0xff]  }
 0x853   : > { %5110 = vmatpush1.bf16.msra.mxu1 %v16186_v37  ;;  %v16257_v37 = vld [vmem:[%s21349_s10 + $0x72c] ss:$16 sps:$4 sm:$0xff]  }
 0x854   : > { %5111 = vmatprep.subr.bf16.mxu1 %v16194_v40  ;;  %v16252_v40 = vld [vmem:[%s21349_s10 + $0x100] ss:$16 sps:$4 sm:$0xff]  }
 0x855   : > { %5983 = vmatpush1.bf16.msra.mxu0 %v16189_v41  ;;  %v16260_v41 = vld [vmem:[%s21349_s10 + $0x124] ss:$16 sps:$4 sm:$0xff]  }
 0x856   : > { %5984 = vmatprep.subr.bf16.mxu0 %v16197_v4  ;;  %v16255_v4 = vld [vmem:[%s21349_s10 + $0x728] ss:$16 sps:$4 sm:$0xff]  }
 0x857   : > { %5112 = vmatpush1.bf16.msra.mxu1 %v16192_v7  ;;  %v16263_v7 = vld [vmem:[%s21349_s10 + $0x74c] ss:$16 sps:$4 sm:$0xff]  }
 0x858   : > { %5113 = vmatprep.subr.bf16.mxu1 %v16200_v44  ;;  %v16258_v44 = vld [vmem:[%s21349_s10 + $0x120] ss:$16 sps:$4 sm:$0xff]  }
 0x859   : > { %5985 = vmatpush1.bf16.msra.mxu0 %v16195_v46  ;;  %v16266_v46 = vld [vmem:[%s21349_s10 + $0x144] ss:$16 sps:$4 sm:$0xff]  }
 0x85a   : > { %6427 = vmatprep.subr.bf16.mxu0 %v16203_v24  ;;  %v16261_v24 = vld [vmem:[%s21349_s10 + $0x748] ss:$16 sps:$4 sm:$0xff]  }
 0x85b   : > { %5114 = vmatpush1.bf16.msra.mxu1 %v16198_v49  ;;  %v16269_v49 = vld [vmem:[%s21349_s10 + $0x76c] ss:$16 sps:$4 sm:$0xff]  }
 0x85c   : > { %5987 = vmatmul.mubr.bf16.vlgmr.msra.gmra.mrb[84].mxu0 %v18795_v38  ;;  %5444 = vmatprep.subr.bf16.mxu1 %v16206_v51  ;;  %v16264_v51 = vld [vmem:[%s21349_s10 + $0x140] ss:$16 sps:$4 sm:$0xff]  }
 0x85d   : > { %6428 = vmatpush1.bf16.msra.mxu0 %v16201_v54  ;;  %6459 = vmatprep.mubr.bf16.mxu0 %v18807_v56  ;;  %v16272_v54 = vld [vmem:[%s21349_s10 + $0x164] ss:$16 sps:$4 sm:$0xff]  }
 0x85e   : > { %5116 = vmatmul.mubr.bf16.vlgmr.msra.gmra.mrb[168].mxu1 %v18598_v39  ;;  %6429 = vmatprep.subr.bf16.mxu0 %v16209_v9  ;;  %v18840_v39 = vpop.f32.mrb[157].mxu1  ;;  %v16267_v9 = vld [vmem:[%s21349_s10 + $0x768] ss:$16 sps:$4 sm:$0xff]  }
 0x85f   : > { %5445 = vmatpush1.bf16.msra.mxu1 %v16204_v19  ;;  %5476 = vmatprep.mubr.bf16.mxu1 %v18584_v55  ;;  %v18845_v63 = vpop.f32.mrb[158].mxu1  ;;  %v16221_v55 = vld [vmem:[%s21349_s10 + $0x66c] ss:$16 sps:$4 sm:$0xff]  }
 0x860   : > { %5446 = vmatprep.subr.bf16.mxu1 %v16212_v33  ;;  %v18850_v0 = vpop.f32.mrb[159].mxu1  ;;  %v16275_v19 = vld [vmem:[%s21349_s10 + $0x78c] ss:$16 sps:$4 sm:$0xff]   ;;  %v16270_v33 = vld [vmem:[%s21349_s10 + $0x160] ss:$16 sps:$4 sm:$0xff]  }
 0x861   : > { %6430 = vmatpush1.bf16.msra.mxu0 %v16207_v57  ;;  %v18867_v30 = vpop.f32.mrb[160].mxu1  ;;  %v16278_v57 = vld [vmem:[%s21349_s10 + $0x184] ss:$16 sps:$4 sm:$0xff]  }
 0x862   : > { %6431 = vmatprep.subr.bf16.mxu0 %v16215_v58  ;;  %v18872_v2 = vpop.f32.mrb[161].mxu1  ;;  %v16273_v58 = vld [vmem:[%s21349_s10 + $0x788] ss:$16 sps:$4 sm:$0xff]  }
 0x863   : > { %5447 = vmatpush1.bf16.msra.mxu1 %v16210_v59  ;;  %v4586_v3 = vpop.f32.mrb[162].mxu1  ;;  %v16281_v59 = vld [vmem:[%s21349_s10 + $0x7ac] ss:$16 sps:$4 sm:$0xff]  }
 0x864   : > { %5448 = vmatprep.subr.bf16.mxu1 %v16218_v61  ;;  %v4587_v6 = vpop.f32.mrb[163].mxu1  ;;  %v16276_v61 = vld [vmem:[%s21349_s10 + $0x180] ss:$16 sps:$4 sm:$0xff]   ;;  %v16291_v3 = vld [vmem:[%s21349_s10 + $0x7e8] ss:$16 sps:$4 sm:$0xff]  }
 0x865   : > { %6432 = vmatpush1.bf16.msra.mxu0 %v16213_v62  ;;  %v16284_v62 = vld [vmem:[%s21349_s10 + $0x1a4] ss:$16 sps:$4 sm:$0xff]   ;;  %v16294_v6 = vld [vmem:[%s21349_s10 + $0x1e0] ss:$16 sps:$4 sm:$0xff]  }
 0x866   : > { %6433 = vmatprep.subr.bf16.mxu0 %v16221_v55  ;;  %v16279_v55 = vld [vmem:[%s21349_s10 + $0x7a8] ss:$16 sps:$4 sm:$0xff]  }
 0x867   : > { %5449 = vmatpush1.bf16.msra.mxu1 %v16216_v1  ;;  %v16287_v1 = vld [vmem:[%s21349_s10 + $0x7cc] ss:$16 sps:$4 sm:$0xff]  }
 0x868   : > { %5450 = vmatprep.subr.bf16.mxu1 %v16224_v43  ;;  %v16282_v43 = vld [vmem:[%s21349_s10 + $0x1a0] ss:$16 sps:$4 sm:$0xff]  }
 0x869   : > { %6434 = vmatpush1.bf16.msra.mxu0 %v16219_v42  ;;  %v16290_v42 = vld [vmem:[%s21349_s10 + $0x1c4] ss:$16 sps:$4 sm:$0xff]  }
 0x86a   : > { %6435 = vmatprep.subr.bf16.mxu0 %v16227_v27  ;;  %v16285_v27 = vld [vmem:[%s21349_s10 + $0x7c8] ss:$16 sps:$4 sm:$0xff]  }
 0x86b   : > { %5451 = vmatpush1.bf16.msra.mxu1 %v16222_v20  ;;  %v16293_v20 = vld [vmem:[%s21349_s10 + $0x7ec] ss:$16 sps:$4 sm:$0xff]  }
 0x86c   : > { %5452 = vmatprep.subr.bf16.mxu1 %v16230_v45  ;;  %v16288_v45 = vld [vmem:[%s21349_s10 + $0x1c0] ss:$16 sps:$4 sm:$0xff]  }
 0x86d   : > { %6436 = vmatpush1.bf16.msra.mxu0 %v16225_v15  ;;  %v16296_v15 = vld [vmem:[%s21349_s10 + $0x1e4] ss:$16 sps:$4 sm:$0xff]  }
 0x86e   : > { %6437 = vmatprep.subr.bf16.mxu0 %v16233_v5  ;;  %v16299_v5 = vld [vmem:[%s21349_s10 + $0x80c] ss:$16 sps:$4 sm:$0xff]  }
 0x86f   : > { %5453 = vmatpush1.bf16.msra.mxu1 %v16228_v8  ;;  %v19017_v8 = vpack.c.bf16 %v18624_v48, %v18624_v48  ;;  %v16305_v48 = vld [vmem:[%s21349_s10 + $0x82c] ss:$16 sps:$4 sm:$0xff]  }
 0x870   : > { %5454 = vmatprep.subr.bf16.mxu1 %v16236_v10  ;;  %v16302_v10 = vld [vmem:[%s21349_s10 + $0x404] ss:$16 sps:$4 sm:$0xff]  }
 0x871   : > { %6438 = vmatpush1.bf16.msra.mxu0 %v16231_v11  ;;  %v16297_v11 = vld [vmem:[%s21349_s10 + $0x808] ss:$16 sps:$4 sm:$0xff]  }
 0x872   : > { %6439 = vmatprep.subr.bf16.mxu0 %v16239_v12  ;;  %v19027_v12 = vpack.c.bf16 %v18800_v52, %v18800_v52  ;;  %v16303_v52 = vld [vmem:[%s21349_s10 + $0x828] ss:$16 sps:$4 sm:$0xff]  }
 0x873   : > { %5455 = vmatpush1.bf16.msra.mxu1 %v16234_v14  ;;  %v16300_v14 = vld [vmem:[%s21349_s10 + $0x400] ss:$16 sps:$4 sm:$0xff]  }
 0x874   : > { %5456 = vmatprep.subr.bf16.mxu1 %v16242_v16  ;;  %v16308_v16 = vld [vmem:[%s21349_s10 + $0x424] ss:$16 sps:$4 sm:$0xff]  }
 0x875   : > { %6440 = vmatpush1.bf16.msra.mxu0 %v16237_v17  ;;  %v16311_v17 = vld [vmem:[%s21349_s10 + $0x84c] ss:$16 sps:$4 sm:$0xff]  }
 0x876   : > { %6441 = vmatprep.subr.bf16.mxu0 %v16245_v21  ;;  %v16306_v21 = vld [vmem:[%s21349_s10 + $0x420] ss:$16 sps:$4 sm:$0xff]  }
 0x877   : > { %5457 = vmatpush1.bf16.msra.mxu1 %v16240_v50  ;;  %v16314_v50 = vld [vmem:[%s21349_s10 + $0x444] ss:$16 sps:$4 sm:$0xff]  }
 0x878   : > { %5458 = vmatprep.subr.bf16.mxu1 %v16248_v53  ;;  %v16317_v53 = vld [vmem:[%s21349_s10 + $0x86c] ss:$16 sps:$4 sm:$0xff]  }
 0x879   : > { %6442 = vmatpush1.bf16.msra.mxu0 %v16243_v25  ;;  %v16320_v25 = vld [vmem:[%s21349_s10 + $0x464] ss:$16 sps:$4 sm:$0xff]  }
 0x87a   : > { %6443 = vmatprep.subr.bf16.mxu0 %v16251_v26  ;;  %v16315_v26 = vld [vmem:[%s21349_s10 + $0x868] ss:$16 sps:$4 sm:$0xff]  }
 0x87b   : > { %5459 = vmatpush1.bf16.msra.mxu1 %v16246_v31  ;;  %v16323_v31 = vld [vmem:[%s21349_s10 + $0x88c] ss:$16 sps:$4 sm:$0xff]  }
 0x87c   : > { %5460 = vmatprep.subr.bf16.mxu1 %v16254_v34  ;;  %v16318_v34 = vld [vmem:[%s21349_s10 + $0x460] ss:$16 sps:$4 sm:$0xff]  }
 0x87d   : > { %6444 = vmatpush1.bf16.msra.mxu0 %v16249_v35  ;;  %v16326_v35 = vld [vmem:[%s21349_s10 + $0x484] ss:$16 sps:$4 sm:$0xff]  }
 0x87e   : > { %6445 = vmatprep.subr.bf16.mxu0 %v16257_v37  ;;  %v16321_v37 = vld [vmem:[%s21349_s10 + $0x888] ss:$16 sps:$4 sm:$0xff]  }
 0x87f   : > { %5461 = vmatpush1.bf16.msra.mxu1 %v16252_v40  ;;  %v16329_v40 = vld [vmem:[%s21349_s10 + $0x8ac] ss:$16 sps:$4 sm:$0xff]  }
 0x880   : > { %5462 = vmatprep.subr.bf16.mxu1 %v16260_v41  ;;  %v16324_v41 = vld [vmem:[%s21349_s10 + $0x480] ss:$16 sps:$4 sm:$0xff]  }
 0x881   : > { %6446 = vmatpush1.bf16.msra.mxu0 %v16255_v4  ;;  %v16332_v4 = vld [vmem:[%s21349_s10 + $0x4a4] ss:$16 sps:$4 sm:$0xff]  }
 0x882   : > { %6447 = vmatprep.subr.bf16.mxu0 %v16263_v7  ;;  %v16327_v7 = vld [vmem:[%s21349_s10 + $0x8a8] ss:$16 sps:$4 sm:$0xff]  }
 0x883   : > { %5463 = vmatpush1.bf16.msra.mxu1 %v16258_v44  ;;  %v16335_v44 = vld [vmem:[%s21349_s10 + $0x8cc] ss:$16 sps:$4 sm:$0xff]  }
 0x884   : > { %5464 = vmatprep.subr.bf16.mxu1 %v16266_v46  ;;  %v16330_v46 = vld [vmem:[%s21349_s10 + $0x4a0] ss:$16 sps:$4 sm:$0xff]  }
 0x885   : > { %6448 = vmatpush1.bf16.msra.mxu0 %v16261_v24  ;;  %v16338_v24 = vld [vmem:[%s21349_s10 + $0x4c4] ss:$16 sps:$4 sm:$0xff]  }
 0x886   : > { %6449 = vmatprep.subr.bf16.mxu0 %v16269_v49  ;;  %v16333_v49 = vld [vmem:[%s21349_s10 + $0x8c8] ss:$16 sps:$4 sm:$0xff]  }
 0x887   : > { %5465 = vmatpush1.bf16.msra.mxu1 %v16264_v51  ;;  %v16341_v51 = vld [vmem:[%s21349_s10 + $0x8ec] ss:$16 sps:$4 sm:$0xff]  }
 0x888   : > { %5466 = vmatprep.subr.bf16.mxu1 %v16272_v54  ;;  %v16336_v54 = vld [vmem:[%s21349_s10 + $0x4c0] ss:$16 sps:$4 sm:$0xff]  }
 0x889   : > { %6450 = vmatpush1.bf16.msra.mxu0 %v16267_v9  ;;  %v16344_v9 = vld [vmem:[%s21349_s10 + $0x4e4] ss:$16 sps:$4 sm:$0xff]  }
 0x88a   : > { %6451 = vmatprep.subr.bf16.mxu0 %v16275_v19  ;;  %v16339_v19 = vld [vmem:[%s21349_s10 + $0x8e8] ss:$16 sps:$4 sm:$0xff]  }
 0x88b   : > { %5467 = vmatpush1.bf16.msra.mxu1 %v16270_v33  ;;  %v16347_v33 = vld [vmem:[%s21349_s10 + $0x90c] ss:$16 sps:$4 sm:$0xff]  }
 0x88c   : > { %5468 = vmatprep.subr.bf16.mxu1 %v16278_v57  ;;  %v16342_v57 = vld [vmem:[%s21349_s10 + $0x4e0] ss:$16 sps:$4 sm:$0xff]  }
 0x88d   : > { %6452 = vmatpush1.bf16.msra.mxu0 %v16273_v58  ;;  %v16350_v58 = vld [vmem:[%s21349_s10 + $0x504] ss:$16 sps:$4 sm:$0xff]  }
 0x88e   : > { %6453 = vmatprep.subr.bf16.mxu0 %v16281_v59  ;;  %v16345_v59 = vld [vmem:[%s21349_s10 + $0x908] ss:$16 sps:$4 sm:$0xff]  }
 0x88f   : > { %5469 = vmatpush1.bf16.msra.mxu1 %v16276_v61  ;;  %v16353_v61 = vld [vmem:[%s21349_s10 + $0x92c] ss:$16 sps:$4 sm:$0xff]  }
 0x890   : > { %5470 = vmatprep.subr.bf16.mxu1 %v16284_v62  ;;  %v16348_v62 = vld [vmem:[%s21349_s10 + $0x500] ss:$16 sps:$4 sm:$0xff]  }
 0x891   : > { %6454 = vmatpush1.bf16.msra.mxu0 %v16279_v55  ;;  %v16356_v55 = vld [vmem:[%s21349_s10 + $0x524] ss:$16 sps:$4 sm:$0xff]  }
 0x892   : > { %6455 = vmatprep.subr.bf16.mxu0 %v16287_v1  ;;  %v16351_v1 = vld [vmem:[%s21349_s10 + $0x928] ss:$16 sps:$4 sm:$0xff]  }
 0x893   : > { %5471 = vmatpush1.bf16.msra.mxu1 %v16282_v43  ;;  %v16359_v43 = vld [vmem:[%s21349_s10 + $0x94c] ss:$16 sps:$4 sm:$0xff]  }
 0x894   : > { %5472 = vmatprep.subr.bf16.mxu1 %v16290_v42  ;;  %v16354_v42 = vld [vmem:[%s21349_s10 + $0x520] ss:$16 sps:$4 sm:$0xff]  }
 0x895   : > { %6456 = vmatpush1.bf16.msra.mxu0 %v16285_v27  ;;  %v16362_v27 = vld [vmem:[%s21349_s10 + $0x544] ss:$16 sps:$4 sm:$0xff]  }
 0x896   : > { %6457 = vmatprep.subr.bf16.mxu0 %v16293_v20  ;;  %v16357_v20 = vld [vmem:[%s21349_s10 + $0x948] ss:$16 sps:$4 sm:$0xff]  }
 0x897   : > { %5473 = vmatpush1.bf16.msra.mxu1 %v16288_v45  ;;  %v16365_v45 = vld [vmem:[%s21349_s10 + $0x96c] ss:$16 sps:$4 sm:$0xff]  }
 0x898   : > { %5474 = vmatprep.subr.bf16.mxu1 %v16296_v15  ;;  %v16360_v15 = vld [vmem:[%s21349_s10 + $0x540] ss:$16 sps:$4 sm:$0xff]  }
 0x899   : > { %6458 = vmatpush1.bf16.msra.mxu0 %v16291_v3  ;;  %v16368_v3 = vld [vmem:[%s21349_s10 + $0x564] ss:$16 sps:$4 sm:$0xff]  }
 0x89a   : > { %6900 = vmatprep.subr.bf16.mxu0 %v16299_v5  ;;  %v16363_v5 = vld [vmem:[%s21349_s10 + $0x968] ss:$16 sps:$4 sm:$0xff]  }
 0x89b   : > { %5475 = vmatpush1.bf16.msra.mxu1 %v16294_v6  ;;  %v16371_v6 = vld [vmem:[%s21349_s10 + $0x98c] ss:$16 sps:$4 sm:$0xff]  }
 0x89c   : > { %6460 = vmatmul.mubr.bf16.vlgmr.msra.gmra.mrb[88].mxu0 %v19017_v8  ;;  %5913 = vmatprep.subr.bf16.mxu1 %v16302_v10  ;;  %v16366_v10 = vld [vmem:[%s21349_s10 + $0x560] ss:$16 sps:$4 sm:$0xff]  }
 0x89d   : > { %6901 = vmatpush1.bf16.msra.mxu0 %v16297_v11  ;;  %6932 = vmatprep.mubr.bf16.mxu0 %v19027_v12  ;;  %v16374_v11 = vld [vmem:[%s21349_s10 + $0x584] ss:$16 sps:$4 sm:$0xff]  }
 0x89e   : > { %5477 = vmatmul.mubr.bf16.vlgmr.msra.gmra.mrb[172].mxu1 %v18589_v29  ;;  %6902 = vmatprep.subr.bf16.mxu0 %v16305_v48  ;;  %v16309_v29 = vld [vmem:[%s21349_s10 + $0x848] ss:$16 sps:$4 sm:$0xff]  }
 0x89f   : > { %5914 = vmatpush1.bf16.msra.mxu1 %v16300_v14  ;;  %5945 = vmatprep.mubr.bf16.mxu1 %v18622_v47  ;;  %v16312_v47 = vld [vmem:[%s21349_s10 + $0x440] ss:$16 sps:$4 sm:$0xff]   ;;  %v16369_v48 = vld [vmem:[%s21349_s10 + $0x988] ss:$16 sps:$4 sm:$0xff]   ;;  %v16377_v14 = vld [vmem:[%s21349_s10 + $0x9ac] ss:$16 sps:$4 sm:$0xff]  }
 0x8a0   : > { %5915 = vmatprep.subr.bf16.mxu1 %v16308_v16  ;;  %v16372_v16 = vld [vmem:[%s21349_s10 + $0x580] ss:$16 sps:$4 sm:$0xff]  }
 0x8a1   : > { %6903 = vmatpush1.bf16.msra.mxu0 %v16303_v52  ;;  %v16380_v52 = vld [vmem:[%s21349_s10 + $0x5a4] ss:$16 sps:$4 sm:$0xff]  }
 0x8a2   : > { %6904 = vmatprep.subr.bf16.mxu0 %v16311_v17  ;;  %v16375_v17 = vld [vmem:[%s21349_s10 + $0x9a8] ss:$16 sps:$4 sm:$0xff]  }
 0x8a3   : > { %5916 = vmatpush1.bf16.msra.mxu1 %v16306_v21  ;;  %v16383_v21 = vld [vmem:[%s21349_s10 + $0x9cc] ss:$16 sps:$4 sm:$0xff]  }
 0x8a4   : > { %5917 = vmatprep.subr.bf16.mxu1 %v16314_v50  ;;  %v16378_v50 = vld [vmem:[%s21349_s10 + $0x5a0] ss:$16 sps:$4 sm:$0xff]  }
 0x8a5   : > { %6905 = vmatpush1.bf16.msra.mxu0 %v16309_v29  ;;  %v16386_v29 = vld [vmem:[%s21349_s10 + $0x5c4] ss:$16 sps:$4 sm:$0xff]  }
 0x8a6   : > { %6906 = vmatprep.subr.bf16.mxu0 %v16317_v53  ;;  %v16381_v53 = vld [vmem:[%s21349_s10 + $0x9c8] ss:$16 sps:$4 sm:$0xff]  }
 0x8a7   : > { %5918 = vmatpush1.bf16.msra.mxu1 %v16312_v47  ;;  %v16389_v47 = vld [vmem:[%s21349_s10 + $0x9ec] ss:$16 sps:$4 sm:$0xff]  }
 0x8a8   : > { %5919 = vmatprep.subr.bf16.mxu1 %v16320_v25  ;;  %v16384_v25 = vld [vmem:[%s21349_s10 + $0x5c0] ss:$16 sps:$4 sm:$0xff]  }
 0x8a9   : > { %6907 = vmatpush1.bf16.msra.mxu0 %v16315_v26  ;;  %v16392_v26 = vld [vmem:[%s21349_s10 + $0x5e4] ss:$16 sps:$4 sm:$0xff]  }
 0x8aa   : > { %6908 = vmatprep.subr.bf16.mxu0 %v16323_v31  ;;  %v16387_v31 = vld [vmem:[%s21349_s10 + $0x9e8] ss:$16 sps:$4 sm:$0xff]  }
 0x8ab   : > { %5920 = vmatpush1.bf16.msra.mxu1 %v16318_v34  ;;  %v16395_v34 = vld [vmem:[%s21349_s10 + $0xa0c] ss:$16 sps:$4 sm:$0xff]  }
 0x8ac   : > { %5921 = vmatprep.subr.bf16.mxu1 %v16326_v35  ;;  %v16390_v35 = vld [vmem:[%s21349_s10 + $0x5e0] ss:$16 sps:$4 sm:$0xff]  }
 0x8ad   : > { %6909 = vmatpush1.bf16.msra.mxu0 %v16321_v37  ;;  %v19221_v37 = vpack.c.bf16 %v18791_v36, %v18791_v36  ;;  %v16401_v36 = vld [vmem:[%s21349_s10 + $0xa2c] ss:$16 sps:$4 sm:$0xff]  }
 0x8ae   : > { %6910 = vmatprep.subr.bf16.mxu0 %v16329_v40  ;;  %v16398_v40 = vld [vmem:[%s21349_s10 + $0x604] ss:$16 sps:$4 sm:$0xff]  }
 0x8af   : > { %5922 = vmatpush1.bf16.msra.mxu1 %v16324_v41  ;;  %v16393_v41 = vld [vmem:[%s21349_s10 + $0xa08] ss:$16 sps:$4 sm:$0xff]  }
 0x8b0   : > { %5923 = vmatprep.subr.bf16.mxu1 %v16332_v4  ;;  %v19231_v4 = vpack.c.bf16 %v18814_v18, %v18814_v18  ;;  %v16399_v18 = vld [vmem:[%s21349_s10 + $0xa28] ss:$16 sps:$4 sm:$0xff]  }
 0x8b1   : > { %6911 = vmatpush1.bf16.msra.mxu0 %v16327_v7  ;;  %v16396_v7 = vld [vmem:[%s21349_s10 + $0x600] ss:$16 sps:$4 sm:$0xff]  }
 0x8b2   : > { %6912 = vmatprep.subr.bf16.mxu0 %v16335_v44  ;;  %v16404_v44 = vld [vmem:[%s21349_s10 + $0x624] ss:$16 sps:$4 sm:$0xff]  }
 0x8b3   : > { %5924 = vmatpush1.bf16.msra.mxu1 %v16330_v46  ;;  %v16407_v46 = vld [vmem:[%s21349_s10 + $0xa4c] ss:$16 sps:$4 sm:$0xff]  }
 0x8b4   : > { %5925 = vmatprep.subr.bf16.mxu1 %v16338_v24  ;;  %v16402_v24 = vld [vmem:[%s21349_s10 + $0x620] ss:$16 sps:$4 sm:$0xff]  }
 0x8b5   : > { %6913 = vmatpush1.bf16.msra.mxu0 %v16333_v49  ;;  %v16410_v49 = vld [vmem:[%s21349_s10 + $0x644] ss:$16 sps:$4 sm:$0xff]  }
 0x8b6   : > { %6914 = vmatprep.subr.bf16.mxu0 %v16341_v51  ;;  %v16413_v51 = vld [vmem:[%s21349_s10 + $0xa6c] ss:$16 sps:$4 sm:$0xff]  }
 0x8b7   : > { %5926 = vmatpush1.bf16.msra.mxu1 %v16336_v54  ;;  %v16416_v54 = vld [vmem:[%s21349_s10 + $0x664] ss:$16 sps:$4 sm:$0xff]  }
 0x8b8   : > { %5927 = vmatprep.subr.bf16.mxu1 %v16344_v9  ;;  %v16411_v9 = vld [vmem:[%s21349_s10 + $0xa68] ss:$16 sps:$4 sm:$0xff]  }
 0x8b9   : > { %6915 = vmatpush1.bf16.msra.mxu0 %v16339_v19  ;;  %v16419_v19 = vld [vmem:[%s21349_s10 + $0xa8c] ss:$16 sps:$4 sm:$0xff]  }
 0x8ba   : > { %6916 = vmatprep.subr.bf16.mxu0 %v16347_v33  ;;  %v16414_v33 = vld [vmem:[%s21349_s10 + $0x660] ss:$16 sps:$4 sm:$0xff]  }
 0x8bb   : > { %5928 = vmatpush1.bf16.msra.mxu1 %v16342_v57  ;;  %v16422_v57 = vld [vmem:[%s21349_s10 + $0x684] ss:$16 sps:$4 sm:$0xff]  }
 0x8bc   : > { %5929 = vmatprep.subr.bf16.mxu1 %v16350_v58  ;;  %v16417_v58 = vld [vmem:[%s21349_s10 + $0xa88] ss:$16 sps:$4 sm:$0xff]  }
 0x8bd   : > { %6917 = vmatpush1.bf16.msra.mxu0 %v16345_v59  ;;  %v16425_v59 = vld [vmem:[%s21349_s10 + $0xaac] ss:$16 sps:$4 sm:$0xff]  }
 0x8be   : > { %6918 = vmatprep.subr.bf16.mxu0 %v16353_v61  ;;  %v16420_v61 = vld [vmem:[%s21349_s10 + $0x680] ss:$16 sps:$4 sm:$0xff]  }
 0x8bf   : > { %5930 = vmatpush1.bf16.msra.mxu1 %v16348_v62  ;;  %v16428_v62 = vld [vmem:[%s21349_s10 + $0x6a4] ss:$16 sps:$4 sm:$0xff]  }
 0x8c0   : > { %5931 = vmatprep.subr.bf16.mxu1 %v16356_v55  ;;  %v16423_v55 = vld [vmem:[%s21349_s10 + $0xaa8] ss:$16 sps:$4 sm:$0xff]  }
 0x8c1   : > { %6919 = vmatpush1.bf16.msra.mxu0 %v16351_v1  ;;  %v16431_v1 = vld [vmem:[%s21349_s10 + $0xacc] ss:$16 sps:$4 sm:$0xff]  }
 0x8c2   : > { %6920 = vmatprep.subr.bf16.mxu0 %v16359_v43  ;;  %v16426_v43 = vld [vmem:[%s21349_s10 + $0x6a0] ss:$16 sps:$4 sm:$0xff]  }
 0x8c3   : > { %5932 = vmatpush1.bf16.msra.mxu1 %v16354_v42 }
 0x8c4   : > { %5933 = vmatprep.subr.bf16.mxu1 %v16362_v27  ;;  %v16434_v27 = vld [vmem:[%s21349_s10 + $0x6c4] ss:$16 sps:$4 sm:$0xff]  }
 0x8c5   : > { %6921 = vmatpush1.bf16.msra.mxu0 %v16357_v20 }
 0x8c6   : > { %6922 = vmatprep.subr.bf16.mxu0 %v16365_v45  ;;  %v16429_v45 = vld [vmem:[%s21349_s10 + $0xac8] ss:$16 sps:$4 sm:$0xff]  }
 0x8c7   : > { %5934 = vmatpush1.bf16.msra.mxu1 %v16360_v15 }
 0x8c8   : > { %5935 = vmatprep.subr.bf16.mxu1 %v16368_v3 }
 0x8c9   : > { %6923 = vmatpush1.bf16.msra.mxu0 %v16363_v5  ;;  %v16437_v5 = vld [vmem:[%s21349_s10 + $0xaec] ss:$16 sps:$4 sm:$0xff]  }
 0x8ca   : > { %6924 = vmatprep.subr.bf16.mxu0 %v16371_v6 }
 0x8cb   : > { %5936 = vmatpush1.bf16.msra.mxu1 %v16366_v10 }
 0x8cc   : > { %5937 = vmatprep.subr.bf16.mxu1 %v16374_v11  ;;  %v16432_v11 = vld [vmem:[%s21349_s10 + $0x6c0] ss:$16 sps:$4 sm:$0xff]  }
 0x8cd   : > { %6925 = vmatpush1.bf16.msra.mxu0 %v16369_v48 }
 0x8ce   : > { %6926 = vmatprep.subr.bf16.mxu0 %v16377_v14  ;;  %v16440_v14 = vld [vmem:[%s21349_s10 + $0x6e4] ss:$16 sps:$4 sm:$0xff]  }
 0x8cf   : > { %5938 = vmatpush1.bf16.msra.mxu1 %v16372_v16 }
 0x8d0   : > { %5939 = vmatprep.subr.bf16.mxu1 %v16380_v52  ;;  %v16435_v52 = vld [vmem:[%s21349_s10 + $0xae8] ss:$16 sps:$4 sm:$0xff]  }
 0x8d1   : > { %6927 = vmatpush1.bf16.msra.mxu0 %v16375_v17  ;;  %v16443_v17 = vld [vmem:[%s21349_s10 + $0xb0c] ss:$16 sps:$4 sm:$0xff]  }
 0x8d2   : > { %6928 = vmatprep.subr.bf16.mxu0 %v16383_v21  ;;  %v16438_v21 = vld [vmem:[%s21349_s10 + $0x6e0] ss:$16 sps:$4 sm:$0xff]  }
 0x8d3   : > { %5940 = vmatpush1.bf16.msra.mxu1 %v16378_v50  ;;  %v16446_v50 = vld [vmem:[%s21349_s10 + $0x704] ss:$16 sps:$4 sm:$0xff]  }
 0x8d4   : > { %5941 = vmatprep.subr.bf16.mxu1 %v16386_v29  ;;  %v16441_v29 = vld [vmem:[%s21349_s10 + $0xb08] ss:$16 sps:$4 sm:$0xff]  }
 0x8d5   : > { %6929 = vmatpush1.bf16.msra.mxu0 %v16381_v53  ;;  %v16449_v53 = vld [vmem:[%s21349_s10 + $0xb2c] ss:$16 sps:$4 sm:$0xff]  }
 0x8d6   : > { %6930 = vmatprep.subr.bf16.mxu0 %v16389_v47  ;;  %v16444_v47 = vld [vmem:[%s21349_s10 + $0x700] ss:$16 sps:$4 sm:$0xff]  }
 0x8d7   : > { %5942 = vmatpush1.bf16.msra.mxu1 %v16384_v25  ;;  %v16452_v25 = vld [vmem:[%s21349_s10 + $0x724] ss:$16 sps:$4 sm:$0xff]  }
 0x8d8   : > { %5943 = vmatprep.subr.bf16.mxu1 %v16392_v26  ;;  %v16447_v26 = vld [vmem:[%s21349_s10 + $0xb28] ss:$16 sps:$4 sm:$0xff]  }
 0x8d9   : > { %6931 = vmatpush1.bf16.msra.mxu0 %v16387_v31  ;;  %v16455_v31 = vld [vmem:[%s21349_s10 + $0xb4c] ss:$16 sps:$4 sm:$0xff]  }
 0x8da   : > { %7373 = vmatprep.subr.bf16.mxu0 %v16395_v34  ;;  %v16450_v34 = vld [vmem:[%s21349_s10 + $0x720] ss:$16 sps:$4 sm:$0xff]  }
 0x8db   : > { %5944 = vmatpush1.bf16.msra.mxu1 %v16390_v35  ;;  %v16458_v35 = vld [vmem:[%s21349_s10 + $0x744] ss:$16 sps:$4 sm:$0xff]  }
 0x8dc   : > { %6933 = vmatmul.mubr.bf16.vlgmr.msra.gmra.mrb[92].mxu0 %v19221_v37  ;;  %6386 = vmatprep.subr.bf16.mxu1 %v16398_v40  ;;  %v16453_v40 = vld [vmem:[%s21349_s10 + $0xb48] ss:$16 sps:$4 sm:$0xff]  }
 0x8dd   : > { %7374 = vmatpush1.bf16.msra.mxu0 %v16393_v41  ;;  %7405 = vmatprep.mubr.bf16.mxu0 %v19231_v4  ;;  %v16461_v41 = vld [vmem:[%s21349_s10 + $0xb6c] ss:$16 sps:$4 sm:$0xff]  }
 0x8de   : > { %5946 = vmatmul.mubr.bf16.vlgmr.msra.gmra.mrb[176].mxu1 %v18795_v38  ;;  %7375 = vmatprep.subr.bf16.mxu0 %v16401_v36  ;;  %v16405_v38 = vld [vmem:[%s21349_s10 + $0xa48] ss:$16 sps:$4 sm:$0xff]   ;;  %v16456_v36 = vld [vmem:[%s21349_s10 + $0x740] ss:$16 sps:$4 sm:$0xff]  }
 0x8df   : > { %6387 = vmatpush1.bf16.msra.mxu1 %v16396_v7  ;;  %6418 = vmatprep.mubr.bf16.mxu1 %v18807_v56  ;;  %v16408_v56 = vld [vmem:[%s21349_s10 + $0x640] ss:$16 sps:$4 sm:$0xff]   ;;  %v16464_v7 = vld [vmem:[%s21349_s10 + $0x764] ss:$16 sps:$4 sm:$0xff]  }
 0x8e0   : > { %6388 = vmatprep.subr.bf16.mxu1 %v16404_v44  ;;  %v16459_v44 = vld [vmem:[%s21349_s10 + $0xb68] ss:$16 sps:$4 sm:$0xff]  }
 0x8e1   : > { %7376 = vmatpush1.bf16.msra.mxu0 %v16399_v18  ;;  %v16467_v18 = vld [vmem:[%s21349_s10 + $0xb8c] ss:$16 sps:$4 sm:$0xff]  }
 0x8e2   : > { %7377 = vmatprep.subr.bf16.mxu0 %v16407_v46  ;;  %v16462_v46 = vld [vmem:[%s21349_s10 + $0x760] ss:$16 sps:$4 sm:$0xff]  }
 0x8e3   : > { %6389 = vmatpush1.bf16.msra.mxu1 %v16402_v24  ;;  %v16470_v24 = vld [vmem:[%s21349_s10 + $0x784] ss:$16 sps:$4 sm:$0xff]  }
 0x8e4   : > { %6390 = vmatprep.subr.bf16.mxu1 %v16410_v49  ;;  %v16465_v49 = vld [vmem:[%s21349_s10 + $0xb88] ss:$16 sps:$4 sm:$0xff]  }
 0x8e5   : > { %7378 = vmatpush1.bf16.msra.mxu0 %v16405_v38  ;;  %v16473_v38 = vld [vmem:[%s21349_s10 + $0xbac] ss:$16 sps:$4 sm:$0xff]  }
 0x8e6   : > { %7379 = vmatprep.subr.bf16.mxu0 %v16413_v51  ;;  %v16468_v51 = vld [vmem:[%s21349_s10 + $0x780] ss:$16 sps:$4 sm:$0xff]  }
 0x8e7   : > { %6391 = vmatpush1.bf16.msra.mxu1 %v16408_v56  ;;  %v16476_v56 = vld [vmem:[%s21349_s10 + $0x7a4] ss:$16 sps:$4 sm:$0xff]  }
 0x8e8   : > { %6392 = vmatprep.subr.bf16.mxu1 %v16416_v54  ;;  %v16471_v54 = vld [vmem:[%s21349_s10 + $0xba8] ss:$16 sps:$4 sm:$0xff]  }
 0x8e9   : > { %7380 = vmatpush1.bf16.msra.mxu0 %v16411_v9  ;;  %v16479_v9 = vld [vmem:[%s21349_s10 + $0xbcc] ss:$16 sps:$4 sm:$0xff]  }
 0x8ea   : > { %7381 = vmatprep.subr.bf16.mxu0 %v16419_v19  ;;  %v16474_v19 = vld [vmem:[%s21349_s10 + $0x7a0] ss:$16 sps:$4 sm:$0xff]  }
 0x8eb   : > { %6393 = vmatpush1.bf16.msra.mxu1 %v16414_v33  ;;  %v16482_v33 = vld [vmem:[%s21349_s10 + $0x7c4] ss:$16 sps:$4 sm:$0xff]  }
 0x8ec   : > { %6394 = vmatprep.subr.bf16.mxu1 %v16422_v57  ;;  %v16477_v57 = vld [vmem:[%s21349_s10 + $0xbc8] ss:$16 sps:$4 sm:$0xff]  }
 0x8ed   : > { %7382 = vmatpush1.bf16.msra.mxu0 %v16417_v58  ;;  %v16485_v58 = vld [vmem:[%s21349_s10 + $0xbec] ss:$16 sps:$4 sm:$0xff]  }
 0x8ee   : > { %7383 = vmatprep.subr.bf16.mxu0 %v16425_v59  ;;  %v16480_v59 = vld [vmem:[%s21349_s10 + $0x7c0] ss:$16 sps:$4 sm:$0xff]  }
 0x8ef   : > { %6395 = vmatpush1.bf16.msra.mxu1 %v16420_v61  ;;  %v19303_v42 = vpop.f32.mrb[80].mxu0  ;;  %v16488_v61 = vld [vmem:[%s21349_s10 + $0x7e4] ss:$16 sps:$4 sm:$0xff]  }
 0x8f0   : > { %6396 = vmatprep.subr.bf16.mxu1 %v16428_v62  ;;  %v19308_v20 = vpop.f32.mrb[81].mxu0  ;;  %v16483_v62 = vld [vmem:[%s21349_s10 + $0xbe8] ss:$16 sps:$4 sm:$0xff]  }
 0x8f1   : > { %7384 = vmatpush1.bf16.msra.mxu0 %v16423_v55  ;;  %v19313_v15 = vpop.f32.mrb[164].mxu1  ;;  %v5523_v3 = vpop.f32.mrb[82].mxu0  ;;  %v16491_v55 = vld [vmem:[%s21349_s10 + $0xc0c] ss:$16 sps:$4 sm:$0xff]  }
 0x8f2   : > { %7385 = vmatprep.subr.bf16.mxu0 %v16431_v1  ;;  %v19318_v6 = vpop.f32.mrb[165].mxu1  ;;  %v5524_v10 = vpop.f32.mrb[83].mxu0  ;;  %v16486_v1 = vld [vmem:[%s21349_s10 + $0x7e0] ss:$16 sps:$4 sm:$0xff]   ;;  %v16497_v3 = vld [vmem:[%s21349_s10 + $0xc2c] ss:$16 sps:$4 sm:$0xff]  }
 0x8f3   : > { %6397 = vmatpush1.bf16.msra.mxu1 %v16426_v43  ;;  %v5080_v48 = vpop.f32.mrb[166].mxu1  ;;  %v16494_v43 = vld [vmem:[%s21349_s10 + $0x804] ss:$16 sps:$4 sm:$0xff]   ;;  %v19449_v10 = vpack.c.bf16 %v18840_v39, %v18840_v39  ;;  %v16503_v39 = vld [vmem:[%s21349_s10 + $0xc4c] ss:$16 sps:$4 sm:$0xff]  }
 0x8f4   : > { %6398 = vmatprep.subr.bf16.mxu1 %v16434_v27  ;;  %v5081_v16 = vpop.f32.mrb[167].mxu1  ;;  %v16489_v27 = vld [vmem:[%s21349_s10 + $0xc08] ss:$16 sps:$4 sm:$0xff]   ;;  %v16498_v48 = vld [vmem:[%s21349_s10 + $0x820] ss:$16 sps:$4 sm:$0xff]  }
 0x8f5   : > { %7386 = vmatpush1.bf16.msra.mxu0 %v16429_v45  ;;  %v19439_v45 = vpack.c.bf16 %v18809_v13, %v18809_v13  ;;  %v16500_v13 = vld [vmem:[%s21349_s10 + $0x824] ss:$16 sps:$4 sm:$0xff]   ;;  %v16509_v16 = vld [vmem:[%s21349_s10 + $0xc6c] ss:$16 sps:$4 sm:$0xff]  }
 0x8f6   : > { %7387 = vmatprep.subr.bf16.mxu0 %v16437_v5  ;;  %v16492_v5 = vld [vmem:[%s21349_s10 + $0x800] ss:$16 sps:$4 sm:$0xff]  }
 0x8f7   : > { %6399 = vmatpush1.bf16.msra.mxu1 %v16432_v11  ;;  %v16495_v11 = vld [vmem:[%s21349_s10 + $0xc28] ss:$16 sps:$4 sm:$0xff]  }
 0x8f8   : > { %6400 = vmatprep.subr.bf16.mxu1 %v16440_v14  ;;  %v16506_v14 = vld [vmem:[%s21349_s10 + $0x844] ss:$16 sps:$4 sm:$0xff]  }
 0x8f9   : > { %7388 = vmatpush1.bf16.msra.mxu0 %v16435_v52  ;;  %v16512_v52 = vld [vmem:[%s21349_s10 + $0x864] ss:$16 sps:$4 sm:$0xff]  }
 0x8fa   : > { %7389 = vmatprep.subr.bf16.mxu0 %v16443_v17  ;;  %v16507_v17 = vld [vmem:[%s21349_s10 + $0xc68] ss:$16 sps:$4 sm:$0xff]  }
 0x8fb   : > { %6401 = vmatpush1.bf16.msra.mxu1 %v16438_v21  ;;  %v16515_v21 = vld [vmem:[%s21349_s10 + $0xc8c] ss:$16 sps:$4 sm:$0xff]  }
 0x8fc   : > { %6402 = vmatprep.subr.bf16.mxu1 %v16446_v50  ;;  %v16510_v50 = vld [vmem:[%s21349_s10 + $0x860] ss:$16 sps:$4 sm:$0xff]  }
 0x8fd   : > { %7390 = vmatpush1.bf16.msra.mxu0 %v16441_v29  ;;  %v16518_v29 = vld [vmem:[%s21349_s10 + $0x884] ss:$16 sps:$4 sm:$0xff]  }
 0x8fe   : > { %7391 = vmatprep.subr.bf16.mxu0 %v16449_v53  ;;  %v16513_v53 = vld [vmem:[%s21349_s10 + $0xc88] ss:$16 sps:$4 sm:$0xff]  }
 0x8ff   : > { %6403 = vmatpush1.bf16.msra.mxu1 %v16444_v47  ;;  %v16521_v47 = vld [vmem:[%s21349_s10 + $0xcac] ss:$16 sps:$4 sm:$0xff]  }
 0x900   : > { %6404 = vmatprep.subr.bf16.mxu1 %v16452_v25  ;;  %v16516_v25 = vld [vmem:[%s21349_s10 + $0x880] ss:$16 sps:$4 sm:$0xff]  }
 0x901   : > { %7392 = vmatpush1.bf16.msra.mxu0 %v16447_v26  ;;  %v16524_v26 = vld [vmem:[%s21349_s10 + $0x8a4] ss:$16 sps:$4 sm:$0xff]  }
 0x902   : > { %7393 = vmatprep.subr.bf16.mxu0 %v16455_v31  ;;  %v16519_v31 = vld [vmem:[%s21349_s10 + $0xca8] ss:$16 sps:$4 sm:$0xff]  }
 0x903   : > { %6405 = vmatpush1.bf16.msra.mxu1 %v16450_v34  ;;  %v16527_v34 = vld [vmem:[%s21349_s10 + $0xccc] ss:$16 sps:$4 sm:$0xff]  }
 0x904   : > { %6406 = vmatprep.subr.bf16.mxu1 %v16458_v35  ;;  %v16522_v35 = vld [vmem:[%s21349_s10 + $0x8a0] ss:$16 sps:$4 sm:$0xff]  }
 0x905   : > { %7394 = vmatpush1.bf16.msra.mxu0 %v16453_v40 }
 0x906   : > { %7395 = vmatprep.subr.bf16.mxu0 %v16461_v41  ;;  %v16530_v41 = vld [vmem:[%s21349_s10 + $0x8c4] ss:$16 sps:$4 sm:$0xff]  }
 0x907   : > { %6407 = vmatpush1.bf16.msra.mxu1 %v16456_v36 }
 0x908   : > { %6408 = vmatprep.subr.bf16.mxu1 %v16464_v7  ;;  %v16525_v7 = vld [vmem:[%s21349_s10 + $0xcc8] ss:$16 sps:$4 sm:$0xff]  }
 0x909   : > { %7396 = vmatpush1.bf16.msra.mxu0 %v16459_v44 }
 0x90a   : > { %7397 = vmatprep.subr.bf16.mxu0 %v16467_v18 }
 0x90b   : > { %6409 = vmatpush1.bf16.msra.mxu1 %v16462_v46  ;;  %v16533_v46 = vld [vmem:[%s21349_s10 + $0xcec] ss:$16 sps:$4 sm:$0xff]  }
 0x90c   : > { %6410 = vmatprep.subr.bf16.mxu1 %v16470_v24 }
 0x90d   : > { %7398 = vmatpush1.bf16.msra.mxu0 %v16465_v49 }
 0x90e   : > { %7399 = vmatprep.subr.bf16.mxu0 %v16473_v38 }
 0x90f   : > { %6411 = vmatpush1.bf16.msra.mxu1 %v16468_v51  ;;  %v16528_v51 = vld [vmem:[%s21349_s10 + $0x8c0] ss:$16 sps:$4 sm:$0xff]  }
 0x910   : > { %6412 = vmatprep.subr.bf16.mxu1 %v16476_v56 }
 0x911   : > { %7400 = vmatpush1.bf16.msra.mxu0 %v16471_v54 }
 0x912   : > { %7401 = vmatprep.subr.bf16.mxu0 %v16479_v9  ;;  %v16536_v9 = vld [vmem:[%s21349_s10 + $0x8e4] ss:$16 sps:$4 sm:$0xff]  }
 0x913   : > { %6413 = vmatpush1.bf16.msra.mxu1 %v16474_v19 }
 0x914   : > { %6414 = vmatprep.subr.bf16.mxu1 %v16482_v33 }
 0x915   : > { %7402 = vmatpush1.bf16.msra.mxu0 %v16477_v57 }
 0x916   : > { %7403 = vmatprep.subr.bf16.mxu0 %v16485_v58  ;;  %v16534_v58 = vld [vmem:[%s21349_s10 + $0x8e0] ss:$16 sps:$4 sm:$0xff]  }
 0x917   : > { %6415 = vmatpush1.bf16.msra.mxu1 %v16480_v59  ;;  %v16542_v59 = vld [vmem:[%s21349_s10 + $0x904] ss:$16 sps:$4 sm:$0xff]  }
 0x918   : > { %6416 = vmatprep.subr.bf16.mxu1 %v16488_v61  ;;  %v16537_v61 = vld [vmem:[%s21349_s10 + $0xd08] ss:$16 sps:$4 sm:$0xff]  }
 0x919   : > { %7404 = vmatpush1.bf16.msra.mxu0 %v16483_v62  ;;  %v16545_v62 = vld [vmem:[%s21349_s10 + $0xd2c] ss:$16 sps:$4 sm:$0xff]  }
 0x91a   : > { %7846 = vmatprep.subr.bf16.mxu0 %v16491_v55  ;;  %v16540_v55 = vld [vmem:[%s21349_s10 + $0x900] ss:$16 sps:$4 sm:$0xff]  }
 0x91b   : > { %6417 = vmatpush1.bf16.msra.mxu1 %v16486_v1  ;;  %v16548_v1 = vld [vmem:[%s21349_s10 + $0x924] ss:$16 sps:$4 sm:$0xff]  }
 0x91c   : > { %7406 = vmatmul.mubr.bf16.vlgmr.msra.gmra.mrb[96].mxu0 %v19439_v45  ;;  %6859 = vmatprep.subr.bf16.mxu1 %v16494_v43  ;;  %v16543_v43 = vld [vmem:[%s21349_s10 + $0xd28] ss:$16 sps:$4 sm:$0xff]  }
 0x91d   : > { %7847 = vmatpush1.bf16.msra.mxu0 %v16489_v27  ;;  %7878 = vmatprep.mubr.bf16.mxu0 %v19449_v10  ;;  %v16551_v27 = vld [vmem:[%s21349_s10 + $0xd4c] ss:$16 sps:$4 sm:$0xff]  }
 0x91e   : > { %6419 = vmatmul.mubr.bf16.vlgmr.msra.gmra.mrb[180].mxu1 %v19017_v8  ;;  %7848 = vmatprep.subr.bf16.mxu0 %v16497_v3  ;;  %v16501_v8 = vld [vmem:[%s21349_s10 + $0xc48] ss:$16 sps:$4 sm:$0xff]   ;;  %v16546_v3 = vld [vmem:[%s21349_s10 + $0x920] ss:$16 sps:$4 sm:$0xff]  }
 0x91f   : > { %6860 = vmatpush1.bf16.msra.mxu1 %v16492_v5  ;;  %6891 = vmatprep.mubr.bf16.mxu1 %v19027_v12  ;;  %v16504_v12 = vld [vmem:[%s21349_s10 + $0x840] ss:$16 sps:$4 sm:$0xff]   ;;  %v16554_v5 = vld [vmem:[%s21349_s10 + $0x944] ss:$16 sps:$4 sm:$0xff]  }
 0x920   : > { %6861 = vmatprep.subr.bf16.mxu1 %v16500_v13  ;;  %v16549_v13 = vld [vmem:[%s21349_s10 + $0xd48] ss:$16 sps:$4 sm:$0xff]  }
 0x921   : > { %7849 = vmatpush1.bf16.msra.mxu0 %v16495_v11  ;;  %v16557_v11 = vld [vmem:[%s21349_s10 + $0xd6c] ss:$16 sps:$4 sm:$0xff]  }
 0x922   : > { %7850 = vmatprep.subr.bf16.mxu0 %v16503_v39  ;;  %v16552_v39 = vld [vmem:[%s21349_s10 + $0x940] ss:$16 sps:$4 sm:$0xff]  }
 0x923   : > { %6862 = vmatpush1.bf16.msra.mxu1 %v16498_v48  ;;  %v16560_v48 = vld [vmem:[%s21349_s10 + $0x964] ss:$16 sps:$4 sm:$0xff]  }
 0x924   : > { %6863 = vmatprep.subr.bf16.mxu1 %v16506_v14  ;;  %v16555_v14 = vld [vmem:[%s21349_s10 + $0xd68] ss:$16 sps:$4 sm:$0xff]  }
 0x925   : > { %7851 = vmatpush1.bf16.msra.mxu0 %v16501_v8  ;;  %v16563_v8 = vld [vmem:[%s21349_s10 + $0xd8c] ss:$16 sps:$4 sm:$0xff]  }
 0x926   : > { %7852 = vmatprep.subr.bf16.mxu0 %v16509_v16  ;;  %v16558_v16 = vld [vmem:[%s21349_s10 + $0x960] ss:$16 sps:$4 sm:$0xff]  }
 0x927   : > { %6864 = vmatpush1.bf16.msra.mxu1 %v16504_v12  ;;  %v16566_v12 = vld [vmem:[%s21349_s10 + $0x984] ss:$16 sps:$4 sm:$0xff]  }
 0x928   : > { %6865 = vmatprep.subr.bf16.mxu1 %v16512_v52  ;;  %v16561_v52 = vld [vmem:[%s21349_s10 + $0xd88] ss:$16 sps:$4 sm:$0xff]  }
 0x929   : > { %7853 = vmatpush1.bf16.msra.mxu0 %v16507_v17  ;;  %v16569_v17 = vld [vmem:[%s21349_s10 + $0xdac] ss:$16 sps:$4 sm:$0xff]  }
 0x92a   : > { %7854 = vmatprep.subr.bf16.mxu0 %v16515_v21  ;;  %v16564_v21 = vld [vmem:[%s21349_s10 + $0x980] ss:$16 sps:$4 sm:$0xff]  }
 0x92b   : > { %6866 = vmatpush1.bf16.msra.mxu1 %v16510_v50  ;;  %v16572_v50 = vld [vmem:[%s21349_s10 + $0x9a4] ss:$16 sps:$4 sm:$0xff]  }
 0x92c   : > { %6867 = vmatprep.subr.bf16.mxu1 %v16518_v29  ;;  %v16567_v29 = vld [vmem:[%s21349_s10 + $0xda8] ss:$16 sps:$4 sm:$0xff]  }
 0x92d   : > { %7855 = vmatpush1.bf16.msra.mxu0 %v16513_v53  ;;  %v16575_v53 = vld [vmem:[%s21349_s10 + $0xdcc] ss:$16 sps:$4 sm:$0xff]  }
 0x92e   : > { %7856 = vmatprep.subr.bf16.mxu0 %v16521_v47  ;;  %v16570_v47 = vld [vmem:[%s21349_s10 + $0x9a0] ss:$16 sps:$4 sm:$0xff]  }
 0x92f   : > { %6868 = vmatpush1.bf16.msra.mxu1 %v16516_v25  ;;  %v5988_v40 = vpop.f32.mrb[84].mxu0  ;;  %v16578_v25 = vld [vmem:[%s21349_s10 + $0x9c4] ss:$16 sps:$4 sm:$0xff]  }
 0x930   : > { %6869 = vmatprep.subr.bf16.mxu1 %v16524_v26  ;;  %v5990_v36 = vpop.f32.mrb[85].mxu0  ;;  %v16573_v26 = vld [vmem:[%s21349_s10 + $0xdc8] ss:$16 sps:$4 sm:$0xff]  }
 0x931   : > { %7857 = vmatpush1.bf16.msra.mxu0 %v16519_v31  ;;  %v5117_v44 = vpop.f32.mrb[168].mxu1  ;;  %v5992_v18 = vpop.f32.mrb[86].mxu0  ;;  %v16581_v31 = vld [vmem:[%s21349_s10 + $0xdec] ss:$16 sps:$4 sm:$0xff]  }
 0x932   : > { %7858 = vmatprep.subr.bf16.mxu0 %v16527_v34  ;;  %v5520_v24 = vadd.f32 %v19303_v42, %v5117_v44  ;;  %v5119_v49 = vpop.f32.mrb[169].mxu1  ;;  %v5993_v38 = vpop.f32.mrb[87].mxu0  ;;  %v16531_v42 = vld [vmem:[%s21349_s10 + $0xce8] ss:$16 sps:$4 sm:$0xff]   ;;  %v16576_v34 = vld [vmem:[%s21349_s10 + $0x9c0] ss:$16 sps:$4 sm:$0xff]   ;;  %v19649_v18 = vpack.c.bf16 %v18835_v60, %v18835_v60 }
 0x933   : > { %6870 = vmatpush1.bf16.msra.mxu1 %v16522_v35  ;;  %v5522_v56 = vadd.f32 %v19308_v20, %v5119_v49  ;;  %v5121_v54 = vpop.f32.mrb[170].mxu1  ;;  %v16539_v20 = vld [vmem:[%s21349_s10 + $0xd0c] ss:$16 sps:$4 sm:$0xff]   ;;  %v16584_v35 = vld [vmem:[%s21349_s10 + $0x9e4] ss:$16 sps:$4 sm:$0xff]   ;;  %v19659_v49 = vpack.c.bf16 %v18850_v0, %v18850_v0 }
 0x934   : > { %6871 = vmatprep.subr.bf16.mxu1 %v16530_v41  ;;  %v5122_v19 = vpop.f32.mrb[171].mxu1  ;;  %v19532_v33 = vadd.f32 %v5988_v40, %v5520_v24  ;;  %v16579_v40 = vld [vmem:[%s21349_s10 + $0xde8] ss:$16 sps:$4 sm:$0xff]   ;;  %v16587_v41 = vld [vmem:[%s21349_s10 + $0xe0c] ss:$16 sps:$4 sm:$0xff]  }
 0x935   : > { %7859 = vmatpush1.bf16.msra.mxu0 %v16525_v7  ;;  %v19537_v57 = vadd.f32 %v5990_v36, %v5522_v56  ;;  %v16582_v36 = vld [vmem:[%s21349_s10 + $0x9e0] ss:$16 sps:$4 sm:$0xff]   ;;  %v16590_v7 = vld [vmem:[%s21349_s10 + $0xa04] ss:$16 sps:$4 sm:$0xff]   ;;  %v16585_v44 = vld [vmem:[%s21349_s10 + $0xe08] ss:$16 sps:$4 sm:$0xff]  }
 0x936   : > { %7860 = vmatprep.subr.bf16.mxu0 %v16533_v46  ;;  %v16593_v46 = vld [vmem:[%s21349_s10 + $0xe2c] ss:$16 sps:$4 sm:$0xff]   ;;  %v16588_v24 = vld [vmem:[%s21349_s10 + $0xa00] ss:$16 sps:$4 sm:$0xff]   ;;  %v16596_v60 = vld [vmem:[%s21349_s10 + $0xa24] ss:$16 sps:$4 sm:$0xff]  }
 0x937   : > { %6872 = vmatpush1.bf16.msra.mxu1 %v16528_v51  ;;  %v16591_v38 = vld [vmem:[%s21349_s10 + $0xe28] ss:$16 sps:$4 sm:$0xff]   ;;  %v16599_v0 = vld [vmem:[%s21349_s10 + $0xe4c] ss:$16 sps:$4 sm:$0xff]   ;;  %v16594_v51 = vld [vmem:[%s21349_s10 + $0xa20] ss:$16 sps:$4 sm:$0xff]  }
 0x938   : > { %6873 = vmatprep.subr.bf16.mxu1 %v16536_v9  ;;  %v16602_v56 = vld [vmem:[%s21349_s10 + $0xa44] ss:$16 sps:$4 sm:$0xff]   ;;  %v16605_v54 = vld [vmem:[%s21349_s10 + $0xe6c] ss:$16 sps:$4 sm:$0xff]   ;;  %v16603_v19 = vld [vmem:[%s21349_s10 + $0xe68] ss:$16 sps:$4 sm:$0xff]  }
 0x939   : > { %7861 = vmatpush1.bf16.msra.mxu0 %v16531_v42  ;;  %v16608_v9 = vld [vmem:[%s21349_s10 + $0xa64] ss:$16 sps:$4 sm:$0xff]   ;;  %v16611_v42 = vld [vmem:[%s21349_s10 + $0xe8c] ss:$16 sps:$4 sm:$0xff]  }
 0x93a   : > { %7862 = vmatprep.subr.bf16.mxu0 %v16539_v20  ;;  %v16606_v20 = vld [vmem:[%s21349_s10 + $0xa60] ss:$16 sps:$4 sm:$0xff]  }
 0x93b   : > { %6874 = vmatpush1.bf16.msra.mxu1 %v16534_v58  ;;  %v16614_v58 = vld [vmem:[%s21349_s10 + $0xa84] ss:$16 sps:$4 sm:$0xff]  }
 0x93c   : > { %6875 = vmatprep.subr.bf16.mxu1 %v16542_v59  ;;  %v16609_v59 = vld [vmem:[%s21349_s10 + $0xe88] ss:$16 sps:$4 sm:$0xff]  }
 0x93d   : > { %7863 = vmatpush1.bf16.msra.mxu0 %v16537_v61  ;;  %v16617_v61 = vld [vmem:[%s21349_s10 + $0xeac] ss:$16 sps:$4 sm:$0xff]  }
 0x93e   : > { %7864 = vmatprep.subr.bf16.mxu0 %v16545_v62  ;;  %v16612_v62 = vld [vmem:[%s21349_s10 + $0xa80] ss:$16 sps:$4 sm:$0xff]  }
 0x93f   : > { %6876 = vmatpush1.bf16.msra.mxu1 %v16540_v55  ;;  %v16620_v55 = vld [vmem:[%s21349_s10 + $0xaa4] ss:$16 sps:$4 sm:$0xff]  }
 0x940   : > { %6877 = vmatprep.subr.bf16.mxu1 %v16548_v1  ;;  %v16615_v1 = vld [vmem:[%s21349_s10 + $0xea8] ss:$16 sps:$4 sm:$0xff]  }
 0x941   : > { %7865 = vmatpush1.bf16.msra.mxu0 %v16543_v43  ;;  %v16623_v43 = vld [vmem:[%s21349_s10 + $0xecc] ss:$16 sps:$4 sm:$0xff]  }
 0x942   : > { %7866 = vmatprep.subr.bf16.mxu0 %v16551_v27  ;;  %v16618_v27 = vld [vmem:[%s21349_s10 + $0xaa0] ss:$16 sps:$4 sm:$0xff]  }
 0x943   : > { %6878 = vmatpush1.bf16.msra.mxu1 %v16546_v3 }
 0x944   : > { %6879 = vmatprep.subr.bf16.mxu1 %v16554_v5  ;;  %v16626_v5 = vld [vmem:[%s21349_s10 + $0xac4] ss:$16 sps:$4 sm:$0xff]  }
 0x945   : > { %7867 = vmatpush1.bf16.msra.mxu0 %v16549_v13 }
 0x946   : > { %7868 = vmatprep.subr.bf16.mxu0 %v16557_v11 }
 0x947   : > { %6880 = vmatpush1.bf16.msra.mxu1 %v16552_v39  ;;  %v16621_v39 = vld [vmem:[%s21349_s10 + $0xec8] ss:$16 sps:$4 sm:$0xff]  }
 0x948   : > { %6881 = vmatprep.subr.bf16.mxu1 %v16560_v48 }
 0x949   : > { %7869 = vmatpush1.bf16.msra.mxu0 %v16555_v14 }
 0x94a   : > { %7870 = vmatprep.subr.bf16.mxu0 %v16563_v8 }
 0x94b   : > { %6882 = vmatpush1.bf16.msra.mxu1 %v16558_v16  ;;  %v16629_v16 = vld [vmem:[%s21349_s10 + $0xeec] ss:$16 sps:$4 sm:$0xff]  }
 0x94c   : > { %6883 = vmatprep.subr.bf16.mxu1 %v16566_v12 }
 0x94d   : > { %7871 = vmatpush1.bf16.msra.mxu0 %v16561_v52 }
 0x94e   : > { %7872 = vmatprep.subr.bf16.mxu0 %v16569_v17  ;;  %v16624_v17 = vld [vmem:[%s21349_s10 + $0xac0] ss:$16 sps:$4 sm:$0xff]  }
 0x94f   : > { %6884 = vmatpush1.bf16.msra.mxu1 %v16564_v21 }
 0x950   : > { %6885 = vmatprep.subr.bf16.mxu1 %v16572_v50  ;;  %v16632_v50 = vld [vmem:[%s21349_s10 + $0xae4] ss:$16 sps:$4 sm:$0xff]  }
 0x951   : > { %7873 = vmatpush1.bf16.msra.mxu0 %v16567_v29 }
 0x952   : > { %7874 = vmatprep.subr.bf16.mxu0 %v16575_v53  ;;  %v16635_v53 = vld [vmem:[%s21349_s10 + $0xf0c] ss:$16 sps:$4 sm:$0xff]  }
 0x953   : > { %6886 = vmatpush1.bf16.msra.mxu1 %v16570_v47  ;;  %v16638_v47 = vld [vmem:[%s21349_s10 + $0xb04] ss:$16 sps:$4 sm:$0xff]  }
 0x954   : > { %6887 = vmatprep.subr.bf16.mxu1 %v16578_v25  ;;  %v16633_v25 = vld [vmem:[%s21349_s10 + $0xf08] ss:$16 sps:$4 sm:$0xff]  }
 0x955   : > { %7875 = vmatpush1.bf16.msra.mxu0 %v16573_v26  ;;  %v16641_v26 = vld [vmem:[%s21349_s10 + $0xf2c] ss:$16 sps:$4 sm:$0xff]  }
 0x956   : > { %7876 = vmatprep.subr.bf16.mxu0 %v16581_v31  ;;  %v16636_v31 = vld [vmem:[%s21349_s10 + $0xb00] ss:$16 sps:$4 sm:$0xff]  }
 0x957   : > { %6888 = vmatpush1.bf16.msra.mxu1 %v16576_v34  ;;  %v16644_v34 = vld [vmem:[%s21349_s10 + $0xb24] ss:$16 sps:$4 sm:$0xff]  }
 0x958   : > { %6889 = vmatprep.subr.bf16.mxu1 %v16584_v35  ;;  %v16639_v35 = vld [vmem:[%s21349_s10 + $0xf28] ss:$16 sps:$4 sm:$0xff]  }
 0x959   : > { %7877 = vmatpush1.bf16.msra.mxu0 %v16579_v40  ;;  %v16647_v40 = vld [vmem:[%s21349_s10 + $0xf4c] ss:$16 sps:$4 sm:$0xff]  }
 0x95a   : > { %8319 = vmatprep.subr.bf16.mxu0 %v16587_v41  ;;  %v16642_v41 = vld [vmem:[%s21349_s10 + $0xb20] ss:$16 sps:$4 sm:$0xff]  }
 0x95b   : > { %6890 = vmatpush1.bf16.msra.mxu1 %v16582_v36  ;;  %v16650_v36 = vld [vmem:[%s21349_s10 + $0xb44] ss:$16 sps:$4 sm:$0xff]  }
 0x95c   : > { %7879 = vmatmul.mubr.bf16.vlgmr.msra.gmra.mrb[100].mxu0 %v19649_v18  ;;  %7332 = vmatprep.subr.bf16.mxu1 %v16590_v7  ;;  %v16645_v7 = vld [vmem:[%s21349_s10 + $0xf48] ss:$16 sps:$4 sm:$0xff]  }
 0x95d   : > { %8320 = vmatpush1.bf16.msra.mxu0 %v16585_v44  ;;  %8351 = vmatprep.mubr.bf16.mxu0 %v19659_v49  ;;  %v16653_v44 = vld [vmem:[%s21349_s10 + $0xf6c] ss:$16 sps:$4 sm:$0xff]  }
 0x95e   : > { %6892 = vmatmul.mubr.bf16.vlgmr.msra.gmra.mrb[184].mxu1 %v19221_v37  ;;  %8321 = vmatprep.subr.bf16.mxu0 %v16593_v46  ;;  %v16597_v37 = vld [vmem:[%s21349_s10 + $0xe48] ss:$16 sps:$4 sm:$0xff]   ;;  %v16648_v46 = vld [vmem:[%s21349_s10 + $0xb40] ss:$16 sps:$4 sm:$0xff]  }
 0x95f   : > { %7333 = vmatpush1.bf16.msra.mxu1 %v16588_v24  ;;  %7364 = vmatprep.mubr.bf16.mxu1 %v19231_v4  ;;  %v16600_v4 = vld [vmem:[%s21349_s10 + $0xa40] ss:$16 sps:$4 sm:$0xff]   ;;  %v16656_v24 = vld [vmem:[%s21349_s10 + $0xb64] ss:$16 sps:$4 sm:$0xff]  }
 0x960   : > { %7334 = vmatprep.subr.bf16.mxu1 %v16596_v60  ;;  %v16651_v60 = vld [vmem:[%s21349_s10 + $0xf68] ss:$16 sps:$4 sm:$0xff]  }
 0x961   : > { %8322 = vmatpush1.bf16.msra.mxu0 %v16591_v38  ;;  %v16659_v38 = vld [vmem:[%s21349_s10 + $0xf8c] ss:$16 sps:$4 sm:$0xff]  }
 0x962   : > { %8323 = vmatprep.subr.bf16.mxu0 %v16599_v0  ;;  %v16654_v0 = vld [vmem:[%s21349_s10 + $0xb60] ss:$16 sps:$4 sm:$0xff]  }
 0x963   : > { %7335 = vmatpush1.bf16.msra.mxu1 %v16594_v51  ;;  %v16662_v51 = vld [vmem:[%s21349_s10 + $0xb84] ss:$16 sps:$4 sm:$0xff]  }
 0x964   : > { %7336 = vmatprep.subr.bf16.mxu1 %v16602_v56  ;;  %v16657_v56 = vld [vmem:[%s21349_s10 + $0xf88] ss:$16 sps:$4 sm:$0xff]  }
 0x965   : > { %8324 = vmatpush1.bf16.msra.mxu0 %v16597_v37  ;;  %v16665_v37 = vld [vmem:[%s21349_s10 + $0xfac] ss:$16 sps:$4 sm:$0xff]  }
 0x966   : > { %8325 = vmatprep.subr.bf16.mxu0 %v16605_v54  ;;  %v16660_v54 = vld [vmem:[%s21349_s10 + $0xb80] ss:$16 sps:$4 sm:$0xff]  }
 0x967   : > { %7337 = vmatpush1.bf16.msra.mxu1 %v16600_v4  ;;  %v16668_v4 = vld [vmem:[%s21349_s10 + $0xba4] ss:$16 sps:$4 sm:$0xff]  }
 0x968   : > { %7338 = vmatprep.subr.bf16.mxu1 %v16608_v9  ;;  %v16663_v9 = vld [vmem:[%s21349_s10 + $0xfa8] ss:$16 sps:$4 sm:$0xff]  }
 0x969   : > { %8326 = vmatpush1.bf16.msra.mxu0 %v16603_v19  ;;  %v16671_v19 = vld [vmem:[%s21349_s10 + $0xfcc] ss:$16 sps:$4 sm:$0xff]  }
 0x96a   : > { %8327 = vmatprep.subr.bf16.mxu0 %v16611_v42  ;;  %v16666_v42 = vld [vmem:[%s21349_s10 + $0xba0] ss:$16 sps:$4 sm:$0xff]  }
 0x96b   : > { %7339 = vmatpush1.bf16.msra.mxu1 %v16606_v20  ;;  %v16674_v20 = vld [vmem:[%s21349_s10 + $0xbc4] ss:$16 sps:$4 sm:$0xff]  }
 0x96c   : > { %7340 = vmatprep.subr.bf16.mxu1 %v16614_v58  ;;  %v16669_v58 = vld [vmem:[%s21349_s10 + $0xfc8] ss:$16 sps:$4 sm:$0xff]  }
 0x96d   : > { %8328 = vmatpush1.bf16.msra.mxu0 %v16609_v59  ;;  %v16677_v59 = vld [vmem:[%s21349_s10 + $0xfec] ss:$16 sps:$4 sm:$0xff]  }
 0x96e   : > { %8329 = vmatprep.subr.bf16.mxu0 %v16617_v61  ;;  %v16672_v61 = vld [vmem:[%s21349_s10 + $0xbc0] ss:$16 sps:$4 sm:$0xff]  }
 0x96f   : > { %7341 = vmatpush1.bf16.msra.mxu1 %v16612_v62  ;;  %v6461_v3 = vpop.f32.mrb[88].mxu0  ;;  %v16680_v62 = vld [vmem:[%s21349_s10 + $0xbe4] ss:$16 sps:$4 sm:$0xff]  }
 0x970   : > { %7342 = vmatprep.subr.bf16.mxu1 %v16620_v55  ;;  %v19729_v13 = vadd.f32 %v6461_v3, %v19532_v33  ;;  %v6463_v11 = vpop.f32.mrb[89].mxu0  ;;  %v16675_v55 = vld [vmem:[%s21349_s10 + $0xfe8] ss:$16 sps:$4 sm:$0xff]  }
 0x971   : > { %8330 = vmatpush1.bf16.msra.mxu0 %v16615_v1  ;;  %v5478_v48 = vpop.f32.mrb[172].mxu1  ;;  %v19735_v14 = vadd.f32 %v6463_v11, %v19537_v57  ;;  %v6465_v8 = vpop.f32.mrb[90].mxu0  ;;  %v16683_v1 = vld [vmem:[%s21349_s10 + $0x100c] ss:$16 sps:$4 sm:$0xff]   ;;  %v16681_v3 = vld [vmem:[%s21349_s10 + $0x1008] ss:$16 sps:$4 sm:$0xff]  }
 0x972   : > { %8331 = vmatprep.subr.bf16.mxu0 %v16623_v43  ;;  %v19741_v12 = vadd.f32 %v5478_v48, %v19313_v15  ;;  %v5480_v33 = vpop.f32.mrb[173].mxu1  ;;  %v6466_v52 = vpop.f32.mrb[91].mxu0  ;;  %v16627_v15 = vld [vmem:[%s21349_s10 + $0xee8] ss:$16 sps:$4 sm:$0xff]   ;;  %v16678_v43 = vld [vmem:[%s21349_s10 + $0xbe0] ss:$16 sps:$4 sm:$0xff]   ;;  %v19875_v48 = vpack.c.bf16 %v18872_v2, %v18872_v2 }
 0x973   : > { %7343 = vmatpush1.bf16.msra.mxu1 %v16618_v27  ;;  %v19747_v21 = vadd.f32 %v5480_v33, %v19318_v6  ;;  %v5482_v57 = vpop.f32.mrb[174].mxu1  ;;  %v16630_v6 = vld [vmem:[%s21349_s10 + $0xae0] ss:$16 sps:$4 sm:$0xff]   ;;  %v16686_v27 = vld [vmem:[%s21349_s10 + $0xc04] ss:$16 sps:$4 sm:$0xff]  }
 0x974   : > { %7344 = vmatprep.subr.bf16.mxu1 %v16626_v5  ;;  %v5483_v29 = vpop.f32.mrb[175].mxu1  ;;  %v19865_v5 = vpack.c.bf16 %v18845_v63, %v18845_v63  ;;  %v16689_v11 = vld [vmem:[%s21349_s10 + $0x102c] ss:$16 sps:$4 sm:$0xff]   ;;  %v16692_v63 = vld [vmem:[%s21349_s10 + $0xc24] ss:$16 sps:$4 sm:$0xff]  }
 0x975   : > { %8332 = vmatpush1.bf16.msra.mxu0 %v16621_v39  ;;  %v16684_v39 = vld [vmem:[%s21349_s10 + $0xc00] ss:$16 sps:$4 sm:$0xff]   ;;  %v16687_v8 = vld [vmem:[%s21349_s10 + $0x1028] ss:$16 sps:$4 sm:$0xff]   ;;  %v16695_v2 = vld [vmem:[%s21349_s10 + $0x104c] ss:$16 sps:$4 sm:$0xff]  }
 0x976   : > { %8333 = vmatprep.subr.bf16.mxu0 %v16629_v16  ;;  %v16690_v16 = vld [vmem:[%s21349_s10 + $0xc20] ss:$16 sps:$4 sm:$0xff]   ;;  %v16698_v33 = vld [vmem:[%s21349_s10 + $0xc44] ss:$16 sps:$4 sm:$0xff]   ;;  %v16701_v52 = vld [vmem:[%s21349_s10 + $0x106c] ss:$16 sps:$4 sm:$0xff]  }
 0x977   : > { %7345 = vmatpush1.bf16.msra.mxu1 %v16624_v17  ;;  %v16704_v17 = vld [vmem:[%s21349_s10 + $0xc64] ss:$16 sps:$4 sm:$0xff]   ;;  %v16699_v57 = vld [vmem:[%s21349_s10 + $0x1068] ss:$16 sps:$4 sm:$0xff]   ;;  %v16702_v29 = vld [vmem:[%s21349_s10 + $0xc60] ss:$16 sps:$4 sm:$0xff]  }
 0x978   : > { %7346 = vmatprep.subr.bf16.mxu1 %v16632_v50  ;;  %v16707_v50 = vld [vmem:[%s21349_s10 + $0x108c] ss:$16 sps:$4 sm:$0xff]  }
 0x979   : > { %8334 = vmatpush1.bf16.msra.mxu0 %v16627_v15  ;;  %v16710_v15 = vld [vmem:[%s21349_s10 + $0xc84] ss:$16 sps:$4 sm:$0xff]  }
 0x97a   : > { %8335 = vmatprep.subr.bf16.mxu0 %v16635_v53  ;;  %v16705_v53 = vld [vmem:[%s21349_s10 + $0x1088] ss:$16 sps:$4 sm:$0xff]  }
 0x97b   : > { %7347 = vmatpush1.bf16.msra.mxu1 %v16630_v6  ;;  %v16713_v6 = vld [vmem:[%s21349_s10 + $0x10ac] ss:$16 sps:$4 sm:$0xff]  }
 0x97c   : > { %7348 = vmatprep.subr.bf16.mxu1 %v16638_v47  ;;  %v16708_v47 = vld [vmem:[%s21349_s10 + $0xc80] ss:$16 sps:$4 sm:$0xff]  }
 0x97d   : > { %8336 = vmatpush1.bf16.msra.mxu0 %v16633_v25  ;;  %v16716_v25 = vld [vmem:[%s21349_s10 + $0xca4] ss:$16 sps:$4 sm:$0xff]  }
 0x97e   : > { %8337 = vmatprep.subr.bf16.mxu0 %v16641_v26  ;;  %v16711_v26 = vld [vmem:[%s21349_s10 + $0x10a8] ss:$16 sps:$4 sm:$0xff]  }
 0x97f   : > { %7349 = vmatpush1.bf16.msra.mxu1 %v16636_v31  ;;  %v16719_v31 = vld [vmem:[%s21349_s10 + $0x10cc] ss:$16 sps:$4 sm:$0xff]  }
 0x980   : > { %7350 = vmatprep.subr.bf16.mxu1 %v16644_v34  ;;  %v16714_v34 = vld [vmem:[%s21349_s10 + $0xca0] ss:$16 sps:$4 sm:$0xff]  }
 0x981   : > { %8338 = vmatpush1.bf16.msra.mxu0 %v16639_v35 }
 0x982   : > { %8339 = vmatprep.subr.bf16.mxu0 %v16647_v40  ;;  %v16722_v40 = vld [vmem:[%s21349_s10 + $0xcc4] ss:$16 sps:$4 sm:$0xff]  }
 0x983   : > { %7351 = vmatpush1.bf16.msra.mxu1 %v16642_v41 }
 0x984   : > { %7352 = vmatprep.subr.bf16.mxu1 %v16650_v36 }
 0x985   : > { %8340 = vmatpush1.bf16.msra.mxu0 %v16645_v7  ;;  %v16717_v7 = vld [vmem:[%s21349_s10 + $0x10c8] ss:$16 sps:$4 sm:$0xff]  }
 0x986   : > { %8341 = vmatprep.subr.bf16.mxu0 %v16653_v44 }
 0x987   : > { %7353 = vmatpush1.bf16.msra.mxu1 %v16648_v46 }
 0x988   : > { %7354 = vmatprep.subr.bf16.mxu1 %v16656_v24 }
 0x989   : > { %8342 = vmatpush1.bf16.msra.mxu0 %v16651_v60  ;;  %v16725_v60 = vld [vmem:[%s21349_s10 + $0x10ec] ss:$16 sps:$4 sm:$0xff]  }
 0x98a   : > { %8343 = vmatprep.subr.bf16.mxu0 %v16659_v38 }
 0x98b   : > { %7355 = vmatpush1.bf16.msra.mxu1 %v16654_v0 }
 0x98c   : > { %7356 = vmatprep.subr.bf16.mxu1 %v16662_v51  ;;  %v16720_v51 = vld [vmem:[%s21349_s10 + $0xcc0] ss:$16 sps:$4 sm:$0xff]  }
 0x98d   : > { %8344 = vmatpush1.bf16.msra.mxu0 %v16657_v56 }
 0x98e   : > { %8345 = vmatprep.subr.bf16.mxu0 %v16665_v37  ;;  %v16728_v37 = vld [vmem:[%s21349_s10 + $0xce4] ss:$16 sps:$4 sm:$0xff]  }
 0x98f   : > { %7357 = vmatpush1.bf16.msra.mxu1 %v16660_v54 }
 0x990   : > { %7358 = vmatprep.subr.bf16.mxu1 %v16668_v4  ;;  %v16731_v4 = vld [vmem:[%s21349_s10 + $0x110c] ss:$16 sps:$4 sm:$0xff]  }
 0x991   : > { %8346 = vmatpush1.bf16.msra.mxu0 %v16663_v9  ;;  %v16734_v9 = vld [vmem:[%s21349_s10 + $0xd04] ss:$16 sps:$4 sm:$0xff]  }
 0x992   : > { %8347 = vmatprep.subr.bf16.mxu0 %v16671_v19  ;;  %v16729_v19 = vld [vmem:[%s21349_s10 + $0x1108] ss:$16 sps:$4 sm:$0xff]  }
 0x993   : > { %7359 = vmatpush1.bf16.msra.mxu1 %v16666_v42  ;;  %v16737_v42 = vld [vmem:[%s21349_s10 + $0x112c] ss:$16 sps:$4 sm:$0xff]  }
 0x994   : > { %7360 = vmatprep.subr.bf16.mxu1 %v16674_v20  ;;  %v16732_v20 = vld [vmem:[%s21349_s10 + $0xd00] ss:$16 sps:$4 sm:$0xff]  }
 0x995   : > { %8348 = vmatpush1.bf16.msra.mxu0 %v16669_v58  ;;  %v16740_v58 = vld [vmem:[%s21349_s10 + $0xd24] ss:$16 sps:$4 sm:$0xff]  }
 0x996   : > { %8349 = vmatprep.subr.bf16.mxu0 %v16677_v59  ;;  %v16735_v59 = vld [vmem:[%s21349_s10 + $0x1128] ss:$16 sps:$4 sm:$0xff]  }
 0x997   : > { %7361 = vmatpush1.bf16.msra.mxu1 %v16672_v61  ;;  %v16743_v61 = vld [vmem:[%s21349_s10 + $0x114c] ss:$16 sps:$4 sm:$0xff]  }
 0x998   : > { %7362 = vmatprep.subr.bf16.mxu1 %v16680_v62  ;;  %v16738_v62 = vld [vmem:[%s21349_s10 + $0xd20] ss:$16 sps:$4 sm:$0xff]  }
 0x999   : > { %8350 = vmatpush1.bf16.msra.mxu0 %v16675_v55  ;;  %v16746_v55 = vld [vmem:[%s21349_s10 + $0xd44] ss:$16 sps:$4 sm:$0xff]  }
 0x99a   : > { %8792 = vmatprep.subr.bf16.mxu0 %v16683_v1  ;;  %v16741_v1 = vld [vmem:[%s21349_s10 + $0x1148] ss:$16 sps:$4 sm:$0xff]  }
 0x99b   : > { %7363 = vmatpush1.bf16.msra.mxu1 %v16678_v43  ;;  %v16749_v43 = vld [vmem:[%s21349_s10 + $0x116c] ss:$16 sps:$4 sm:$0xff]  }
 0x99c   : > { %8352 = vmatmul.mubr.bf16.vlgmr.msra.gmra.mrb[104].mxu0 %v19865_v5  ;;  %7805 = vmatprep.subr.bf16.mxu1 %v16686_v27  ;;  %v16744_v27 = vld [vmem:[%s21349_s10 + $0xd40] ss:$16 sps:$4 sm:$0xff]  }
 0x99d   : > { %8793 = vmatpush1.bf16.msra.mxu0 %v16681_v3  ;;  %8824 = vmatprep.mubr.bf16.mxu0 %v19875_v48  ;;  %v16752_v3 = vld [vmem:[%s21349_s10 + $0xd64] ss:$16 sps:$4 sm:$0xff]  }
 0x99e   : > { %7365 = vmatmul.mubr.bf16.vlgmr.msra.gmra.mrb[188].mxu1 %v19439_v45  ;;  %8794 = vmatprep.subr.bf16.mxu0 %v16689_v11  ;;  %v16693_v45 = vld [vmem:[%s21349_s10 + $0x1048] ss:$16 sps:$4 sm:$0xff]  }
 0x99f   : > { %7806 = vmatpush1.bf16.msra.mxu1 %v16684_v39  ;;  %7837 = vmatprep.mubr.bf16.mxu1 %v19449_v10  ;;  %v16696_v10 = vld [vmem:[%s21349_s10 + $0xc40] ss:$16 sps:$4 sm:$0xff]   ;;  %v16747_v11 = vld [vmem:[%s21349_s10 + $0x1168] ss:$16 sps:$4 sm:$0xff]   ;;  %v16755_v39 = vld [vmem:[%s21349_s10 + $0x118c] ss:$16 sps:$4 sm:$0xff]  }
 0x9a0   : > { %7807 = vmatprep.subr.bf16.mxu1 %v16692_v63  ;;  %v16750_v63 = vld [vmem:[%s21349_s10 + $0xd60] ss:$16 sps:$4 sm:$0xff]  }
 0x9a1   : > { %8795 = vmatpush1.bf16.msra.mxu0 %v16687_v8  ;;  %v16758_v8 = vld [vmem:[%s21349_s10 + $0xd84] ss:$16 sps:$4 sm:$0xff]  }
 0x9a2   : > { %8796 = vmatprep.subr.bf16.mxu0 %v16695_v2  ;;  %v16753_v2 = vld [vmem:[%s21349_s10 + $0x1188] ss:$16 sps:$4 sm:$0xff]  }
 0x9a3   : > { %7808 = vmatpush1.bf16.msra.mxu1 %v16690_v16  ;;  %v16761_v16 = vld [vmem:[%s21349_s10 + $0x11ac] ss:$16 sps:$4 sm:$0xff]  }
 0x9a4   : > { %7809 = vmatprep.subr.bf16.mxu1 %v16698_v33  ;;  %v16756_v33 = vld [vmem:[%s21349_s10 + $0xd80] ss:$16 sps:$4 sm:$0xff]  }
 0x9a5   : > { %8797 = vmatpush1.bf16.msra.mxu0 %v16693_v45  ;;  %v16764_v45 = vld [vmem:[%s21349_s10 + $0xda4] ss:$16 sps:$4 sm:$0xff]  }
 0x9a6   : > { %8798 = vmatprep.subr.bf16.mxu0 %v16701_v52  ;;  %v16759_v52 = vld [vmem:[%s21349_s10 + $0x11a8] ss:$16 sps:$4 sm:$0xff]  }
 0x9a7   : > { %7810 = vmatpush1.bf16.msra.mxu1 %v16696_v10  ;;  %v16767_v10 = vld [vmem:[%s21349_s10 + $0x11cc] ss:$16 sps:$4 sm:$0xff]  }
 0x9a8   : > { %7811 = vmatprep.subr.bf16.mxu1 %v16704_v17  ;;  %v16762_v17 = vld [vmem:[%s21349_s10 + $0xda0] ss:$16 sps:$4 sm:$0xff]  }
 0x9a9   : > { %8799 = vmatpush1.bf16.msra.mxu0 %v16699_v57  ;;  %v16770_v57 = vld [vmem:[%s21349_s10 + $0xdc4] ss:$16 sps:$4 sm:$0xff]  }
 0x9aa   : > { %8800 = vmatprep.subr.bf16.mxu0 %v16707_v50  ;;  %v16765_v50 = vld [vmem:[%s21349_s10 + $0x11c8] ss:$16 sps:$4 sm:$0xff]  }
 0x9ab   : > { %7812 = vmatpush1.bf16.msra.mxu1 %v16702_v29  ;;  %v16773_v29 = vld [vmem:[%s21349_s10 + $0x11ec] ss:$16 sps:$4 sm:$0xff]  }
 0x9ac   : > { %7813 = vmatprep.subr.bf16.mxu1 %v16710_v15  ;;  %v16768_v15 = vld [vmem:[%s21349_s10 + $0xdc0] ss:$16 sps:$4 sm:$0xff]  }
 0x9ad   : > { %8801 = vmatpush1.bf16.msra.mxu0 %v16705_v53  ;;  %v16776_v53 = vld [vmem:[%s21349_s10 + $0xde4] ss:$16 sps:$4 sm:$0xff]  }
 0x9ae   : > { %8802 = vmatprep.subr.bf16.mxu0 %v16713_v6  ;;  %v16771_v6 = vld [vmem:[%s21349_s10 + $0x11e8] ss:$16 sps:$4 sm:$0xff]  }
 0x9af   : > { %7814 = vmatpush1.bf16.msra.mxu1 %v16708_v47  ;;  %v6934_v35 = vpop.f32.mrb[92].mxu0  ;;  %v16774_v47 = vld [vmem:[%s21349_s10 + $0xde0] ss:$16 sps:$4 sm:$0xff]  }
 0x9b0   : > { %7815 = vmatprep.subr.bf16.mxu1 %v16716_v25  ;;  %v19945_v41 = vadd.f32 %v6934_v35, %v19729_v13  ;;  %v6936_v36 = vpop.f32.mrb[93].mxu0  ;;  %v16779_v25 = vld [vmem:[%s21349_s10 + $0xe04] ss:$16 sps:$4 sm:$0xff]  }
 0x9b1   : > { %8803 = vmatpush1.bf16.msra.mxu0 %v16711_v26  ;;  %v5947_v44 = vpop.f32.mrb[176].mxu1  ;;  %v19951_v46 = vadd.f32 %v6936_v36, %v19735_v14  ;;  %v6938_v24 = vpop.f32.mrb[94].mxu0  ;;  %v20075_v26 = vpack.c.bf16 %v18867_v30, %v18867_v30  ;;  %v16780_v30 = vld [vmem:[%s21349_s10 + $0xe20] ss:$16 sps:$4 sm:$0xff]   ;;  %v16785_v35 = vld [vmem:[%s21349_s10 + $0xe44] ss:$16 sps:$4 sm:$0xff]  }
 0x9b2   : > { %8804 = vmatprep.subr.bf16.mxu0 %v16719_v31  ;;  %v19957_v38 = vadd.f32 %v5947_v44, %v19741_v12  ;;  %v5949_v13 = vpop.f32.mrb[177].mxu1  ;;  %v6939_v0 = vpop.f32.mrb[95].mxu0  ;;  %v16723_v12 = vld [vmem:[%s21349_s10 + $0x10e8] ss:$16 sps:$4 sm:$0xff]   ;;  %v16777_v31 = vld [vmem:[%s21349_s10 + $0xe00] ss:$16 sps:$4 sm:$0xff]  }
 0x9b3   : > { %7816 = vmatpush1.bf16.msra.mxu1 %v16714_v34  ;;  %v19963_v56 = vadd.f32 %v5949_v13, %v19747_v21  ;;  %v5951_v14 = vpop.f32.mrb[178].mxu1  ;;  %v16726_v21 = vld [vmem:[%s21349_s10 + $0xce0] ss:$16 sps:$4 sm:$0xff]   ;;  %v16782_v34 = vld [vmem:[%s21349_s10 + $0xe24] ss:$16 sps:$4 sm:$0xff]  }
 0x9b4   : > { %7817 = vmatprep.subr.bf16.mxu1 %v16722_v40  ;;  %v5952_v54 = vpop.f32.mrb[179].mxu1  ;;  %v16783_v40 = vld [vmem:[%s21349_s10 + $0xe40] ss:$16 sps:$4 sm:$0xff]   ;;  %v16791_v36 = vld [vmem:[%s21349_s10 + $0xe84] ss:$16 sps:$4 sm:$0xff]  }
 0x9b5   : > { %8805 = vmatpush1.bf16.msra.mxu0 %v16717_v7  ;;  %v16789_v7 = vld [vmem:[%s21349_s10 + $0xe80] ss:$16 sps:$4 sm:$0xff]   ;;  %v16794_v44 = vld [vmem:[%s21349_s10 + $0xea4] ss:$16 sps:$4 sm:$0xff]  }
 0x9b6   : > { %8806 = vmatprep.subr.bf16.mxu0 %v16725_v60  ;;  %v16792_v24 = vld [vmem:[%s21349_s10 + $0xea0] ss:$16 sps:$4 sm:$0xff]   ;;  %v16797_v13 = vld [vmem:[%s21349_s10 + $0xec4] ss:$16 sps:$4 sm:$0xff]  }
 0x9b7   : > { %7818 = vmatpush1.bf16.msra.mxu1 %v16720_v51 }
 0x9b8   : > { %7819 = vmatprep.subr.bf16.mxu1 %v16728_v37 }
 0x9b9   : > { %8807 = vmatpush1.bf16.msra.mxu0 %v16723_v12 }
 0x9ba   : > { %8808 = vmatprep.subr.bf16.mxu0 %v16731_v4 }
 0x9bb   : > { %7820 = vmatpush1.bf16.msra.mxu1 %v16726_v21 }
 0x9bc   : > { %7821 = vmatprep.subr.bf16.mxu1 %v16734_v9  ;;  %v16795_v9 = vld [vmem:[%s21349_s10 + $0xec0] ss:$16 sps:$4 sm:$0xff]  }
 0x9bd   : > { %8809 = vmatpush1.bf16.msra.mxu0 %v16729_v19 }
 0x9be   : > { %8810 = vmatprep.subr.bf16.mxu0 %v16737_v42 }
 0x9bf   : > { %7822 = vmatpush1.bf16.msra.mxu1 %v16732_v20  ;;  %v16803_v20 = vld [vmem:[%s21349_s10 + $0xf04] ss:$16 sps:$4 sm:$0xff]  }
 0x9c0   : > { %7823 = vmatprep.subr.bf16.mxu1 %v16740_v58  ;;  %v16806_v58 = vld [vmem:[%s21349_s10 + $0xf24] ss:$16 sps:$4 sm:$0xff]  }
 0x9c1   : > { %8811 = vmatpush1.bf16.msra.mxu0 %v16735_v59  ;;  %v16804_v59 = vld [vmem:[%s21349_s10 + $0xf20] ss:$16 sps:$4 sm:$0xff]  }
 0x9c2   : > { %8812 = vmatprep.subr.bf16.mxu0 %v16743_v61  ;;  %v16809_v61 = vld [vmem:[%s21349_s10 + $0xf44] ss:$16 sps:$4 sm:$0xff]  }
 0x9c3   : > { %7824 = vmatpush1.bf16.msra.mxu1 %v16738_v62  ;;  %v16807_v62 = vld [vmem:[%s21349_s10 + $0xf40] ss:$16 sps:$4 sm:$0xff]  }
 0x9c4   : > { %7825 = vmatprep.subr.bf16.mxu1 %v16746_v55  ;;  %v16812_v55 = vld [vmem:[%s21349_s10 + $0xf64] ss:$16 sps:$4 sm:$0xff]  }
 0x9c5   : > { %8813 = vmatpush1.bf16.msra.mxu0 %v16741_v1  ;;  %v16810_v1 = vld [vmem:[%s21349_s10 + $0xf60] ss:$16 sps:$4 sm:$0xff]  }
 0x9c6   : > { %8814 = vmatprep.subr.bf16.mxu0 %v16749_v43  ;;  %v16815_v43 = vld [vmem:[%s21349_s10 + $0xf84] ss:$16 sps:$4 sm:$0xff]  }
 0x9c7   : > { %7826 = vmatpush1.bf16.msra.mxu1 %v16744_v27  ;;  %v16813_v27 = vld [vmem:[%s21349_s10 + $0xf80] ss:$16 sps:$4 sm:$0xff]  }
 0x9c8   : > { %7827 = vmatprep.subr.bf16.mxu1 %v16752_v3  ;;  %v16818_v3 = vld [vmem:[%s21349_s10 + $0xfa4] ss:$16 sps:$4 sm:$0xff]  }
 0x9c9   : > { %8815 = vmatpush1.bf16.msra.mxu0 %v16747_v11  ;;  %v16816_v11 = vld [vmem:[%s21349_s10 + $0xfa0] ss:$16 sps:$4 sm:$0xff]  }
 0x9ca   : > { %8816 = vmatprep.subr.bf16.mxu0 %v16755_v39  ;;  %v16821_v39 = vld [vmem:[%s21349_s10 + $0xfc4] ss:$16 sps:$4 sm:$0xff]  }
 0x9cb   : > { %7828 = vmatpush1.bf16.msra.mxu1 %v16750_v63  ;;  %v16819_v63 = vld [vmem:[%s21349_s10 + $0xfc0] ss:$16 sps:$4 sm:$0xff]  }
 0x9cc   : > { %7829 = vmatprep.subr.bf16.mxu1 %v16758_v8  ;;  %v16824_v8 = vld [vmem:[%s21349_s10 + $0xfe4] ss:$16 sps:$4 sm:$0xff]  }
 0x9cd   : > { %8817 = vmatpush1.bf16.msra.mxu0 %v16753_v2  ;;  %v16822_v2 = vld [vmem:[%s21349_s10 + $0xfe0] ss:$16 sps:$4 sm:$0xff]  }
 0x9ce   : > { %8818 = vmatprep.subr.bf16.mxu0 %v16761_v16  ;;  %v16827_v16 = vld [vmem:[%s21349_s10 + $0x1004] ss:$16 sps:$4 sm:$0xff]  }
 0x9cf   : > { %7830 = vmatpush1.bf16.msra.mxu1 %v16756_v33  ;;  %v16825_v33 = vld [vmem:[%s21349_s10 + $0x1000] ss:$16 sps:$4 sm:$0xff]  }
 0x9d0   : > { %7831 = vmatprep.subr.bf16.mxu1 %v16764_v45  ;;  %v16830_v45 = vld [vmem:[%s21349_s10 + $0x1024] ss:$16 sps:$4 sm:$0xff]  }
 0x9d1   : > { %8819 = vmatpush1.bf16.msra.mxu0 %v16759_v52  ;;  %v16828_v52 = vld [vmem:[%s21349_s10 + $0x1020] ss:$16 sps:$4 sm:$0xff]  }
 0x9d2   : > { %8820 = vmatprep.subr.bf16.mxu0 %v16767_v10  ;;  %v16833_v10 = vld [vmem:[%s21349_s10 + $0x1044] ss:$16 sps:$4 sm:$0xff]  }
 0x9d3   : > { %7832 = vmatpush1.bf16.msra.mxu1 %v16762_v17  ;;  %v16831_v17 = vld [vmem:[%s21349_s10 + $0x1040] ss:$16 sps:$4 sm:$0xff]  }
 0x9d4   : > { %7833 = vmatprep.subr.bf16.mxu1 %v16770_v57  ;;  %v16839_v57 = vld [vmem:[%s21349_s10 + $0x1084] ss:$16 sps:$4 sm:$0xff]  }
 0x9d5   : > { %8821 = vmatpush1.bf16.msra.mxu0 %v16765_v50  ;;  %v16837_v50 = vld [vmem:[%s21349_s10 + $0x1080] ss:$16 sps:$4 sm:$0xff]  }
 0x9d6   : > { %8822 = vmatprep.subr.bf16.mxu0 %v16773_v29  ;;  %v16842_v29 = vld [vmem:[%s21349_s10 + $0x10a4] ss:$16 sps:$4 sm:$0xff]  }
 0x9d7   : > { %7834 = vmatpush1.bf16.msra.mxu1 %v16768_v15 }
 0x9d8   : > { %7835 = vmatprep.subr.bf16.mxu1 %v16776_v53  ;;  %v16840_v53 = vld [vmem:[%s21349_s10 + $0x10a0] ss:$16 sps:$4 sm:$0xff]  }
 0x9d9   : > { %8823 = vmatpush1.bf16.msra.mxu0 %v16771_v6 }
 0x9db   : > { %7836 = vmatpush1.bf16.msra.mxu1 %v16774_v47 }
 0x9dc   : > { %8825 = vmatmul.mubr.bf16.vlgmr.msra.gmra.mrb[108].mxu0 %v20075_v26  ;;  %8278 = vmatprep.subr.bf16.mxu1 %v16779_v25  ;;  %v16845_v25 = vld [vmem:[%s21349_s10 + $0x10c4] ss:$16 sps:$4 sm:$0xff]  }
 0x9de   : > { %7838 = vmatmul.mubr.bf16.vlgmr.msra.gmra.mrb[192].mxu1 %v19649_v18  ;;  %v16788_v18 = vld [vmem:[%s21349_s10 + $0xe64] ss:$16 sps:$4 sm:$0xff]  }
 0x9df   : > { %8279 = vmatpush1.bf16.msra.mxu1 %v16777_v31  ;;  %8310 = vmatprep.mubr.bf16.mxu1 %v19659_v49  ;;  %v16786_v49 = vld [vmem:[%s21349_s10 + $0xe60] ss:$16 sps:$4 sm:$0xff]  }
 0x9e0   : > { %8280 = vmatprep.subr.bf16.mxu1 %v16782_v34 }
 0x9e3   : > { %8281 = vmatpush1.bf16.msra.mxu1 %v16780_v30 }
 0x9e4   : > { %8282 = vmatprep.subr.bf16.mxu1 %v16785_v35 }
 0x9e7   : > { %8283 = vmatpush1.bf16.msra.mxu1 %v16783_v40 }
 0x9e8   : > { %8284 = vmatprep.subr.bf16.mxu1 %v16788_v18 }
 0x9eb   : > { %8285 = vmatpush1.bf16.msra.mxu1 %v16786_v49 }
 0x9ec   : > { %8286 = vmatprep.subr.bf16.mxu1 %v16791_v36  ;;  %v16843_v36 = vld [vmem:[%s21349_s10 + $0x10c0] ss:$16 sps:$4 sm:$0xff]  }
 0x9ef   : > { %8287 = vmatpush1.bf16.msra.mxu1 %v16789_v7  ;;  %v7407_v60 = vpop.f32.mrb[96].mxu0 }
 0x9f0   : > { %8288 = vmatprep.subr.bf16.mxu1 %v16794_v44  ;;  %v20117_v0 = vadd.f32 %v7407_v60, %v19945_v41  ;;  %v7409_v51 = vpop.f32.mrb[97].mxu0  ;;  %v16848_v44 = vld [vmem:[%s21349_s10 + $0x10e4] ss:$16 sps:$4 sm:$0xff]   ;;  %v16846_v60 = vld [vmem:[%s21349_s10 + $0x10e0] ss:$16 sps:$4 sm:$0xff]  }
 0x9f1   : > { %v6420_v14 = vpop.f32.mrb[180].mxu1  ;;  %v20120_v37 = vadd.f32 %v7409_v51, %v19951_v46  ;;  %v7411_v54 = vpop.f32.mrb[98].mxu0  ;;  %v16800_v46 = vld [vmem:[%s21349_s10 + $0xee4] ss:$16 sps:$4 sm:$0xff]  }
 0x9f2   : > { %v20123_v12 = vadd.f32 %v6420_v14, %v19957_v38  ;;  %v6422_v4 = vpop.f32.mrb[181].mxu1  ;;  %v7412_v21 = vpop.f32.mrb[99].mxu0  ;;  %v16798_v38 = vld [vmem:[%s21349_s10 + $0xee0] ss:$16 sps:$4 sm:$0xff]   ;;  %v16854_v51 = vld [vmem:[%s21349_s10 + $0x1124] ss:$16 sps:$4 sm:$0xff]  }
 0x9f3   : > { %8289 = vmatpush1.bf16.msra.mxu1 %v16792_v24  ;;  %v20129_v19 = vadd.f32 %v6422_v4, %v19963_v56  ;;  %v6424_v41 = vpop.f32.mrb[182].mxu1  ;;  %v16801_v56 = vld [vmem:[%s21349_s10 + $0xf00] ss:$16 sps:$4 sm:$0xff]   ;;  %v16863_v21 = vld [vmem:[%s21349_s10 + $0x1184] ss:$16 sps:$4 sm:$0xff]  }
 0x9f4   : > { %8290 = vmatprep.subr.bf16.mxu1 %v16797_v13  ;;  %v6425_v42 = vpop.f32.mrb[183].mxu1  ;;  %v16851_v13 = vld [vmem:[%s21349_s10 + $0x1104] ss:$16 sps:$4 sm:$0xff]   ;;  %v16852_v14 = vld [vmem:[%s21349_s10 + $0x1120] ss:$16 sps:$4 sm:$0xff]  }
 0x9f5   : > { %v16855_v54 = vld [vmem:[%s21349_s10 + $0x1140] ss:$16 sps:$4 sm:$0xff]  }
 0x9f6   : > { %v16858_v4 = vld [vmem:[%s21349_s10 + $0x1160] ss:$16 sps:$4 sm:$0xff]  }
 0x9f7   : > { %8291 = vmatpush1.bf16.msra.mxu1 %v16795_v9  ;;  %v16861_v9 = vld [vmem:[%s21349_s10 + $0x1180] ss:$16 sps:$4 sm:$0xff]  }
 0x9f8   : > { %8292 = vmatprep.subr.bf16.mxu1 %v16800_v46  ;;  %v16864_v41 = vld [vmem:[%s21349_s10 + $0x11a0] ss:$16 sps:$4 sm:$0xff]   ;;  %v16869_v46 = vld [vmem:[%s21349_s10 + $0x11c4] ss:$16 sps:$4 sm:$0xff]  }
 0x9f9   : > { %v16867_v42 = vld [vmem:[%s21349_s10 + $0x11c0] ss:$16 sps:$4 sm:$0xff]  }
 0x9fb   : > { %8293 = vmatpush1.bf16.msra.mxu1 %v16798_v38  ;;  %v16872_v38 = vld [vmem:[%s21349_s10 + $0x11e4] ss:$16 sps:$4 sm:$0xff]  }
 0x9fc   : > { %8294 = vmatprep.subr.bf16.mxu1 %v16803_v20  ;;  %v16870_v20 = vld [vmem:[%s21349_s10 + $0x11e0] ss:$16 sps:$4 sm:$0xff]  }
 0x9ff   : > { %8295 = vmatpush1.bf16.msra.mxu1 %v16801_v56 }
 0xa00   : > { %8296 = vmatprep.subr.bf16.mxu1 %v16806_v58 }
 0xa03   : > { %8297 = vmatpush1.bf16.msra.mxu1 %v16804_v59 }
 0xa04   : > { %8298 = vmatprep.subr.bf16.mxu1 %v16809_v61 }
 0xa07   : > { %8299 = vmatpush1.bf16.msra.mxu1 %v16807_v62 }
 0xa08   : > { %8300 = vmatprep.subr.bf16.mxu1 %v16812_v55 }
 0xa0b   : > { %8301 = vmatpush1.bf16.msra.mxu1 %v16810_v1 }
 0xa0c   : > { %8302 = vmatprep.subr.bf16.mxu1 %v16815_v43 }
 0xa0f   : > { %8303 = vmatpush1.bf16.msra.mxu1 %v16813_v27 }
 0xa10   : > { %8304 = vmatprep.subr.bf16.mxu1 %v16818_v3 }
 0xa13   : > { %8305 = vmatpush1.bf16.msra.mxu1 %v16816_v11 }
 0xa14   : > { %8306 = vmatprep.subr.bf16.mxu1 %v16821_v39 }
 0xa17   : > { %8307 = vmatpush1.bf16.msra.mxu1 %v16819_v63 }
 0xa18   : > { %8308 = vmatprep.subr.bf16.mxu1 %v16824_v8 }
 0xa1b   : > { %8309 = vmatpush1.bf16.msra.mxu1 %v16822_v2 }
 0xa1c   : > { %8751 = vmatprep.subr.bf16.mxu1 %v16827_v16 }
 0xa1e   : > { %8311 = vmatmul.mubr.bf16.vlgmr.msra.gmra.mrb[196].mxu1 %v19865_v5  ;;  %v16836_v5 = vld [vmem:[%s21349_s10 + $0x1064] ss:$16 sps:$4 sm:$0xff]  }
 0xa1f   : > { %8752 = vmatpush1.bf16.msra.mxu1 %v16825_v33  ;;  %8783 = vmatprep.mubr.bf16.mxu1 %v19875_v48  ;;  %v16834_v48 = vld [vmem:[%s21349_s10 + $0x1060] ss:$16 sps:$4 sm:$0xff]  }
 0xa20   : > { %8753 = vmatprep.subr.bf16.mxu1 %v16830_v45 }
 0xa23   : > { %8754 = vmatpush1.bf16.msra.mxu1 %v16828_v52 }
 0xa24   : > { %8755 = vmatprep.subr.bf16.mxu1 %v16833_v10 }
 0xa27   : > { %8756 = vmatpush1.bf16.msra.mxu1 %v16831_v17 }
 0xa28   : > { %8757 = vmatprep.subr.bf16.mxu1 %v16836_v5 }
 0xa2b   : > { %8758 = vmatpush1.bf16.msra.mxu1 %v16834_v48 }
 0xa2c   : > { %8759 = vmatprep.subr.bf16.mxu1 %v16839_v57 }
 0xa2f   : > { %v7880_v15 = vpop.f32.mrb[100].mxu0  ;;  %8760 = vmatpush1.bf16.msra.mxu1 %v16837_v50 }
 0xa30   : > { %v7889_v6 = vadd.f32 %v7880_v15, %v20117_v0  ;;  %v7882_v47 = vpop.f32.mrb[101].mxu0  ;;  %8761 = vmatprep.subr.bf16.mxu1 %v16842_v29  ;;  %v16849_v0 = vld [vmem:[%s21349_s10 + $0x1100] ss:$16 sps:$4 sm:$0xff]  }
 0xa31   : > { %v7890_v31 = vadd.f32 %v7882_v47, %v20120_v37  ;;  %v6893_v34 = vpop.f32.mrb[184].mxu1  ;;  %v7884_v30 = vpop.f32.mrb[102].mxu0  ;;  %v16857_v37 = vld [vmem:[%s21349_s10 + $0x1144] ss:$16 sps:$4 sm:$0xff]   ;;  %v8849_v47 = vsub.s32 2, %v18420_v23 }
 0xa32   : > { %v6941_v35 = vadd.f32 %v6893_v34, %v20123_v12  ;;  %v6895_v40 = vpop.f32.mrb[185].mxu1  ;;  %v7885_v18 = vpop.f32.mrb[103].mxu0  ;;  %v16860_v12 = vld [vmem:[%s21349_s10 + $0x1164] ss:$16 sps:$4 sm:$0xff]  }
 0xa33   : > { %v6942_v49 = vadd.f32 %v6895_v40, %v20129_v19  ;;  %8762 = vmatpush1.bf16.msra.mxu1 %v16840_v53  ;;  %v6897_v7 = vpop.f32.mrb[186].mxu1  ;;  %v16866_v19 = vld [vmem:[%s21349_s10 + $0x11a4] ss:$16 sps:$4 sm:$0xff]  }
 0xa34   : > { %8763 = vmatprep.subr.bf16.mxu1 %v16845_v25  ;;  %v6898_v24 = vpop.f32.mrb[187].mxu1  ;;  %v8837_v25 = vld [vmem:[%s21350_s11] sm:$0xf] }
 0xa35   : > { %v8850_v34 = vrot.slane %v8837_v25, %v8849_v47 }
 0xa37   : > { %8764 = vmatpush1.bf16.msra.mxu1 %v16843_v36 }
 0xa38   : > { %8765 = vmatprep.subr.bf16.mxu1 %v16848_v44 }
 0xa3b   : > { %8766 = vmatpush1.bf16.msra.mxu1 %v16846_v60 }
 0xa3c   : > { %8767 = vmatprep.subr.bf16.mxu1 %v16851_v13 }
 0xa3f   : > { %8768 = vmatpush1.bf16.msra.mxu1 %v16849_v0 }
 0xa40   : > { %8769 = vmatprep.subr.bf16.mxu1 %v16854_v51 }
 0xa43   : > { %8770 = vmatpush1.bf16.msra.mxu1 %v16852_v14 }
 0xa44   : > { %8771 = vmatprep.subr.bf16.mxu1 %v16857_v37 }
 0xa47   : > { %8772 = vmatpush1.bf16.msra.mxu1 %v16855_v54 }
 0xa48   : > { %8773 = vmatprep.subr.bf16.mxu1 %v16860_v12 }
 0xa4b   : > { %8774 = vmatpush1.bf16.msra.mxu1 %v16858_v4 }
 0xa4c   : > { %8775 = vmatprep.subr.bf16.mxu1 %v16863_v21 }
 0xa4f   : > { %8776 = vmatpush1.bf16.msra.mxu1 %v16861_v9 }
 0xa50   : > { %8777 = vmatprep.subr.bf16.mxu1 %v16866_v19 }
 0xa53   : > { %8778 = vmatpush1.bf16.msra.mxu1 %v16864_v41  ;;  %v16879_v41 = vld [vmem:[%s21352_s13 + $0x1c0] sm:$0xff]  }
 0xa54   : > { %8779 = vmatprep.subr.bf16.mxu1 %v16869_v46  ;;  %v16881_v46 = vld [vmem:[%s21352_s13 + $0x180] sm:$0xff]   ;;  %14911 = vmatprep.subr.bf16.mxu0 %v16879_v41 }
 0xa55   : > { %14912 = vmatpush3.bf16.msra.mxu0 %v16881_v46 }
 0xa57   : > { %8780 = vmatpush1.bf16.msra.mxu1 %v16867_v42  ;;  %v16883_v42 = vld [vmem:[%s21352_s13 + $0x1c8] sm:$0xff]  }
 0xa58   : > { %8781 = vmatprep.subr.bf16.mxu1 %v16872_v38  ;;  %14913 = vmatprep.subr.bf16.mxu0 %v16883_v42 }
 0xa5b   : > { %8782 = vmatpush1.bf16.msra.mxu1 %v16870_v20  ;;  %v16885_v20 = vld [vmem:[%s21352_s13 + $0x188] sm:$0xff]  }
 0xa5c   : > { %14914 = vmatpush3.bf16.msra.mxu0 %v16885_v20 }
 0xa5e   : > { %8784 = vmatmul.mubr.bf16.vlgmr.msra.gmra.mrb[200].mxu1 %v20075_v26 }
 0xa5f   : > { %9058 = vmatprep.mubr.bf16.mxu1 %v17189_v22 }
 0xa6f   : > { %v8353_v56 = vpop.f32.mrb[104].mxu0 }
 0xa70   : > { %v8362_v58 = vadd.f32 %v8353_v56, %v7889_v6  ;;  %v8355_v59 = vpop.f32.mrb[105].mxu0 }
 0xa71   : > { %v8363_v61 = vadd.f32 %v8355_v59, %v7890_v31  ;;  %v7366_v62 = vpop.f32.mrb[188].mxu1  ;;  %v8357_v55 = vpop.f32.mrb[106].mxu0  ;;  %v8853_v31 = vsub.s32 3, %v18420_v23 }
 0xa72   : > { %v7414_v1 = vadd.f32 %v7366_v62, %v6941_v35  ;;  %v7368_v43 = vpop.f32.mrb[189].mxu1  ;;  %v8358_v27 = vpop.f32.mrb[107].mxu0  ;;  %v8846_v55 = vrot.slane %v8837_v25, %v4389_v32 }
 0xa73   : > { %v7415_v3 = vadd.f32 %v7368_v43, %v6942_v49  ;;  %v7370_v11 = vpop.f32.mrb[190].mxu1  ;;  %v8854_v30 = vrot.slane %v8837_v25, %v8853_v31 }
 0xa74   : > { %v7371_v39 = vpop.f32.mrb[191].mxu1 }
 0xaaf   : > { %v8826_v63 = vpop.f32.mrb[108].mxu0 }
 0xab0   : > { %v8835_v8 = vadd.f32 %v8826_v63, %v8362_v58  ;;  %v8828_v2 = vpop.f32.mrb[109].mxu0  ;;  %v8842_v58 = vrot.slane %v8837_v25, %v4385_v28 }
 0xab1   : > { %v8836_v16 = vadd.f32 %v8828_v2, %v8363_v61  ;;  %v7839_v33 = vpop.f32.mrb[192].mxu1  ;;  %v8830_v26 = vpop.f32.mrb[110].mxu0 }
 0xab2   : > { %v7887_v45 = vadd.f32 %v7839_v33, %v7414_v1  ;;  %v7841_v52 = vpop.f32.mrb[193].mxu1  ;;  %v8831_v10 = vpop.f32.mrb[111].mxu0  ;;  %v8861_v35 = vadd.f32 %v8850_v34, %v8835_v8 }
 0xab3   : > { %v7888_v17 = vadd.f32 %v7841_v52, %v7415_v3  ;;  %v7843_v5 = vpop.f32.mrb[194].mxu1  ;;  %v8862_v40 = vadd.f32 %v8854_v30, %v8836_v16 }
 0xab4   : > { %v7844_v48 = vpop.f32.mrb[195].mxu1  ;;  %v8869_v18 = vmul.f32 0.2, %v8861_v35  ;;  %vm8865_vm2 = vcmp.ge.f32.partialorder %v8861_v35, 0.0 }
 0xab5   : > { %v8870_v49 = vmul.f32 0.2, %v8862_v40  ;;  %vm8866_vm3 = vcmp.ge.f32.partialorder %v8862_v40, 0.0 }
 0xab6   : > { %v8873_v36 = vsel %vm8865_vm2, %v8861_v35, %v8869_v18 }
 0xab7   : > { %v8874_v7 = vsel %vm8866_vm3, %v8862_v40, %v8870_v49  ;;  %v8890_v44 = vsel %vm8875_vm4, %v8873_v36, 0.0 }
 0xab8   : > { %v8897_v24 = vsel %vm8875_vm4, %v8874_v7, 0.0  ;;  %v8891_v60 = vrot.slane %v8890_v44, 4 }
 0xab9   : > { %v8898_v13 = vrot.slane %v8897_v24, 4 }
 0xaba   : > { %v8892_v0 = vadd.f32 %v8891_v60, %v8890_v44 }
 0xabb   : > { %v8899_v51 = vadd.f32 %v8898_v13, %v8897_v24 }
 0xabc   : > { %v8893_v14 = vrot.slane %v8892_v0, 2 }
 0xabd   : > { %v8900_v37 = vrot.slane %v8899_v51, 2 }
 0xabe   : > { %v8894_v54 = vadd.f32 %v8893_v14, %v8892_v0 }
 0xabf   : > { %v8901_v12 = vadd.f32 %v8900_v37, %v8899_v51 }
 0xac0   : > { %v8895_v4 = vrot.slane %v8894_v54, 1 }
 0xac1   : > { %v8902_v21 = vrot.slane %v8901_v12, 1 }
 0xac2   : > { %v8896_v9 = vadd.f32 %v8895_v4, %v8894_v54 }
 0xac3   : > { %v8903_v19 = vadd.f32 %v8902_v21, %v8901_v12 }
 0xac4   : > { %v8907_v38 = vmul.f32 0.25, %v8896_v9 }
 0xac5   : > { %v8908_v56 = vmul.f32 0.25, %v8903_v19 }
 0xac6   : > { %v20310_v59 = vsub.f32 %v8873_v36, %v8907_v38 }
 0xac7   : > { %v20312_v61 = vsub.f32 %v8874_v7, %v8908_v56 }
 0xac8   : > { %v8915_v63 = vmul.f32 %v20310_v59, %v20310_v59 }
 0xac9   : > { %v8916_v28 = vmul.f32 %v20312_v61, %v20312_v61 }
 0xaca   : > { %v8931_v23 = vsel %vm8875_vm4, %v8915_v63, 0.0 }
 0xacb   : > { %v8938_v32 = vsel %vm8875_vm4, %v8916_v28, 0.0  ;;  %v8932_v5 = vrot.slane %v8931_v23, 4 }
 0xacc   : > { %v8939_v48 = vrot.slane %v8938_v32, 4 }
 0xaf1   : > { %v8312_v57 = vpop.f32.mrb[196].mxu1 }
 0xaf2   : > { %v8360_v50 = vadd.f32 %v8312_v57, %v7887_v45  ;;  %v8314_v29 = vpop.f32.mrb[197].mxu1 }
 0xaf3   : > { %v8361_v15 = vadd.f32 %v8314_v29, %v7888_v17  ;;  %v8316_v53 = vpop.f32.mrb[198].mxu1 }
 0xaf4   : > { %v8317_v6 = vpop.f32.mrb[199].mxu1  ;;  %v8933_v53 = vadd.f32 %v8932_v5, %v8931_v23 }
 0xaf5   : > { %v8940_v6 = vadd.f32 %v8939_v48, %v8938_v32  ;;  %v16873_v48 = vld [vmem:[%s21351_s12] sm:$0xff]  }
 0xaf6   : > { %v8934_v30 = vrot.slane %v8933_v53, 2 }
 0xaf7   : > { %v8941_v35 = vrot.slane %v8940_v6, 2 }
 0xaf8   : > { %v8935_v7 = vadd.f32 %v8934_v30, %v8933_v53  ;;  %v16877_v53 = vld [vmem:[%s21351_s12 + $0x20] ss:$0 sps:$4 sm:$0xff]   ;;  %v16890_v30 = vld [vmem:[%s21352_s13 + $0x158] sm:$0xff]  }
 0xaf9   : > { %v8942_v44 = vadd.f32 %v8941_v35, %v8940_v6  ;;  %v16880_v6 = vld [vmem:[%s21352_s13 + $0x100] sm:$0xff]   ;;  %v16892_v35 = vld [vmem:[%s21352_s13 + $0x118] sm:$0xff]  }
 0xafa   : > { %v8936_v51 = vrot.slane %v8935_v7, 1 }
 0xafb   : > { %v8943_v14 = vrot.slane %v8942_v44, 1 }
 0xafc   : > { %v8937_v9 = vadd.f32 %v8936_v51, %v8935_v7  ;;  %v16904_v7 = vld [vmem:[%s21352_s13 + $0x130] sm:$0xff]   ;;  %v16891_v51 = vld [vmem:[%s21352_s13 + $0x1d8] sm:$0xff]  }
 0xafd   : > { %v8944_v19 = vadd.f32 %v8943_v14, %v8942_v44  ;;  %v16906_v44 = vld [vmem:[%s21352_s13 + $0x178] sm:$0xff]  }
 0xafe   : > { %v8947_v20 = vmul.f32 0.25, %v8937_v9  ;;  %v16893_v14 = vld [vmem:[%s21352_s13 + $0x198] sm:$0xff]   ;;  %v16905_v9 = vld [vmem:[%s21352_s13 + $0x1b0] sm:$0xff]  }
 0xaff   : > { %v8948_v56 = vmul.f32 0.25, %v8944_v19  ;;  %v16907_v19 = vld [vmem:[%s21352_s13 + $0x1f8] sm:$0xff]  }
 0xb31   : > { %v8785_v62 = vpop.f32.mrb[200].mxu1 }
 0xb32   : > { %v8833_v1 = vadd.f32 %v8785_v62, %v8360_v50  ;;  %v8787_v43 = vpop.f32.mrb[201].mxu1 }
 0xb33   : > { %v8834_v27 = vadd.f32 %v8787_v43, %v8361_v15  ;;  %v8789_v3 = vpop.f32.mrb[202].mxu1  ;;  %v8951_v43 = vadd.f32 1e-05, %v8947_v20 }
 0xb34   : > { %v8859_v11 = vadd.f32 %v8842_v58, %v8833_v1  ;;  %v8790_v39 = vpop.f32.mrb[203].mxu1 }
 0xb35   : > { %v8860_v8 = vadd.f32 %v8846_v55, %v8834_v27  ;;  %v8952_v27 = vadd.f32 1e-05, %v8948_v56  ;;  %17172 = vrsqrt.f32 %v8951_v43 }
 0xb36   : > { %vm8863_vm5 = vcmp.ge.f32.partialorder %v8859_v11, 0.0  ;;  %v8867_v2 = vmul.f32 0.2, %v8859_v11 }
 0xb37   : > { %vm8864_vm6 = vcmp.ge.f32.partialorder %v8860_v8, 0.0  ;;  %v8868_v16 = vmul.f32 0.2, %v8860_v8  ;;  %17174 = vrsqrt.f32 %v8952_v27 }
 0xb38   : > { %v8871_v33 = vsel %vm8863_vm5, %v8859_v11, %v8867_v2 }
 0xb39   : > { %v8876_v26 = vsel %vm8875_vm4, %v8871_v33, 0.0  ;;  %v8872_v45 = vsel %vm8864_vm6, %v8860_v8, %v8868_v16 }
 0xb3a   : > { %v8877_v52 = vrot.slane %v8876_v26, 4  ;;  %v8883_v10 = vsel %vm8875_vm4, %v8872_v45, 0.0 }
 0xb3b   : > { %v8884_v17 = vrot.slane %v8883_v10, 4 }
 0xb3c   : > { %v8878_v57 = vadd.f32 %v8877_v52, %v8876_v26 }
 0xb3d   : > { %v8885_v50 = vadd.f32 %v8884_v17, %v8883_v10 }
 0xb3e   : > { %v8879_v29 = vrot.slane %v8878_v57, 2 }
 0xb3f   : > { %v8886_v15 = vrot.slane %v8885_v50, 2  ;;  %v17173_v8 = vpop.eup %17172 }
 0xb40   : > { %v8880_v47 = vadd.f32 %v8879_v29, %v8878_v57  ;;  %v16875_v29 = vld [vmem:[%s21351_s12 + $0x10] sm:$0xff]  }
 0xb41   : > { %v8887_v25 = vadd.f32 %v8886_v15, %v8885_v50  ;;  %v17175_v2 = vpop.eup %17174  ;;  %v16874_v50 = vld [vmem:[%s21351_s12 + $0x8] sm:$0xff]   ;;  %v16876_v15 = vld [vmem:[%s21351_s12 + $0x18] sm:$0xff]  }
 0xb42   : > { %v8881_v31 = vrot.slane %v8880_v47, 1  ;;  %v8960_v26 = vmul.f32 %v17175_v2, %v20312_v61  ;;  %v16878_v61 = vld [vmem:[%s21352_s13 + $0x140] sm:$0xff]   ;;  %v16922_v2 = vld [vmem:[%s21352_s13 + $0x58] sm:$0xff]  }
 0xb43   : > { %v8888_v34 = vrot.slane %v8887_v25, 1 }
 0xb44   : > { %v8882_v40 = vadd.f32 %v8881_v31, %v8880_v47  ;;  %v8964_v5 = vpack.c.bf16 %v8960_v26, %v8960_v26  ;;  %v16882_v47 = vld [vmem:[%s21352_s13 + $0x148] sm:$0xff]   ;;  %v16886_v31 = vld [vmem:[%s21352_s13 + $0x150] sm:$0xff]  }
 0xb45   : > { %v8889_v18 = vadd.f32 %v8888_v34, %v8887_v25  ;;  %v16884_v25 = vld [vmem:[%s21352_s13 + $0x108] sm:$0xff]   ;;  %v16888_v34 = vld [vmem:[%s21352_s13 + $0x110] sm:$0xff]  }
 0xb46   : > { %v8905_v49 = vmul.f32 0.25, %v8882_v40  ;;  %v16894_v40 = vld [vmem:[%s21352_s13 + $0x160] sm:$0xff]  }
 0xb47   : > { %v8906_v36 = vmul.f32 0.25, %v8889_v18  ;;  %v16896_v18 = vld [vmem:[%s21352_s13 + $0x120] sm:$0xff]  }
 0xb48   : > { %v8909_v24 = vsub.f32 %v8871_v33, %v8905_v49  ;;  %v16900_v49 = vld [vmem:[%s21352_s13 + $0x128] sm:$0xff]  }
 0xb49   : > { %v8910_v60 = vsub.f32 %v8872_v45, %v8906_v36  ;;  %v8959_v45 = vmul.f32 %v17173_v8, %v20310_v59  ;;  %v16902_v36 = vld [vmem:[%s21352_s13 + $0x170] sm:$0xff]  }
 0xb4a   : > { %v8913_v13 = vmul.f32 %v8909_v24, %v8909_v24  ;;  %v16920_v8 = vld [vmem:[%s21352_s13 + $0x10] sm:$0xff]  }
 0xb4b   : > { %v8914_v0 = vmul.f32 %v8910_v60, %v8910_v60  ;;  %v8963_v57 = vpack.c.bf16 %v8959_v45, %v8959_v45 }
 0xb4c   : > { %v8917_v37 = vsel %vm8875_vm4, %v8913_v13, 0.0  ;;  %v16889_v13 = vld [vmem:[%s21352_s13 + $0x190] sm:$0xff]  }
 0xb4d   : > { %v8924_v54 = vsel %vm8875_vm4, %v8914_v0, 0.0  ;;  %v8918_v12 = vrot.slane %v8917_v37, 4  ;;  %v9021_v59 = vsel %vm9013_vm7, %v8963_v57, 0  ;;  %v16910_v0 = vld [vmem:[%s21352_s13 + $0x40] sm:$0xff]   ;;  %v16934_v57 = vld [vmem:[%s21352_s13 + $0x70] sm:$0xff]  }
 0xb4e   : > { %v8925_v4 = vrot.slane %v8924_v54, 4 }
 0xb4f   : > { %v8919_v21 = vadd.f32 %v8918_v12, %v8917_v37  ;;  %v16895_v37 = vld [vmem:[%s21352_s13 + $0x1e0] sm:$0xff]   ;;  %v16899_v12 = vld [vmem:[%s21352_s13 + $0x1e8] sm:$0xff]  }
 0xb50   : > { %v8926_v41 = vadd.f32 %v8925_v4, %v8924_v54  ;;  %v16897_v54 = vld [vmem:[%s21352_s13 + $0x1a0] sm:$0xff]   ;;  %v16901_v4 = vld [vmem:[%s21352_s13 + $0x1a8] sm:$0xff]  }
 0xb51   : > { %v8920_v46 = vrot.slane %v8919_v21, 2 }
 0xb52   : > { %v8927_v42 = vrot.slane %v8926_v41, 2 }
 0xb53   : > { %v8921_v38 = vadd.f32 %v8920_v46, %v8919_v21  ;;  %v16903_v21 = vld [vmem:[%s21352_s13 + $0x1f0] sm:$0xff]   ;;  %v16911_v46 = vld [vmem:[%s21352_s13 + $0xc0] sm:$0xff]  }
 0xb54   : > { %v8928_v58 = vadd.f32 %v8927_v42, %v8926_v41  ;;  %v16909_v41 = vld [vmem:[%s21352_s13 + $0x1b8] sm:$0xff]  }
 0xb55   : > { %v8922_v62 = vrot.slane %v8921_v38, 1 }
 0xb56   : > { %v8929_v55 = vrot.slane %v8928_v58, 1 }
 0xb57   : > { %v8923_v1 = vadd.f32 %v8922_v62, %v8921_v38  ;;  %v16912_v62 = vld [vmem:[%s21352_s13] sm:$0xff]  }
 0xb58   : > { %v8930_v3 = vadd.f32 %v8929_v55, %v8928_v58 }
 0xb59   : > { %v8945_v11 = vmul.f32 0.25, %v8923_v1  ;;  %v16914_v1 = vld [vmem:[%s21352_s13 + $0x48] sm:$0xff]  }
 0xb5a   : > { %v8946_v39 = vmul.f32 0.25, %v8930_v3  ;;  %v16916_v3 = vld [vmem:[%s21352_s13 + $0x8] sm:$0xff]  }
 0xb5b   : > { %v8949_v63 = vadd.f32 1e-05, %v8945_v11 }
 0xb5c   : > { %v8950_v28 = vadd.f32 1e-05, %v8946_v39  ;;  %v16918_v39 = vld [vmem:[%s21352_s13 + $0x50] sm:$0xff]  }
 0xb5d   : > { %17176 = vrsqrt.f32 %v8949_v63 }
 0xb5e   : > { %17178 = vrsqrt.f32 %v8950_v28 }
 0xb67   : > { %v17177_v16 = vpop.eup %17176 }
 0xb68   : > { %v17179_v33 = vpop.eup %17178  ;;  %v8957_v23 = vmul.f32 %v17177_v16, %v8909_v24  ;;  %v16908_v24 = vld [vmem:[%s21352_s13 + $0x138] sm:$0xff]  }
 0xb69   : > { %v8958_v32 = vmul.f32 %v17179_v33, %v8910_v60  ;;  %v16887_v60 = vld [vmem:[%s21352_s13 + $0x1d0] sm:$0xff]   ;;  %v16924_v33 = vld [vmem:[%s21352_s13 + $0x18] sm:$0xff]  }
 0xb6a   : > { %v8961_v52 = vpack.c.bf16 %v8957_v23, %v8957_v23  ;;  %14915 = vmatprep.subr.bf16.mxu0 %v16887_v60  ;;  %v16913_v60 = vld [vmem:[%s21352_s13 + $0x80] sm:$0xff]  }
 0xb6b   : > { %v8962_v10 = vpack.c.bf16 %v8958_v32, %v8958_v32  ;;  %14916 = vmatpush3.bf16.msra.mxu0 %v16889_v13  ;;  %v16926_v32 = vld [vmem:[%s21352_s13 + $0x60] sm:$0xff]  }
 0xb6c   : > { %v9015_v17 = vsel %vm9013_vm7, %v8961_v52, 0  ;;  %14917 = vmatprep.subr.bf16.mxu0 %v16891_v51  ;;  %v16928_v52 = vld [vmem:[%s21352_s13 + $0x20] sm:$0xff]   ;;  %v16952_v51 = vld [vmem:[%s21352_s13 + $0x210] sm:$0xff]  }
 0xb6d   : > { %13970 = vmatprep.subr.msk.bf16.mxu1 %vm9013_vm7, %v8962_v10  ;;  %v16930_v10 = vld [vmem:[%s21352_s13 + $0x68] sm:$0xff]  }
 0xb6e   : > { %9027 = vmatpush1.bf16.msra.mxu1 %v9015_v17 }
 0xb6f   : > { %13976 = vmatprep.subr.msk.bf16.mxu1 %vm9013_vm7, %v8964_v5  ;;  %14918 = vmatpush3.bf16.msra.mxu0 %v16893_v14  ;;  %v16932_v5 = vld [vmem:[%s21352_s13 + $0x28] sm:$0xff]  }
 0xb70   : > { %14919 = vmatprep.subr.bf16.mxu0 %v16895_v37  ;;  %v16954_v37 = vld [vmem:[%s21352_s13 + $0x258] sm:$0xff]  }
 0xb71   : > { %13971 = vmatmul.mubr.msk.bf16.vlgmr.msra.gmra.mrb[204].mxu1 %vm8997_vm8, %v16873_v48 }
 0xb72   : > { %9108 = vmatpush1.bf16.msra.mxu1 %v9021_v59  ;;  %9068 = vmatprep.mubr.bf16.mxu1 %v17189_v22 }
 0xb73   : > { %14889 = vmatprep.subr.bf16.mxu1 %v16878_v61  ;;  %14920 = vmatpush3.bf16.msra.mxu0 %v16897_v54  ;;  %v16917_v54 = vld [vmem:[%s21352_s13 + $0x88] sm:$0xff]  }
 0xb74   : > { %14921 = vmatprep.subr.bf16.mxu0 %v16899_v12 }
 0xb77   : > { %14922 = vmatpush3.bf16.msra.mxu0 %v16901_v4  ;;  %v16919_v4 = vld [vmem:[%s21352_s13 + $0xd0] sm:$0xff]  }
 0xb78   : > { %14923 = vmatprep.subr.bf16.mxu0 %v16903_v21  ;;  %v16956_v21 = vld [vmem:[%s21352_s13 + $0x218] sm:$0xff]  }
 0xb79   : > { %13972 = vmatmul.mubr.msk.bf16.gmra.mrb[208].mxu1 %vm8997_vm8, %v16874_v50 }
 0xb7a   : > { %9078 = vmatprep.mubr.bf16.mxu1 %v17189_v22 }
 0xb7b   : > { %14924 = vmatpush3.bf16.msra.mxu0 %v16905_v9 }
 0xb7c   : > { %14925 = vmatprep.subr.bf16.mxu0 %v16907_v19  ;;  %v16958_v19 = vld [vmem:[%s21352_s13 + $0x260] sm:$0xff]  }
 0xb7f   : > { %14926 = vmatpush3.bf16.msra.mxu0 %v16909_v41 }
 0xb80   : > { %14955 = vmatprep.subr.bf16.mxu0 %v16911_v46 }
 0xb81   : > { %13973 = vmatmul.mubr.msk.bf16.gmra.mrb[212].mxu1 %vm8997_vm8, %v16875_v29 }
 0xb82   : > { %9088 = vmatprep.mubr.bf16.mxu1 %v17189_v22 }
 0xb89   : > { %13974 = vmatmul.mubr.msk.bf16.gmra.mrb[216].mxu1 %vm8997_vm8, %v16876_v15 }
 0xb8a   : > { %9098 = vmatprep.mubr.bf16.mxu1 %v17189_v22 }
 0xb91   : > { %13975 = vmatmul.mubr.msk.bf16.gmra.mrb[220].mxu1 %vm8997_vm8, %v16877_v53 }
 0xb92   : > { %9139 = vmatprep.mubr.bf16.mxu1 %v17189_v22 }
 0xb99   : > { %13977 = vmatmul.mubr.msk.bf16.vlgmr.msra.gmra.mrb[224].mxu1 %vm8997_vm8, %v16873_v48 }
 0xb9a   : > { %9149 = vmatprep.mubr.bf16.mxu1 %v17189_v22  ;;  %14890 = vmatpush3.bf16.msra.mxu1 %v16880_v6 }
 0xb9b   : > { %14891 = vmatprep.subr.bf16.mxu1 %v16882_v47  ;;  %v16942_v47 = vld [vmem:[%s21352_s13 + $0x240] sm:$0xff]  }
 0xb9e   : > { %14892 = vmatpush3.bf16.msra.mxu1 %v16884_v25 }
 0xb9f   : > { %14893 = vmatprep.subr.bf16.mxu1 %v16886_v31 }
 0xba1   : > { %13978 = vmatmul.mubr.msk.bf16.gmra.mrb[228].mxu1 %vm8997_vm8, %v16874_v50  ;;  %v16936_v50 = vld [vmem:[%s21352_s13 + $0x30] sm:$0xff]  }
 0xba2   : > { %9159 = vmatprep.mubr.bf16.mxu1 %v17189_v22  ;;  %14894 = vmatpush3.bf16.msra.mxu1 %v16888_v34  ;;  %v16944_v34 = vld [vmem:[%s21352_s13 + $0x200] sm:$0xff]  }
 0xba3   : > { %14895 = vmatprep.subr.bf16.mxu1 %v16890_v30 }
 0xba6   : > { %14896 = vmatpush3.bf16.msra.mxu1 %v16892_v35  ;;  %v16946_v35 = vld [vmem:[%s21352_s13 + $0x248] sm:$0xff]  }
 0xba7   : > { %14897 = vmatprep.subr.bf16.mxu1 %v16894_v40 }
 0xba9   : > { %13979 = vmatmul.mubr.msk.bf16.gmra.mrb[232].mxu1 %vm8997_vm8, %v16875_v29  ;;  %v16938_v29 = vld [vmem:[%s21352_s13 + $0x78] sm:$0xff]  }
 0xbaa   : > { %9169 = vmatprep.mubr.bf16.mxu1 %v17189_v22  ;;  %14898 = vmatpush3.bf16.msra.mxu1 %v16896_v18 }
 0xbb1   : > { %13980 = vmatmul.mubr.msk.bf16.gmra.mrb[236].mxu1 %vm8997_vm8, %v16876_v15 }
 0xbb2   : > { %9179 = vmatprep.mubr.bf16.mxu1 %v17189_v22  ;;  %v16898_v22 = vld [vmem:[%s21352_s13 + $0x168] sm:$0xff]  }
 0xbb3   : > { %14899 = vmatprep.subr.bf16.mxu1 %v16898_v22  ;;  %v16948_v22 = vld [vmem:[%s21352_s13 + $0x208] sm:$0xff]  }
 0xbb4   : > { %14900 = vmatpush3.bf16.msra.mxu1 %v16900_v49 }
 0xbb5   : > { %14901 = vmatprep.subr.bf16.mxu1 %v16902_v36  ;;  %v16950_v36 = vld [vmem:[%s21352_s13 + $0x250] sm:$0xff]  }
 0xbb8   : > { %14902 = vmatpush3.bf16.msra.mxu1 %v16904_v7 }
 0xbb9   : > { %13981 = vmatmul.mubr.msk.bf16.gmra.mrb[240].mxu1 %vm8997_vm8, %v16877_v53  ;;  %14903 = vmatprep.subr.bf16.mxu1 %v16906_v44  ;;  %v16940_v53 = vld [vmem:[%s21352_s13 + $0x38] sm:$0xff]  }
 0xbbc   : > { %14904 = vmatpush3.bf16.msra.mxu1 %v16908_v24 }
 0xbbd   : > { %14933 = vmatprep.subr.bf16.mxu1 %v16910_v0  ;;  %v16915_v0 = vld [vmem:[%s21352_s13 + $0xc8] sm:$0xff]  }
 0xc44   : > { %v9060_v42 = vpop.f32.mrb[204].mxu1 }
 0xc45   : > { %v9062_v38 = vpop.f32.mrb[205].mxu1  ;;  %v9188_v30 = vpack.c.bf16 %v9060_v42, %v9060_v42  ;;  %v16921_v42 = vld [vmem:[%s21352_s13 + $0x90] sm:$0xff]  }
 0xc46   : > { %v9064_v20 = vpop.f32.mrb[206].mxu1  ;;  %v9189_v43 = vpack.c.bf16 %v9062_v38, %v9062_v38  ;;  %v16923_v38 = vld [vmem:[%s21352_s13 + $0xd8] sm:$0xff]  }
 0xc47   : > { %v9066_v56 = vpop.f32.mrb[207].mxu1  ;;  %v9256_v55 = vpack.c.bf16 %v9064_v20, %v9064_v20  ;;  %v16960_v20 = vld [vmem:[%s21352_s13 + $0x220] sm:$0xff]  }
 0xc48   : > { %v9257_v58 = vpack.c.bf16 %v9066_v56, %v9066_v56  ;;  %v16962_v56 = vld [vmem:[%s21352_s13 + $0x268] sm:$0xff]  }
 0xc4a   : > { %9549 = vmatprep.mubr.bf16.mxu1 %v9257_v58  ;;  %v16925_v58 = vld [vmem:[%s21352_s13 + $0x98] sm:$0xff]  }
 0xc4b   : > { %9550 = vmatmul.mubr.bf16.vlgmr.msra.gmra.mrb[244].mxu1 %v9256_v55  ;;  %v16927_v55 = vld [vmem:[%s21352_s13 + $0xe0] sm:$0xff]  }
 0xc4c   : > { %v20458_v27 = vpop.f32.mrb[208].mxu1  ;;  %14934 = vmatpush3.bf16.msra.mxu1 %v16912_v62  ;;  %9821 = vmatprep.mubr.bf16.mxu1 %v9189_v43 }
 0xc4d   : > { %v9072_v11 = vpop.f32.mrb[209].mxu1  ;;  %14935 = vmatprep.subr.bf16.mxu1 %v16914_v1  ;;  %v16964_v1 = vld [vmem:[%s21352_s13 + $0x228] sm:$0xff]  }
 0xc4e   : > { %v20466_v63 = vpop.f32.mrb[210].mxu1  ;;  %v9870_v40 = vpack.c.bf16 %v9072_v11, %v9072_v11 }
 0xc4f   : > { %v20468_v28 = vpop.f32.mrb[211].mxu1 }
 0xc50   : > { %14936 = vmatpush3.bf16.msra.mxu1 %v16916_v3  ;;  %v16966_v3 = vld [vmem:[%s21352_s13 + $0x270] sm:$0xff]  }
 0xc51   : > { %14937 = vmatprep.subr.bf16.mxu1 %v16918_v39 }
 0xc54   : > { %v20476_v16 = vpop.f32.mrb[212].mxu1  ;;  %14938 = vmatpush3.bf16.msra.mxu1 %v16920_v8  ;;  %v16929_v8 = vld [vmem:[%s21352_s13 + $0xa0] sm:$0xff]  }
 0xc55   : > { %v20481_v23 = vpop.f32.mrb[213].mxu1  ;;  %14939 = vmatprep.subr.bf16.mxu1 %v16922_v2  ;;  %v16931_v2 = vld [vmem:[%s21352_s13 + $0xe8] sm:$0xff]  }
 0xc56   : > { %v20486_v26 = vpop.f32.mrb[214].mxu1 }
 0xc57   : > { %v20488_v45 = vpop.f32.mrb[215].mxu1 }
 0xc58   : > { %14940 = vmatpush3.bf16.msra.mxu1 %v16924_v33  ;;  %v16968_v33 = vld [vmem:[%s21352_s13 + $0x230] sm:$0xff]  }
 0xc59   : > { %14941 = vmatprep.subr.bf16.mxu1 %v16926_v32  ;;  %v16970_v32 = vld [vmem:[%s21352_s13 + $0x278] sm:$0xff]  }
 0xc5c   : > { %v20496_v17 = vpop.f32.mrb[216].mxu1  ;;  %14942 = vmatpush3.bf16.msra.mxu1 %v16928_v52  ;;  %v16933_v52 = vld [vmem:[%s21352_s13 + $0xa8] sm:$0xff]  }
 0xc5d   : > { %v20501_v48 = vpop.f32.mrb[217].mxu1  ;;  %14943 = vmatprep.subr.bf16.mxu1 %v16930_v10  ;;  %v16935_v10 = vld [vmem:[%s21352_s13 + $0xf0] sm:$0xff]  }
 0xc5e   : > { %v20506_v61 = vpop.f32.mrb[218].mxu1 }
 0xc5f   : > { %v20508_v59 = vpop.f32.mrb[219].mxu1 }
 0xc60   : > { %14944 = vmatpush3.bf16.msra.mxu1 %v16932_v5  ;;  %v16972_v5 = vld [vmem:[%s21352_s13 + $0x238] sm:$0xff]  }
 0xc61   : > { %14945 = vmatprep.subr.bf16.mxu1 %v16934_v57  ;;  %v16974_v57 = vld [vmem:[%s21352_s13 + $0x340] sm:$0xff]  }
 0xc64   : > { %v20516_v15 = vpop.f32.mrb[220].mxu1  ;;  %14946 = vmatpush3.bf16.msra.mxu1 %v16936_v50  ;;  %v16937_v50 = vld [vmem:[%s21352_s13 + $0xb0] sm:$0xff]  }
 0xc65   : > { %v20521_v6 = vpop.f32.mrb[221].mxu1  ;;  %14947 = vmatprep.subr.bf16.mxu1 %v16938_v29  ;;  %v16939_v29 = vld [vmem:[%s21352_s13 + $0xf8] sm:$0xff]  }
 0xc66   : > { %v9104_v25 = vpop.f32.mrb[222].mxu1 }
 0xc67   : > { %v9105_v31 = vpop.f32.mrb[223].mxu1  ;;  %v16978_v25 = vld [vmem:[%s21352_s13 + $0x348] sm:$0xff]  }
 0xc68   : > { %14948 = vmatpush3.bf16.msra.mxu1 %v16940_v53  ;;  %v16976_v53 = vld [vmem:[%s21352_s13 + $0x300] sm:$0xff]   ;;  %v10212_v31 = vpack.c.bf16 %v20468_v28, %v20468_v28  ;;  %v16982_v28 = vld [vmem:[%s21352_s13 + $0x350] sm:$0xff]  }
 0xc69   : > { %14977 = vmatprep.subr.bf16.mxu1 %v16942_v47  ;;  %v9869_v47 = vpack.c.bf16 %v20458_v27, %v20458_v27  ;;  %v16980_v27 = vld [vmem:[%s21352_s13 + $0x308] sm:$0xff]  }
 0xc6b   : > { %9822 = vmatmul.mubr.bf16.vlgmr.msra.gmra.mrb[248].mxu1 %v9188_v30  ;;  %v16943_v30 = vld [vmem:[%s21352_s13 + $0x2c0] sm:$0xff]  }
 0xc6c   : > { %v20532_v18 = vpop.f32.mrb[224].mxu1  ;;  %14978 = vmatpush3.bf16.msra.mxu1 %v16944_v34  ;;  %10162 = vmatprep.mubr.bf16.mxu1 %v9870_v40  ;;  %v16941_v34 = vld [vmem:[%s21352_s13 + $0xb8] sm:$0xff]  }
 0xc6d   : > { %v9143_v49 = vpop.f32.mrb[225].mxu1  ;;  %14979 = vmatprep.subr.bf16.mxu1 %v16946_v35  ;;  %v16945_v35 = vld [vmem:[%s21352_s13 + $0x280] sm:$0xff]  }
 0xc6e   : > { %v9145_v7 = vpop.f32.mrb[226].mxu1  ;;  %v9191_v14 = vpack.c.bf16 %v9143_v49, %v9143_v49  ;;  %v16947_v49 = vld [vmem:[%s21352_s13 + $0x2c8] sm:$0xff]  }
 0xc6f   : > { %v9147_v44 = vpop.f32.mrb[227].mxu1  ;;  %v9258_v13 = vpack.c.bf16 %v9145_v7, %v9145_v7  ;;  %v16986_v7 = vld [vmem:[%s21352_s13 + $0x358] sm:$0xff]  }
 0xc70   : > { %v9259_v24 = vpack.c.bf16 %v9147_v44, %v9147_v44  ;;  %14980 = vmatpush3.bf16.msra.mxu1 %v16948_v22  ;;  %v9190_v22 = vpack.c.bf16 %v20532_v18, %v20532_v18  ;;  %v16949_v18 = vld [vmem:[%s21352_s13 + $0x288] sm:$0xff]   ;;  %v16951_v44 = vld [vmem:[%s21352_s13 + $0x2d0] sm:$0xff]  }
 0xc71   : > { %14981 = vmatprep.subr.bf16.mxu1 %v16950_v36  ;;  %v16984_v36 = vld [vmem:[%s21352_s13 + $0x310] sm:$0xff]  }
 0xc72   : > { %9589 = vmatprep.mubr.bf16.mxu0 %v9259_v24  ;;  %v16988_v24 = vld [vmem:[%s21352_s13 + $0x318] sm:$0xff]  }
 0xc73   : > { %9590 = vmatmul.mubr.bf16.vlgmr.msra.gmra.mrb[112].mxu0 %v9258_v13  ;;  %v16953_v13 = vld [vmem:[%s21352_s13 + $0x290] sm:$0xff]  }
 0xc74   : > { %14956 = vmatpush3.bf16.msra.mxu0 %v16913_v60  ;;  %9861 = vmatprep.mubr.bf16.mxu0 %v9191_v14  ;;  %v20555_v12 = vpop.f32.mrb[228].mxu1  ;;  %v16990_v60 = vld [vmem:[%s21352_s13 + $0x360] sm:$0xff]  }
 0xc75   : > { %14957 = vmatprep.subr.bf16.mxu0 %v16915_v0  ;;  %14982 = vmatpush3.bf16.msra.mxu1 %v16952_v51  ;;  %v20563_v9 = vpop.f32.mrb[229].mxu1  ;;  %v16955_v0 = vld [vmem:[%s21352_s13 + $0x2d8] sm:$0xff]   ;;  %v16992_v51 = vld [vmem:[%s21352_s13 + $0x320] sm:$0xff]  }
 0xc76   : > { %14983 = vmatprep.subr.bf16.mxu1 %v16954_v37  ;;  %v20568_v41 = vpop.f32.mrb[230].mxu1  ;;  %v9872_v40 = vpack.c.bf16 %v20563_v9, %v20563_v9  ;;  %v16994_v37 = vld [vmem:[%s21352_s13 + $0x368] sm:$0xff]  }
 0xc77   : > { %v20570_v46 = vpop.f32.mrb[231].mxu1 }
 0xc78   : > { %14958 = vmatpush3.bf16.msra.mxu0 %v16917_v54 }
 0xc79   : > { %14959 = vmatprep.subr.bf16.mxu0 %v16919_v4  ;;  %14984 = vmatpush3.bf16.msra.mxu1 %v16956_v21  ;;  %v16957_v21 = vld [vmem:[%s21352_s13 + $0x298] sm:$0xff]  }
 0xc7a   : > { %14985 = vmatprep.subr.bf16.mxu1 %v16958_v19  ;;  %v16959_v19 = vld [vmem:[%s21352_s13 + $0x2e0] sm:$0xff]  }
 0xc7c   : > { %14960 = vmatpush3.bf16.msra.mxu0 %v16921_v42  ;;  %v20587_v62 = vpop.f32.mrb[232].mxu1  ;;  %v16996_v42 = vld [vmem:[%s21352_s13 + $0x328] sm:$0xff]  }
 0xc7d   : > { %14961 = vmatprep.subr.bf16.mxu0 %v16923_v38  ;;  %14986 = vmatpush3.bf16.msra.mxu1 %v16960_v20  ;;  %v20595_v43 = vpop.f32.mrb[233].mxu1  ;;  %v16998_v20 = vld [vmem:[%s21352_s13 + $0x370] sm:$0xff]  }
 0xc7e   : > { %14987 = vmatprep.subr.bf16.mxu1 %v16962_v56  ;;  %v20600_v11 = vpop.f32.mrb[234].mxu1 }
 0xc7f   : > { %v20602_v39 = vpop.f32.mrb[235].mxu1 }
 0xc80   : > { %14962 = vmatpush3.bf16.msra.mxu0 %v16925_v58 }
 0xc81   : > { %14963 = vmatprep.subr.bf16.mxu0 %v16927_v55  ;;  %14988 = vmatpush3.bf16.msra.mxu1 %v16964_v1  ;;  %v16961_v55 = vld [vmem:[%s21352_s13 + $0x2a0] sm:$0xff]  }
 0xc82   : > { %14989 = vmatprep.subr.bf16.mxu1 %v16966_v3  ;;  %v16963_v3 = vld [vmem:[%s21352_s13 + $0x2e8] sm:$0xff]  }
 0xc84   : > { %14964 = vmatpush3.bf16.msra.mxu0 %v16929_v8  ;;  %v20693_v14 = vpop.f32.mrb[236].mxu1  ;;  %v17000_v8 = vld [vmem:[%s21352_s13 + $0x330] sm:$0xff]  }
 0xc85   : > { %14965 = vmatprep.subr.bf16.mxu0 %v16931_v2  ;;  %14990 = vmatpush3.bf16.msra.mxu1 %v16968_v33  ;;  %v20698_v54 = vpop.f32.mrb[237].mxu1  ;;  %v17002_v2 = vld [vmem:[%s21352_s13 + $0x378] sm:$0xff]   ;;  %v16965_v33 = vld [vmem:[%s21352_s13 + $0x2a8] sm:$0xff]  }
 0xc86   : > { %14991 = vmatprep.subr.bf16.mxu1 %v16970_v32  ;;  %v20700_v4 = vpop.f32.mrb[238].mxu1  ;;  %v16967_v32 = vld [vmem:[%s21352_s13 + $0x2f0] sm:$0xff]  }
 0xc87   : > { %v20705_v9 = vpop.f32.mrb[239].mxu1 }
 0xc88   : > { %14966 = vmatpush3.bf16.msra.mxu0 %v16933_v52  ;;  %v17004_v52 = vld [vmem:[%s21352_s13 + $0x338] sm:$0xff]  }
 0xc89   : > { %14967 = vmatprep.subr.bf16.mxu0 %v16935_v10  ;;  %14992 = vmatpush3.bf16.msra.mxu1 %v16972_v5  ;;  %v17006_v10 = vld [vmem:[%s21352_s13 + $0x440] sm:$0xff]   ;;  %v16969_v5 = vld [vmem:[%s21352_s13 + $0x2b0] sm:$0xff]  }
 0xc8a   : > { %15021 = vmatprep.subr.bf16.mxu1 %v16974_v57  ;;  %v16971_v57 = vld [vmem:[%s21352_s13 + $0x2f8] sm:$0xff]  }
 0xc8c   : > { %14968 = vmatpush3.bf16.msra.mxu0 %v16937_v50  ;;  %10163 = vmatmul.mubr.bf16.vlgmr.msra.gmra.mrb[252].mxu1 %v9869_v47  ;;  %v20713_v38 = vpop.f32.mrb[240].mxu1  ;;  %v17008_v50 = vld [vmem:[%s21352_s13 + $0x400] sm:$0xff]   ;;  %v10554_v47 = vpack.c.bf16 %v20481_v23, %v20481_v23  ;;  %v17014_v23 = vld [vmem:[%s21352_s13 + $0x450] sm:$0xff]  }
 0xc8d   : > { %14969 = vmatprep.subr.bf16.mxu0 %v16939_v29  ;;  %15022 = vmatpush3.bf16.msra.mxu1 %v16976_v53  ;;  %v20718_v56 = vpop.f32.mrb[241].mxu1  ;;  %v10211_v29 = vpack.c.bf16 %v20466_v63, %v20466_v63  ;;  %v17010_v53 = vld [vmem:[%s21352_s13 + $0x448] sm:$0xff]  }
 0xc8e   : > { %15023 = vmatprep.subr.bf16.mxu1 %v16978_v25  ;;  %10504 = vmatprep.mubr.bf16.mxu1 %v10212_v31  ;;  %v9185_v58 = vpop.f32.mrb[242].mxu1  ;;  %v16973_v25 = vld [vmem:[%s21352_s13 + $0x2b8] sm:$0xff]   ;;  %v16975_v31 = vld [vmem:[%s21352_s13 + $0x3c0] sm:$0xff]   ;;  %v17012_v63 = vld [vmem:[%s21352_s13 + $0x408] sm:$0xff]  }
 0xc8f   : > { %v9186_v1 = vpop.f32.mrb[243].mxu1  ;;  %v17036_v58 = vld [vmem:[%s21352_s13 + $0x438] sm:$0xff]  }
 0xc90   : > { %14970 = vmatpush3.bf16.msra.mxu0 %v16941_v34  ;;  %v9871_v34 = vpack.c.bf16 %v20555_v12, %v20555_v12  ;;  %v17018_v12 = vld [vmem:[%s21352_s13 + $0x458] sm:$0xff]   ;;  %v17001_v1 = vld [vmem:[%s21352_s13 + $0x3b0] sm:$0xff]  }
 0xc91   : > { %14999 = vmatprep.subr.bf16.mxu0 %v16943_v30  ;;  %15024 = vmatpush3.bf16.msra.mxu1 %v16980_v27  ;;  %v16977_v30 = vld [vmem:[%s21352_s13 + $0x380] sm:$0xff]   ;;  %v16979_v27 = vld [vmem:[%s21352_s13 + $0x3c8] sm:$0xff]  }
 0xc92   : > { %15025 = vmatprep.subr.bf16.mxu1 %v16982_v28  ;;  %v17016_v28 = vld [vmem:[%s21352_s13 + $0x410] sm:$0xff]  }
 0xc93   : > { %9862 = vmatmul.mubr.bf16.vlgmr.msra.gmra.mrb[116].mxu0 %v9190_v22  ;;  %v16983_v22 = vld [vmem:[%s21352_s13 + $0x3d0] sm:$0xff]  }
 0xc94   : > { %15000 = vmatpush3.bf16.msra.mxu0 %v16945_v35  ;;  %10202 = vmatprep.mubr.bf16.mxu0 %v9872_v40  ;;  %v10214_v35 = vpack.c.bf16 %v20570_v46, %v20570_v46  ;;  %v16981_v40 = vld [vmem:[%s21352_s13 + $0x388] sm:$0xff]   ;;  %v17020_v46 = vld [vmem:[%s21352_s13 + $0x418] sm:$0xff]  }
 0xc95   : > { %15001 = vmatprep.subr.bf16.mxu0 %v16947_v49  ;;  %15026 = vmatpush3.bf16.msra.mxu1 %v16984_v36  ;;  %v17022_v49 = vld [vmem:[%s21352_s13 + $0x460] sm:$0xff]   ;;  %v16985_v36 = vld [vmem:[%s21352_s13 + $0x390] sm:$0xff]  }
 0xc96   : > { %15027 = vmatprep.subr.bf16.mxu1 %v16986_v7  ;;  %v16987_v7 = vld [vmem:[%s21352_s13 + $0x3d8] sm:$0xff]  }
 0xc98   : > { %15002 = vmatpush3.bf16.msra.mxu0 %v16949_v18  ;;  %v17024_v18 = vld [vmem:[%s21352_s13 + $0x420] sm:$0xff]  }
 0xc99   : > { %15003 = vmatprep.subr.bf16.mxu0 %v16951_v44  ;;  %15028 = vmatpush3.bf16.msra.mxu1 %v16988_v24  ;;  %v17026_v44 = vld [vmem:[%s21352_s13 + $0x468] sm:$0xff]   ;;  %v16989_v24 = vld [vmem:[%s21352_s13 + $0x398] sm:$0xff]  }
 0xc9a   : > { %15029 = vmatprep.subr.bf16.mxu1 %v16990_v60  ;;  %v16991_v60 = vld [vmem:[%s21352_s13 + $0x3e0] sm:$0xff]  }
 0xc9c   : > { %15004 = vmatpush3.bf16.msra.mxu0 %v16953_v13  ;;  %v17028_v13 = vld [vmem:[%s21352_s13 + $0x428] sm:$0xff]  }
 0xc9d   : > { %15005 = vmatprep.subr.bf16.mxu0 %v16955_v0  ;;  %15030 = vmatpush3.bf16.msra.mxu1 %v16992_v51  ;;  %v17030_v0 = vld [vmem:[%s21352_s13 + $0x470] sm:$0xff]   ;;  %v16993_v51 = vld [vmem:[%s21352_s13 + $0x3a0] sm:$0xff]  }
 0xc9e   : > { %15031 = vmatprep.subr.bf16.mxu1 %v16994_v37  ;;  %v16995_v37 = vld [vmem:[%s21352_s13 + $0x3e8] sm:$0xff]  }
 0xca0   : > { %15006 = vmatpush3.bf16.msra.mxu0 %v16957_v21  ;;  %v17032_v21 = vld [vmem:[%s21352_s13 + $0x430] sm:$0xff]  }
 0xca1   : > { %15007 = vmatprep.subr.bf16.mxu0 %v16959_v19  ;;  %15032 = vmatpush3.bf16.msra.mxu1 %v16996_v42  ;;  %v17034_v19 = vld [vmem:[%s21352_s13 + $0x478] sm:$0xff]   ;;  %v16997_v42 = vld [vmem:[%s21352_s13 + $0x3a8] sm:$0xff]  }
 0xca2   : > { %15033 = vmatprep.subr.bf16.mxu1 %v16998_v20  ;;  %v16999_v20 = vld [vmem:[%s21352_s13 + $0x3f0] sm:$0xff]  }
 0xca4   : > { %15008 = vmatpush3.bf16.msra.mxu0 %v16961_v55  ;;  %v17038_v55 = vld [vmem:[%s21352_s13 + $0x540] sm:$0xff]  }
 0xca5   : > { %15009 = vmatprep.subr.bf16.mxu0 %v16963_v3  ;;  %15034 = vmatpush3.bf16.msra.mxu1 %v17000_v8  ;;  %v17003_v3 = vld [vmem:[%s21352_s13 + $0x3f8] sm:$0xff]   ;;  %v17040_v8 = vld [vmem:[%s21352_s13 + $0x500] sm:$0xff]  }
 0xca6   : > { %15035 = vmatprep.subr.bf16.mxu1 %v17002_v2  ;;  %v10553_v2 = vpack.c.bf16 %v20476_v16, %v20476_v16  ;;  %v17044_v16 = vld [vmem:[%s21352_s13 + $0x508] sm:$0xff]  }
 0xca8   : > { %15010 = vmatpush3.bf16.msra.mxu0 %v16965_v33  ;;  %v17042_v33 = vld [vmem:[%s21352_s13 + $0x548] sm:$0xff]  }
 0xca9   : > { %15011 = vmatprep.subr.bf16.mxu0 %v16967_v32  ;;  %15036 = vmatpush3.bf16.msra.mxu1 %v17004_v52  ;;  %v10896_v32 = vpack.c.bf16 %v20488_v45, %v20488_v45  ;;  %v17005_v52 = vld [vmem:[%s21352_s13 + $0x3b8] sm:$0xff]   ;;  %v17046_v45 = vld [vmem:[%s21352_s13 + $0x550] sm:$0xff]  }
 0xcaa   : > { %15065 = vmatprep.subr.bf16.mxu1 %v17006_v10  ;;  %v17007_v10 = vld [vmem:[%s21352_s13 + $0x4c0] sm:$0xff]  }
 0xcac   : > { %15012 = vmatpush3.bf16.msra.mxu0 %v16969_v5  ;;  %10505 = vmatmul.mubr.bf16.vlgmr.msra.gmra.mrb[0].mxu1 %v10211_v29  ;;  %v17009_v5 = vld [vmem:[%s21352_s13 + $0x480] sm:$0xff]   ;;  %v17011_v29 = vld [vmem:[%s21352_s13 + $0x4c8] sm:$0xff]  }
 0xcad   : > { %15013 = vmatprep.subr.bf16.mxu0 %v16971_v57  ;;  %15066 = vmatpush3.bf16.msra.mxu1 %v17008_v50  ;;  %v10556_v57 = vpack.c.bf16 %v20595_v43, %v20595_v43  ;;  %v10213_v50 = vpack.c.bf16 %v20568_v41, %v20568_v41  ;;  %v17013_v41 = vld [vmem:[%s21352_s13 + $0x488] sm:$0xff]   ;;  %v17015_v43 = vld [vmem:[%s21352_s13 + $0x4d0] sm:$0xff]  }
 0xcae   : > { %15067 = vmatprep.subr.bf16.mxu1 %v17010_v53  ;;  %10846 = vmatprep.mubr.bf16.mxu1 %v10554_v47  ;;  %v17048_v53 = vld [vmem:[%s21352_s13 + $0x510] sm:$0xff]   ;;  %v17050_v47 = vld [vmem:[%s21352_s13 + $0x558] sm:$0xff]  }
 0xcb0   : > { %15014 = vmatpush3.bf16.msra.mxu0 %v16973_v25  ;;  %v17052_v25 = vld [vmem:[%s21352_s13 + $0x518] sm:$0xff]  }
 0xcb1   : > { %15043 = vmatprep.subr.bf16.mxu0 %v16975_v31  ;;  %15068 = vmatpush3.bf16.msra.mxu1 %v17012_v63  ;;  %v17054_v31 = vld [vmem:[%s21352_s13 + $0x560] sm:$0xff]   ;;  %v17017_v63 = vld [vmem:[%s21352_s13 + $0x490] sm:$0xff]  }
 0xcb2   : > { %15069 = vmatprep.subr.bf16.mxu1 %v17014_v23  ;;  %v17019_v23 = vld [vmem:[%s21352_s13 + $0x4d8] sm:$0xff]  }
 0xcb3   : > { %10203 = vmatmul.mubr.bf16.vlgmr.msra.gmra.mrb[120].mxu0 %v9871_v34  ;;  %v17056_v34 = vld [vmem:[%s21352_s13 + $0x520] sm:$0xff]  }
 0xcb4   : > { %15044 = vmatpush3.bf16.msra.mxu0 %v16977_v30  ;;  %10544 = vmatprep.mubr.bf16.mxu0 %v10214_v35  ;;  %v17058_v30 = vld [vmem:[%s21352_s13 + $0x568] sm:$0xff]  }
 0xcb5   : > { %15045 = vmatprep.subr.bf16.mxu0 %v16979_v27  ;;  %15070 = vmatpush3.bf16.msra.mxu1 %v17016_v28  ;;  %v17021_v27 = vld [vmem:[%s21352_s13 + $0x498] sm:$0xff]   ;;  %v17023_v28 = vld [vmem:[%s21352_s13 + $0x4e0] sm:$0xff]   ;;  %v17060_v35 = vld [vmem:[%s21352_s13 + $0x528] sm:$0xff]  }
 0xcb6   : > { %15071 = vmatprep.subr.bf16.mxu1 %v17018_v12  ;;  %v17062_v12 = vld [vmem:[%s21352_s13 + $0x570] sm:$0xff]  }
 0xcb8   : > { %15046 = vmatpush3.bf16.msra.mxu0 %v16981_v40  ;;  %v17025_v40 = vld [vmem:[%s21352_s13 + $0x4a0] sm:$0xff]  }
 0xcb9   : > { %15047 = vmatprep.subr.bf16.mxu0 %v16983_v22  ;;  %15072 = vmatpush3.bf16.msra.mxu1 %v17020_v46  ;;  %v17027_v22 = vld [vmem:[%s21352_s13 + $0x4e8] sm:$0xff]   ;;  %v17064_v46 = vld [vmem:[%s21352_s13 + $0x530] sm:$0xff]  }
 0xcba   : > { %15073 = vmatprep.subr.bf16.mxu1 %v17022_v49  ;;  %v17066_v49 = vld [vmem:[%s21352_s13 + $0x578] sm:$0xff]  }
 0xcbc   : > { %15048 = vmatpush3.bf16.msra.mxu0 %v16985_v36  ;;  %v17029_v36 = vld [vmem:[%s21352_s13 + $0x4a8] sm:$0xff]  }
 0xcbd   : > { %15049 = vmatprep.subr.bf16.mxu0 %v16987_v7  ;;  %15074 = vmatpush3.bf16.msra.mxu1 %v17024_v18  ;;  %v17031_v7 = vld [vmem:[%s21352_s13 + $0x4f0] sm:$0xff]   ;;  %v17068_v18 = vld [vmem:[%s21352_s13 + $0x538] sm:$0xff]  }
 0xcbe   : > { %15075 = vmatprep.subr.bf16.mxu1 %v17026_v44  ;;  %v17070_v44 = vld [vmem:[%s21352_s13 + $0x640] sm:$0xff]  }
 0xcc0   : > { %15050 = vmatpush3.bf16.msra.mxu0 %v16989_v24  ;;  %v17033_v24 = vld [vmem:[%s21352_s13 + $0x4b0] sm:$0xff]  }
 0xcc1   : > { %15051 = vmatprep.subr.bf16.mxu0 %v16991_v60  ;;  %15076 = vmatpush3.bf16.msra.mxu1 %v17028_v13  ;;  %v17035_v60 = vld [vmem:[%s21352_s13 + $0x4f8] sm:$0xff]   ;;  %v17072_v13 = vld [vmem:[%s21352_s13 + $0x600] sm:$0xff]  }
 0xcc2   : > { %15077 = vmatprep.subr.bf16.mxu1 %v17030_v0  ;;  %v10895_v0 = vpack.c.bf16 %v20486_v26, %v20486_v26  ;;  %v17076_v26 = vld [vmem:[%s21352_s13 + $0x608] sm:$0xff]  }
 0xcc4   : > { %15052 = vmatpush3.bf16.msra.mxu0 %v16993_v51  ;;  %v17074_v51 = vld [vmem:[%s21352_s13 + $0x648] sm:$0xff]  }
 0xcc5   : > { %15053 = vmatprep.subr.bf16.mxu0 %v16995_v37  ;;  %15078 = vmatpush3.bf16.msra.mxu1 %v17032_v21  ;;  %v11238_v37 = vpack.c.bf16 %v20501_v48, %v20501_v48  ;;  %v17037_v21 = vld [vmem:[%s21352_s13 + $0x4b8] sm:$0xff]   ;;  %v17078_v48 = vld [vmem:[%s21352_s13 + $0x650] sm:$0xff]  }
 0xcc6   : > { %15079 = vmatprep.subr.bf16.mxu1 %v17034_v19  ;;  %v17039_v19 = vld [vmem:[%s21352_s13 + $0x5c0] sm:$0xff]  }
 0xcc8   : > { %15054 = vmatpush3.bf16.msra.mxu0 %v16997_v42  ;;  %v10555_v42 = vpack.c.bf16 %v20587_v62, %v20587_v62  ;;  %v17082_v62 = vld [vmem:[%s21352_s13 + $0x658] sm:$0xff]  }
 0xcc9   : > { %15055 = vmatprep.subr.bf16.mxu0 %v16999_v20  ;;  %15080 = vmatpush3.bf16.msra.mxu1 %v17036_v58  ;;  %v17041_v20 = vld [vmem:[%s21352_s13 + $0x580] sm:$0xff]   ;;  %v17043_v58 = vld [vmem:[%s21352_s13 + $0x5c8] sm:$0xff]  }
 0xcca   : > { %15109 = vmatprep.subr.bf16.mxu1 %v17038_v55  ;;  %v17080_v55 = vld [vmem:[%s21352_s13 + $0x610] sm:$0xff]  }
 0xccc   : > { %15056 = vmatpush3.bf16.msra.mxu0 %v17001_v1  ;;  %10847 = vmatmul.mubr.bf16.vlgmr.msra.gmra.mrb[4].mxu1 %v10553_v2  ;;  %v10898_v1 = vpack.c.bf16 %v20602_v39, %v20602_v39  ;;  %v17084_v39 = vld [vmem:[%s21352_s13 + $0x618] sm:$0xff]   ;;  %v17086_v2 = vld [vmem:[%s21352_s13 + $0x660] sm:$0xff]  }
 0xccd   : > { %15057 = vmatprep.subr.bf16.mxu0 %v17003_v3  ;;  %15110 = vmatpush3.bf16.msra.mxu1 %v17040_v8  ;;  %v17045_v3 = vld [vmem:[%s21352_s13 + $0x588] sm:$0xff]   ;;  %v17047_v8 = vld [vmem:[%s21352_s13 + $0x5d0] sm:$0xff]  }
 0xcce   : > { %15111 = vmatprep.subr.bf16.mxu1 %v17042_v33  ;;  %11188 = vmatprep.mubr.bf16.mxu1 %v10896_v32  ;;  %v17049_v33 = vld [vmem:[%s21352_s13 + $0x590] sm:$0xff]   ;;  %v17051_v32 = vld [vmem:[%s21352_s13 + $0x5d8] sm:$0xff]  }
 0xcd0   : > { %15058 = vmatpush3.bf16.msra.mxu0 %v17005_v52  ;;  %v17088_v52 = vld [vmem:[%s21352_s13 + $0x620] sm:$0xff]  }
 0xcd1   : > { %15087 = vmatprep.subr.bf16.mxu0 %v17007_v10  ;;  %15112 = vmatpush3.bf16.msra.mxu1 %v17044_v16  ;;  %v17090_v10 = vld [vmem:[%s21352_s13 + $0x668] sm:$0xff]   ;;  %v17053_v16 = vld [vmem:[%s21352_s13 + $0x598] sm:$0xff]  }
 0xcd2   : > { %15113 = vmatprep.subr.bf16.mxu1 %v17046_v45  ;;  %v17055_v45 = vld [vmem:[%s21352_s13 + $0x5e0] sm:$0xff]  }
 0xcd3   : > { %10545 = vmatmul.mubr.bf16.vlgmr.msra.gmra.mrb[124].mxu0 %v10213_v50  ;;  %v17057_v50 = vld [vmem:[%s21352_s13 + $0x5a0] sm:$0xff]  }
 0xcd4   : > { %15088 = vmatpush3.bf16.msra.mxu0 %v17009_v5  ;;  %10886 = vmatprep.mubr.bf16.mxu0 %v10556_v57  ;;  %v17092_v5 = vld [vmem:[%s21352_s13 + $0x628] sm:$0xff]   ;;  %v17094_v57 = vld [vmem:[%s21352_s13 + $0x670] sm:$0xff]  }
 0xcd5   : > { %15089 = vmatprep.subr.bf16.mxu0 %v17011_v29  ;;  %15114 = vmatpush3.bf16.msra.mxu1 %v17048_v53  ;;  %v17059_v29 = vld [vmem:[%s21352_s13 + $0x5e8] sm:$0xff]   ;;  %v17096_v53 = vld [vmem:[%s21352_s13 + $0x630] sm:$0xff]  }
 0xcd6   : > { %15115 = vmatprep.subr.bf16.mxu1 %v17050_v47  ;;  %v17098_v47 = vld [vmem:[%s21352_s13 + $0x678] sm:$0xff]  }
 0xcd8   : > { %15090 = vmatpush3.bf16.msra.mxu0 %v17013_v41  ;;  %v17061_v41 = vld [vmem:[%s21352_s13 + $0x5a8] sm:$0xff]  }
 0xcd9   : > { %15091 = vmatprep.subr.bf16.mxu0 %v17015_v43  ;;  %15116 = vmatpush3.bf16.msra.mxu1 %v17052_v25  ;;  %v17063_v43 = vld [vmem:[%s21352_s13 + $0x5f0] sm:$0xff]   ;;  %v17100_v25 = vld [vmem:[%s21352_s13 + $0x638] sm:$0xff]  }
 0xcda   : > { %15117 = vmatprep.subr.bf16.mxu1 %v17054_v31  ;;  %v17102_v31 = vld [vmem:[%s21352_s13 + $0x740] sm:$0xff]  }
 0xcdc   : > { %15092 = vmatpush3.bf16.msra.mxu0 %v17017_v63  ;;  %v17065_v63 = vld [vmem:[%s21352_s13 + $0x5b0] sm:$0xff]  }
 0xcdd   : > { %15093 = vmatprep.subr.bf16.mxu0 %v17019_v23  ;;  %15118 = vmatpush3.bf16.msra.mxu1 %v17056_v34  ;;  %v17067_v23 = vld [vmem:[%s21352_s13 + $0x5f8] sm:$0xff]   ;;  %v17104_v34 = vld [vmem:[%s21352_s13 + $0x700] sm:$0xff]  }
 0xcde   : > { %15119 = vmatprep.subr.bf16.mxu1 %v17058_v30  ;;  %v11237_v30 = vpack.c.bf16 %v20496_v17, %v20496_v17  ;;  %v17108_v17 = vld [vmem:[%s21352_s13 + $0x708] sm:$0xff]  }
 0xce0   : > { %15094 = vmatpush3.bf16.msra.mxu0 %v17021_v27  ;;  %v17106_v27 = vld [vmem:[%s21352_s13 + $0x748] sm:$0xff]  }
 0xce1   : > { %15095 = vmatprep.subr.bf16.mxu0 %v17023_v28  ;;  %15120 = vmatpush3.bf16.msra.mxu1 %v17060_v35  ;;  %v11580_v28 = vpack.c.bf16 %v20508_v59, %v20508_v59  ;;  %v17069_v35 = vld [vmem:[%s21352_s13 + $0x5b8] sm:$0xff]   ;;  %v17110_v59 = vld [vmem:[%s21352_s13 + $0x750] sm:$0xff]  }
 0xce2   : > { %15121 = vmatprep.subr.bf16.mxu1 %v17062_v12  ;;  %v17071_v12 = vld [vmem:[%s21352_s13 + $0x6c0] sm:$0xff]  }
 0xce4   : > { %15096 = vmatpush3.bf16.msra.mxu0 %v17025_v40  ;;  %v17073_v40 = vld [vmem:[%s21352_s13 + $0x680] sm:$0xff]  }
 0xce5   : > { %15097 = vmatprep.subr.bf16.mxu0 %v17027_v22  ;;  %15122 = vmatpush3.bf16.msra.mxu1 %v17064_v46  ;;  %v11240_v22 = vpack.c.bf16 %v20698_v54, %v20698_v54  ;;  %v10897_v46 = vpack.c.bf16 %v20600_v11, %v20600_v11  ;;  %v17077_v11 = vld [vmem:[%s21352_s13 + $0x688] sm:$0xff]   ;;  %v17079_v54 = vld [vmem:[%s21352_s13 + $0x6d0] sm:$0xff]  }
 0xce6   : > { %15123 = vmatprep.subr.bf16.mxu1 %v17066_v49  ;;  %v17075_v49 = vld [vmem:[%s21352_s13 + $0x6c8] sm:$0xff]  }
 0xce8   : > { %15098 = vmatpush3.bf16.msra.mxu0 %v17029_v36  ;;  %v17112_v36 = vld [vmem:[%s21352_s13 + $0x710] sm:$0xff]  }
 0xce9   : > { %15099 = vmatprep.subr.bf16.mxu0 %v17031_v7  ;;  %15124 = vmatpush3.bf16.msra.mxu1 %v17068_v18  ;;  %v17114_v7 = vld [vmem:[%s21352_s13 + $0x758] sm:$0xff]  }
 0xcea   : > { %15153 = vmatprep.subr.bf16.mxu1 %v17070_v44  ;;  %v17116_v18 = vld [vmem:[%s21352_s13 + $0x718] sm:$0xff]   ;;  %v17118_v44 = vld [vmem:[%s21352_s13 + $0x760] sm:$0xff]  }
 0xcec   : > { %15100 = vmatpush3.bf16.msra.mxu0 %v17033_v24  ;;  %11189 = vmatmul.mubr.bf16.vlgmr.msra.gmra.mrb[8].mxu1 %v10895_v0  ;;  %v17081_v24 = vld [vmem:[%s21352_s13 + $0x690] sm:$0xff]   ;;  %v17122_v0 = vld [vmem:[%s21352_s13 + $0x768] sm:$0xff]  }
 0xced   : > { %15101 = vmatprep.subr.bf16.mxu0 %v17035_v60  ;;  %15154 = vmatpush3.bf16.msra.mxu1 %v17072_v13  ;;  %v17083_v60 = vld [vmem:[%s21352_s13 + $0x6d8] sm:$0xff]   ;;  %v17120_v13 = vld [vmem:[%s21352_s13 + $0x720] sm:$0xff]  }
 0xcee   : > { %15155 = vmatprep.subr.bf16.mxu1 %v17074_v51  ;;  %11530 = vmatprep.mubr.bf16.mxu1 %v11238_v37  ;;  %v17085_v51 = vld [vmem:[%s21352_s13 + $0x698] sm:$0xff]   ;;  %v17087_v37 = vld [vmem:[%s21352_s13 + $0x6e0] sm:$0xff]  }
 0xcf0   : > { %15102 = vmatpush3.bf16.msra.mxu0 %v17037_v21  ;;  %v17124_v21 = vld [vmem:[%s21352_s13 + $0x728] sm:$0xff]  }
 0xcf1   : > { %15131 = vmatprep.subr.bf16.mxu0 %v17039_v19  ;;  %15156 = vmatpush3.bf16.msra.mxu1 %v17076_v26  ;;  %v17126_v19 = vld [vmem:[%s21352_s13 + $0x770] sm:$0xff]  }
 0xcf2   : > { %15157 = vmatprep.subr.bf16.mxu1 %v17078_v48 }
 0xcf3   : > { %10887 = vmatmul.mubr.bf16.vlgmr.msra.gmra.mrb[128].mxu0 %v10555_v42  ;;  %v17089_v42 = vld [vmem:[%s21352_s13 + $0x6a0] sm:$0xff]  }
 0xcf4   : > { %15132 = vmatpush3.bf16.msra.mxu0 %v17041_v20  ;;  %11228 = vmatprep.mubr.bf16.mxu0 %v10898_v1  ;;  %v17128_v1 = vld [vmem:[%s21352_s13 + $0x730] sm:$0xff]  }
 0xcf5   : > { %15133 = vmatprep.subr.bf16.mxu0 %v17043_v58  ;;  %15158 = vmatpush3.bf16.msra.mxu1 %v17080_v55  ;;  %v17091_v55 = vld [vmem:[%s21352_s13 + $0x6e8] sm:$0xff]  }
 0xcf6   : > { %15159 = vmatprep.subr.bf16.mxu1 %v17082_v62 }
 0xcf8   : > { %15134 = vmatpush3.bf16.msra.mxu0 %v17045_v3  ;;  %v17130_v3 = vld [vmem:[%s21352_s13 + $0x778] sm:$0xff]  }
 0xcf9   : > { %15135 = vmatprep.subr.bf16.mxu0 %v17047_v8  ;;  %15160 = vmatpush3.bf16.msra.mxu1 %v17084_v39  ;;  %v17093_v8 = vld [vmem:[%s21352_s13 + $0x6a8] sm:$0xff]   ;;  %v17095_v39 = vld [vmem:[%s21352_s13 + $0x6f0] sm:$0xff]  }
 0xcfa   : > { %15161 = vmatprep.subr.bf16.mxu1 %v17086_v2  ;;  %v17132_v2 = vld [vmem:[%s21352_s13 + $0x738] sm:$0xff]  }
 0xcfc   : > { %15136 = vmatpush3.bf16.msra.mxu0 %v17049_v33  ;;  %v17134_v33 = vld [vmem:[%s21352_s13 + $0x840] sm:$0xff]  }
 0xcfd   : > { %15137 = vmatprep.subr.bf16.mxu0 %v17051_v32  ;;  %15162 = vmatpush3.bf16.msra.mxu1 %v17088_v52  ;;  %v17097_v32 = vld [vmem:[%s21352_s13 + $0x6b0] sm:$0xff]   ;;  %v17099_v52 = vld [vmem:[%s21352_s13 + $0x6f8] sm:$0xff]  }
 0xcfe   : > { %15163 = vmatprep.subr.bf16.mxu1 %v17090_v10  ;;  %v17136_v10 = vld [vmem:[%s21352_s13 + $0x800] sm:$0xff]  }
 0xd00   : > { %15138 = vmatpush3.bf16.msra.mxu0 %v17053_v16  ;;  %v11579_v16 = vpack.c.bf16 %v20506_v61, %v20506_v61  ;;  %v17140_v61 = vld [vmem:[%s21352_s13 + $0x808] sm:$0xff]  }
 0xd01   : > { %15139 = vmatprep.subr.bf16.mxu0 %v17055_v45  ;;  %15164 = vmatpush3.bf16.msra.mxu1 %v17092_v5  ;;  %v17138_v45 = vld [vmem:[%s21352_s13 + $0x848] sm:$0xff]   ;;  %v11922_v5 = vpack.c.bf16 %v20521_v6, %v20521_v6  ;;  %v17142_v6 = vld [vmem:[%s21352_s13 + $0x850] sm:$0xff]  }
 0xd02   : > { %15165 = vmatprep.subr.bf16.mxu1 %v17094_v57  ;;  %v17101_v57 = vld [vmem:[%s21352_s13 + $0x6b8] sm:$0xff]  }
 0xd04   : > { %15140 = vmatpush3.bf16.msra.mxu0 %v17057_v50  ;;  %v17103_v50 = vld [vmem:[%s21352_s13 + $0x7c0] sm:$0xff]  }
 0xd05   : > { %15141 = vmatprep.subr.bf16.mxu0 %v17059_v29  ;;  %15166 = vmatpush3.bf16.msra.mxu1 %v17096_v53  ;;  %v11239_v29 = vpack.c.bf16 %v20693_v14, %v20693_v14  ;;  %v17105_v53 = vld [vmem:[%s21352_s13 + $0x780] sm:$0xff]   ;;  %v17146_v14 = vld [vmem:[%s21352_s13 + $0x858] sm:$0xff]  }
 0xd06   : > { %15167 = vmatprep.subr.bf16.mxu1 %v17098_v47  ;;  %v17107_v47 = vld [vmem:[%s21352_s13 + $0x7c8] sm:$0xff]  }
 0xd08   : > { %15142 = vmatpush3.bf16.msra.mxu0 %v17061_v41  ;;  %v17144_v41 = vld [vmem:[%s21352_s13 + $0x810] sm:$0xff]  }
 0xd09   : > { %15143 = vmatprep.subr.bf16.mxu0 %v17063_v43  ;;  %15168 = vmatpush3.bf16.msra.mxu1 %v17100_v25  ;;  %v11582_v43 = vpack.c.bf16 %v20705_v9, %v20705_v9  ;;  %v17109_v25 = vld [vmem:[%s21352_s13 + $0x788] sm:$0xff]   ;;  %v17148_v9 = vld [vmem:[%s21352_s13 + $0x818] sm:$0xff]  }
 0xd0a   : > { %15197 = vmatprep.subr.bf16.mxu1 %v17102_v31  ;;  %v17111_v31 = vld [vmem:[%s21352_s13 + $0x7d0] sm:$0xff]  }
 0xd0c   : > { %15144 = vmatpush3.bf16.msra.mxu0 %v17065_v63  ;;  %11531 = vmatmul.mubr.bf16.vlgmr.msra.gmra.mrb[12].mxu1 %v11237_v30  ;;  %v17150_v63 = vld [vmem:[%s21352_s13 + $0x860] sm:$0xff]  }
 0xd0d   : > { %15145 = vmatprep.subr.bf16.mxu0 %v17067_v23  ;;  %15198 = vmatpush3.bf16.msra.mxu1 %v17104_v34  ;;  %v17113_v23 = vld [vmem:[%s21352_s13 + $0x790] sm:$0xff]   ;;  %v17115_v34 = vld [vmem:[%s21352_s13 + $0x7d8] sm:$0xff]   ;;  %v17152_v30 = vld [vmem:[%s21352_s13 + $0x820] sm:$0xff]  }
 0xd0e   : > { %15199 = vmatprep.subr.bf16.mxu1 %v17106_v27  ;;  %11872 = vmatprep.mubr.bf16.mxu1 %v11580_v28  ;;  %v17154_v27 = vld [vmem:[%s21352_s13 + $0x868] sm:$0xff]   ;;  %v17117_v28 = vld [vmem:[%s21352_s13 + $0x798] sm:$0xff]  }
 0xd10   : > { %15146 = vmatpush3.bf16.msra.mxu0 %v17069_v35  ;;  %v17119_v35 = vld [vmem:[%s21352_s13 + $0x7e0] sm:$0xff]  }
 0xd11   : > { %15175 = vmatprep.subr.bf16.mxu0 %v17071_v12  ;;  %15200 = vmatpush3.bf16.msra.mxu1 %v17108_v17  ;;  %v17156_v12 = vld [vmem:[%s21352_s13 + $0x828] sm:$0xff]   ;;  %v17158_v17 = vld [vmem:[%s21352_s13 + $0x870] sm:$0xff]  }
 0xd12   : > { %15201 = vmatprep.subr.bf16.mxu1 %v17110_v59 }
 0xd13   : > { %11229 = vmatmul.mubr.bf16.vlgmr.msra.gmra.mrb[132].mxu0 %v10897_v46 }
 0xd14   : > { %15176 = vmatpush3.bf16.msra.mxu0 %v17073_v40  ;;  %11570 = vmatprep.mubr.bf16.mxu0 %v11240_v22  ;;  %v17121_v22 = vld [vmem:[%s21352_s13 + $0x7a0] sm:$0xff]  }
 0xd15   : > { %15177 = vmatprep.subr.bf16.mxu0 %v17075_v49  ;;  %15202 = vmatpush3.bf16.msra.mxu1 %v17112_v36  ;;  %v17123_v36 = vld [vmem:[%s21352_s13 + $0x7e8] sm:$0xff]  }
 0xd16   : > { %15203 = vmatprep.subr.bf16.mxu1 %v17114_v7  ;;  %v17160_v7 = vld [vmem:[%s21352_s13 + $0x830] sm:$0xff]  }
 0xd18   : > { %15178 = vmatpush3.bf16.msra.mxu0 %v17077_v11 }
 0xd19   : > { %15179 = vmatprep.subr.bf16.mxu0 %v17079_v54  ;;  %15204 = vmatpush3.bf16.msra.mxu1 %v17116_v18  ;;  %v17162_v54 = vld [vmem:[%s21352_s13 + $0x878] sm:$0xff]   ;;  %v17125_v18 = vld [vmem:[%s21352_s13 + $0x7a8] sm:$0xff]  }
 0xd1a   : > { %15205 = vmatprep.subr.bf16.mxu1 %v17118_v44  ;;  %v17127_v44 = vld [vmem:[%s21352_s13 + $0x7f0] sm:$0xff]  }
 0xd1c   : > { %15180 = vmatpush3.bf16.msra.mxu0 %v17081_v24  ;;  %v17164_v24 = vld [vmem:[%s21352_s13 + $0x838] sm:$0xff]  }
 0xd1d   : > { %15181 = vmatprep.subr.bf16.mxu0 %v17083_v60  ;;  %15206 = vmatpush3.bf16.msra.mxu1 %v17120_v13 }
 0xd1e   : > { %15207 = vmatprep.subr.bf16.mxu1 %v17122_v0  ;;  %v14905_v26 = vpop.f32.mrb[244].mxu1  ;;  %v17129_v0 = vld [vmem:[%s21352_s13 + $0x7b0] sm:$0xff]  }
 0xd1f   : > { %v14906_v48 = vpop.f32.mrb[245].mxu1 }
 0xd20   : > { %15182 = vmatpush3.bf16.msra.mxu0 %v17085_v51  ;;  %v21139_v20 = vadd.f32 %v14906_v48, %v14905_v26  ;;  %v14908_v58 = vpop.f32.mrb[246].mxu1  ;;  %v11921_v26 = vpack.c.bf16 %v20516_v15, %v20516_v15  ;;  %v11581_v15 = vpack.c.bf16 %v20700_v4, %v20700_v4  ;;  %v17143_v4 = vld [vmem:[%s21352_s13 + $0x8d0] sm:$0xff]  }
 0xd21   : > { %15183 = vmatprep.subr.bf16.mxu0 %v17087_v37  ;;  %15208 = vmatpush3.bf16.msra.mxu1 %v17124_v21  ;;  %v14909_v62 = vpop.f32.mrb[247].mxu1  ;;  %v17131_v21 = vld [vmem:[%s21352_s13 + $0x7f8] sm:$0xff]  }
 0xd22   : > { %15209 = vmatprep.subr.bf16.mxu1 %v17126_v19  ;;  %v11924_v62 = vpack.c.bf16 %v20718_v56, %v20718_v56  ;;  %v17147_v56 = vld [vmem:[%s21352_s13 + $0x8d8] sm:$0xff]  }
 0xd24   : > { %15184 = vmatpush3.bf16.msra.mxu0 %v17089_v42  ;;  %v17133_v42 = vld [vmem:[%s21352_s13 + $0x7b8] sm:$0xff]  }
 0xd25   : > { %15185 = vmatprep.subr.bf16.mxu0 %v17091_v55  ;;  %15210 = vmatpush3.bf16.msra.mxu1 %v17128_v1  ;;  %v17135_v55 = vld [vmem:[%s21352_s13 + $0x8c0] sm:$0xff]  }
 0xd26   : > { %15211 = vmatprep.subr.bf16.mxu1 %v17130_v3  ;;  %v17137_v1 = vld [vmem:[%s21352_s13 + $0x880] sm:$0xff]   ;;  %v17141_v3 = vld [vmem:[%s21352_s13 + $0x888] sm:$0xff]  }
 0xd28   : > { %15186 = vmatpush3.bf16.msra.mxu0 %v17093_v8  ;;  %v17145_v8 = vld [vmem:[%s21352_s13 + $0x890] sm:$0xff]  }
 0xd29   : > { %15187 = vmatprep.subr.bf16.mxu0 %v17095_v39  ;;  %15212 = vmatpush3.bf16.msra.mxu1 %v17132_v2  ;;  %v17149_v39 = vld [vmem:[%s21352_s13 + $0x898] sm:$0xff]   ;;  %v17151_v2 = vld [vmem:[%s21352_s13 + $0x8e0] sm:$0xff]  }
 0xd2a   : > { %15241 = vmatprep.subr.bf16.mxu1 %v17134_v33 }
 0xd2c   : > { %15188 = vmatpush3.bf16.msra.mxu0 %v17097_v32  ;;  %11873 = vmatmul.mubr.bf16.vlgmr.msra.gmra.mrb[16].mxu1 %v11579_v16  ;;  %v17153_v32 = vld [vmem:[%s21352_s13 + $0x8a0] sm:$0xff]  }
 0xd2d   : > { %15189 = vmatprep.subr.bf16.mxu0 %v17099_v52  ;;  %15242 = vmatpush3.bf16.msra.mxu1 %v17136_v10  ;;  %v17155_v10 = vld [vmem:[%s21352_s13 + $0x8e8] sm:$0xff]  }
 0xd2e   : > { %15243 = vmatprep.subr.bf16.mxu1 %v17138_v45  ;;  %12214 = vmatprep.mubr.bf16.mxu1 %v11922_v5 }
 0xd30   : > { %15190 = vmatpush3.bf16.msra.mxu0 %v17101_v57  ;;  %v17157_v57 = vld [vmem:[%s21352_s13 + $0x8a8] sm:$0xff]  }
 0xd31   : > { %15219 = vmatprep.subr.bf16.mxu0 %v17103_v50  ;;  %15244 = vmatpush3.bf16.msra.mxu1 %v17140_v61  ;;  %v17159_v50 = vld [vmem:[%s21352_s13 + $0x8f0] sm:$0xff]  }
 0xd32   : > { %15245 = vmatprep.subr.bf16.mxu1 %v17142_v6 }
 0xd33   : > { %11571 = vmatmul.mubr.bf16.vlgmr.msra.gmra.mrb[136].mxu0 %v11239_v29  ;;  %v17161_v29 = vld [vmem:[%s21352_s13 + $0x8b0] sm:$0xff]  }
 0xd34   : > { %15220 = vmatpush3.bf16.msra.mxu0 %v17105_v53  ;;  %11912 = vmatprep.mubr.bf16.mxu0 %v11582_v43 }
 0xd35   : > { %15221 = vmatprep.subr.bf16.mxu0 %v17107_v47  ;;  %15246 = vmatpush3.bf16.msra.mxu1 %v17144_v41  ;;  %v17163_v41 = vld [vmem:[%s21352_s13 + $0x8f8] sm:$0xff]  }
 0xd36   : > { %15247 = vmatprep.subr.bf16.mxu1 %v17146_v14 }
 0xd38   : > { %15222 = vmatpush3.bf16.msra.mxu0 %v17109_v25  ;;  %v17165_v25 = vld [vmem:[%s21352_s13 + $0x8b8] sm:$0xff]  }
 0xd39   : > { %15223 = vmatprep.subr.bf16.mxu0 %v17111_v31  ;;  %15248 = vmatpush3.bf16.msra.mxu1 %v17148_v9  ;;  %v11923_v31 = vpack.c.bf16 %v20713_v38, %v20713_v38 }
 0xd3a   : > { %15249 = vmatprep.subr.bf16.mxu1 %v17150_v63 }
 0xd3c   : > { %15224 = vmatpush3.bf16.msra.mxu0 %v17113_v23 }
 0xd3d   : > { %15225 = vmatprep.subr.bf16.mxu0 %v17115_v34  ;;  %15250 = vmatpush3.bf16.msra.mxu1 %v17152_v30 }
 0xd3e   : > { %15251 = vmatprep.subr.bf16.mxu1 %v17154_v27  ;;  %v14949_v59 = vpop.f32.mrb[248].mxu1 }
 0xd3f   : > { %v14950_v40 = vpop.f32.mrb[249].mxu1 }
 0xd40   : > { %15226 = vmatpush3.bf16.msra.mxu0 %v17117_v28  ;;  %v14951_v46 = vadd.f32 %v14950_v40, %v14949_v59  ;;  %v14952_v49 = vpop.f32.mrb[250].mxu1 }
 0xd41   : > { %15227 = vmatprep.subr.bf16.mxu0 %v17119_v35  ;;  %15252 = vmatpush3.bf16.msra.mxu1 %v17156_v12  ;;  %v14953_v11 = vpop.f32.mrb[251].mxu1 }
 0xd42   : > { %15253 = vmatprep.subr.bf16.mxu1 %v17158_v17 }
 0xd44   : > { %15228 = vmatpush3.bf16.msra.mxu0 %v17121_v22 }
 0xd45   : > { %15229 = vmatprep.subr.bf16.mxu0 %v17123_v36  ;;  %15254 = vmatpush3.bf16.msra.mxu1 %v17160_v7 }
 0xd46   : > { %15255 = vmatprep.subr.bf16.mxu1 %v17162_v54  ;;  %v14927_v60 = vpop.f32.mrb[112].mxu0 }
 0xd47   : > { %v14928_v13 = vpop.f32.mrb[113].mxu0 }
 0xd48   : > { %15230 = vmatpush3.bf16.msra.mxu0 %v17125_v18  ;;  %v14929_v51 = vadd.f32 %v14928_v13, %v14927_v60  ;;  %v14930_v37 = vpop.f32.mrb[114].mxu0 }
 0xd49   : > { %15231 = vmatprep.subr.bf16.mxu0 %v17127_v44  ;;  %15256 = vmatpush3.bf16.msra.mxu1 %v17164_v24  ;;  %v14931_v19 = vpop.f32.mrb[115].mxu0 }
 0xd4a   : > { %v9592_v48 = vadd.f32 %v14929_v51, %v21139_v20  ;;  %v17139_v20 = vld [vmem:[%s21352_s13 + $0x8c8] sm:$0xff]  }
 0xd4c   : > { %15232 = vmatpush3.bf16.msra.mxu0 %v17129_v0  ;;  %12215 = vmatmul.mubr.bf16.vlgmr.msra.gmra.mrb[20].mxu1 %v11921_v26  ;;  %v9824_v58 = vadd.f32 %v14951_v46, %v9592_v48 }
 0xd4d   : > { %15233 = vmatprep.subr.bf16.mxu0 %v17131_v21 }
 0xd50   : > { %15234 = vmatpush3.bf16.msra.mxu0 %v17133_v42 }
 0xd51   : > { %15263 = vmatprep.subr.bf16.mxu0 %v17135_v55 }
 0xd53   : > { %11913 = vmatmul.mubr.bf16.vlgmr.msra.gmra.mrb[140].mxu0 %v11581_v15 }
 0xd54   : > { %15264 = vmatpush3.bf16.msra.mxu0 %v17137_v1  ;;  %12254 = vmatprep.mubr.bf16.mxu0 %v11924_v62 }
 0xd55   : > { %15265 = vmatprep.subr.bf16.mxu0 %v17139_v20 }
 0xd58   : > { %15266 = vmatpush3.bf16.msra.mxu0 %v17141_v3 }
 0xd59   : > { %15267 = vmatprep.subr.bf16.mxu0 %v17143_v4 }
 0xd5c   : > { %15268 = vmatpush3.bf16.msra.mxu0 %v17145_v8 }
 0xd5d   : > { %15269 = vmatprep.subr.bf16.mxu0 %v17147_v56 }
 0xd5f   : > { %v14993_v33 = vpop.f32.mrb[252].mxu1 }
 0xd60   : > { %15270 = vmatpush3.bf16.msra.mxu0 %v17149_v39  ;;  %v14994_v52 = vpop.f32.mrb[253].mxu1 }
 0xd61   : > { %15271 = vmatprep.subr.bf16.mxu0 %v17151_v2  ;;  %v14995_v16 = vadd.f32 %v14994_v52, %v14993_v33  ;;  %v14996_v45 = vpop.f32.mrb[254].mxu1 }
 0xd62   : > { %v14997_v5 = vpop.f32.mrb[255].mxu1 }
 0xd64   : > { %15272 = vmatpush3.bf16.msra.mxu0 %v17153_v32 }
 0xd65   : > { %15273 = vmatprep.subr.bf16.mxu0 %v17155_v10 }
 0xd66   : > { %v14971_v61 = vpop.f32.mrb[116].mxu0 }
 0xd67   : > { %v14972_v6 = vpop.f32.mrb[117].mxu0 }
 0xd68   : > { %15274 = vmatpush3.bf16.msra.mxu0 %v17157_v57  ;;  %v14973_v53 = vadd.f32 %v14972_v6, %v14971_v61  ;;  %v14974_v47 = vpop.f32.mrb[118].mxu0 }
 0xd69   : > { %15275 = vmatprep.subr.bf16.mxu0 %v17159_v50  ;;  %v14975_v43 = vpop.f32.mrb[119].mxu0 }
 0xd6a   : > { %v9864_v14 = vadd.f32 %v14973_v53, %v9824_v58 }
 0xd6c   : > { %15276 = vmatpush3.bf16.msra.mxu0 %v17161_v29 }
 0xd6d   : > { %15277 = vmatprep.subr.bf16.mxu0 %v17163_v41 }
 0xd70   : > { %15278 = vmatpush3.bf16.msra.mxu0 %v17165_v25 }
 0xd73   : > { %12255 = vmatmul.mubr.bf16.vlgmr.msra.gmra.mrb[144].mxu0 %v11923_v31 }
 0xd7f   : > { %v15037_v9 = vpop.f32.mrb[0].mxu1 }
 0xd80   : > { %v15038_v63 = vpop.f32.mrb[1].mxu1 }
 0xd81   : > { %v15039_v23 = vadd.f32 %v15038_v63, %v15037_v9  ;;  %v15040_v34 = vpop.f32.mrb[2].mxu1 }
 0xd82   : > { %v15041_v30 = vpop.f32.mrb[3].mxu1 }
 0xd86   : > { %v15015_v27 = vpop.f32.mrb[120].mxu0 }
 0xd87   : > { %v15016_v28 = vpop.f32.mrb[121].mxu0 }
 0xd88   : > { %v15017_v35 = vadd.f32 %v15016_v28, %v15015_v27  ;;  %v15018_v12 = vpop.f32.mrb[122].mxu0 }
 0xd89   : > { %v15019_v17 = vpop.f32.mrb[123].mxu0 }
 0xd8a   : > { %v10205_v59 = vadd.f32 %v15017_v35, %v14995_v16 }
 0xd8c   : > { %v10210_v40 = vadd.f32 %v10205_v59, %v9864_v14 }
 0xd9f   : > { %v15081_v22 = vpop.f32.mrb[4].mxu1 }
 0xda0   : > { %v15082_v46 = vpop.f32.mrb[5].mxu1 }
 0xda1   : > { %v15083_v49 = vadd.f32 %v15082_v46, %v15081_v22  ;;  %v15084_v36 = vpop.f32.mrb[6].mxu1 }
 0xda2   : > { %v15085_v7 = vpop.f32.mrb[7].mxu1 }
 0xda6   : > { %v15059_v11 = vpop.f32.mrb[124].mxu0 }
 0xda7   : > { %v15060_v38 = vpop.f32.mrb[125].mxu0 }
 0xda8   : > { %v15061_v54 = vadd.f32 %v15060_v38, %v15059_v11  ;;  %v15062_v18 = vpop.f32.mrb[126].mxu0 }
 0xda9   : > { %v15063_v44 = vpop.f32.mrb[127].mxu0 }
 0xdaa   : > { %v10547_v24 = vadd.f32 %v15061_v54, %v15039_v23 }
 0xdac   : > { %v10552_v60 = vadd.f32 %v10547_v24, %v10210_v40 }
 0xdbf   : > { %v15125_v13 = vpop.f32.mrb[8].mxu1 }
 0xdc0   : > { %v15126_v0 = vpop.f32.mrb[9].mxu1 }
 0xdc1   : > { %v15127_v51 = vadd.f32 %v15126_v0, %v15125_v13  ;;  %v15128_v37 = vpop.f32.mrb[10].mxu1 }
 0xdc2   : > { %v15129_v21 = vpop.f32.mrb[11].mxu1 }
 0xdc6   : > { %v15103_v19 = vpop.f32.mrb[128].mxu0 }
 0xdc7   : > { %v15104_v26 = vpop.f32.mrb[129].mxu0 }
 0xdc8   : > { %v15105_v48 = vadd.f32 %v15104_v26, %v15103_v19  ;;  %v15106_v42 = vpop.f32.mrb[130].mxu0 }
 0xdc9   : > { %v15107_v58 = vpop.f32.mrb[131].mxu0 }
 0xdca   : > { %v10889_v55 = vadd.f32 %v15105_v48, %v15083_v49  ;;  %v14782_v49 = vld [vmem:[%s21353_s14] ss:$0 sm:$0xff] }
 0xdcc   : > { %v10894_v1 = vadd.f32 %v10889_v55, %v10552_v60 }
 0xddf   : > { %v15169_v15 = vpop.f32.mrb[12].mxu1 }
 0xde0   : > { %v15170_v20 = vpop.f32.mrb[13].mxu1 }
 0xde1   : > { %v15171_v62 = vadd.f32 %v15170_v20, %v15169_v15  ;;  %v15172_v3 = vpop.f32.mrb[14].mxu1 }
 0xde2   : > { %v15173_v4 = vpop.f32.mrb[15].mxu1 }
 0xde6   : > { %v15147_v8 = vpop.f32.mrb[132].mxu0 }
 0xde7   : > { %v15148_v56 = vpop.f32.mrb[133].mxu0 }
 0xde8   : > { %v15149_v39 = vadd.f32 %v15148_v56, %v15147_v8  ;;  %v15150_v2 = vpop.f32.mrb[134].mxu0 }
 0xde9   : > { %v15151_v33 = vpop.f32.mrb[135].mxu0 }
 0xdea   : > { %v11231_v32 = vadd.f32 %v15149_v39, %v15127_v51 }
 0xdec   : > { %v11236_v52 = vadd.f32 %v11231_v32, %v10894_v1 }
 0xdff   : > { %v15213_v10 = vpop.f32.mrb[16].mxu1 }
 0xe00   : > { %v15214_v16 = vpop.f32.mrb[17].mxu1 }
 0xe01   : > { %v15215_v45 = vadd.f32 %v15214_v16, %v15213_v10  ;;  %v15216_v5 = vpop.f32.mrb[18].mxu1 }
 0xe02   : > { %v15217_v57 = vpop.f32.mrb[19].mxu1 }
 0xe06   : > { %v15191_v50 = vpop.f32.mrb[136].mxu0 }
 0xe07   : > { %v15192_v61 = vpop.f32.mrb[137].mxu0 }
 0xe08   : > { %v15193_v6 = vadd.f32 %v15192_v61, %v15191_v50  ;;  %v15194_v29 = vpop.f32.mrb[138].mxu0 }
 0xe09   : > { %v15195_v53 = vpop.f32.mrb[139].mxu0 }
 0xe0a   : > { %v11573_v47 = vadd.f32 %v15193_v6, %v15171_v62 }
 0xe0c   : > { %v11578_v41 = vadd.f32 %v11573_v47, %v11236_v52 }
 0xe1f   : > { %v15257_v43 = vpop.f32.mrb[20].mxu1 }
 0xe20   : > { %v15258_v14 = vpop.f32.mrb[21].mxu1 }
 0xe21   : > { %v15259_v25 = vadd.f32 %v15258_v14, %v15257_v43  ;;  %v15260_v31 = vpop.f32.mrb[22].mxu1 }
 0xe22   : > { %v15261_v9 = vpop.f32.mrb[23].mxu1 }
 0xe26   : > { %v15235_v63 = vpop.f32.mrb[140].mxu0 }
 0xe27   : > { %v15236_v23 = vpop.f32.mrb[141].mxu0 }
 0xe28   : > { %v15237_v34 = vadd.f32 %v15236_v23, %v15235_v63  ;;  %v15238_v30 = vpop.f32.mrb[142].mxu0 }
 0xe29   : > { %v15239_v27 = vpop.f32.mrb[143].mxu0 }
 0xe2a   : > { %v11915_v28 = vadd.f32 %v15237_v34, %v15215_v45 }
 0xe2c   : > { %v11920_v35 = vadd.f32 %v11915_v28, %v11578_v41 }
 0xe46   : > { %v15279_v12 = vpop.f32.mrb[144].mxu0 }
 0xe47   : > { %v15280_v17 = vpop.f32.mrb[145].mxu0 }
 0xe48   : > { %v15281_v59 = vadd.f32 %v15280_v17, %v15279_v12  ;;  %v15282_v40 = vpop.f32.mrb[146].mxu0 }
 0xe49   : > { %v15283_v22 = vpop.f32.mrb[147].mxu0 }
 0xe4a   : > { %v12257_v46 = vadd.f32 %v15281_v59, %v15259_v25 }
 0xe4c   : > { %v12262_v36 = vadd.f32 %v12257_v46, %v11920_v35 }
 0xe4e   : > { %v12270_v7 = vadd.f32 %v14782_v49, %v12262_v36 }
 0xe50   : > { %12271 = vst [vmem:[%s492_s23] sm:$0xf] %v12270_v7 }
 0xe51 PF: > { %s25_s18 = sadd.s32 1, %s17186_s18  }
 0xe52   : > { %p22_p4 = scmp.ge.s32.totalorder %s25_s18, 4  }
 0xe54   :  { %24 = sbr.rel (!%p22_p4) target bundleno = 1 (0x1), region = 142 }

</bundles_post_ra>
